<compile_context>
chip_gen: v5e
topology: v5e:2x2
jax: 0.10.0
libtpu: 0.0.40
codegen_flags: <defaults>
</compile_context>

<pallas_src>
import functools

import jax
import jax.numpy as jnp
import numpy as np
from jax import lax
from jax.experimental import pallas as pl
from jax.experimental.pallas import tpu as pltpu

BN_EPS = 1e-5
LANE = 128


# ---------------------------------------------------------------------------
# small helpers
# ---------------------------------------------------------------------------
def _round_up(x, m):
    return ((x + m - 1) // m) * m


def _pick_m_tile(m, max_tile=2048):
    for t in (2048, 1024, 512, 256, 128, 64, 32, 16, 8):
        if t <= max_tile and m % t == 0:
            return t
    return m


def _pick_row_tile(ho, wo, max_rows=512):
    # Largest divisor of Ho with (rows * Wo) <= max_rows so the f32 accumulator
    # stays small.  TODO(synk): for tiny late-stage spatial dims (Ho=Wo=7) fold
    # the batch dim into M instead, so M stays >= 256 and sublane-aligned.
    best = 1
    for tr in range(1, ho + 1):
        if ho % tr == 0 and tr * wo <= max_rows:
            best = tr
    return best


def _vmem_cap_bytes():
    try:
        return int(pltpu.get_tpu_info().vmem_capacity_bytes)
    except Exception:
        return 64 * 1024 * 1024          # v7x per-TC VMEM (most restrictive)


# ---------------------------------------------------------------------------
# Kernel 1: conv (implicit im2col, kw taps folded into K) + per-tile BN stats.
# Optional fused "prologue" = previous layer's BN-affine + ReLU, applied to the
# whole image once per n while it is copied into the padded VMEM scratch.
# ---------------------------------------------------------------------------
def _make_conv_kernel(*, kh, kw, stride, pad, ph, pwl, tr, wo, hin, win,
                      cpin, cpout, compute_dtype, has_prologue, use_scratch):
    s = stride
    ib = (tr - 1) * s + kh               # padded-image rows per row block
    mrows = tr * wo
    kcat = kw * cpin
    wtot = pwl + win + pad               # scratch width (aligned left pad)
    base_col = pwl - pad                 # scratch column of padded-coord col 0

    def kernel(*refs):
        it = iter(refs)
        x_ref = next(it)
        w_ref = next(it)
        ps_ref = next(it) if has_prologue else None
        psh_ref = next(it) if has_prologue else None
        y_ref = next(it)
        sum_ref = next(it)
        m2_ref = next(it)
        pimg_ref = next(it) if use_scratch else None

        rb = pl.program_id(1)

        if use_scratch:
            # Build the padded (and prologue-transformed) image once per image.
            @pl.when(rb == 0)
            def _():
                xv = x_ref[...]                               # (hin, win, cpin)
                if has_prologue:
                    xf = xv.astype(jnp.float32)
                    ps = ps_ref[...].reshape(1, 1, cpin)
                    psh = psh_ref[...].reshape(1, 1, cpin)
                    xv = jnp.maximum(xf * ps + psh, 0.0)      # BN1 affine+ReLU
                xv = xv.astype(compute_dtype)
                if pad:
                    # Zero halo; interior store is tile-aligned (pwl is a
                    # multiple of 16, H offset is the outer dim).
                    pimg_ref[...] = jnp.zeros((hin + 2 * ph, wtot, cpin),
                                              compute_dtype)
                    pimg_ref[ph:ph + hin, pwl:pwl + win, :] = xv
                else:
                    pimg_ref[...] = xv

        src = pimg_ref if use_scratch else x_ref
        r0 = pl.multiple_of(rb * (tr * s), tr * s)

        # Hoisted dx shifts (+ W decimation), concatenated along lanes so the
        # tap loop below is only kh matmuls with K = kw*cpin.
        slabs = []
        for dx in range(kw):
            c0 = base_col + dx
            if s == 1:
                slabs.append(src[pl.ds(r0, ib), c0:c0 + wo, :])
            else:
                slabs.append(src[pl.ds(r0, ib), pl.ds(c0, wo, s), :])
        xcat = slabs[0] if kw == 1 else jnp.concatenate(slabs, axis=-1)
        # xcat: (ib, wo, kw*cpin)

        acc = None
        for dy in range(kh):                      # unrolled: kh matmuls
            if kh == 1 and s == 1:
                tap = xcat
            elif s == 1:
                tap = xcat[dy:dy + tr]
            else:
                tap = lax.slice(xcat, (dy, 0, 0),
                                (dy + (tr - 1) * s + 1, wo, kcat), (s, 1, 1))
            part = jnp.dot(tap.reshape(mrows, kcat), w_ref[dy],
                           preferred_element_type=jnp.float32)
            acc = part if acc is None else acc + part

        y_ref[...] = acc.astype(y_ref.dtype)      # lane-dense (mrows, cpout)

        # Per-tile partial BatchNorm stats: channel sum + centered M2
        # (merged with Chan's parallel-variance formula in the wrapper).
        tsum = jnp.sum(acc, axis=0, keepdims=True)
        tmean = tsum * (1.0 / mrows)
        d = acc - tmean
        sum_ref[...] = tsum
        m2_ref[...] = jnp.sum(d * d, axis=0, keepdims=True)

    return kernel


def conv2d_with_stats(x, w_dy, *, kh, kw, stride=1, pad=0, prologue=None,
                      store_dtype=jnp.float32, compute_dtype=jnp.float32):
    """Implicit-im2col conv + per-tile BatchNorm partial stats.

    x:     (N, Hin, Win, Cpin)  spatially UNPADDED, channels lane-padded.
    w_dy:  (kh, kw*Cpin, Cpout) kw taps folded into K, channels lane-padded.
    prologue: optional (scale, shift), each (1, Cpin) f32 — input is
              transformed as relu(x*scale + shift) before padding / matmuls.
    Returns y (N, Ho*Wo, Cpout) in store_dtype plus per-tile partial stats
    (sum, centered-M2), each (N, nrb, 1, Cpout) f32.
    """
    n, hin, win, cpin = x.shape
    cpout = w_dy.shape[-1]
    ho = (hin + 2 * pad - kh) // stride + 1
    wo = (win + 2 * pad - kw) // stride + 1
    tr = _pick_row_tile(ho, wo)
    nrb = ho // tr
    mrows = tr * wo
    has_pro = prologue is not None
    use_scratch = (pad > 0) or has_pro or (x.dtype != jnp.dtype(compute_dtype))
    ph = pad
    pwl = _round_up(pad, 16) if pad else 0       # tile-aligned left W pad
    wtot = pwl + win + pad

    in_specs = [
        # Whole (unpadded) image per n; re-DMA'd only when n changes.
        pl.BlockSpec((None, hin, win, cpin), lambda i, j: (i, 0, 0, 0)),
        # All kh weight slabs resident.
        # TODO(synk): single-buffer via pipeline_mode=pl.Buffered(1) and add a
        # Cout-block grid axis for real layers with Cout >= 256 (v6e/v7x MXU
        # N=256, v7x 64 MiB VMEM).
        pl.BlockSpec((kh, kw * cpin, cpout), lambda i, j: (0, 0, 0)),
    ]
    args = [x, w_dy]
    if has_pro:
        in_specs += [pl.BlockSpec((1, cpin), lambda i, j: (0, 0)),
                     pl.BlockSpec((1, cpin), lambda i, j: (0, 0))]
        args += [prologue[0], prologue[1]]

    out_shape = (
        jax.ShapeDtypeStruct((n, ho * wo, cpout), store_dtype),
        jax.ShapeDtypeStruct((n, nrb, 1, cpout), jnp.float32),
        jax.ShapeDtypeStruct((n, nrb, 1, cpout), jnp.float32),
    )
    out_specs = (
        pl.BlockSpec((None, mrows, cpout), lambda i, j: (i, j, 0)),
        pl.BlockSpec((None, None, 1, cpout), lambda i, j: (i, j, 0, 0)),
        pl.BlockSpec((None, None, 1, cpout), lambda i, j: (i, j, 0, 0)),
    )
    scratch_shapes = ([pltpu.VMEM((hin + 2 * ph, wtot, cpin), compute_dtype)]
                      if use_scratch else [])

    # Explicit VMEM budget (double-buffered blocks + scratch + temporaries),
    # capped at 75% of physical VMEM so it also fits v7x's 64 MiB per TC.
    sb = jnp.dtype(store_dtype).itemsize
    xb = jnp.dtype(x.dtype).itemsize
    cb = jnp.dtype(compute_dtype).itemsize
    kcat = kw * cpin
    ib = (tr - 1) * stride + kh
    est = (2 * hin * win * cpin * xb
           + 2 * kh * kcat * cpout * cb
           + 2 * mrows * cpout * sb
           + 8 * cpout * 4
           + ((hin + 2 * ph) * wtot * cpin * cb if use_scratch else 0)
           + 2 * ib * wo * kcat * cb            # dx slabs + lane concat
           + 2 * mrows * kcat * cb              # tap staging
           + 4 * mrows * cpout * 4)             # acc + stats temporaries
    vmem_limit = int(min(max(2 * est, 24 * 1024 * 1024),
                         int(0.75 * _vmem_cap_bytes())))

    kernel = _make_conv_kernel(
        kh=kh, kw=kw, stride=stride, pad=pad, ph=ph, pwl=pwl, tr=tr, wo=wo,
        hin=hin, win=win, cpin=cpin, cpout=cpout, compute_dtype=compute_dtype,
        has_prologue=has_pro, use_scratch=use_scratch)

    return pl.pallas_call(
        kernel,
        out_shape=out_shape,
        grid=(n, nrb),
        in_specs=in_specs,
        out_specs=out_specs,
        scratch_shapes=scratch_shapes,
        compiler_params=pltpu.CompilerParams(
            # Row-block axis is sequential only when the per-image scratch
            # carries state across row blocks.
            dimension_semantics=(("parallel", "arbitrary") if use_scratch
                                 else ("parallel", "parallel")),
            vmem_limit_bytes=vmem_limit),
    )(*args)


# ---------------------------------------------------------------------------
# Kernel 2: fused BN2-affine + shortcut-BN-affine + residual add + ReLU
# ---------------------------------------------------------------------------
def _bn_add_relu_kernel(y_ref, s2_ref, b2_ref, sc_ref, ss_ref, bs_ref, o_ref):
    y = y_ref[...].astype(jnp.float32)
    sc = sc_ref[...].astype(jnp.float32)
    out = (y * s2_ref[...] + b2_ref[...]) + (sc * ss_ref[...] + bs_ref[...])
    o_ref[...] = jnp.maximum(out, 0.0).astype(o_ref.dtype)


def bn_add_relu(y, scale2, shift2, sc, scale_s, shift_s, out_dtype):
    m, cp = y.shape
    tm = _pick_m_tile(m)
    vec = lambda v: v.reshape(1, cp).astype(jnp.float32)
    row_spec = pl.BlockSpec((tm, cp), lambda i: (i, 0))
    ch_spec = pl.BlockSpec((1, cp), lambda i: (0, 0))
    alias = {0: 0} if y.dtype == jnp.dtype(out_dtype) else {}
    return pl.pallas_call(
        _bn_add_relu_kernel,
        out_shape=jax.ShapeDtypeStruct((m, cp), out_dtype),
        grid=(m // tm,),
        in_specs=[row_spec, ch_spec, ch_spec, row_spec, ch_spec, ch_spec],
        out_specs=row_spec,
        input_output_aliases=alias,           # reuse y's HBM buffer
        compiler_params=pltpu.CompilerParams(
            dimension_semantics=("parallel",)),
    )(y, vec(scale2), vec(shift2), sc, vec(scale_s), vec(shift_s))


# ---------------------------------------------------------------------------
# JAX-side glue: stats merge, lane-padding, weight repack, full block forward
# ---------------------------------------------------------------------------
def _combine_stats(psum, pm2, m_total):
    """Chan parallel-variance merge of per-tile (sum, centered-M2) partials."""
    cp = psum.shape[-1]
    ps = psum.reshape(-1, cp)
    pm = pm2.reshape(-1, cp)
    cnt = m_total / ps.shape[0]                       # elements per tile
    mean = jnp.sum(ps, axis=0) / m_total
    tile_mean = ps / cnt
    m2 = jnp.sum(pm, axis=0) + cnt * jnp.sum((tile_mean - mean) ** 2, axis=0)
    var = m2 / m_total                                # biased (training mode)
    return mean, var


def _pad_vec(v, cp):
    return jnp.pad(v.astype(jnp.float32), (0, cp - v.shape[0]))


def _weight_dy(w, cpin, cpout, compute_dtype):
    # (Cout, Cin, kh, kw) -> (kh, kw*Cpin, Cpout): kw taps folded into K,
    # channels zero-padded to lane multiples.
    cout, cin, kh, kw = w.shape
    t = jnp.transpose(w, (2, 3, 1, 0))                 # (kh, kw, Cin, Cout)
    t = jnp.pad(t, ((0, 0), (0, 0), (0, cpin - cin), (0, cpout - cout)))
    return t.reshape(kh, kw * cpin, cpout).astype(compute_dtype)


def basic_block_forward(x_nchw, p, stride, *, compute_dtype=jnp.float32):
    """Training-mode BasicBlock forward (conv biases drop out exactly in BN)."""
    store_dtype = compute_dtype
    x = jnp.transpose(x_nchw, (0, 2, 3, 1)).astype(jnp.float32)   # NCHW -> NHWC
    n, h, w, cin = x.shape
    cout = p["w1"].shape[0]
    cpi = _round_up(cin, LANE)
    cpo = _round_up(cout, LANE)
    x_lp = jnp.pad(x, ((0, 0), (0, 0), (0, 0),
                       (0, cpi - cin))).astype(store_dtype)       # lane-pad C

    # ---- conv1 (3x3, stride, pad 1; halo in-kernel) + BN1 batch stats -------
    w1 = _weight_dy(p["w1"], cpi, cpo, compute_dtype)
    y1, s1, m21 = conv2d_with_stats(x_lp, w1, kh=3, kw=3, stride=stride, pad=1,
                                    store_dtype=store_dtype,
                                    compute_dtype=compute_dtype)
    ho = (h + 2 - 3) // stride + 1
    wo = (w + 2 - 3) // stride + 1
    m_total = n * ho * wo
    mean1, var1 = _combine_stats(s1, m21, m_total)
    scale1 = _pad_vec(p["g1"], cpo) * lax.rsqrt(var1 + BN_EPS)
    shift1 = _pad_vec(p["be1"], cpo) - mean1 * scale1

    # ---- conv2 (3x3, stride 1, pad 1): BN1+ReLU fused as its input prologue;
    # the halo is built in-kernel AFTER the ReLU, so it is exactly zero --------
    w2 = _weight_dy(p["w2"], cpo, cpo, compute_dtype)
    y2, s2, m22 = conv2d_with_stats(
        y1.reshape(n, ho, wo, cpo), w2, kh=3, kw=3, stride=1, pad=1,
        prologue=(scale1.reshape(1, cpo), shift1.reshape(1, cpo)),
        store_dtype=store_dtype, compute_dtype=compute_dtype)
    mean2, var2 = _combine_stats(s2, m22, m_total)
    scale2 = _pad_vec(p["g2"], cpo) * lax.rsqrt(var2 + BN_EPS)
    shift2 = _pad_vec(p["be2"], cpo) - mean2 * scale2

    # ---- shortcut: 1x1 conv (stride decimation in-kernel) + BN, or identity --
    if "ws" in p:
        ws = _weight_dy(p["ws"], cpi, cpo, compute_dtype)
        ysc, ssc, m2sc = conv2d_with_stats(x_lp, ws, kh=1, kw=1, stride=stride,
                                           pad=0, store_dtype=store_dtype,
                                           compute_dtype=compute_dtype)
        mean_s, var_s = _combine_stats(ssc, m2sc, m_total)
        scale_s = _pad_vec(p["gs"], cpo) * lax.rsqrt(var_s + BN_EPS)
        shift_s = _pad_vec(p["bes"], cpo) - mean_s * scale_s
        sc_flat = ysc.reshape(m_total, cpo)
    else:  # identity shortcut (cin == cout, stride == 1)
        sc_flat = x_lp.reshape(m_total, cpo)
        scale_s = jnp.ones((cpo,), jnp.float32)
        shift_s = jnp.zeros((cpo,), jnp.float32)

    # ---- fused BN2-affine + shortcut-BN-affine + add + ReLU ------------------
    out = bn_add_relu(y2.reshape(m_total, cpo), scale2, shift2,
                      sc_flat, scale_s, shift_s, store_dtype)
    out = out.reshape(n, ho, wo, cpo)[:, :, :, :cout]
    return jnp.transpose(out, (0, 3, 1, 2)).astype(jnp.float32)   # NHWC -> NCHW


# ---------------------------------------------------------------------------
# Parameter init + pure-JAX reference (mirrors the PyTorch module incl. bias)
# ---------------------------------------------------------------------------
def init_params(key, in_c, out_c, stride):
    ks = jax.random.split(key, 12)
    p = {
        "w1": 0.1 * jax.random.normal(ks[0], (out_c, in_c, 3, 3), jnp.float32),
        "b1": 0.1 * jax.random.normal(ks[1], (out_c,), jnp.float32),
        "g1": 1.0 + 0.1 * jax.random.normal(ks[2], (out_c,), jnp.float32),
        "be1": 0.1 * jax.random.normal(ks[3], (out_c,), jnp.float32),
        "w2": 0.1 * jax.random.normal(ks[4], (out_c, out_c, 3, 3), jnp.float32),
        "b2": 0.1 * jax.random.normal(ks[5], (out_c,), jnp.float32),
        "g2": 1.0 + 0.1 * jax.random.normal(ks[6], (out_c,), jnp.float32),
        "be2": 0.1 * jax.random.normal(ks[7], (out_c,), jnp.float32),
    }
    if stride != 1 or in_c != out_c:
        p["ws"] = 0.1 * jax.random.normal(ks[8], (out_c, in_c, 1, 1), jnp.float32)
        p["bs"] = 0.1 * jax.random.normal(ks[9], (out_c,), jnp.float32)
        p["gs"] = 1.0 + 0.1 * jax.random.normal(ks[10], (out_c,), jnp.float32)
        p["bes"] = 0.1 * jax.random.normal(ks[11], (out_c,), jnp.float32)
    return p


def ref_forward(x, p, stride):
    # Includes the conv biases, as in the PyTorch module; training-mode BN
    # cancels them exactly, which the Pallas path exploits by dropping them.
    def conv(x, w, b, s, pad):
        y = lax.conv_general_dilated(
            x, w, (s, s), ((pad, pad), (pad, pad)),
            dimension_numbers=("NCHW", "OIHW", "NCHW"))
        return y + b[None, :, None, None]

    def bn(y, g, be):
        mean = jnp.mean(y, axis=(0, 2, 3), keepdims=True)
        var = jnp.mean((y - mean) ** 2, axis=(0, 2, 3), keepdims=True)
        return (g[None, :, None, None] * (y - mean) / jnp.sqrt(var + BN_EPS)
                + be[None, :, None, None])

    out = jax.nn.relu(bn(conv(x, p["w1"], p["b1"], stride, 1), p["g1"], p["be1"]))
    out = bn(conv(out, p["w2"], p["b2"], 1, 1), p["g2"], p["be2"])
    if "ws" in p:
        sc = bn(conv(x, p["ws"], p["bs"], stride, 0), p["gs"], p["bes"])
    else:
        sc = x
    return jax.nn.relu(out + sc)


if __name__ == "__main__":
    key = jax.random.PRNGKey(0)
    k_x, k_p = jax.random.split(key)

    N, Cin, H, W = 2, 4, 16, 16
    Cout, stride = 8, 1                      # in != out -> 1x1-conv shortcut

    x = jax.random.normal(k_x, (N, Cin, H, W), jnp.float32)
    params = init_params(k_p, Cin, Cout, stride)

    # f32 path: checked against the pure-JAX reference.  Tolerance covers TPU
    # default (bf16-pass) MXU precision differences between the two conv paths.
    fwd = jax.jit(functools.partial(basic_block_forward, stride=stride))
    out = jax.block_until_ready(fwd(x, params))
    ref = jax.block_until_ready(ref_forward(x, params, stride))
    np.testing.assert_allclose(np.asarray(out), np.asarray(ref),
                               rtol=2e-2, atol=2e-2)

    # bf16-storage / f32-accumulate path (half HBM traffic, full MXU rate on
    # v6e/v7x).  Loose sanity bound only — bf16 rounding is expected.
    fwd_bf16 = jax.jit(functools.partial(basic_block_forward, stride=stride,
                                         compute_dtype=jnp.bfloat16))
    out_bf16 = jax.block_until_ready(fwd_bf16(x, params))
    assert float(jnp.max(jnp.abs(out_bf16.astype(jnp.float32) - ref))) < 0.5

    print("KERNEL_OK")
</pallas_src>

<mosaic_0001>
module attributes {stable_mosaic.version = 11 : i64} {
  func.func @kernel(%arg0: i32, %arg1: i32, %arg2: memref<1x16x16x128xf32, #tpu.memory_space<vmem>>, %arg3: memref<3x384x128xf32, #tpu.memory_space<vmem>>, %arg4: memref<1x256x128xf32, #tpu.memory_space<vmem>>, %arg5: memref<1x1x1x128xf32, #tpu.memory_space<vmem>>, %arg6: memref<1x1x1x128xf32, #tpu.memory_space<vmem>>, %arg7: memref<18x33x128xf32, #tpu.memory_space<vmem>>) attributes {dimension_semantics = [#tpu.dimension_semantics<parallel>, #tpu.dimension_semantics<arbitrary>], iteration_bounds = array<i64: 2, 1>, scalar_prefetch = 0 : i64, scratch_operands = 1 : i64, tpu.core_type = #tpu.core_type<tc>, window_params = [{transform_indices = @transform_0, window_bounds = array<i64: 1, 16, 16, 128>}, {pipeline_mode = #tpu.pipeline_mode<synchronous>, transform_indices = @transform_1, window_bounds = array<i64: 3, 384, 128>}, {transform_indices = @transform_2, window_bounds = array<i64: 1, 256, 128>}, {transform_indices = @transform_3, window_bounds = array<i64: 1, 1, 1, 128>}, {transform_indices = @transform_4, window_bounds = array<i64: 1, 1, 1, 128>}]} {
    %c0_i32 = arith.constant 0 : i32
    %0 = arith.cmpi eq, %arg1, %c0_i32 : i32
    %1 = arith.extui %0 : i1 to i32
    %c0_i32_0 = arith.constant 0 : i32
    %2 = arith.cmpi ne, %1, %c0_i32_0 : i32
    scf.if %2 {
      %c0_26 = arith.constant 0 : index
      %c0_27 = arith.constant 0 : index
      %c0_28 = arith.constant 0 : index
      %c0_29 = arith.constant 0 : index
      %47 = vector.load %arg2[%c0_26, %c0_27, %c0_28, %c0_29] : memref<1x16x16x128xf32, #tpu.memory_space<vmem>>, vector<1x16x16x128xf32>
      %48 = vector.shape_cast %47 : vector<1x16x16x128xf32> to vector<16x16x128xf32>
      %cst_30 = arith.constant 0.000000e+00 : f32
      %49 = vector.broadcast %cst_30 : f32 to vector<18x33x128xf32>
      %c0_31 = arith.constant 0 : index
      %c0_32 = arith.constant 0 : index
      %c0_33 = arith.constant 0 : index
      %50 = vector.load %arg7[%c0_31, %c0_32, %c0_33] : memref<18x33x128xf32, #tpu.memory_space<vmem>>, vector<18x33x128xf32>
      tpu.vector_store %arg7[%c0_31, %c0_32, %c0_33], %49 {strides = array<i32>} : memref<18x33x128xf32, #tpu.memory_space<vmem>>, vector<18x33x128xf32>,
      %c1_34 = arith.constant 1 : index
      %c16_35 = arith.constant 16 : index
      %c0_36 = arith.constant 0 : index
      %51 = vector.load %arg7[%c1_34, %c16_35, %c0_36] : memref<18x33x128xf32, #tpu.memory_space<vmem>>, vector<16x16x128xf32>
      tpu.vector_store %arg7[%c1_34, %c16_35, %c0_36], %48 {strides = array<i32>} : memref<18x33x128xf32, #tpu.memory_space<vmem>>, vector<16x16x128xf32>,
    } else {
    }
    %c16_i32 = arith.constant 16 : i32
    %3 = arith.muli %arg1, %c16_i32 : i32
    %4 = tpu.assume_multiple %3, 16 : i32
    %5 = arith.index_cast %4 : i32 to index
    %c15 = arith.constant 15 : index
    %c0 = arith.constant 0 : index
    %6 = vector.load %arg7[%5, %c15, %c0] : memref<18x33x128xf32, #tpu.memory_space<vmem>>, vector<18x16x128xf32>
    %7 = arith.index_cast %4 : i32 to index
    %c16 = arith.constant 16 : index
    %c0_1 = arith.constant 0 : index
    %8 = vector.load %arg7[%7, %c16, %c0_1] : memref<18x33x128xf32, #tpu.memory_space<vmem>>, vector<18x16x128xf32>
    %9 = arith.index_cast %4 : i32 to index
    %c17 = arith.constant 17 : index
    %c0_2 = arith.constant 0 : index
    %10 = vector.load %arg7[%9, %c17, %c0_2] : memref<18x33x128xf32, #tpu.memory_space<vmem>>, vector<18x16x128xf32>
    %11 = tpu.concatenate %6, %8, %10 in 2 : vector<18x16x128xf32>, vector<18x16x128xf32>, vector<18x16x128xf32> -> vector<18x16x384xf32>
    %12 = vector.extract_strided_slice %11 {offsets = [0, 0, 0], sizes = [16, 16, 384], strides = [1, 1, 1]} : vector<18x16x384xf32> to vector<16x16x384xf32>
    %13 = vector.shape_cast %12 : vector<16x16x384xf32> to vector<256x384xf32>
    %c0_3 = arith.constant 0 : index
    %c0_4 = arith.constant 0 : index
    %c0_5 = arith.constant 0 : index
    %14 = vector.load %arg3[%c0_3, %c0_4, %c0_5] : memref<3x384x128xf32, #tpu.memory_space<vmem>>, vector<1x384x128xf32>
    %15 = vector.shape_cast %14 : vector<1x384x128xf32> to vector<384x128xf32>
    %cst = arith.constant dense<0.000000e+00> : vector<256x128xf32>
    %16 = tpu.matmul %13, %15, %cst {dimension_numbers = #tpu.dot_dimension_numbers<[1], [0], [0], [1], [0, 0, 1, 1], [], []>} : vector<256x384xf32>, vector<384x128xf32>, vector<256x128xf32> -> vector<256x128xf32>
    %17 = vector.extract_strided_slice %11 {offsets = [1, 0, 0], sizes = [16, 16, 384], strides = [1, 1, 1]} : vector<18x16x384xf32> to vector<16x16x384xf32>
    %18 = vector.shape_cast %17 : vector<16x16x384xf32> to vector<256x384xf32>
    %c1 = arith.constant 1 : index
    %c0_6 = arith.constant 0 : index
    %c0_7 = arith.constant 0 : index
    %19 = vector.load %arg3[%c1, %c0_6, %c0_7] : memref<3x384x128xf32, #tpu.memory_space<vmem>>, vector<1x384x128xf32>
    %20 = vector.shape_cast %19 : vector<1x384x128xf32> to vector<384x128xf32>
    %cst_8 = arith.constant dense<0.000000e+00> : vector<256x128xf32>
    %21 = tpu.matmul %18, %20, %cst_8 {dimension_numbers = #tpu.dot_dimension_numbers<[1], [0], [0], [1], [0, 0, 1, 1], [], []>} : vector<256x384xf32>, vector<384x128xf32>, vector<256x128xf32> -> vector<256x128xf32>
    %22 = arith.addf %16, %21 : vector<256x128xf32>
    %23 = vector.extract_strided_slice %11 {offsets = [2, 0, 0], sizes = [16, 16, 384], strides = [1, 1, 1]} : vector<18x16x384xf32> to vector<16x16x384xf32>
    %24 = vector.shape_cast %23 : vector<16x16x384xf32> to vector<256x384xf32>
    %c2 = arith.constant 2 : index
    %c0_9 = arith.constant 0 : index
    %c0_10 = arith.constant 0 : index
    %25 = vector.load %arg3[%c2, %c0_9, %c0_10] : memref<3x384x128xf32, #tpu.memory_space<vmem>>, vector<1x384x128xf32>
    %26 = vector.shape_cast %25 : vector<1x384x128xf32> to vector<384x128xf32>
    %cst_11 = arith.constant dense<0.000000e+00> : vector<256x128xf32>
    %27 = tpu.matmul %24, %26, %cst_11 {dimension_numbers = #tpu.dot_dimension_numbers<[1], [0], [0], [1], [0, 0, 1, 1], [], []>} : vector<256x384xf32>, vector<384x128xf32>, vector<256x128xf32> -> vector<256x128xf32>
    %28 = arith.addf %22, %27 : vector<256x128xf32>
    %c0_12 = arith.constant 0 : index
    %c0_13 = arith.constant 0 : index
    %c0_14 = arith.constant 0 : index
    %29 = vector.load %arg4[%c0_12, %c0_13, %c0_14] : memref<1x256x128xf32, #tpu.memory_space<vmem>>, vector<1x256x128xf32>
    %30 = vector.shape_cast %29 : vector<1x256x128xf32> to vector<256x128xf32>
    %31 = vector.shape_cast %28 : vector<256x128xf32> to vector<1x256x128xf32>
    tpu.vector_store %arg4[%c0_12, %c0_13, %c0_14], %31 {strides = array<i32>} : memref<1x256x128xf32, #tpu.memory_space<vmem>>, vector<1x256x128xf32>,
    %cst_15 = arith.constant dense<0.000000e+00> : vector<128xf32>
    %32 = vector.multi_reduction <add>, %28, %cst_15 [0] : vector<256x128xf32> to vector<128xf32>
    %33 = vector.shape_cast %32 : vector<128xf32> to vector<1x128xf32>
    %cst_16 = arith.constant 3.906250e-03 : f32
    %34 = vector.broadcast %cst_16 : f32 to vector<1x128xf32>
    %35 = arith.mulf %33, %34 : vector<1x128xf32>
    %36 = vector.broadcast %35 : vector<1x128xf32> to vector<256x128xf32>
    %37 = arith.subf %28, %36 : vector<256x128xf32>
    %c0_17 = arith.constant 0 : index
    %c0_18 = arith.constant 0 : index
    %c0_19 = arith.constant 0 : index
    %c0_20 = arith.constant 0 : index
    %38 = vector.load %arg5[%c0_17, %c0_18, %c0_19, %c0_20] : memref<1x1x1x128xf32, #tpu.memory_space<vmem>>, vector<1x1x1x128xf32>
    %39 = vector.shape_cast %38 : vector<1x1x1x128xf32> to vector<1x128xf32>
    %40 = vector.shape_cast %33 : vector<1x128xf32> to vector<1x1x1x128xf32>
    tpu.vector_store %arg5[%c0_17, %c0_18, %c0_19, %c0_20], %40 {strides = array<i32>} : memref<1x1x1x128xf32, #tpu.memory_space<vmem>>, vector<1x1x1x128xf32>,
    %41 = arith.mulf %37, %37 : vector<256x128xf32>
    %cst_21 = arith.constant dense<0.000000e+00> : vector<128xf32>
    %42 = vector.multi_reduction <add>, %41, %cst_21 [0] : vector<256x128xf32> to vector<128xf32>
    %43 = vector.shape_cast %42 : vector<128xf32> to vector<1x128xf32>
    %c0_22 = arith.constant 0 : index
    %c0_23 = arith.constant 0 : index
    %c0_24 = arith.constant 0 : index
    %c0_25 = arith.constant 0 : index
    %44 = vector.load %arg6[%c0_22, %c0_23, %c0_24, %c0_25] : memref<1x1x1x128xf32, #tpu.memory_space<vmem>>, vector<1x1x1x128xf32>
    %45 = vector.shape_cast %44 : vector<1x1x1x128xf32> to vector<1x128xf32>
    %46 = vector.shape_cast %43 : vector<1x128xf32> to vector<1x1x1x128xf32>
    tpu.vector_store %arg6[%c0_22, %c0_23, %c0_24, %c0_25], %46 {strides = array<i32>} : memref<1x1x1x128xf32, #tpu.memory_space<vmem>>, vector<1x1x1x128xf32>,
    return
  }
  func.func @transform_0(%arg0: i32, %arg1: i32) -> (i32, i32, i32, i32) {
    %c0_i32 = arith.constant 0 : i32
    %c0_i32_0 = arith.constant 0 : i32
    %c0_i32_1 = arith.constant 0 : i32
    %c0_i32_2 = arith.constant 0 : i32
    return %arg0, %c0_i32, %c0_i32_0, %c0_i32_1 : i32, i32, i32, i32
  }
  func.func @transform_1(%arg0: i32, %arg1: i32) -> (i32, i32, i32) {
    %c0_i32 = arith.constant 0 : i32
    %c0_i32_0 = arith.constant 0 : i32
    %c0_i32_1 = arith.constant 0 : i32
    %c0_i32_2 = arith.constant 0 : i32
    return %c0_i32, %c0_i32_0, %c0_i32_1 : i32, i32, i32
  }
  func.func @transform_2(%arg0: i32, %arg1: i32) -> (i32, i32, i32) {
    %c0_i32 = arith.constant 0 : i32
    %c0_i32_0 = arith.constant 0 : i32
    return %arg0, %arg1, %c0_i32 : i32, i32, i32
  }
  func.func @transform_3(%arg0: i32, %arg1: i32) -> (i32, i32, i32, i32) {
    %c0_i32 = arith.constant 0 : i32
    %c0_i32_0 = arith.constant 0 : i32
    %c0_i32_1 = arith.constant 0 : i32
    return %arg0, %arg1, %c0_i32, %c0_i32_0 : i32, i32, i32, i32
  }
  func.func @transform_4(%arg0: i32, %arg1: i32) -> (i32, i32, i32, i32) {
    %c0_i32 = arith.constant 0 : i32
    %c0_i32_0 = arith.constant 0 : i32
    %c0_i32_1 = arith.constant 0 : i32
    return %arg0, %arg1, %c0_i32, %c0_i32_0 : i32, i32, i32, i32
  }
}

module attributes {stable_mosaic.version = 11 : i64} {
  func.func @kernel(%arg0: i32, %arg1: i32, %arg2: memref<1x16x16x128xf32, #tpu.memory_space<vmem>>, %arg3: memref<1x128x128xf32, #tpu.memory_space<vmem>>, %arg4: memref<1x256x128xf32, #tpu.memory_space<vmem>>, %arg5: memref<1x1x1x128xf32, #tpu.memory_space<vmem>>, %arg6: memref<1x1x1x128xf32, #tpu.memory_space<vmem>>) attributes {dimension_semantics = [#tpu.dimension_semantics<parallel>, #tpu.dimension_semantics<parallel>], iteration_bounds = array<i64: 2, 1>, scalar_prefetch = 0 : i64, scratch_operands = 0 : i64, tpu.core_type = #tpu.core_type<tc>, window_params = [{transform_indices = @transform_0, window_bounds = array<i64: 1, 16, 16, 128>}, {pipeline_mode = #tpu.pipeline_mode<synchronous>, transform_indices = @transform_1, window_bounds = array<i64: 1, 128, 128>}, {transform_indices = @transform_2, window_bounds = array<i64: 1, 256, 128>}, {transform_indices = @transform_3, window_bounds = array<i64: 1, 1, 1, 128>}, {transform_indices = @transform_4, window_bounds = array<i64: 1, 1, 1, 128>}]} {
    %c16_i32 = arith.constant 16 : i32
    %0 = arith.muli %arg1, %c16_i32 : i32
    %1 = tpu.assume_multiple %0, 16 : i32
    %c0 = arith.constant 0 : index
    %2 = arith.index_cast %1 : i32 to index
    %c0_0 = arith.constant 0 : index
    %c0_1 = arith.constant 0 : index
    %3 = vector.load %arg2[%c0, %2, %c0_0, %c0_1] : memref<1x16x16x128xf32, #tpu.memory_space<vmem>>, vector<1x16x16x128xf32>
    %4 = vector.shape_cast %3 : vector<1x16x16x128xf32> to vector<16x16x128xf32>
    %5 = vector.shape_cast %4 : vector<16x16x128xf32> to vector<256x128xf32>
    %c0_2 = arith.constant 0 : index
    %c0_3 = arith.constant 0 : index
    %c0_4 = arith.constant 0 : index
    %6 = vector.load %arg3[%c0_2, %c0_3, %c0_4] : memref<1x128x128xf32, #tpu.memory_space<vmem>>, vector<1x128x128xf32>
    %7 = vector.shape_cast %6 : vector<1x128x128xf32> to vector<128x128xf32>
    %cst = arith.constant dense<0.000000e+00> : vector<256x128xf32>
    %8 = tpu.matmul %5, %7, %cst {dimension_numbers = #tpu.dot_dimension_numbers<[1], [0], [0], [1], [0, 0, 1, 1], [], []>} : vector<256x128xf32>, vector<128x128xf32>, vector<256x128xf32> -> vector<256x128xf32>
    %c0_5 = arith.constant 0 : index
    %c0_6 = arith.constant 0 : index
    %c0_7 = arith.constant 0 : index
    %9 = vector.load %arg4[%c0_5, %c0_6, %c0_7] : memref<1x256x128xf32, #tpu.memory_space<vmem>>, vector<1x256x128xf32>
    %10 = vector.shape_cast %9 : vector<1x256x128xf32> to vector<256x128xf32>
    %11 = vector.shape_cast %8 : vector<256x128xf32> to vector<1x256x128xf32>
    tpu.vector_store %arg4[%c0_5, %c0_6, %c0_7], %11 {strides = array<i32>} : memref<1x256x128xf32, #tpu.memory_space<vmem>>, vector<1x256x128xf32>,
    %cst_8 = arith.constant dense<0.000000e+00> : vector<128xf32>
    %12 = vector.multi_reduction <add>, %8, %cst_8 [0] : vector<256x128xf32> to vector<128xf32>
    %13 = vector.shape_cast %12 : vector<128xf32> to vector<1x128xf32>
    %cst_9 = arith.constant 3.906250e-03 : f32
    %14 = vector.broadcast %cst_9 : f32 to vector<1x128xf32>
    %15 = arith.mulf %13, %14 : vector<1x128xf32>
    %16 = vector.broadcast %15 : vector<1x128xf32> to vector<256x128xf32>
    %17 = arith.subf %8, %16 : vector<256x128xf32>
    %c0_10 = arith.constant 0 : index
    %c0_11 = arith.constant 0 : index
    %c0_12 = arith.constant 0 : index
    %c0_13 = arith.constant 0 : index
    %18 = vector.load %arg5[%c0_10, %c0_11, %c0_12, %c0_13] : memref<1x1x1x128xf32, #tpu.memory_space<vmem>>, vector<1x1x1x128xf32>
    %19 = vector.shape_cast %18 : vector<1x1x1x128xf32> to vector<1x128xf32>
    %20 = vector.shape_cast %13 : vector<1x128xf32> to vector<1x1x1x128xf32>
    tpu.vector_store %arg5[%c0_10, %c0_11, %c0_12, %c0_13], %20 {strides = array<i32>} : memref<1x1x1x128xf32, #tpu.memory_space<vmem>>, vector<1x1x1x128xf32>,
    %21 = arith.mulf %17, %17 : vector<256x128xf32>
    %cst_14 = arith.constant dense<0.000000e+00> : vector<128xf32>
    %22 = vector.multi_reduction <add>, %21, %cst_14 [0] : vector<256x128xf32> to vector<128xf32>
    %23 = vector.shape_cast %22 : vector<128xf32> to vector<1x128xf32>
    %c0_15 = arith.constant 0 : index
    %c0_16 = arith.constant 0 : index
    %c0_17 = arith.constant 0 : index
    %c0_18 = arith.constant 0 : index
    %24 = vector.load %arg6[%c0_15, %c0_16, %c0_17, %c0_18] : memref<1x1x1x128xf32, #tpu.memory_space<vmem>>, vector<1x1x1x128xf32>
    %25 = vector.shape_cast %24 : vector<1x1x1x128xf32> to vector<1x128xf32>
    %26 = vector.shape_cast %23 : vector<1x128xf32> to vector<1x1x1x128xf32>
    tpu.vector_store %arg6[%c0_15, %c0_16, %c0_17, %c0_18], %26 {strides = array<i32>} : memref<1x1x1x128xf32, #tpu.memory_space<vmem>>, vector<1x1x1x128xf32>,
    return
  }
  func.func @transform_0(%arg0: i32, %arg1: i32) -> (i32, i32, i32, i32) {
    %c0_i32 = arith.constant 0 : i32
    %c0_i32_0 = arith.constant 0 : i32
    %c0_i32_1 = arith.constant 0 : i32
    %c0_i32_2 = arith.constant 0 : i32
    return %arg0, %c0_i32, %c0_i32_0, %c0_i32_1 : i32, i32, i32, i32
  }
  func.func @transform_1(%arg0: i32, %arg1: i32) -> (i32, i32, i32) {
    %c0_i32 = arith.constant 0 : i32
    %c0_i32_0 = arith.constant 0 : i32
    %c0_i32_1 = arith.constant 0 : i32
    %c0_i32_2 = arith.constant 0 : i32
    return %c0_i32, %c0_i32_0, %c0_i32_1 : i32, i32, i32
  }
  func.func @transform_2(%arg0: i32, %arg1: i32) -> (i32, i32, i32) {
    %c0_i32 = arith.constant 0 : i32
    %c0_i32_0 = arith.constant 0 : i32
    return %arg0, %arg1, %c0_i32 : i32, i32, i32
  }
  func.func @transform_3(%arg0: i32, %arg1: i32) -> (i32, i32, i32, i32) {
    %c0_i32 = arith.constant 0 : i32
    %c0_i32_0 = arith.constant 0 : i32
    %c0_i32_1 = arith.constant 0 : i32
    return %arg0, %arg1, %c0_i32, %c0_i32_0 : i32, i32, i32, i32
  }
  func.func @transform_4(%arg0: i32, %arg1: i32) -> (i32, i32, i32, i32) {
    %c0_i32 = arith.constant 0 : i32
    %c0_i32_0 = arith.constant 0 : i32
    %c0_i32_1 = arith.constant 0 : i32
    return %arg0, %arg1, %c0_i32, %c0_i32_0 : i32, i32, i32, i32
  }
}

module attributes {stable_mosaic.version = 11 : i64} {
  func.func @_bn_add_relu_kernel(%arg0: i32, %arg1: memref<512x128xf32, #tpu.memory_space<vmem>>, %arg2: memref<1x128xf32, #tpu.memory_space<vmem>>, %arg3: memref<1x128xf32, #tpu.memory_space<vmem>>, %arg4: memref<512x128xf32, #tpu.memory_space<vmem>>, %arg5: memref<1x128xf32, #tpu.memory_space<vmem>>, %arg6: memref<1x128xf32, #tpu.memory_space<vmem>>, %arg7: memref<512x128xf32, #tpu.memory_space<vmem>>) attributes {dimension_semantics = [#tpu.dimension_semantics<parallel>], iteration_bounds = array<i64: 1>, scalar_prefetch = 0 : i64, scratch_operands = 0 : i64, tpu.core_type = #tpu.core_type<tc>, window_params = [{transform_indices = @transform_0, window_bounds = array<i64: 512, 128>}, {pipeline_mode = #tpu.pipeline_mode<synchronous>, transform_indices = @transform_1, window_bounds = array<i64: 1, 128>}, {pipeline_mode = #tpu.pipeline_mode<synchronous>, transform_indices = @transform_2, window_bounds = array<i64: 1, 128>}, {transform_indices = @transform_3, window_bounds = array<i64: 512, 128>}, {pipeline_mode = #tpu.pipeline_mode<synchronous>, transform_indices = @transform_4, window_bounds = array<i64: 1, 128>}, {pipeline_mode = #tpu.pipeline_mode<synchronous>, transform_indices = @transform_5, window_bounds = array<i64: 1, 128>}, {transform_indices = @transform_6, window_bounds = array<i64: 512, 128>}]} {
    %c0 = arith.constant 0 : index
    %c0_0 = arith.constant 0 : index
    %0 = vector.load %arg1[%c0, %c0_0] : memref<512x128xf32, #tpu.memory_space<vmem>>, vector<512x128xf32>
    %c0_1 = arith.constant 0 : index
    %c0_2 = arith.constant 0 : index
    %1 = vector.load %arg4[%c0_1, %c0_2] : memref<512x128xf32, #tpu.memory_space<vmem>>, vector<512x128xf32>
    %c0_3 = arith.constant 0 : index
    %c0_4 = arith.constant 0 : index
    %2 = vector.load %arg2[%c0_3, %c0_4] : memref<1x128xf32, #tpu.memory_space<vmem>>, vector<1x128xf32>
    %3 = vector.broadcast %2 : vector<1x128xf32> to vector<512x128xf32>
    %4 = arith.mulf %0, %3 : vector<512x128xf32>
    %c0_5 = arith.constant 0 : index
    %c0_6 = arith.constant 0 : index
    %5 = vector.load %arg3[%c0_5, %c0_6] : memref<1x128xf32, #tpu.memory_space<vmem>>, vector<1x128xf32>
    %6 = vector.broadcast %5 : vector<1x128xf32> to vector<512x128xf32>
    %7 = arith.addf %4, %6 : vector<512x128xf32>
    %c0_7 = arith.constant 0 : index
    %c0_8 = arith.constant 0 : index
    %8 = vector.load %arg5[%c0_7, %c0_8] : memref<1x128xf32, #tpu.memory_space<vmem>>, vector<1x128xf32>
    %9 = vector.broadcast %8 : vector<1x128xf32> to vector<512x128xf32>
    %10 = arith.mulf %1, %9 : vector<512x128xf32>
    %c0_9 = arith.constant 0 : index
    %c0_10 = arith.constant 0 : index
    %11 = vector.load %arg6[%c0_9, %c0_10] : memref<1x128xf32, #tpu.memory_space<vmem>>, vector<1x128xf32>
    %12 = vector.broadcast %11 : vector<1x128xf32> to vector<512x128xf32>
    %13 = arith.addf %10, %12 : vector<512x128xf32>
    %14 = arith.addf %7, %13 : vector<512x128xf32>
    %cst = arith.constant 0.000000e+00 : f32
    %15 = vector.broadcast %cst : f32 to vector<512x128xf32>
    %16 = arith.maximumf %14, %15 : vector<512x128xf32>
    %c0_11 = arith.constant 0 : index
    %c0_12 = arith.constant 0 : index
    %17 = vector.load %arg7[%c0_11, %c0_12] : memref<512x128xf32, #tpu.memory_space<vmem>>, vector<512x128xf32>
    tpu.vector_store %arg7[%c0_11, %c0_12], %16 {strides = array<i32>} : memref<512x128xf32, #tpu.memory_space<vmem>>, vector<512x128xf32>,
    return
  }
  func.func @transform_0(%arg0: i32) -> (i32, i32) {
    %c0_i32 = arith.constant 0 : i32
    %c0_i32_0 = arith.constant 0 : i32
    return %arg0, %c0_i32 : i32, i32
  }
  func.func @transform_1(%arg0: i32) -> (i32, i32) {
    %c0_i32 = arith.constant 0 : i32
    %c0_i32_0 = arith.constant 0 : i32
    %c0_i32_1 = arith.constant 0 : i32
    return %c0_i32, %c0_i32_0 : i32, i32
  }
  func.func @transform_2(%arg0: i32) -> (i32, i32) {
    %c0_i32 = arith.constant 0 : i32
    %c0_i32_0 = arith.constant 0 : i32
    %c0_i32_1 = arith.constant 0 : i32
    return %c0_i32, %c0_i32_0 : i32, i32
  }
  func.func @transform_3(%arg0: i32) -> (i32, i32) {
    %c0_i32 = arith.constant 0 : i32
    %c0_i32_0 = arith.constant 0 : i32
    return %arg0, %c0_i32 : i32, i32
  }
  func.func @transform_4(%arg0: i32) -> (i32, i32) {
    %c0_i32 = arith.constant 0 : i32
    %c0_i32_0 = arith.constant 0 : i32
    %c0_i32_1 = arith.constant 0 : i32
    return %c0_i32, %c0_i32_0 : i32, i32
  }
  func.func @transform_5(%arg0: i32) -> (i32, i32) {
    %c0_i32 = arith.constant 0 : i32
    %c0_i32_0 = arith.constant 0 : i32
    %c0_i32_1 = arith.constant 0 : i32
    return %c0_i32, %c0_i32_0 : i32, i32
  }
  func.func @transform_6(%arg0: i32) -> (i32, i32) {
    %c0_i32 = arith.constant 0 : i32
    %c0_i32_0 = arith.constant 0 : i32
    return %arg0, %c0_i32 : i32, i32
  }
}

module attributes {stable_mosaic.version = 11 : i64} {
  func.func @kernel(%arg0: i32, %arg1: i32, %arg2: memref<1x16x16x128xf32, #tpu.memory_space<vmem>>, %arg3: memref<3x384x128xf32, #tpu.memory_space<vmem>>, %arg4: memref<1x128xf32, #tpu.memory_space<vmem>>, %arg5: memref<1x128xf32, #tpu.memory_space<vmem>>, %arg6: memref<1x256x128xf32, #tpu.memory_space<vmem>>, %arg7: memref<1x1x1x128xf32, #tpu.memory_space<vmem>>, %arg8: memref<1x1x1x128xf32, #tpu.memory_space<vmem>>, %arg9: memref<18x33x128xf32, #tpu.memory_space<vmem>>) attributes {dimension_semantics = [#tpu.dimension_semantics<parallel>, #tpu.dimension_semantics<arbitrary>], iteration_bounds = array<i64: 2, 1>, scalar_prefetch = 0 : i64, scratch_operands = 1 : i64, tpu.core_type = #tpu.core_type<tc>, window_params = [{transform_indices = @transform_0, window_bounds = array<i64: 1, 16, 16, 128>}, {pipeline_mode = #tpu.pipeline_mode<synchronous>, transform_indices = @transform_1, window_bounds = array<i64: 3, 384, 128>}, {pipeline_mode = #tpu.pipeline_mode<synchronous>, transform_indices = @transform_2, window_bounds = array<i64: 1, 128>}, {pipeline_mode = #tpu.pipeline_mode<synchronous>, transform_indices = @transform_3, window_bounds = array<i64: 1, 128>}, {transform_indices = @transform_4, window_bounds = array<i64: 1, 256, 128>}, {transform_indices = @transform_5, window_bounds = array<i64: 1, 1, 1, 128>}, {transform_indices = @transform_6, window_bounds = array<i64: 1, 1, 1, 128>}]} {
    %c0_i32 = arith.constant 0 : i32
    %0 = arith.cmpi eq, %arg1, %c0_i32 : i32
    %1 = arith.extui %0 : i1 to i32
    %c0_i32_0 = arith.constant 0 : i32
    %2 = arith.cmpi ne, %1, %c0_i32_0 : i32
    scf.if %2 {
      %c0_26 = arith.constant 0 : index
      %c0_27 = arith.constant 0 : index
      %c0_28 = arith.constant 0 : index
      %c0_29 = arith.constant 0 : index
      %47 = vector.load %arg2[%c0_26, %c0_27, %c0_28, %c0_29] : memref<1x16x16x128xf32, #tpu.memory_space<vmem>>, vector<1x16x16x128xf32>
      %48 = vector.shape_cast %47 : vector<1x16x16x128xf32> to vector<16x16x128xf32>
      %c0_30 = arith.constant 0 : index
      %c0_31 = arith.constant 0 : index
      %49 = vector.load %arg4[%c0_30, %c0_31] : memref<1x128xf32, #tpu.memory_space<vmem>>, vector<1x128xf32>
      %50 = vector.shape_cast %49 : vector<1x128xf32> to vector<1x1x128xf32>
      %c0_32 = arith.constant 0 : index
      %c0_33 = arith.constant 0 : index
      %51 = vector.load %arg5[%c0_32, %c0_33] : memref<1x128xf32, #tpu.memory_space<vmem>>, vector<1x128xf32>
      %52 = vector.shape_cast %51 : vector<1x128xf32> to vector<1x1x128xf32>
      %53 = vector.broadcast %50 : vector<1x1x128xf32> to vector<16x16x128xf32>
      %54 = arith.mulf %48, %53 : vector<16x16x128xf32>
      %55 = vector.broadcast %52 : vector<1x1x128xf32> to vector<16x16x128xf32>
      %56 = arith.addf %54, %55 : vector<16x16x128xf32>
      %cst_34 = arith.constant 0.000000e+00 : f32
      %57 = vector.broadcast %cst_34 : f32 to vector<16x16x128xf32>
      %58 = arith.maximumf %56, %57 : vector<16x16x128xf32>
      %cst_35 = arith.constant 0.000000e+00 : f32
      %59 = vector.broadcast %cst_35 : f32 to vector<18x33x128xf32>
      %c0_36 = arith.constant 0 : index
      %c0_37 = arith.constant 0 : index
      %c0_38 = arith.constant 0 : index
      %60 = vector.load %arg9[%c0_36, %c0_37, %c0_38] : memref<18x33x128xf32, #tpu.memory_space<vmem>>, vector<18x33x128xf32>
      tpu.vector_store %arg9[%c0_36, %c0_37, %c0_38], %59 {strides = array<i32>} : memref<18x33x128xf32, #tpu.memory_space<vmem>>, vector<18x33x128xf32>,
      %c1_39 = arith.constant 1 : index
      %c16_40 = arith.constant 16 : index
      %c0_41 = arith.constant 0 : index
      %61 = vector.load %arg9[%c1_39, %c16_40, %c0_41] : memref<18x33x128xf32, #tpu.memory_space<vmem>>, vector<16x16x128xf32>
      tpu.vector_store %arg9[%c1_39, %c16_40, %c0_41], %58 {strides = array<i32>} : memref<18x33x128xf32, #tpu.memory_space<vmem>>, vector<16x16x128xf32>,
    } else {
    }
    %c16_i32 = arith.constant 16 : i32
    %3 = arith.muli %arg1, %c16_i32 : i32
    %4 = tpu.assume_multiple %3, 16 : i32
    %5 = arith.index_cast %4 : i32 to index
    %c15 = arith.constant 15 : index
    %c0 = arith.constant 0 : index
    %6 = vector.load %arg9[%5, %c15, %c0] : memref<18x33x128xf32, #tpu.memory_space<vmem>>, vector<18x16x128xf32>
    %7 = arith.index_cast %4 : i32 to index
    %c16 = arith.constant 16 : index
    %c0_1 = arith.constant 0 : index
    %8 = vector.load %arg9[%7, %c16, %c0_1] : memref<18x33x128xf32, #tpu.memory_space<vmem>>, vector<18x16x128xf32>
    %9 = arith.index_cast %4 : i32 to index
    %c17 = arith.constant 17 : index
    %c0_2 = arith.constant 0 : index
    %10 = vector.load %arg9[%9, %c17, %c0_2] : memref<18x33x128xf32, #tpu.memory_space<vmem>>, vector<18x16x128xf32>
    %11 = tpu.concatenate %6, %8, %10 in 2 : vector<18x16x128xf32>, vector<18x16x128xf32>, vector<18x16x128xf32> -> vector<18x16x384xf32>
    %12 = vector.extract_strided_slice %11 {offsets = [0, 0, 0], sizes = [16, 16, 384], strides = [1, 1, 1]} : vector<18x16x384xf32> to vector<16x16x384xf32>
    %13 = vector.shape_cast %12 : vector<16x16x384xf32> to vector<256x384xf32>
    %c0_3 = arith.constant 0 : index
    %c0_4 = arith.constant 0 : index
    %c0_5 = arith.constant 0 : index
    %14 = vector.load %arg3[%c0_3, %c0_4, %c0_5] : memref<3x384x128xf32, #tpu.memory_space<vmem>>, vector<1x384x128xf32>
    %15 = vector.shape_cast %14 : vector<1x384x128xf32> to vector<384x128xf32>
    %cst = arith.constant dense<0.000000e+00> : vector<256x128xf32>
    %16 = tpu.matmul %13, %15, %cst {dimension_numbers = #tpu.dot_dimension_numbers<[1], [0], [0], [1], [0, 0, 1, 1], [], []>} : vector<256x384xf32>, vector<384x128xf32>, vector<256x128xf32> -> vector<256x128xf32>
    %17 = vector.extract_strided_slice %11 {offsets = [1, 0, 0], sizes = [16, 16, 384], strides = [1, 1, 1]} : vector<18x16x384xf32> to vector<16x16x384xf32>
    %18 = vector.shape_cast %17 : vector<16x16x384xf32> to vector<256x384xf32>
    %c1 = arith.constant 1 : index
    %c0_6 = arith.constant 0 : index
    %c0_7 = arith.constant 0 : index
    %19 = vector.load %arg3[%c1, %c0_6, %c0_7] : memref<3x384x128xf32, #tpu.memory_space<vmem>>, vector<1x384x128xf32>
    %20 = vector.shape_cast %19 : vector<1x384x128xf32> to vector<384x128xf32>
    %cst_8 = arith.constant dense<0.000000e+00> : vector<256x128xf32>
    %21 = tpu.matmul %18, %20, %cst_8 {dimension_numbers = #tpu.dot_dimension_numbers<[1], [0], [0], [1], [0, 0, 1, 1], [], []>} : vector<256x384xf32>, vector<384x128xf32>, vector<256x128xf32> -> vector<256x128xf32>
    %22 = arith.addf %16, %21 : vector<256x128xf32>
    %23 = vector.extract_strided_slice %11 {offsets = [2, 0, 0], sizes = [16, 16, 384], strides = [1, 1, 1]} : vector<18x16x384xf32> to vector<16x16x384xf32>
    %24 = vector.shape_cast %23 : vector<16x16x384xf32> to vector<256x384xf32>
    %c2 = arith.constant 2 : index
    %c0_9 = arith.constant 0 : index
    %c0_10 = arith.constant 0 : index
    %25 = vector.load %arg3[%c2, %c0_9, %c0_10] : memref<3x384x128xf32, #tpu.memory_space<vmem>>, vector<1x384x128xf32>
    %26 = vector.shape_cast %25 : vector<1x384x128xf32> to vector<384x128xf32>
    %cst_11 = arith.constant dense<0.000000e+00> : vector<256x128xf32>
    %27 = tpu.matmul %24, %26, %cst_11 {dimension_numbers = #tpu.dot_dimension_numbers<[1], [0], [0], [1], [0, 0, 1, 1], [], []>} : vector<256x384xf32>, vector<384x128xf32>, vector<256x128xf32> -> vector<256x128xf32>
    %28 = arith.addf %22, %27 : vector<256x128xf32>
    %c0_12 = arith.constant 0 : index
    %c0_13 = arith.constant 0 : index
    %c0_14 = arith.constant 0 : index
    %29 = vector.load %arg6[%c0_12, %c0_13, %c0_14] : memref<1x256x128xf32, #tpu.memory_space<vmem>>, vector<1x256x128xf32>
    %30 = vector.shape_cast %29 : vector<1x256x128xf32> to vector<256x128xf32>
    %31 = vector.shape_cast %28 : vector<256x128xf32> to vector<1x256x128xf32>
    tpu.vector_store %arg6[%c0_12, %c0_13, %c0_14], %31 {strides = array<i32>} : memref<1x256x128xf32, #tpu.memory_space<vmem>>, vector<1x256x128xf32>,
    %cst_15 = arith.constant dense<0.000000e+00> : vector<128xf32>
    %32 = vector.multi_reduction <add>, %28, %cst_15 [0] : vector<256x128xf32> to vector<128xf32>
    %33 = vector.shape_cast %32 : vector<128xf32> to vector<1x128xf32>
    %cst_16 = arith.constant 3.906250e-03 : f32
    %34 = vector.broadcast %cst_16 : f32 to vector<1x128xf32>
    %35 = arith.mulf %33, %34 : vector<1x128xf32>
    %36 = vector.broadcast %35 : vector<1x128xf32> to vector<256x128xf32>
    %37 = arith.subf %28, %36 : vector<256x128xf32>
    %c0_17 = arith.constant 0 : index
    %c0_18 = arith.constant 0 : index
    %c0_19 = arith.constant 0 : index
    %c0_20 = arith.constant 0 : index
    %38 = vector.load %arg7[%c0_17, %c0_18, %c0_19, %c0_20] : memref<1x1x1x128xf32, #tpu.memory_space<vmem>>, vector<1x1x1x128xf32>
    %39 = vector.shape_cast %38 : vector<1x1x1x128xf32> to vector<1x128xf32>
    %40 = vector.shape_cast %33 : vector<1x128xf32> to vector<1x1x1x128xf32>
    tpu.vector_store %arg7[%c0_17, %c0_18, %c0_19, %c0_20], %40 {strides = array<i32>} : memref<1x1x1x128xf32, #tpu.memory_space<vmem>>, vector<1x1x1x128xf32>,
    %41 = arith.mulf %37, %37 : vector<256x128xf32>
    %cst_21 = arith.constant dense<0.000000e+00> : vector<128xf32>
    %42 = vector.multi_reduction <add>, %41, %cst_21 [0] : vector<256x128xf32> to vector<128xf32>
    %43 = vector.shape_cast %42 : vector<128xf32> to vector<1x128xf32>
    %c0_22 = arith.constant 0 : index
    %c0_23 = arith.constant 0 : index
    %c0_24 = arith.constant 0 : index
    %c0_25 = arith.constant 0 : index
    %44 = vector.load %arg8[%c0_22, %c0_23, %c0_24, %c0_25] : memref<1x1x1x128xf32, #tpu.memory_space<vmem>>, vector<1x1x1x128xf32>
    %45 = vector.shape_cast %44 : vector<1x1x1x128xf32> to vector<1x128xf32>
    %46 = vector.shape_cast %43 : vector<1x128xf32> to vector<1x1x1x128xf32>
    tpu.vector_store %arg8[%c0_22, %c0_23, %c0_24, %c0_25], %46 {strides = array<i32>} : memref<1x1x1x128xf32, #tpu.memory_space<vmem>>, vector<1x1x1x128xf32>,
    return
  }
  func.func @transform_0(%arg0: i32, %arg1: i32) -> (i32, i32, i32, i32) {
    %c0_i32 = arith.constant 0 : i32
    %c0_i32_0 = arith.constant 0 : i32
    %c0_i32_1 = arith.constant 0 : i32
    %c0_i32_2 = arith.constant 0 : i32
    return %arg0, %c0_i32, %c0_i32_0, %c0_i32_1 : i32, i32, i32, i32
  }
  func.func @transform_1(%arg0: i32, %arg1: i32) -> (i32, i32, i32) {
    %c0_i32 = arith.constant 0 : i32
    %c0_i32_0 = arith.constant 0 : i32
    %c0_i32_1 = arith.constant 0 : i32
    %c0_i32_2 = arith.constant 0 : i32
    return %c0_i32, %c0_i32_0, %c0_i32_1 : i32, i32, i32
  }
  func.func @transform_2(%arg0: i32, %arg1: i32) -> (i32, i32) {
    %c0_i32 = arith.constant 0 : i32
    %c0_i32_0 = arith.constant 0 : i32
    %c0_i32_1 = arith.constant 0 : i32
    return %c0_i32, %c0_i32_0 : i32, i32
  }
  func.func @transform_3(%arg0: i32, %arg1: i32) -> (i32, i32) {
    %c0_i32 = arith.constant 0 : i32
    %c0_i32_0 = arith.constant 0 : i32
    %c0_i32_1 = arith.constant 0 : i32
    return %c0_i32, %c0_i32_0 : i32, i32
  }
  func.func @transform_4(%arg0: i32, %arg1: i32) -> (i32, i32, i32) {
    %c0_i32 = arith.constant 0 : i32
    %c0_i32_0 = arith.constant 0 : i32
    return %arg0, %arg1, %c0_i32 : i32, i32, i32
  }
  func.func @transform_5(%arg0: i32, %arg1: i32) -> (i32, i32, i32, i32) {
    %c0_i32 = arith.constant 0 : i32
    %c0_i32_0 = arith.constant 0 : i32
    %c0_i32_1 = arith.constant 0 : i32
    return %arg0, %arg1, %c0_i32, %c0_i32_0 : i32, i32, i32, i32
  }
  func.func @transform_6(%arg0: i32, %arg1: i32) -> (i32, i32, i32, i32) {
    %c0_i32 = arith.constant 0 : i32
    %c0_i32_0 = arith.constant 0 : i32
    %c0_i32_1 = arith.constant 0 : i32
    return %arg0, %arg1, %c0_i32, %c0_i32_0 : i32, i32, i32, i32
  }
}

</mosaic_0001>

<bundles_post_ra>
// kernel: basic_block_forward.7
= control target key start
LH: loop header
LB: loop body
LE: loop exit
PB: predicated region body
PF: predicated region fallthrough
CT: control target
= control target key end

     0   :  { %s1498_s0 = inlined_call_operand.vmem [shape: f32[512,128], index: 0, kind: input, shape index: {}, may-alias: {0,6}]   ;;  %s1499_s1 = inlined_call_operand.vmem [shape: f32[1,128], index: 1, kind: input, shape index: {}]   ;;  %s1500_s2 = inlined_call_operand.vmem [shape: f32[1,128], index: 2, kind: input, shape index: {}]   ;;  %s1501_s3 = inlined_call_operand.vmem [shape: f32[512,128], index: 3, kind: input, shape index: {}]   ;;  %s1502_s4 = inlined_call_operand.vmem [shape: f32[1,128], index: 4, kind: input, shape index: {}]   ;;  %s1503_s5 = inlined_call_operand.vmem [shape: f32[1,128], index: 5, kind: input, shape index: {}]   ;;  %s1504_s6 = inlined_call_operand.vmem [shape: f32[512,128], index: 6, kind: output, shape index: {}, may-alias: {0,6}]  }
   0x1   :  { %v23_v0 = vld [vmem:[%s1498_s0] sm:$0xff]  ;;  %v24_v7 = vld [vmem:[%s1498_s0 + $0x8] sm:$0xff]  ;;  %v25_v12 = vld [vmem:[%s1498_s0 + $0x10] sm:$0xff] }
   0x2   :  { %v87_v1 = vld [vmem:[%s1501_s3] sm:$0xff]  ;;  %v88_v8 = vld [vmem:[%s1501_s3 + $0x8] sm:$0xff]  ;;  %v89_v13 = vld [vmem:[%s1501_s3 + $0x10] sm:$0xff] }
   0x3   :  { %v671_v2 = vld [vmem:[%s1499_s1] ss:$0 sm:$0xff]  ;;  %v26_v14 = vld [vmem:[%s1498_s0 + $0x18] sm:$0xff]  ;;  %v28_v26 = vld [vmem:[%s1498_s0 + $0x28] sm:$0xff] }
   0x4   :  { %v676_v3 = vld [vmem:[%s1500_s2] ss:$0 sm:$0xff]  ;;  %v155_v5 = vmul.f32 %v671_v2, %v23_v0  ;;  %v156_v10 = vmul.f32 %v671_v2, %v24_v7  ;;  %v157_v16 = vmul.f32 %v671_v2, %v25_v12  ;;  %v90_v18 = vld [vmem:[%s1501_s3 + $0x18] sm:$0xff]  ;;  %v158_v19 = vmul.f32 %v671_v2, %v26_v14  ;;  %v92_v27 = vld [vmem:[%s1501_s3 + $0x28] sm:$0xff] }
   0x5   :  { %v681_v4 = vld [vmem:[%s1502_s4] ss:$0 sm:$0xff]  ;;  %v29_v36 = vld [vmem:[%s1498_s0 + $0x30] sm:$0xff]  ;;  %v160_v39 = vmul.f32 %v671_v2, %v28_v26  ;;  %v30_v42 = vld [vmem:[%s1498_s0 + $0x38] sm:$0xff] }
   0x6   :  { %v687_v6 = vld [vmem:[%s1503_s5] ss:$0 sm:$0xff]  ;;  %v291_v9 = vmul.f32 %v681_v4, %v87_v1  ;;  %v292_v11 = vmul.f32 %v681_v4, %v88_v8  ;;  %v223_v15 = vadd.f32 %v676_v3, %v155_v5  ;;  %v293_v17 = vmul.f32 %v681_v4, %v89_v13  ;;  %v93_v41 = vld [vmem:[%s1501_s3 + $0x30] sm:$0xff]  ;;  %v94_v47 = vld [vmem:[%s1501_s3 + $0x38] sm:$0xff] }
   0x7   :  { %v27_v20 = vld [vmem:[%s1498_s0 + $0x20] sm:$0xff]  ;;  %v224_v23 = vadd.f32 %v676_v3, %v156_v10  ;;  %v294_v25 = vmul.f32 %v681_v4, %v90_v18  ;;  %v225_v28 = vadd.f32 %v676_v3, %v157_v16  ;;  %v226_v30 = vadd.f32 %v676_v3, %v158_v19  ;;  %v96_v63 = vld [vmem:[%s1501_s3 + $0x48] sm:$0xff]  ;;  %v98_v19 = vld [vmem:[%s1501_s3 + $0x58] sm:$0xff] }
   0x8   :  { %v91_v21 = vld [vmem:[%s1501_s3 + $0x20] sm:$0xff]  ;;  %v359_v22 = vadd.f32 %v687_v6, %v291_v9  ;;  %v360_v24 = vadd.f32 %v687_v6, %v292_v11  ;;  %v361_v29 = vadd.f32 %v687_v6, %v293_v17  ;;  %v159_v31 = vmul.f32 %v671_v2, %v27_v20  ;;  %v97_v9 = vld [vmem:[%s1501_s3 + $0x50] sm:$0xff] }
   0x9   :  { %v362_v34 = vadd.f32 %v687_v6, %v294_v25  ;;  %v295_v35 = vmul.f32 %v681_v4, %v91_v21  ;;  %v296_v40 = vmul.f32 %v681_v4, %v92_v27  ;;  %v31_v48 = vld [vmem:[%s1498_s0 + $0x40] sm:$0xff]  ;;  %v228_v50 = vadd.f32 %v676_v3, %v160_v39 }
   0xa   :  { %v423_v32 = vadd.f32 %v359_v22, %v223_v15  ;;  %v424_v33 = vadd.f32 %v360_v24, %v224_v23  ;;  %v425_v37 = vadd.f32 %v361_v29, %v225_v28  ;;  %v227_v38 = vadd.f32 %v676_v3, %v159_v31  ;;  %v95_v53 = vld [vmem:[%s1501_s3 + $0x40] sm:$0xff]  ;;  %v100_v31 = vld [vmem:[%s1501_s3 + $0x68] sm:$0xff] }
   0xb   :  { %v426_v45 = vadd.f32 %v362_v34, %v226_v30  ;;  %v363_v46 = vadd.f32 %v687_v6, %v295_v35  ;;  %v364_v51 = vadd.f32 %v687_v6, %v296_v40  ;;  %v161_v52 = vmul.f32 %v671_v2, %v29_v36  ;;  %v99_v25 = vld [vmem:[%s1501_s3 + $0x60] sm:$0xff] }
   0xc   :  { %v487_v43 = vmax.f32 %v423_v32, 0.0  ;;  %v488_v44 = vmax.f32 %v424_v33, 0.0  ;;  %v489_v49 = vmax.f32 %v425_v37, 0.0  ;;  %v297_v56 = vmul.f32 %v681_v4, %v93_v41 }
   0xd   :  { %v490_v54 = vmax.f32 %v426_v45, 0.0  ;;  %v427_v55 = vadd.f32 %v363_v46, %v227_v38  ;;  %v162_v57 = vmul.f32 %v671_v2, %v30_v42  ;;  %v428_v59 = vadd.f32 %v364_v51, %v228_v50  ;;  %v101_v45 = vld [vmem:[%s1501_s3 + $0x70] sm:$0xff]  ;;  %v102_v51 = vld [vmem:[%s1501_s3 + $0x78] sm:$0xff] }
   0xe   :  { %551 = vst [vmem:[%s1504_s6] sm:$0xff] %v487_v43  ;;  %v229_v60 = vadd.f32 %v676_v3, %v161_v52  ;;  %v298_v61 = vmul.f32 %v681_v4, %v94_v47  ;;  %v163_v62 = vmul.f32 %v671_v2, %v31_v48  ;;  %v365_v5 = vadd.f32 %v687_v6, %v297_v56 }
   0xf   :  { %v491_v1 = vmax.f32 %v427_v55, 0.0  ;;  %v230_v7 = vadd.f32 %v676_v3, %v162_v57  ;;  %v299_v8 = vmul.f32 %v681_v4, %v95_v53  ;;  %v492_v11 = vmax.f32 %v428_v59, 0.0  ;;  %v103_v57 = vld [vmem:[%s1501_s3 + $0x80] sm:$0xff] }
  0x10   :  { %v366_v12 = vadd.f32 %v687_v6, %v298_v61  ;;  %v231_v13 = vadd.f32 %v676_v3, %v163_v62  ;;  %v429_v15 = vadd.f32 %v365_v5, %v229_v60  ;;  %v300_v17 = vmul.f32 %v681_v4, %v96_v63 }
  0x11   :  { %v367_v16 = vadd.f32 %v687_v6, %v299_v8  ;;  %v301_v22 = vmul.f32 %v681_v4, %v97_v9  ;;  %v302_v35 = vmul.f32 %v681_v4, %v98_v19  ;;  %v303_v40 = vmul.f32 %v681_v4, %v99_v25 }
  0x12   :  { %v430_v20 = vadd.f32 %v366_v12, %v230_v7  ;;  %v493_v26 = vmax.f32 %v429_v15, 0.0  ;;  %v368_v28 = vadd.f32 %v687_v6, %v300_v17  ;;  %v305_v60 = vmul.f32 %v681_v4, %v101_v45  ;;  %v104_v7 = vld [vmem:[%s1501_s3 + $0x88] sm:$0xff] }
  0x13   :  { %v431_v27 = vadd.f32 %v367_v16, %v231_v13  ;;  %v369_v33 = vadd.f32 %v687_v6, %v301_v22  ;;  %v370_v42 = vadd.f32 %v687_v6, %v302_v35  ;;  %v307_v12 = vmul.f32 %v681_v4, %v103_v57  ;;  %v105_v13 = vld [vmem:[%s1501_s3 + $0x90] sm:$0xff]  ;;  %v108_v35 = vld [vmem:[%s1501_s3 + $0xa8] sm:$0xff] }
  0x14   :  { %v494_v32 = vmax.f32 %v430_v20, 0.0 }
  0x15   :  { %v32_v58 = vld [vmem:[%s1498_s0 + $0x48] sm:$0xff]  ;;  %v495_v37 = vmax.f32 %v431_v27, 0.0  ;;  %v375_v20 = vadd.f32 %v687_v6, %v307_v12 }
  0x16   :  { %552 = vst [vmem:[%s1504_s6 + $0x8] sm:$0xff] %v488_v44  ;;  %v164_v14 = vmul.f32 %v671_v2, %v32_v58  ;;  %v304_v44 = vmul.f32 %v681_v4, %v100_v31 }
  0x18   :  { %v232_v21 = vadd.f32 %v676_v3, %v164_v14  ;;  %v372_v56 = vadd.f32 %v687_v6, %v304_v44 }
  0x1a   :  { %v432_v38 = vadd.f32 %v368_v28, %v232_v21  ;;  %v308_v21 = vmul.f32 %v681_v4, %v104_v7 }
  0x1c   :  { %v496_v47 = vmax.f32 %v432_v38, 0.0 }
  0x1d   :  { %v33_v0 = vld [vmem:[%s1498_s0 + $0x50] sm:$0xff] }
  0x1e   :  { %553 = vst [vmem:[%s1504_s6 + $0x10] sm:$0xff] %v489_v49  ;;  %v165_v18 = vmul.f32 %v671_v2, %v33_v0  ;;  %v371_v49 = vadd.f32 %v687_v6, %v303_v40 }
  0x20   :  { %v233_v29 = vadd.f32 %v676_v3, %v165_v18 }
  0x22   :  { %v433_v41 = vadd.f32 %v369_v33, %v233_v29  ;;  %v107_v29 = vld [vmem:[%s1501_s3 + $0xa0] sm:$0xff] }
  0x23   :  { %v311_v44 = vmul.f32 %v681_v4, %v107_v29 }
  0x24   :  { %v497_v53 = vmax.f32 %v433_v41, 0.0 }
  0x25   :  { %v34_v10 = vld [vmem:[%s1498_s0 + $0x58] sm:$0xff] }
  0x26   :  { %554 = vst [vmem:[%s1504_s6 + $0x18] sm:$0xff] %v490_v54  ;;  %v166_v23 = vmul.f32 %v671_v2, %v34_v10  ;;  %v373_v10 = vadd.f32 %v687_v6, %v305_v60 }
  0x27   :  { %555 = vst [vmem:[%s1504_s6 + $0x20] sm:$0xff] %v491_v1  ;;  %v306_v1 = vmul.f32 %v681_v4, %v102_v51 }
  0x28   :  { %556 = vst [vmem:[%s1504_s6 + $0x28] sm:$0xff] %v492_v11  ;;  %v234_v34 = vadd.f32 %v676_v3, %v166_v23  ;;  %v106_v23 = vld [vmem:[%s1501_s3 + $0x98] sm:$0xff] }
  0x29   :  { %v374_v16 = vadd.f32 %v687_v6, %v306_v1 }
  0x2a   :  { %v434_v54 = vadd.f32 %v370_v42, %v234_v34 }
  0x2c   :  { %v498_v63 = vmax.f32 %v434_v54, 0.0 }
  0x2f   :  { %v35_v24 = vld [vmem:[%s1498_s0 + $0x60] sm:$0xff]  ;;  %v36_v30 = vld [vmem:[%s1498_s0 + $0x68] sm:$0xff]  ;;  %v37_v36 = vld [vmem:[%s1498_s0 + $0x70] sm:$0xff] }
  0x30   :  { %557 = vst [vmem:[%s1504_s6 + $0x30] sm:$0xff] %v493_v26  ;;  %v167_v39 = vmul.f32 %v671_v2, %v35_v24  ;;  %v168_v43 = vmul.f32 %v671_v2, %v36_v30  ;;  %v169_v50 = vmul.f32 %v671_v2, %v37_v36  ;;  %v309_v26 = vmul.f32 %v681_v4, %v105_v13 }
  0x31   :  { %558 = vst [vmem:[%s1504_s6 + $0x38] sm:$0xff] %v494_v32  ;;  %v376_v32 = vadd.f32 %v687_v6, %v308_v21 }
  0x32   :  { %v235_v48 = vadd.f32 %v676_v3, %v167_v39  ;;  %v236_v55 = vadd.f32 %v676_v3, %v168_v43  ;;  %v237_v59 = vadd.f32 %v676_v3, %v169_v50  ;;  %v310_v39 = vmul.f32 %v681_v4, %v106_v23 }
  0x34   :  { %v435_v58 = vadd.f32 %v371_v49, %v235_v48  ;;  %v436_v0 = vadd.f32 %v372_v56, %v236_v55  ;;  %v437_v19 = vadd.f32 %v373_v10, %v237_v59  ;;  %v312_v48 = vmul.f32 %v681_v4, %v108_v35  ;;  %v109_v49 = vld [vmem:[%s1501_s3 + $0xb0] sm:$0xff]  ;;  %v110_v55 = vld [vmem:[%s1501_s3 + $0xb8] sm:$0xff] }
  0x36   :  { %v499_v9 = vmax.f32 %v435_v58, 0.0  ;;  %v500_v15 = vmax.f32 %v436_v0, 0.0  ;;  %v501_v30 = vmax.f32 %v437_v19, 0.0  ;;  %v380_v60 = vadd.f32 %v687_v6, %v312_v48 }
  0x37   :  { %v313_v0 = vmul.f32 %v681_v4, %v109_v49 }
  0x38   :  { %v38_v46 = vld [vmem:[%s1498_s0 + $0x78] sm:$0xff] }
  0x39   :  { %559 = vst [vmem:[%s1504_s6 + $0x40] sm:$0xff] %v495_v37  ;;  %v170_v61 = vmul.f32 %v671_v2, %v38_v46  ;;  %v377_v37 = vadd.f32 %v687_v6, %v309_v26  ;;  %v378_v46 = vadd.f32 %v687_v6, %v310_v39  ;;  %v116_v39 = vld [vmem:[%s1501_s3 + $0xe8] sm:$0xff] }
  0x3b   :  { %v238_v11 = vadd.f32 %v676_v3, %v170_v61  ;;  %v111_v61 = vld [vmem:[%s1501_s3 + $0xc0] sm:$0xff] }
  0x3d   :  { %v438_v24 = vadd.f32 %v374_v16, %v238_v11  ;;  %v112_v11 = vld [vmem:[%s1501_s3 + $0xc8] sm:$0xff]  ;;  %v315_v16 = vmul.f32 %v681_v4, %v111_v61 }
  0x3f   :  { %v502_v36 = vmax.f32 %v438_v24, 0.0  ;;  %v383_v24 = vadd.f32 %v687_v6, %v315_v16 }
  0x40   :  { %v39_v52 = vld [vmem:[%s1498_s0 + $0x80] sm:$0xff] }
  0x41   :  { %560 = vst [vmem:[%s1504_s6 + $0x48] sm:$0xff] %v496_v47  ;;  %v171_v5 = vmul.f32 %v671_v2, %v39_v52 }
  0x43   :  { %v239_v17 = vadd.f32 %v676_v3, %v171_v5 }
  0x45   :  { %v439_v31 = vadd.f32 %v375_v20, %v239_v17  ;;  %v113_v17 = vld [vmem:[%s1501_s3 + $0xd0] sm:$0xff] }
  0x47   :  { %v503_v41 = vmax.f32 %v439_v31, 0.0 }
  0x48   :  { %v40_v62 = vld [vmem:[%s1498_s0 + $0x88] sm:$0xff] }
  0x49   :  { %561 = vst [vmem:[%s1504_s6 + $0x50] sm:$0xff] %v497_v53  ;;  %v172_v18 = vmul.f32 %v671_v2, %v40_v62  ;;  %v379_v53 = vadd.f32 %v687_v6, %v311_v44 }
  0x4b   :  { %v240_v25 = vadd.f32 %v676_v3, %v172_v18 }
  0x4d   :  { %v440_v42 = vadd.f32 %v376_v32, %v240_v25  ;;  %v316_v25 = vmul.f32 %v681_v4, %v112_v11 }
  0x4f   :  { %v504_v51 = vmax.f32 %v440_v42, 0.0 }
  0x50   :  { %v41_v8 = vld [vmem:[%s1498_s0 + $0x90] sm:$0xff]  ;;  %v42_v14 = vld [vmem:[%s1498_s0 + $0x98] sm:$0xff] }
  0x51   :  { %562 = vst [vmem:[%s1504_s6 + $0x58] sm:$0xff] %v498_v63  ;;  %v173_v22 = vmul.f32 %v671_v2, %v41_v8  ;;  %v174_v27 = vmul.f32 %v671_v2, %v42_v14  ;;  %v381_v14 = vadd.f32 %v687_v6, %v313_v0 }
  0x52   :  { %563 = vst [vmem:[%s1504_s6 + $0x60] sm:$0xff] %v499_v9  ;;  %v314_v9 = vmul.f32 %v681_v4, %v110_v55 }
  0x53   :  { %564 = vst [vmem:[%s1504_s6 + $0x68] sm:$0xff] %v500_v15  ;;  %v241_v33 = vadd.f32 %v676_v3, %v173_v22  ;;  %v242_v38 = vadd.f32 %v676_v3, %v174_v27  ;;  %v114_v27 = vld [vmem:[%s1501_s3 + $0xd8] sm:$0xff] }
  0x54   :  { %v382_v20 = vadd.f32 %v687_v6, %v314_v9 }
  0x55   :  { %v441_v45 = vadd.f32 %v377_v37, %v241_v33  ;;  %v442_v58 = vadd.f32 %v378_v46, %v242_v38  ;;  %v115_v33 = vld [vmem:[%s1501_s3 + $0xe0] sm:$0xff] }
  0x56   :  { %v319_v48 = vmul.f32 %v681_v4, %v115_v33 }
  0x57   :  { %v505_v57 = vmax.f32 %v441_v45, 0.0  ;;  %v506_v7 = vmax.f32 %v442_v58, 0.0 }
  0x5a   :  { %v43_v28 = vld [vmem:[%s1498_s0 + $0xa0] sm:$0xff]  ;;  %v44_v34 = vld [vmem:[%s1498_s0 + $0xa8] sm:$0xff]  ;;  %v45_v40 = vld [vmem:[%s1498_s0 + $0xb0] sm:$0xff] }
  0x5b   :  { %565 = vst [vmem:[%s1504_s6 + $0x70] sm:$0xff] %v501_v30  ;;  %v175_v43 = vmul.f32 %v671_v2, %v43_v28  ;;  %v176_v47 = vmul.f32 %v671_v2, %v44_v34  ;;  %v177_v54 = vmul.f32 %v671_v2, %v45_v40  ;;  %v317_v30 = vmul.f32 %v681_v4, %v113_v17 }
  0x5c   :  { %566 = vst [vmem:[%s1504_s6 + $0x78] sm:$0xff] %v502_v36  ;;  %v384_v36 = vadd.f32 %v687_v6, %v316_v25 }
  0x5d   :  { %v243_v52 = vadd.f32 %v676_v3, %v175_v43  ;;  %v244_v59 = vadd.f32 %v676_v3, %v176_v47  ;;  %v245_v63 = vadd.f32 %v676_v3, %v177_v54  ;;  %v318_v43 = vmul.f32 %v681_v4, %v114_v27 }
  0x5f   :  { %v443_v62 = vadd.f32 %v379_v53, %v243_v52  ;;  %v444_v8 = vadd.f32 %v380_v60, %v244_v59  ;;  %v445_v23 = vadd.f32 %v381_v14, %v245_v63  ;;  %v320_v52 = vmul.f32 %v681_v4, %v116_v39  ;;  %v117_v53 = vld [vmem:[%s1501_s3 + $0xf0] sm:$0xff]  ;;  %v118_v59 = vld [vmem:[%s1501_s3 + $0xf8] sm:$0xff] }
  0x61   :  { %v507_v13 = vmax.f32 %v443_v62, 0.0  ;;  %v508_v19 = vmax.f32 %v444_v8, 0.0  ;;  %v509_v34 = vmax.f32 %v445_v23, 0.0  ;;  %v388_v0 = vadd.f32 %v687_v6, %v320_v52 }
  0x62   :  { %v321_v8 = vmul.f32 %v681_v4, %v117_v53 }
  0x63   :  { %v46_v50 = vld [vmem:[%s1498_s0 + $0xb8] sm:$0xff] }
  0x64   :  { %567 = vst [vmem:[%s1504_s6 + $0x80] sm:$0xff] %v503_v41  ;;  %v178_v1 = vmul.f32 %v671_v2, %v46_v50  ;;  %v385_v41 = vadd.f32 %v687_v6, %v317_v30  ;;  %v386_v50 = vadd.f32 %v687_v6, %v318_v43  ;;  %v124_v43 = vld [vmem:[%s1501_s3 + $0x128] sm:$0xff] }
  0x66   :  { %v246_v15 = vadd.f32 %v676_v3, %v178_v1  ;;  %v119_v1 = vld [vmem:[%s1501_s3 + $0x100] sm:$0xff] }
  0x68   :  { %v446_v28 = vadd.f32 %v382_v20, %v246_v15  ;;  %v120_v15 = vld [vmem:[%s1501_s3 + $0x108] sm:$0xff]  ;;  %v323_v20 = vmul.f32 %v681_v4, %v119_v1 }
  0x6a   :  { %v510_v40 = vmax.f32 %v446_v28, 0.0  ;;  %v391_v28 = vadd.f32 %v687_v6, %v323_v20 }
  0x6b   :  { %v47_v56 = vld [vmem:[%s1498_s0 + $0xc0] sm:$0xff] }
  0x6c   :  { %568 = vst [vmem:[%s1504_s6 + $0x88] sm:$0xff] %v504_v51  ;;  %v179_v10 = vmul.f32 %v671_v2, %v47_v56 }
  0x6e   :  { %v247_v21 = vadd.f32 %v676_v3, %v179_v10 }
  0x70   :  { %v447_v35 = vadd.f32 %v383_v24, %v247_v21  ;;  %v121_v21 = vld [vmem:[%s1501_s3 + $0x110] sm:$0xff] }
  0x72   :  { %v511_v45 = vmax.f32 %v447_v35, 0.0 }
  0x73   :  { %v48_v5 = vld [vmem:[%s1498_s0 + $0xc8] sm:$0xff] }
  0x74   :  { %569 = vst [vmem:[%s1504_s6 + $0x90] sm:$0xff] %v505_v57  ;;  %v180_v22 = vmul.f32 %v671_v2, %v48_v5  ;;  %v387_v57 = vadd.f32 %v687_v6, %v319_v48 }
  0x76   :  { %v248_v29 = vadd.f32 %v676_v3, %v180_v22 }
  0x78   :  { %v448_v46 = vadd.f32 %v384_v36, %v248_v29  ;;  %v324_v29 = vmul.f32 %v681_v4, %v120_v15 }
  0x7a   :  { %v512_v55 = vmax.f32 %v448_v46, 0.0 }
  0x7b   :  { %v49_v12 = vld [vmem:[%s1498_s0 + $0xd0] sm:$0xff]  ;;  %v50_v18 = vld [vmem:[%s1498_s0 + $0xd8] sm:$0xff] }
  0x7c   :  { %570 = vst [vmem:[%s1504_s6 + $0x98] sm:$0xff] %v506_v7  ;;  %v181_v26 = vmul.f32 %v671_v2, %v49_v12  ;;  %v182_v31 = vmul.f32 %v671_v2, %v50_v18  ;;  %v389_v18 = vadd.f32 %v687_v6, %v321_v8 }
  0x7d   :  { %571 = vst [vmem:[%s1504_s6 + $0xa0] sm:$0xff] %v507_v13  ;;  %v322_v13 = vmul.f32 %v681_v4, %v118_v59 }
  0x7e   :  { %572 = vst [vmem:[%s1504_s6 + $0xa8] sm:$0xff] %v508_v19  ;;  %v249_v37 = vadd.f32 %v676_v3, %v181_v26  ;;  %v250_v42 = vadd.f32 %v676_v3, %v182_v31  ;;  %v122_v31 = vld [vmem:[%s1501_s3 + $0x118] sm:$0xff] }
  0x7f   :  { %v390_v24 = vadd.f32 %v687_v6, %v322_v13 }
  0x80   :  { %v449_v49 = vadd.f32 %v385_v41, %v249_v37  ;;  %v450_v62 = vadd.f32 %v386_v50, %v250_v42  ;;  %v123_v37 = vld [vmem:[%s1501_s3 + $0x120] sm:$0xff] }
  0x81   :  { %v327_v52 = vmul.f32 %v681_v4, %v123_v37 }
  0x82   :  { %v513_v61 = vmax.f32 %v449_v49, 0.0  ;;  %v514_v11 = vmax.f32 %v450_v62, 0.0 }
  0x85   :  { %v51_v32 = vld [vmem:[%s1498_s0 + $0xe0] sm:$0xff]  ;;  %v52_v38 = vld [vmem:[%s1498_s0 + $0xe8] sm:$0xff]  ;;  %v53_v44 = vld [vmem:[%s1498_s0 + $0xf0] sm:$0xff] }
  0x86   :  { %573 = vst [vmem:[%s1504_s6 + $0xb0] sm:$0xff] %v509_v34  ;;  %v183_v47 = vmul.f32 %v671_v2, %v51_v32  ;;  %v184_v51 = vmul.f32 %v671_v2, %v52_v38  ;;  %v185_v58 = vmul.f32 %v671_v2, %v53_v44  ;;  %v325_v34 = vmul.f32 %v681_v4, %v121_v21 }
  0x87   :  { %574 = vst [vmem:[%s1504_s6 + $0xb8] sm:$0xff] %v510_v40  ;;  %v392_v40 = vadd.f32 %v687_v6, %v324_v29 }
  0x88   :  { %v251_v56 = vadd.f32 %v676_v3, %v183_v47  ;;  %v252_v63 = vadd.f32 %v676_v3, %v184_v51  ;;  %v253_v7 = vadd.f32 %v676_v3, %v185_v58  ;;  %v326_v47 = vmul.f32 %v681_v4, %v122_v31 }
  0x8a   :  { %v451_v5 = vadd.f32 %v387_v57, %v251_v56  ;;  %v452_v12 = vadd.f32 %v388_v0, %v252_v63  ;;  %v453_v27 = vadd.f32 %v389_v18, %v253_v7  ;;  %v328_v56 = vmul.f32 %v681_v4, %v124_v43  ;;  %v125_v57 = vld [vmem:[%s1501_s3 + $0x130] sm:$0xff]  ;;  %v126_v63 = vld [vmem:[%s1501_s3 + $0x138] sm:$0xff] }
  0x8c   :  { %v515_v17 = vmax.f32 %v451_v5, 0.0  ;;  %v516_v23 = vmax.f32 %v452_v12, 0.0  ;;  %v517_v38 = vmax.f32 %v453_v27, 0.0  ;;  %v396_v8 = vadd.f32 %v687_v6, %v328_v56 }
  0x8d   :  { %v329_v12 = vmul.f32 %v681_v4, %v125_v57 }
  0x8e   :  { %v54_v54 = vld [vmem:[%s1498_s0 + $0xf8] sm:$0xff] }
  0x8f   :  { %575 = vst [vmem:[%s1504_s6 + $0xc0] sm:$0xff] %v511_v45  ;;  %v186_v9 = vmul.f32 %v671_v2, %v54_v54  ;;  %v393_v45 = vadd.f32 %v687_v6, %v325_v34  ;;  %v394_v54 = vadd.f32 %v687_v6, %v326_v47  ;;  %v132_v47 = vld [vmem:[%s1501_s3 + $0x168] sm:$0xff] }
  0x91   :  { %v254_v19 = vadd.f32 %v676_v3, %v186_v9  ;;  %v127_v9 = vld [vmem:[%s1501_s3 + $0x140] sm:$0xff] }
  0x93   :  { %v454_v32 = vadd.f32 %v390_v24, %v254_v19  ;;  %v128_v19 = vld [vmem:[%s1501_s3 + $0x148] sm:$0xff]  ;;  %v331_v24 = vmul.f32 %v681_v4, %v127_v9 }
  0x95   :  { %v518_v44 = vmax.f32 %v454_v32, 0.0  ;;  %v399_v32 = vadd.f32 %v687_v6, %v331_v24 }
  0x96   :  { %v55_v60 = vld [vmem:[%s1498_s0 + $0x100] sm:$0xff] }
  0x97   :  { %576 = vst [vmem:[%s1504_s6 + $0xc8] sm:$0xff] %v512_v55  ;;  %v187_v14 = vmul.f32 %v671_v2, %v55_v60 }
  0x99   :  { %v255_v25 = vadd.f32 %v676_v3, %v187_v14 }
  0x9b   :  { %v455_v39 = vadd.f32 %v391_v28, %v255_v25  ;;  %v129_v25 = vld [vmem:[%s1501_s3 + $0x150] sm:$0xff] }
  0x9d   :  { %v519_v49 = vmax.f32 %v455_v39, 0.0 }
  0x9e   :  { %v56_v10 = vld [vmem:[%s1498_s0 + $0x108] sm:$0xff] }
  0x9f   :  { %577 = vst [vmem:[%s1504_s6 + $0xd0] sm:$0xff] %v513_v61  ;;  %v188_v26 = vmul.f32 %v671_v2, %v56_v10  ;;  %v395_v61 = vadd.f32 %v687_v6, %v327_v52 }
  0xa1   :  { %v256_v33 = vadd.f32 %v676_v3, %v188_v26 }
  0xa3   :  { %v456_v50 = vadd.f32 %v392_v40, %v256_v33  ;;  %v332_v33 = vmul.f32 %v681_v4, %v128_v19 }
  0xa5   :  { %v520_v59 = vmax.f32 %v456_v50, 0.0 }
  0xa6   :  { %v57_v16 = vld [vmem:[%s1498_s0 + $0x110] sm:$0xff]  ;;  %v58_v22 = vld [vmem:[%s1498_s0 + $0x118] sm:$0xff] }
  0xa7   :  { %578 = vst [vmem:[%s1504_s6 + $0xd8] sm:$0xff] %v514_v11  ;;  %v189_v30 = vmul.f32 %v671_v2, %v57_v16  ;;  %v190_v35 = vmul.f32 %v671_v2, %v58_v22  ;;  %v397_v22 = vadd.f32 %v687_v6, %v329_v12 }
  0xa8   :  { %579 = vst [vmem:[%s1504_s6 + $0xe0] sm:$0xff] %v515_v17  ;;  %v330_v17 = vmul.f32 %v681_v4, %v126_v63 }
  0xa9   :  { %580 = vst [vmem:[%s1504_s6 + $0xe8] sm:$0xff] %v516_v23  ;;  %v257_v41 = vadd.f32 %v676_v3, %v189_v30  ;;  %v258_v46 = vadd.f32 %v676_v3, %v190_v35  ;;  %v130_v35 = vld [vmem:[%s1501_s3 + $0x158] sm:$0xff] }
  0xaa   :  { %v398_v28 = vadd.f32 %v687_v6, %v330_v17 }
  0xab   :  { %v457_v53 = vadd.f32 %v393_v45, %v257_v41  ;;  %v458_v5 = vadd.f32 %v394_v54, %v258_v46  ;;  %v131_v41 = vld [vmem:[%s1501_s3 + $0x160] sm:$0xff] }
  0xac   :  { %v335_v56 = vmul.f32 %v681_v4, %v131_v41 }
  0xad   :  { %v521_v1 = vmax.f32 %v457_v53, 0.0  ;;  %v522_v15 = vmax.f32 %v458_v5, 0.0 }
  0xb0   :  { %v59_v36 = vld [vmem:[%s1498_s0 + $0x120] sm:$0xff]  ;;  %v60_v42 = vld [vmem:[%s1498_s0 + $0x128] sm:$0xff]  ;;  %v61_v48 = vld [vmem:[%s1498_s0 + $0x130] sm:$0xff] }
  0xb1   :  { %581 = vst [vmem:[%s1504_s6 + $0xf0] sm:$0xff] %v517_v38  ;;  %v191_v51 = vmul.f32 %v671_v2, %v59_v36  ;;  %v192_v55 = vmul.f32 %v671_v2, %v60_v42  ;;  %v193_v62 = vmul.f32 %v671_v2, %v61_v48  ;;  %v333_v38 = vmul.f32 %v681_v4, %v129_v25 }
  0xb2   :  { %582 = vst [vmem:[%s1504_s6 + $0xf8] sm:$0xff] %v518_v44  ;;  %v400_v44 = vadd.f32 %v687_v6, %v332_v33 }
  0xb3   :  { %v259_v60 = vadd.f32 %v676_v3, %v191_v51  ;;  %v260_v7 = vadd.f32 %v676_v3, %v192_v55  ;;  %v261_v11 = vadd.f32 %v676_v3, %v193_v62  ;;  %v334_v51 = vmul.f32 %v681_v4, %v130_v35 }
  0xb5   :  { %v459_v10 = vadd.f32 %v395_v61, %v259_v60  ;;  %v460_v16 = vadd.f32 %v396_v8, %v260_v7  ;;  %v461_v31 = vadd.f32 %v397_v22, %v261_v11  ;;  %v336_v60 = vmul.f32 %v681_v4, %v132_v47  ;;  %v133_v61 = vld [vmem:[%s1501_s3 + $0x170] sm:$0xff]  ;;  %v134_v7 = vld [vmem:[%s1501_s3 + $0x178] sm:$0xff] }
  0xb7   :  { %v523_v21 = vmax.f32 %v459_v10, 0.0  ;;  %v524_v27 = vmax.f32 %v460_v16, 0.0  ;;  %v525_v42 = vmax.f32 %v461_v31, 0.0  ;;  %v404_v12 = vadd.f32 %v687_v6, %v336_v60 }
  0xb8   :  { %v337_v16 = vmul.f32 %v681_v4, %v133_v61 }
  0xb9   :  { %v62_v58 = vld [vmem:[%s1498_s0 + $0x138] sm:$0xff] }
  0xba   :  { %583 = vst [vmem:[%s1504_s6 + $0x100] sm:$0xff] %v519_v49  ;;  %v194_v13 = vmul.f32 %v671_v2, %v62_v58  ;;  %v401_v49 = vadd.f32 %v687_v6, %v333_v38  ;;  %v402_v58 = vadd.f32 %v687_v6, %v334_v51  ;;  %v140_v51 = vld [vmem:[%s1501_s3 + $0x1a8] sm:$0xff] }
  0xbc   :  { %v262_v23 = vadd.f32 %v676_v3, %v194_v13  ;;  %v135_v13 = vld [vmem:[%s1501_s3 + $0x180] sm:$0xff] }
  0xbe   :  { %v462_v36 = vadd.f32 %v398_v28, %v262_v23  ;;  %v136_v23 = vld [vmem:[%s1501_s3 + $0x188] sm:$0xff]  ;;  %v339_v28 = vmul.f32 %v681_v4, %v135_v13 }
  0xc0   :  { %v526_v48 = vmax.f32 %v462_v36, 0.0  ;;  %v407_v36 = vadd.f32 %v687_v6, %v339_v28 }
  0xc1   :  { %v63_v0 = vld [vmem:[%s1498_s0 + $0x140] sm:$0xff] }
  0xc2   :  { %584 = vst [vmem:[%s1504_s6 + $0x108] sm:$0xff] %v520_v59  ;;  %v195_v18 = vmul.f32 %v671_v2, %v63_v0 }
  0xc4   :  { %v263_v29 = vadd.f32 %v676_v3, %v195_v18 }
  0xc6   :  { %v463_v43 = vadd.f32 %v399_v32, %v263_v29  ;;  %v137_v29 = vld [vmem:[%s1501_s3 + $0x190] sm:$0xff] }
  0xc8   :  { %v527_v53 = vmax.f32 %v463_v43, 0.0 }
  0xc9   :  { %v64_v14 = vld [vmem:[%s1498_s0 + $0x148] sm:$0xff] }
  0xca   :  { %585 = vst [vmem:[%s1504_s6 + $0x110] sm:$0xff] %v521_v1  ;;  %v196_v30 = vmul.f32 %v671_v2, %v64_v14  ;;  %v403_v1 = vadd.f32 %v687_v6, %v335_v56 }
  0xcc   :  { %v264_v37 = vadd.f32 %v676_v3, %v196_v30 }
  0xce   :  { %v464_v54 = vadd.f32 %v400_v44, %v264_v37  ;;  %v340_v37 = vmul.f32 %v681_v4, %v136_v23 }
  0xd0   :  { %v528_v63 = vmax.f32 %v464_v54, 0.0 }
  0xd1   :  { %v65_v20 = vld [vmem:[%s1498_s0 + $0x150] sm:$0xff]  ;;  %v66_v26 = vld [vmem:[%s1498_s0 + $0x158] sm:$0xff] }
  0xd2   :  { %586 = vst [vmem:[%s1504_s6 + $0x118] sm:$0xff] %v522_v15  ;;  %v197_v34 = vmul.f32 %v671_v2, %v65_v20  ;;  %v198_v39 = vmul.f32 %v671_v2, %v66_v26  ;;  %v405_v26 = vadd.f32 %v687_v6, %v337_v16 }
  0xd3   :  { %587 = vst [vmem:[%s1504_s6 + $0x120] sm:$0xff] %v523_v21  ;;  %v338_v21 = vmul.f32 %v681_v4, %v134_v7 }
  0xd4   :  { %588 = vst [vmem:[%s1504_s6 + $0x128] sm:$0xff] %v524_v27  ;;  %v265_v45 = vadd.f32 %v676_v3, %v197_v34  ;;  %v266_v50 = vadd.f32 %v676_v3, %v198_v39  ;;  %v138_v39 = vld [vmem:[%s1501_s3 + $0x198] sm:$0xff] }
  0xd5   :  { %v406_v32 = vadd.f32 %v687_v6, %v338_v21 }
  0xd6   :  { %v465_v57 = vadd.f32 %v401_v49, %v265_v45  ;;  %v466_v10 = vadd.f32 %v402_v58, %v266_v50  ;;  %v139_v45 = vld [vmem:[%s1501_s3 + $0x1a0] sm:$0xff] }
  0xd7   :  { %v343_v60 = vmul.f32 %v681_v4, %v139_v45 }
  0xd8   :  { %v529_v9 = vmax.f32 %v465_v57, 0.0  ;;  %v530_v19 = vmax.f32 %v466_v10, 0.0 }
  0xdb   :  { %v67_v40 = vld [vmem:[%s1498_s0 + $0x160] sm:$0xff]  ;;  %v68_v46 = vld [vmem:[%s1498_s0 + $0x168] sm:$0xff]  ;;  %v69_v52 = vld [vmem:[%s1498_s0 + $0x170] sm:$0xff] }
  0xdc   :  { %589 = vst [vmem:[%s1504_s6 + $0x130] sm:$0xff] %v525_v42  ;;  %v199_v55 = vmul.f32 %v671_v2, %v67_v40  ;;  %v200_v59 = vmul.f32 %v671_v2, %v68_v46  ;;  %v201_v5 = vmul.f32 %v671_v2, %v69_v52  ;;  %v341_v42 = vmul.f32 %v681_v4, %v137_v29 }
  0xdd   :  { %590 = vst [vmem:[%s1504_s6 + $0x138] sm:$0xff] %v526_v48  ;;  %v408_v48 = vadd.f32 %v687_v6, %v340_v37 }
  0xde   :  { %v267_v0 = vadd.f32 %v676_v3, %v199_v55  ;;  %v268_v11 = vadd.f32 %v676_v3, %v200_v59  ;;  %v269_v15 = vadd.f32 %v676_v3, %v201_v5  ;;  %v342_v55 = vmul.f32 %v681_v4, %v138_v39 }
  0xe0   :  { %v467_v14 = vadd.f32 %v403_v1, %v267_v0  ;;  %v468_v20 = vadd.f32 %v404_v12, %v268_v11  ;;  %v469_v35 = vadd.f32 %v405_v26, %v269_v15  ;;  %v344_v0 = vmul.f32 %v681_v4, %v140_v51  ;;  %v141_v1 = vld [vmem:[%s1501_s3 + $0x1b0] sm:$0xff]  ;;  %v142_v11 = vld [vmem:[%s1501_s3 + $0x1b8] sm:$0xff]  ;;  %v626_v51 = vld [vmem:[%s1503_s5] ss:$0 sm:$0xff] }
  0xe2   :  { %v531_v25 = vmax.f32 %v467_v14, 0.0  ;;  %v532_v31 = vmax.f32 %v468_v20, 0.0  ;;  %v533_v46 = vmax.f32 %v469_v35, 0.0  ;;  %v412_v16 = vadd.f32 %v687_v6, %v344_v0 }
  0xe3   :  { %v345_v20 = vmul.f32 %v681_v4, %v141_v1 }
  0xe4   :  { %v70_v62 = vld [vmem:[%s1498_s0 + $0x178] sm:$0xff] }
  0xe5   :  { %591 = vst [vmem:[%s1504_s6 + $0x140] sm:$0xff] %v527_v53  ;;  %v202_v17 = vmul.f32 %v671_v2, %v70_v62  ;;  %v409_v53 = vadd.f32 %v687_v6, %v341_v42  ;;  %v410_v62 = vadd.f32 %v687_v6, %v342_v55  ;;  %v148_v55 = vld [vmem:[%s1501_s3 + $0x1e8] sm:$0xff] }
  0xe7   :  { %v270_v27 = vadd.f32 %v676_v3, %v202_v17  ;;  %v143_v17 = vld [vmem:[%s1501_s3 + $0x1c0] sm:$0xff] }
  0xe9   :  { %v470_v40 = vadd.f32 %v406_v32, %v270_v27  ;;  %v144_v27 = vld [vmem:[%s1501_s3 + $0x1c8] sm:$0xff]  ;;  %v347_v32 = vmul.f32 %v681_v4, %v143_v17 }
  0xeb   :  { %v534_v52 = vmax.f32 %v470_v40, 0.0  ;;  %v415_v39 = vadd.f32 %v687_v6, %v347_v32  ;;  %v624_v40 = vld [vmem:[%s1502_s4] ss:$0 sm:$0xff] }
  0xec   :  { %v71_v8 = vld [vmem:[%s1498_s0 + $0x180] sm:$0xff] }
  0xed   :  { %592 = vst [vmem:[%s1504_s6 + $0x148] sm:$0xff] %v528_v63  ;;  %v203_v22 = vmul.f32 %v671_v2, %v71_v8 }
  0xef   :  { %v271_v33 = vadd.f32 %v676_v3, %v203_v22 }
  0xf1   :  { %v471_v47 = vadd.f32 %v407_v36, %v271_v33  ;;  %v145_v33 = vld [vmem:[%s1501_s3 + $0x1d0] sm:$0xff] }
  0xf2   :  { %v349_v45 = vmul.f32 %v624_v40, %v145_v33 }
  0xf3   :  { %v535_v57 = vmax.f32 %v471_v47, 0.0 }
  0xf4   :  { %v72_v18 = vld [vmem:[%s1498_s0 + $0x188] sm:$0xff] }
  0xf5   :  { %593 = vst [vmem:[%s1504_s6 + $0x150] sm:$0xff] %v529_v9  ;;  %v204_v34 = vmul.f32 %v671_v2, %v72_v18  ;;  %v411_v9 = vadd.f32 %v687_v6, %v343_v60 }
  0xf7   :  { %v272_v41 = vadd.f32 %v676_v3, %v204_v34 }
  0xf9   :  { %v472_v58 = vadd.f32 %v408_v48, %v272_v41  ;;  %v348_v41 = vmul.f32 %v624_v40, %v144_v27  ;;  %v147_v48 = vld [vmem:[%s1501_s3 + $0x1e0] sm:$0xff] }
  0xfa   :  { %v351_v0 = vmul.f32 %v624_v40, %v147_v48 }
  0xfb   :  { %v536_v7 = vmax.f32 %v472_v58, 0.0 }
  0xfc   :  { %v73_v24 = vld [vmem:[%s1498_s0 + $0x190] sm:$0xff]  ;;  %v74_v30 = vld [vmem:[%s1498_s0 + $0x198] sm:$0xff] }
  0xfd   :  { %594 = vst [vmem:[%s1504_s6 + $0x158] sm:$0xff] %v530_v19  ;;  %v205_v38 = vmul.f32 %v671_v2, %v73_v24  ;;  %v206_v43 = vmul.f32 %v671_v2, %v74_v30  ;;  %v413_v30 = vadd.f32 %v687_v6, %v345_v20 }
  0xfe   :  { %595 = vst [vmem:[%s1504_s6 + $0x160] sm:$0xff] %v531_v25  ;;  %v346_v25 = vmul.f32 %v681_v4, %v142_v11  ;;  %v623_v4 = vld [vmem:[%s1499_s1] ss:$0 sm:$0xff] }
  0xff   :  { %596 = vst [vmem:[%s1504_s6 + $0x168] sm:$0xff] %v532_v31  ;;  %v273_v49 = vadd.f32 %v676_v3, %v205_v38  ;;  %v274_v54 = vadd.f32 %v676_v3, %v206_v43 }
 0x100   :  { %v414_v35 = vadd.f32 %v687_v6, %v346_v25 }
 0x101   :  { %v473_v61 = vadd.f32 %v409_v53, %v273_v49  ;;  %v474_v14 = vadd.f32 %v410_v62, %v274_v54 }
 0x103   :  { %v537_v13 = vmax.f32 %v473_v61, 0.0  ;;  %v538_v23 = vmax.f32 %v474_v14, 0.0 }
 0x106   :  { %v75_v44 = vld [vmem:[%s1498_s0 + $0x1a0] sm:$0xff]  ;;  %v76_v50 = vld [vmem:[%s1498_s0 + $0x1a8] sm:$0xff]  ;;  %v77_v56 = vld [vmem:[%s1498_s0 + $0x1b0] sm:$0xff] }
 0x107   :  { %597 = vst [vmem:[%s1504_s6 + $0x170] sm:$0xff] %v533_v46  ;;  %v207_v59 = vmul.f32 %v671_v2, %v75_v44  ;;  %v208_v63 = vmul.f32 %v671_v2, %v76_v50  ;;  %v209_v10 = vmul.f32 %v671_v2, %v77_v56  ;;  %v625_v44 = vld [vmem:[%s1500_s2] ss:$0 sm:$0xff] }
 0x108   :  { %598 = vst [vmem:[%s1504_s6 + $0x178] sm:$0xff] %v534_v52  ;;  %v416_v52 = vadd.f32 %v626_v51, %v348_v41 }
 0x109   :  { %v275_v8 = vadd.f32 %v676_v3, %v207_v59  ;;  %v276_v15 = vadd.f32 %v676_v3, %v208_v63  ;;  %v277_v19 = vadd.f32 %v676_v3, %v209_v10 }
 0x10b   :  { %v475_v18 = vadd.f32 %v411_v9, %v275_v8  ;;  %v476_v24 = vadd.f32 %v412_v16, %v276_v15  ;;  %v477_v38 = vadd.f32 %v413_v30, %v277_v19  ;;  %v352_v8 = vmul.f32 %v624_v40, %v148_v55  ;;  %v149_v9 = vld [vmem:[%s1501_s3 + $0x1f0] sm:$0xff]  ;;  %v150_v15 = vld [vmem:[%s1501_s3 + $0x1f8] sm:$0xff] }
 0x10d   :  { %v539_v29 = vmax.f32 %v475_v18, 0.0  ;;  %v540_v34 = vmax.f32 %v476_v24, 0.0  ;;  %v541_v49 = vmax.f32 %v477_v38, 0.0  ;;  %v420_v19 = vadd.f32 %v626_v51, %v352_v8 }
 0x10f   :  { %v78_v5 = vld [vmem:[%s1498_s0 + $0x1b8] sm:$0xff] }
 0x110   :  { %599 = vst [vmem:[%s1504_s6 + $0x180] sm:$0xff] %v535_v57  ;;  %v210_v21 = vmul.f32 %v671_v2, %v78_v5  ;;  %v417_v57 = vadd.f32 %v626_v51, %v349_v45 }
 0x112   :  { %v278_v31 = vadd.f32 %v676_v3, %v210_v21 }
 0x114   :  { %v478_v43 = vadd.f32 %v414_v35, %v278_v31 }
 0x116   :  { %v542_v56 = vmax.f32 %v478_v43, 0.0 }
 0x117   :  { %v79_v12 = vld [vmem:[%s1498_s0 + $0x1c0] sm:$0xff] }
 0x118   :  { %600 = vst [vmem:[%s1504_s6 + $0x188] sm:$0xff] %v536_v7  ;;  %v211_v26 = vmul.f32 %v671_v2, %v79_v12 }
 0x11a   :  { %v279_v36 = vadd.f32 %v676_v3, %v211_v26  ;;  %v146_v3 = vld [vmem:[%s1501_s3 + $0x1d8] sm:$0xff]  ;;  %v354_v26 = vmul.f32 %v624_v40, %v150_v15 }
 0x11b   :  { %v350_v59 = vmul.f32 %v624_v40, %v146_v3 }
 0x11c   :  { %v479_v50 = vadd.f32 %v415_v39, %v279_v36  ;;  %v422_v31 = vadd.f32 %v626_v51, %v354_v26 }
 0x11d   :  { %v418_v5 = vadd.f32 %v626_v51, %v350_v59 }
 0x11e   :  { %v543_v61 = vmax.f32 %v479_v50, 0.0 }
 0x11f   :  { %v80_v22 = vld [vmem:[%s1498_s0 + $0x1c8] sm:$0xff] }
 0x120   :  { %601 = vst [vmem:[%s1504_s6 + $0x190] sm:$0xff] %v537_v13  ;;  %v212_v37 = vmul.f32 %v623_v4, %v80_v22  ;;  %v419_v13 = vadd.f32 %v626_v51, %v351_v0  ;;  %v353_v22 = vmul.f32 %v624_v40, %v149_v9 }
 0x122   :  { %v280_v6 = vadd.f32 %v625_v44, %v212_v37 }
 0x124   :  { %v480_v62 = vadd.f32 %v416_v52, %v280_v6 }
 0x126   :  { %v544_v11 = vmax.f32 %v480_v62, 0.0 }
 0x127   :  { %v81_v28 = vld [vmem:[%s1498_s0 + $0x1d0] sm:$0xff]  ;;  %v82_v2 = vld [vmem:[%s1498_s0 + $0x1d8] sm:$0xff] }
 0x128   :  { %602 = vst [vmem:[%s1504_s6 + $0x198] sm:$0xff] %v538_v23  ;;  %v213_v42 = vmul.f32 %v623_v4, %v81_v28  ;;  %v214_v46 = vmul.f32 %v623_v4, %v82_v2  ;;  %v421_v28 = vadd.f32 %v626_v51, %v353_v22 }
 0x129   :  { %603 = vst [vmem:[%s1504_s6 + $0x1a0] sm:$0xff] %v539_v29 }
 0x12a   :  { %604 = vst [vmem:[%s1504_s6 + $0x1a8] sm:$0xff] %v540_v34  ;;  %v281_v53 = vadd.f32 %v625_v44, %v213_v42  ;;  %v282_v58 = vadd.f32 %v625_v44, %v214_v46 }
 0x12c   :  { %v481_v1 = vadd.f32 %v417_v57, %v281_v53  ;;  %v482_v17 = vadd.f32 %v418_v5, %v282_v58 }
 0x12e   :  { %v545_v16 = vmax.f32 %v481_v1, 0.0  ;;  %v546_v24 = vmax.f32 %v482_v17, 0.0 }
 0x131   :  { %v83_v47 = vld [vmem:[%s1498_s0 + $0x1e0] sm:$0xff]  ;;  %v84_v54 = vld [vmem:[%s1498_s0 + $0x1e8] sm:$0xff]  ;;  %v85_v60 = vld [vmem:[%s1498_s0 + $0x1f0] sm:$0xff] }
 0x132   :  { %605 = vst [vmem:[%s1504_s6 + $0x1b0] sm:$0xff] %v541_v49  ;;  %v215_v63 = vmul.f32 %v623_v4, %v83_v47  ;;  %v216_v7 = vmul.f32 %v623_v4, %v84_v54  ;;  %v217_v14 = vmul.f32 %v623_v4, %v85_v60 }
 0x133   :  { %606 = vst [vmem:[%s1504_s6 + $0x1b8] sm:$0xff] %v542_v56 }
 0x134   :  { %v283_v12 = vadd.f32 %v625_v44, %v215_v63  ;;  %v284_v18 = vadd.f32 %v625_v44, %v216_v7  ;;  %v285_v21 = vadd.f32 %v625_v44, %v217_v14 }
 0x136   :  { %v483_v20 = vadd.f32 %v419_v13, %v283_v12  ;;  %v484_v25 = vadd.f32 %v420_v19, %v284_v18  ;;  %v485_v32 = vadd.f32 %v421_v28, %v285_v21 }
 0x138   :  { %v547_v27 = vmax.f32 %v483_v20, 0.0  ;;  %v548_v30 = vmax.f32 %v484_v25, 0.0  ;;  %v549_v2 = vmax.f32 %v485_v32, 0.0 }
 0x13a   :  { %v86_v10 = vld [vmem:[%s1498_s0 + $0x1f8] sm:$0xff] }
 0x13b   :  { %607 = vst [vmem:[%s1504_s6 + $0x1c0] sm:$0xff] %v543_v61  ;;  %v218_v23 = vmul.f32 %v623_v4, %v86_v10 }
 0x13c   :  { %608 = vst [vmem:[%s1504_s6 + $0x1c8] sm:$0xff] %v544_v11 }
 0x13d   :  { %609 = vst [vmem:[%s1504_s6 + $0x1d0] sm:$0xff] %v545_v16  ;;  %v286_v29 = vadd.f32 %v625_v44, %v218_v23 }
 0x13e   :  { %610 = vst [vmem:[%s1504_s6 + $0x1d8] sm:$0xff] %v546_v24 }
 0x13f   :  { %611 = vst [vmem:[%s1504_s6 + $0x1e0] sm:$0xff] %v547_v27  ;;  %v486_v33 = vadd.f32 %v422_v31, %v286_v29 }
 0x140   :  { %612 = vst [vmem:[%s1504_s6 + $0x1e8] sm:$0xff] %v548_v30 }
 0x141   :  { %v550_v34 = vmax.f32 %v486_v33, 0.0  ;;  %613 = vst [vmem:[%s1504_s6 + $0x1f0] sm:$0xff] %v549_v2 }
 0x143   :  { %614 = vst [vmem:[%s1504_s6 + $0x1f8] sm:$0xff] %v550_v34 }

// kernel: basic_block_forward.6
= control target key start
LH: loop header
LB: loop body
LE: loop exit
PB: predicated region body
PF: predicated region fallthrough
CT: control target
= control target key end

     0   :  { %s878_s15 = smov 0   ;;  %s880_s16 = smov 0   ;;  %s1240_s0 = inlined_call_operand.vmem [shape: f32[2,16,16,128], index: 0, kind: input, shape index: {}]   ;;  %s1241_s1 = inlined_call_operand.vmem [shape: f32[1,128,128], index: 1, kind: input, shape index: {}]   ;;  %s1242_s2 = inlined_call_operand.vmem [shape: f32[2,256,128], index: 2, kind: output, shape index: {0}]   ;;  %s1243_s3 = inlined_call_operand.vmem [shape: f32[2,1,1,128], index: 3, kind: output, shape index: {1}]   ;;  %s1244_s4 = inlined_call_operand.vmem [shape: f32[2,1,1,128], index: 4, kind: output, shape index: {2}]  }
   0x1   :  { %s882_s17 = smov 0  }
   0x2 LB: > { %s27_s18 = sadd.s32 1, %s847_s16  ;;  %p748_p0 = scmp.ge.s32.totalorder %s851_s17, 1  ;;  %s851_s17 = sphi %s882_s17, %s15_s17   ;;  %s847_s16 = sphi %s880_s16, %s1246_s16   ;;  %s843_s15 = sphi %s878_s15, %s1245_s15  }
   0x3   : > { %p29_p1 = scmp.ge.s32.totalorder %s27_s18, 2  ;;  %p185_p2 = scmp.lt.s32.totalorder %s851_s17, 3 }
   0x5   : > { %s1248_s18 = smov (%p29_p1, %s27_s18), 0  ;;  %p186_p3 = pnand %p748_p0, %p185_p2 }
   0x6   : > { %p227_p4 = scmp.lt.s32.totalorder (!%p186_p3), %s843_s15, 1 }
   0x7   : > { %189 = sbr.rel (%p186_p3) target bundleno = 369 (0x171), region = 28 }
   0xc   : > { %v304_v0 = vld [vmem:[%s1241_s1 + $0x78] sm:$0xff]  ;;  %v303_v1 = vld [vmem:[%s1241_s1 + $0x70] sm:$0xff]  ;;  %v302_v2 = vld [vmem:[%s1241_s1 + $0x68] sm:$0xff]  ;;  %s1250_s15 = smov (!%p227_p4, %s843_s15), 1 }
   0xd   : > { %305 = vmatpush.msra.mxu0 %v304_v0  ;;  %757 = vmatpush.msra.mxu1 %v304_v0  ;;  %v301_v3 = vld [vmem:[%s1241_s1 + $0x60] sm:$0xff]  ;;  %v300_v4 = vld [vmem:[%s1241_s1 + $0x58] sm:$0xff]  ;;  %v299_v5 = vld [vmem:[%s1241_s1 + $0x50] sm:$0xff]  ;;  %s755_s23 = sshll.u32 %s1250_s15, 8  ;;  %s247_s12 = scalar_lea.vmem %s1243_s3, %s1250_s15 }
   0xe   : > { %758 = vmatpush.msra.mxu2 %v304_v0  ;;  %759 = vmatpush.msra.mxu3 %v304_v0  ;;  %v298_v6 = vld [vmem:[%s1241_s1 + $0x48] sm:$0xff]  ;;  %v297_v7 = vld [vmem:[%s1241_s1 + $0x40] sm:$0xff]  ;;  %v296_v8 = vld [vmem:[%s1241_s1 + $0x38] sm:$0xff]  ;;  %s953_s30 = scalar_lea.vmem %s1240_s0, %s755_s23  ;;  %s995_s9 = scalar_lea.vmem %s1242_s2, %s755_s23 }
   0xf   : > { %306 = vmatpush.msra.mxu0 %v303_v1  ;;  %760 = vmatpush.msra.mxu1 %v303_v1  ;;  %v295_v9 = vld [vmem:[%s1241_s1 + $0x30] sm:$0xff]  ;;  %v294_v10 = vld [vmem:[%s1241_s1 + $0x28] sm:$0xff]  ;;  %v293_v11 = vld [vmem:[%s1241_s1 + $0x20] sm:$0xff]  ;;  %s253_s19 = scalar_lea.vmem %s1244_s4, %s1250_s15 }
  0x10   : > { %761 = vmatpush.msra.mxu2 %v303_v1  ;;  %762 = vmatpush.msra.mxu3 %v303_v1  ;;  %v292_v12 = vld [vmem:[%s1241_s1 + $0x18] sm:$0xff]  ;;  %v291_v13 = vld [vmem:[%s1241_s1 + $0x10] sm:$0xff]  ;;  %v290_v14 = vld [vmem:[%s1241_s1 + $0x8] sm:$0xff] }
  0x11   : > { %307 = vmatpush.msra.mxu0 %v302_v2  ;;  %763 = vmatpush.msra.mxu1 %v302_v2  ;;  %v289_v15 = vld [vmem:[%s1241_s1] sm:$0xff]  ;;  %v258_v19 = vld [vmem:[%s953_s30 + $0x8] sm:$0xff]  ;;  %v259_v23 = vld [vmem:[%s953_s30 + $0x10] sm:$0xff] }
  0x12   : > { %764 = vmatpush.msra.mxu2 %v302_v2  ;;  %765 = vmatpush.msra.mxu3 %v302_v2  ;;  %v257_v16 = vld [vmem:[%s953_s30] sm:$0xff]  ;;  %v266_v20 = vld [vmem:[%s953_s30 + $0x48] sm:$0xff]  ;;  %v267_v24 = vld [vmem:[%s953_s30 + $0x50] sm:$0xff] }
  0x13   : > { %308 = vmatpush.msra.mxu0 %v301_v3  ;;  %766 = vmatpush.msra.mxu1 %v301_v3  ;;  %v265_v17 = vld [vmem:[%s953_s30 + $0x40] sm:$0xff]  ;;  %v274_v21 = vld [vmem:[%s953_s30 + $0x88] sm:$0xff]  ;;  %v275_v25 = vld [vmem:[%s953_s30 + $0x90] sm:$0xff] }
  0x14   : > { %767 = vmatpush.msra.mxu2 %v301_v3  ;;  %768 = vmatpush.msra.mxu3 %v301_v3  ;;  %v273_v18 = vld [vmem:[%s953_s30 + $0x80] sm:$0xff]  ;;  %v282_v26 = vld [vmem:[%s953_s30 + $0xc8] sm:$0xff]  ;;  %v260_v27 = vld [vmem:[%s953_s30 + $0x18] sm:$0xff] }
  0x15   : > { %309 = vmatpush.msra.mxu0 %v300_v4  ;;  %769 = vmatpush.msra.mxu1 %v300_v4  ;;  %v281_v22 = vld [vmem:[%s953_s30 + $0xc0] sm:$0xff]  ;;  %v268_v28 = vld [vmem:[%s953_s30 + $0x58] sm:$0xff]  ;;  %v283_v30 = vld [vmem:[%s953_s30 + $0xd0] sm:$0xff] }
  0x16   : > { %770 = vmatpush.msra.mxu2 %v300_v4  ;;  %771 = vmatpush.msra.mxu3 %v300_v4  ;;  %v276_v29 = vld [vmem:[%s953_s30 + $0x98] sm:$0xff]  ;;  %v261_v31 = vld [vmem:[%s953_s30 + $0x20] sm:$0xff]  ;;  %v262_v35 = vld [vmem:[%s953_s30 + $0x28] sm:$0xff] }
  0x17   : > { %310 = vmatpush.msra.mxu0 %v299_v5  ;;  %772 = vmatpush.msra.mxu1 %v299_v5  ;;  %v269_v32 = vld [vmem:[%s953_s30 + $0x60] sm:$0xff]  ;;  %v284_v33 = vld [vmem:[%s953_s30 + $0xd8] sm:$0xff]  ;;  %v270_v36 = vld [vmem:[%s953_s30 + $0x68] sm:$0xff] }
  0x18   : > { %773 = vmatpush.msra.mxu2 %v299_v5  ;;  %774 = vmatpush.msra.mxu3 %v299_v5  ;;  %v277_v34 = vld [vmem:[%s953_s30 + $0xa0] sm:$0xff]  ;;  %v278_v38 = vld [vmem:[%s953_s30 + $0xa8] sm:$0xff]  ;;  %v263_v39 = vld [vmem:[%s953_s30 + $0x30] sm:$0xff] }
  0x19   : > { %311 = vmatpush.msra.mxu0 %v298_v6  ;;  %775 = vmatpush.msra.mxu1 %v298_v6  ;;  %v285_v37 = vld [vmem:[%s953_s30 + $0xe0] sm:$0xff]  ;;  %v271_v40 = vld [vmem:[%s953_s30 + $0x70] sm:$0xff]  ;;  %v286_v41 = vld [vmem:[%s953_s30 + $0xe8] sm:$0xff] }
  0x1a   : > { %776 = vmatpush.msra.mxu2 %v298_v6  ;;  %777 = vmatpush.msra.mxu3 %v298_v6  ;;  %v279_v42 = vld [vmem:[%s953_s30 + $0xb0] sm:$0xff]  ;;  %v264_v43 = vld [vmem:[%s953_s30 + $0x38] sm:$0xff] }
  0x1b   : > { %312 = vmatpush.msra.mxu0 %v297_v7  ;;  %778 = vmatpush.msra.mxu1 %v297_v7  ;;  %v272_v44 = vld [vmem:[%s953_s30 + $0x78] sm:$0xff]  ;;  %v287_v45 = vld [vmem:[%s953_s30 + $0xf0] sm:$0xff] }
  0x1c   : > { %779 = vmatpush.msra.mxu2 %v297_v7  ;;  %780 = vmatpush.msra.mxu3 %v297_v7  ;;  %v280_v46 = vld [vmem:[%s953_s30 + $0xb8] sm:$0xff] }
  0x1d   : > { %313 = vmatpush.msra.mxu0 %v296_v8  ;;  %781 = vmatpush.msra.mxu1 %v296_v8  ;;  %v288_v47 = vld [vmem:[%s953_s30 + $0xf8] sm:$0xff] }
  0x1e   : > { %782 = vmatpush.msra.mxu2 %v296_v8  ;;  %783 = vmatpush.msra.mxu3 %v296_v8 }
  0x1f   : > { %314 = vmatpush.msra.mxu0 %v295_v9  ;;  %784 = vmatpush.msra.mxu1 %v295_v9 }
  0x20   : > { %785 = vmatpush.msra.mxu2 %v295_v9  ;;  %786 = vmatpush.msra.mxu3 %v295_v9 }
  0x21   : > { %315 = vmatpush.msra.mxu0 %v294_v10  ;;  %787 = vmatpush.msra.mxu1 %v294_v10 }
  0x22   : > { %788 = vmatpush.msra.mxu2 %v294_v10  ;;  %789 = vmatpush.msra.mxu3 %v294_v10 }
  0x23   : > { %316 = vmatpush.msra.mxu0 %v293_v11  ;;  %790 = vmatpush.msra.mxu1 %v293_v11 }
  0x24   : > { %791 = vmatpush.msra.mxu2 %v293_v11  ;;  %792 = vmatpush.msra.mxu3 %v293_v11 }
  0x25   : > { %317 = vmatpush.msra.mxu0 %v292_v12  ;;  %793 = vmatpush.msra.mxu1 %v292_v12 }
  0x26   : > { %794 = vmatpush.msra.mxu2 %v292_v12  ;;  %795 = vmatpush.msra.mxu3 %v292_v12 }
  0x27   : > { %318 = vmatpush.msra.mxu0 %v291_v13  ;;  %796 = vmatpush.msra.mxu1 %v291_v13 }
  0x28   : > { %797 = vmatpush.msra.mxu2 %v291_v13  ;;  %798 = vmatpush.msra.mxu3 %v291_v13 }
  0x29   : > { %319 = vmatpush.msra.mxu0 %v290_v14  ;;  %799 = vmatpush.msra.mxu1 %v290_v14 }
  0x2a   : > { %800 = vmatpush.msra.mxu2 %v290_v14  ;;  %801 = vmatpush.msra.mxu3 %v290_v14 }
  0x2b   : > { %320 = vmatpush.msra.mxu0 %v289_v15  ;;  %802 = vmatpush.msra.mxu1 %v289_v15 }
  0x2c   : > { %321 = vmatmul.f32.vlgmr.msra.gmra.mxu0 %v257_v16  ;;  %345 = vmatmul.f32.vlgmr.msra.gmra.mxu1 %v265_v17 }
  0x2d   : > { %803 = vmatpush.msra.mxu2 %v289_v15  ;;  %804 = vmatpush.msra.mxu3 %v289_v15 }
  0x2e   : > { %369 = vmatmul.f32.vlgmr.msra.gmra.mxu2 %v273_v18  ;;  %393 = vmatmul.f32.vlgmr.msra.gmra.mxu3 %v281_v22 }
  0x34   : > { %324 = vmatmul.f32.gmra.mxu0 %v258_v19  ;;  %348 = vmatmul.f32.gmra.mxu1 %v266_v20 }
  0x36   : > { %372 = vmatmul.f32.gmra.mxu2 %v274_v21  ;;  %396 = vmatmul.f32.gmra.mxu3 %v282_v26 }
  0x3c   : > { %327 = vmatmul.f32.gmra.mxu0 %v259_v23  ;;  %351 = vmatmul.f32.gmra.mxu1 %v267_v24 }
  0x3e   : > { %375 = vmatmul.f32.gmra.mxu2 %v275_v25  ;;  %399 = vmatmul.f32.gmra.mxu3 %v283_v30 }
  0x44   : > { %330 = vmatmul.f32.gmra.mxu0 %v260_v27  ;;  %354 = vmatmul.f32.gmra.mxu1 %v268_v28 }
  0x46   : > { %378 = vmatmul.f32.gmra.mxu2 %v276_v29  ;;  %402 = vmatmul.f32.gmra.mxu3 %v284_v33 }
  0x4c   : > { %333 = vmatmul.f32.gmra.mxu0 %v261_v31  ;;  %357 = vmatmul.f32.gmra.mxu1 %v269_v32 }
  0x4e   : > { %381 = vmatmul.f32.gmra.mxu2 %v277_v34  ;;  %405 = vmatmul.f32.gmra.mxu3 %v285_v37 }
  0x54   : > { %336 = vmatmul.f32.gmra.mxu0 %v262_v35  ;;  %360 = vmatmul.f32.gmra.mxu1 %v270_v36 }
  0x56   : > { %384 = vmatmul.f32.gmra.mxu2 %v278_v38  ;;  %408 = vmatmul.f32.gmra.mxu3 %v286_v41 }
  0x5c   : > { %339 = vmatmul.f32.gmra.mxu0 %v263_v39  ;;  %363 = vmatmul.f32.gmra.mxu1 %v271_v40 }
  0x5e   : > { %387 = vmatmul.f32.gmra.mxu2 %v279_v42  ;;  %411 = vmatmul.f32.gmra.mxu3 %v287_v45 }
  0x64   : > { %342 = vmatmul.f32.gmra.mxu0 %v264_v43  ;;  %366 = vmatmul.f32.gmra.mxu1 %v272_v44 }
  0x66   : > { %390 = vmatmul.f32.gmra.mxu2 %v280_v46  ;;  %414 = vmatmul.f32.gmra.mxu3 %v288_v47 }
  0xa9   : > { %v997_v48 = vpop.f32.mrf.mxu0  ;;  %v999_v49 = vpop.f32.mrf.mxu1 }
  0xaa   : > { %418 = vst [vmem:[%s995_s9] sm:$0xff] %v997_v48 }
  0xab   : > { %426 = vst [vmem:[%s995_s9 + $0x40] sm:$0xff] %v999_v49 }
  0xb1   : > { %v1005_v50 = vpop.f32.mrf.mxu0  ;;  %v1007_v51 = vpop.f32.mrf.mxu1 }
  0xb2   : > { %419 = vst [vmem:[%s995_s9 + $0x8] sm:$0xff] %v1005_v50  ;;  %v1011_v52 = vpop.f32.mrf.mxu2  ;;  %v1025_v56 = vpop.f32.mrf.mxu3  ;;  %v450_v5 = vadd.f32 %v1005_v50, %v997_v48 }
  0xb3   : > { %427 = vst [vmem:[%s995_s9 + $0x48] sm:$0xff] %v1007_v51 }
  0xb4   : > { %434 = vst [vmem:[%s995_s9 + $0x80] sm:$0xff] %v1011_v52 }
  0xb5   : > { %442 = vst [vmem:[%s995_s9 + $0xc0] sm:$0xff] %v1025_v56 }
  0xb9   : > { %v1017_v53 = vpop.f32.mrf.mxu0  ;;  %v1019_v54 = vpop.f32.mrf.mxu1 }
  0xba   : > { %420 = vst [vmem:[%s995_s9 + $0x10] sm:$0xff] %v1017_v53  ;;  %v1023_v55 = vpop.f32.mrf.mxu2  ;;  %v1041_v60 = vpop.f32.mrf.mxu3  ;;  %v451_v6 = vadd.f32 %v450_v5, %v1017_v53 }
  0xbb   : > { %428 = vst [vmem:[%s995_s9 + $0x50] sm:$0xff] %v1019_v54 }
  0xbc   : > { %435 = vst [vmem:[%s995_s9 + $0x88] sm:$0xff] %v1023_v55 }
  0xbd   : > { %443 = vst [vmem:[%s995_s9 + $0xc8] sm:$0xff] %v1041_v60 }
  0xc1   : > { %v1033_v57 = vpop.f32.mrf.mxu0  ;;  %v1035_v58 = vpop.f32.mrf.mxu1 }
  0xc2   : > { %421 = vst [vmem:[%s995_s9 + $0x18] sm:$0xff] %v1033_v57  ;;  %v1039_v59 = vpop.f32.mrf.mxu2  ;;  %v1057_v0 = vpop.f32.mrf.mxu3  ;;  %v452_v9 = vadd.f32 %v451_v6, %v1033_v57 }
  0xc3   : > { %429 = vst [vmem:[%s995_s9 + $0x58] sm:$0xff] %v1035_v58 }
  0xc4   : > { %436 = vst [vmem:[%s995_s9 + $0x90] sm:$0xff] %v1039_v59 }
  0xc5   : > { %444 = vst [vmem:[%s995_s9 + $0xd0] sm:$0xff] %v1057_v0 }
  0xc9   : > { %v1049_v61 = vpop.f32.mrf.mxu0  ;;  %v1051_v62 = vpop.f32.mrf.mxu1 }
  0xca   : > { %422 = vst [vmem:[%s995_s9 + $0x20] sm:$0xff] %v1049_v61  ;;  %v1055_v63 = vpop.f32.mrf.mxu2  ;;  %v1073_v4 = vpop.f32.mrf.mxu3  ;;  %v453_v12 = vadd.f32 %v452_v9, %v1049_v61 }
  0xcb   : > { %430 = vst [vmem:[%s995_s9 + $0x60] sm:$0xff] %v1051_v62 }
  0xcc   : > { %437 = vst [vmem:[%s995_s9 + $0x98] sm:$0xff] %v1055_v63 }
  0xcd   : > { %445 = vst [vmem:[%s995_s9 + $0xd8] sm:$0xff] %v1073_v4 }
  0xd1   : > { %v1065_v1 = vpop.f32.mrf.mxu0  ;;  %v1067_v2 = vpop.f32.mrf.mxu1 }
  0xd2   : > { %423 = vst [vmem:[%s995_s9 + $0x28] sm:$0xff] %v1065_v1  ;;  %v1071_v3 = vpop.f32.mrf.mxu2  ;;  %v1093_v11 = vpop.f32.mrf.mxu3  ;;  %v454_v13 = vadd.f32 %v453_v12, %v1065_v1 }
  0xd3   : > { %431 = vst [vmem:[%s995_s9 + $0x68] sm:$0xff] %v1067_v2 }
  0xd4   : > { %438 = vst [vmem:[%s995_s9 + $0xa0] sm:$0xff] %v1071_v3 }
  0xd5   : > { %446 = vst [vmem:[%s995_s9 + $0xe0] sm:$0xff] %v1093_v11 }
  0xd9   : > { %v1084_v7 = vpop.f32.mrf.mxu0  ;;  %v1086_v8 = vpop.f32.mrf.mxu1 }
  0xda   : > { %424 = vst [vmem:[%s995_s9 + $0x30] sm:$0xff] %v1084_v7  ;;  %v1091_v10 = vpop.f32.mrf.mxu2  ;;  %v455_v14 = vadd.f32 %v454_v13, %v1084_v7  ;;  %v1113_v19 = vpop.f32.mrf.mxu3 }
  0xdb   : > { %432 = vst [vmem:[%s995_s9 + $0x70] sm:$0xff] %v1086_v8 }
  0xdc   : > { %439 = vst [vmem:[%s995_s9 + $0xa8] sm:$0xff] %v1091_v10 }
  0xdd   : > { %447 = vst [vmem:[%s995_s9 + $0xe8] sm:$0xff] %v1113_v19 }
  0xe1   : > { %v1104_v15 = vpop.f32.mrf.mxu0  ;;  %v1106_v16 = vpop.f32.mrf.mxu1 }
  0xe2   : > { %425 = vst [vmem:[%s995_s9 + $0x38] sm:$0xff] %v1104_v15  ;;  %v456_v17 = vadd.f32 %v455_v14, %v1104_v15  ;;  %v1111_v18 = vpop.f32.mrf.mxu2  ;;  %v1127_v25 = vpop.f32.mrf.mxu3 }
  0xe3   : > { %433 = vst [vmem:[%s995_s9 + $0x78] sm:$0xff] %v1106_v16 }
  0xe4   : > { %v457_v20 = vadd.f32 %v456_v17, %v999_v49  ;;  %440 = vst [vmem:[%s995_s9 + $0xb0] sm:$0xff] %v1111_v18 }
  0xe5   : > { %448 = vst [vmem:[%s995_s9 + $0xf0] sm:$0xff] %v1127_v25 }
  0xe6   : > { %v458_v21 = vadd.f32 %v457_v20, %v1007_v51 }
  0xe8   : > { %v459_v22 = vadd.f32 %v458_v21, %v1019_v54 }
  0xea   : > { %v460_v23 = vadd.f32 %v459_v22, %v1035_v58  ;;  %v1125_v24 = vpop.f32.mrf.mxu2  ;;  %v1137_v30 = vpop.f32.mrf.mxu3 }
  0xeb   : > { %441 = vst [vmem:[%s995_s9 + $0xb8] sm:$0xff] %v1125_v24 }
  0xec   : > { %v461_v26 = vadd.f32 %v460_v23, %v1051_v62  ;;  %449 = vst [vmem:[%s995_s9 + $0xf8] sm:$0xff] %v1137_v30 }
  0xee   : > { %v462_v27 = vadd.f32 %v461_v26, %v1067_v2 }
  0xf0   : > { %v463_v28 = vadd.f32 %v462_v27, %v1086_v8 }
  0xf2   : > { %v464_v29 = vadd.f32 %v463_v28, %v1106_v16 }
  0xf4   : > { %v465_v31 = vadd.f32 %v464_v29, %v1011_v52 }
  0xf6   : > { %v466_v32 = vadd.f32 %v465_v31, %v1023_v55 }
  0xf8   : > { %v467_v33 = vadd.f32 %v466_v32, %v1039_v59 }
  0xfa   : > { %v468_v34 = vadd.f32 %v467_v33, %v1055_v63 }
  0xfc   : > { %v469_v35 = vadd.f32 %v468_v34, %v1071_v3 }
  0xfe   : > { %v470_v36 = vadd.f32 %v469_v35, %v1091_v10 }
 0x100   : > { %v471_v37 = vadd.f32 %v470_v36, %v1111_v18 }
 0x102   : > { %v472_v38 = vadd.f32 %v471_v37, %v1125_v24 }
 0x104   : > { %v473_v39 = vadd.f32 %v472_v38, %v1025_v56 }
 0x106   : > { %v474_v40 = vadd.f32 %v473_v39, %v1041_v60 }
 0x108   : > { %v475_v41 = vadd.f32 %v474_v40, %v1057_v0 }
 0x10a   : > { %v476_v42 = vadd.f32 %v475_v41, %v1073_v4 }
 0x10c   : > { %v477_v43 = vadd.f32 %v476_v42, %v1093_v11 }
 0x10e   : > { %v478_v44 = vadd.f32 %v477_v43, %v1113_v19 }
 0x110   : > { %v479_v45 = vadd.f32 %v478_v44, %v1127_v25 }
 0x112   : > { %v480_v46 = vadd.f32 %v479_v45, %v1137_v30 }
 0x114   : > { %v481_v47 = vrot.slane %v480_v46, 4 }
 0x116   : > { %v482_v5 = vadd.f32 %v481_v47, %v480_v46 }
 0x118   : > { %v483_v6 = vrot.slane %v482_v5, 2 }
 0x11a   : > { %v484_v9 = vadd.f32 %v483_v6, %v482_v5 }
 0x11c   : > { %v485_v12 = vrot.slane %v484_v9, 1 }
 0x11e   : > { %v486_v13 = vadd.f32 %v485_v12, %v484_v9 }
 0x120   : > { %520 = vst [vmem:[%s247_s12] sm:$0x1] %v486_v13  ;;  %v1161_v14 = vmul.f32 0.00390625, %v486_v13 }
 0x122   : > { %v488_v17 = vsub.f32 %v997_v48, %v1161_v14  ;;  %v489_v20 = vsub.f32 %v1005_v50, %v1161_v14  ;;  %v490_v21 = vsub.f32 %v1017_v53, %v1161_v14  ;;  %v491_v26 = vsub.f32 %v1033_v57, %v1161_v14 }
 0x123   : > { %v492_v27 = vsub.f32 %v1049_v61, %v1161_v14  ;;  %v493_v31 = vsub.f32 %v1065_v1, %v1161_v14  ;;  %v494_v50 = vsub.f32 %v1084_v7, %v1161_v14  ;;  %v495_v34 = vsub.f32 %v1104_v15, %v1161_v14 }
 0x124   : > { %v521_v22 = vmul.f32 %v488_v17, %v488_v17  ;;  %v522_v23 = vmul.f32 %v489_v20, %v489_v20  ;;  %v523_v28 = vmul.f32 %v490_v21, %v490_v21  ;;  %v524_v48 = vmul.f32 %v491_v26, %v491_v26 }
 0x125   : > { %v525_v33 = vmul.f32 %v492_v27, %v492_v27  ;;  %v526_v35 = vmul.f32 %v493_v31, %v493_v31  ;;  %v496_v61 = vsub.f32 %v999_v49, %v1161_v14  ;;  %v527_v36 = vmul.f32 %v494_v50, %v494_v50 }
 0x126   : > { %v553_v29 = vadd.f32 %v522_v23, %v521_v22  ;;  %v497_v1 = vsub.f32 %v1007_v51, %v1161_v14  ;;  %v528_v38 = vmul.f32 %v495_v34, %v495_v34  ;;  %v498_v7 = vsub.f32 %v1019_v54, %v1161_v14 }
 0x127   : > { %v529_v40 = vmul.f32 %v496_v61, %v496_v61  ;;  %v499_v15 = vsub.f32 %v1035_v58, %v1161_v14  ;;  %v500_v49 = vsub.f32 %v1051_v62, %v1161_v14  ;;  %v501_v51 = vsub.f32 %v1067_v2, %v1161_v14 }
 0x128   : > { %v554_v32 = vadd.f32 %v553_v29, %v523_v28  ;;  %v530_v42 = vmul.f32 %v497_v1, %v497_v1  ;;  %v531_v44 = vmul.f32 %v498_v7, %v498_v7  ;;  %v502_v54 = vsub.f32 %v1086_v8, %v1161_v14 }
 0x129   : > { %v532_v46 = vmul.f32 %v499_v15, %v499_v15  ;;  %v533_v5 = vmul.f32 %v500_v49, %v500_v49  ;;  %v503_v58 = vsub.f32 %v1106_v16, %v1161_v14  ;;  %v534_v9 = vmul.f32 %v501_v51, %v501_v51 }
 0x12a   : > { %v555_v53 = vadd.f32 %v554_v32, %v524_v48  ;;  %v504_v62 = vsub.f32 %v1011_v52, %v1161_v14  ;;  %v535_v13 = vmul.f32 %v502_v54, %v502_v54  ;;  %v505_v2 = vsub.f32 %v1023_v55, %v1161_v14 }
 0x12b   : > { %v536_v20 = vmul.f32 %v503_v58, %v503_v58  ;;  %v506_v8 = vsub.f32 %v1039_v59, %v1161_v14  ;;  %v507_v16 = vsub.f32 %v1055_v63, %v1161_v14  ;;  %v508_v52 = vsub.f32 %v1071_v3, %v1161_v14 }
 0x12c   : > { %v556_v57 = vadd.f32 %v555_v53, %v525_v33  ;;  %v537_v22 = vmul.f32 %v504_v62, %v504_v62  ;;  %v538_v26 = vmul.f32 %v505_v2, %v505_v2  ;;  %v509_v55 = vsub.f32 %v1091_v10, %v1161_v14 }
 0x12d   : > { %v539_v28 = vmul.f32 %v506_v8, %v506_v8  ;;  %v540_v31 = vmul.f32 %v507_v16, %v507_v16  ;;  %v510_v59 = vsub.f32 %v1111_v18, %v1161_v14  ;;  %v541_v32 = vmul.f32 %v508_v52, %v508_v52 }
 0x12e   : > { %v557_v37 = vadd.f32 %v556_v57, %v526_v35  ;;  %v511_v63 = vsub.f32 %v1125_v24, %v1161_v14  ;;  %v542_v33 = vmul.f32 %v509_v55, %v509_v55  ;;  %v512_v3 = vsub.f32 %v1025_v56, %v1161_v14 }
 0x12f   : > { %v543_v34 = vmul.f32 %v510_v59, %v510_v59  ;;  %v513_v10 = vsub.f32 %v1041_v60, %v1161_v14  ;;  %v514_v18 = vsub.f32 %v1057_v0, %v1161_v14  ;;  %v515_v24 = vsub.f32 %v1073_v4, %v1161_v14 }
 0x130   : > { %v558_v39 = vadd.f32 %v557_v37, %v527_v36  ;;  %v544_v57 = vmul.f32 %v511_v63, %v511_v63  ;;  %v545_v36 = vmul.f32 %v512_v3, %v512_v3  ;;  %v516_v56 = vsub.f32 %v1093_v11, %v1161_v14 }
 0x131   : > { %v546_v1 = vmul.f32 %v513_v10, %v513_v10  ;;  %v517_v60 = vsub.f32 %v1113_v19, %v1161_v14  ;;  %v518_v0 = vsub.f32 %v1127_v25, %v1161_v14  ;;  %v519_v4 = vsub.f32 %v1137_v30, %v1161_v14 }
 0x132   : > { %v559_v41 = vadd.f32 %v558_v39, %v528_v38  ;;  %v547_v39 = vmul.f32 %v514_v18, %v514_v18  ;;  %v549_v15 = vmul.f32 %v516_v56, %v516_v56 }
 0x134   : > { %v560_v43 = vadd.f32 %v559_v41, %v529_v40  ;;  %v548_v40 = vmul.f32 %v515_v24, %v515_v24 }
 0x136   : > { %v561_v45 = vadd.f32 %v560_v43, %v530_v42  ;;  %v550_v43 = vmul.f32 %v517_v60, %v517_v60 }
 0x138   : > { %v562_v47 = vadd.f32 %v561_v45, %v531_v44  ;;  %v551_v44 = vmul.f32 %v518_v0, %v518_v0  ;;  %v552_v45 = vmul.f32 %v519_v4, %v519_v4 }
 0x13a   : > { %v563_v6 = vadd.f32 %v562_v47, %v532_v46 }
 0x13c   : > { %v564_v12 = vadd.f32 %v563_v6, %v533_v5 }
 0x13e   : > { %v565_v17 = vadd.f32 %v564_v12, %v534_v9 }
 0x140   : > { %v566_v21 = vadd.f32 %v565_v17, %v535_v13 }
 0x142   : > { %v567_v23 = vadd.f32 %v566_v21, %v536_v20 }
 0x144   : > { %v568_v27 = vadd.f32 %v567_v23, %v537_v22 }
 0x146   : > { %v569_v29 = vadd.f32 %v568_v27, %v538_v26 }
 0x148   : > { %v570_v48 = vadd.f32 %v569_v29, %v539_v28 }
 0x14a   : > { %v571_v50 = vadd.f32 %v570_v48, %v540_v31 }
 0x14c   : > { %v572_v53 = vadd.f32 %v571_v50, %v541_v32 }
 0x14e   : > { %v573_v35 = vadd.f32 %v572_v53, %v542_v33 }
 0x150   : > { %v574_v61 = vadd.f32 %v573_v35, %v543_v34 }
 0x152   : > { %v575_v37 = vadd.f32 %v574_v61, %v544_v57 }
 0x154   : > { %v576_v38 = vadd.f32 %v575_v37, %v545_v36 }
 0x156   : > { %v577_v7 = vadd.f32 %v576_v38, %v546_v1 }
 0x158   : > { %v578_v41 = vadd.f32 %v577_v7, %v547_v39 }
 0x15a   : > { %v579_v42 = vadd.f32 %v578_v41, %v548_v40 }
 0x15c   : > { %v580_v49 = vadd.f32 %v579_v42, %v549_v15 }
 0x15e   : > { %v581_v11 = vadd.f32 %v580_v49, %v550_v43 }
 0x160   : > { %v582_v51 = vadd.f32 %v581_v11, %v551_v44 }
 0x162   : > { %v583_v46 = vadd.f32 %v582_v51, %v552_v45 }
 0x164   : > { %v584_v47 = vrot.slane %v583_v46, 4 }
 0x166   : > { %v585_v19 = vadd.f32 %v584_v47, %v583_v46 }
 0x168   : > { %v586_v54 = vrot.slane %v585_v19, 2 }
 0x16a   : > { %v587_v5 = vadd.f32 %v586_v54, %v585_v19 }
 0x16c   : > { %v588_v6 = vrot.slane %v587_v5, 1 }
 0x16e   : > { %v589_v25 = vadd.f32 %v588_v6, %v587_v5 }
 0x170   : > { %590 = vst [vmem:[%s253_s19] sm:$0x1] %v589_v25 }
 0x171 PF: > { %s15_s17 = sadd.s32 1, %s851_s17   ;;  %s1245_s15 = smov %s847_s16 }
 0x172   : > { %p12_p5 = scmp.ge.s32.totalorder %s15_s17, 4   ;;  %s1246_s16 = smov %s1248_s18 }
 0x174   :  { %14 = sbr.rel (!%p12_p5) target bundleno = 2 (0x2), region = 83 }

// kernel: basic_block_forward.4
= control target key start
LH: loop header
LB: loop body
LE: loop exit
PB: predicated region body
PF: predicated region fallthrough
CT: control target
= control target key end

     0   :  { %s2332_s15 = smov 0   ;;  %s2334_s16 = smov 0   ;;  %s3741_s0 = inlined_call_operand.vmem [shape: f32[2,16,16,128], index: 0, kind: input, shape index: {}]   ;;  %s3742_s1 = inlined_call_operand.vmem [shape: f32[3,384,128], index: 1, kind: input, shape index: {}]   ;;  %s3743_s2 = inlined_call_operand.vmem [shape: f32[2,256,128], index: 2, kind: output, shape index: {0}]   ;;  %s3744_s3 = inlined_call_operand.vmem [shape: f32[2,1,1,128], index: 3, kind: output, shape index: {1}]   ;;  %s3745_s4 = inlined_call_operand.vmem [shape: f32[2,1,1,128], index: 4, kind: output, shape index: {2}]  }
   0x1   :  { %s2336_s17 = smov 0  }
   0x2 LB: > { %s27_s18 = sadd.s32 1, %s2300_s16  ;;  %p2049_p0 = scmp.ge.s32.totalorder %s2304_s17, 1  ;;  %s2304_s17 = sphi %s2336_s17, %s15_s17   ;;  %s2300_s16 = sphi %s2334_s16, %s3835_s16   ;;  %s2296_s15 = sphi %s2332_s15, %s3834_s15  }
   0x3   : > { %p29_p1 = scmp.ge.s32.totalorder %s27_s18, 2  ;;  %p185_p2 = scmp.lt.s32.totalorder %s2304_s17, 3 }
   0x5   : > { %s3837_s18 = smov (%p29_p1, %s27_s18), 0  ;;  %p186_p3 = pnand %p2049_p0, %p185_p2 }
   0x7   : > { %189 = sbr.rel (%p186_p3) target bundleno = 865 (0x361), region = 28 }
   0xc   : > { %v2069_v0 = vld [vmem:[%s3742_s1 + $0x1f8] sm:$0xff]  ;;  %v2068_v1 = vld [vmem:[%s3742_s1 + $0x1f0] sm:$0xff]  ;;  %p227_p4 = scmp.lt.s32.totalorder %s2296_s15, 1  ;;  %v2306_v2 = vmov 0.0   ;;  %v2067_v3 = vld [vmem:[%s3742_s1 + $0x1e8] sm:$0xff] }
   0xd   : > { %2154 = vmatpush.msra.mxu1 %v2069_v0  ;;  %2155 = vmatpush.msra.mxu2 %v2069_v0  ;;  %316 = vst [vmem:[#allocation2 + $0xd0] sm:$0xff] %v2306_v2  ;;  %v2066_v4 = vld [vmem:[%s3742_s1 + $0x1e0] sm:$0xff]  ;;  %v2065_v5 = vld [vmem:[%s3742_s1 + $0x1d8] sm:$0xff]  ;;  %v2064_v7 = vld [vmem:[%s3742_s1 + $0x1d0] sm:$0xff] }
   0xe   : > { %2156 = vmatpush.msra.mxu3 %v2069_v0  ;;  %621 = vmatpush.msra.mxu0 %v2069_v0  ;;  %s3839_s15 = smov (!%p227_p4, %s2296_s15), 1  ;;  %291 = vst [vmem:[#allocation2 + $0x8] sm:$0xff] %v2306_v2  ;;  %v2063_v8 = vld [vmem:[%s3742_s1 + $0x1c8] sm:$0xff]  ;;  %v2062_v9 = vld [vmem:[%s3742_s1 + $0x1c0] sm:$0xff]  ;;  %v2061_v10 = vld [vmem:[%s3742_s1 + $0x1b8] sm:$0xff] }
   0xf   : > { %2157 = vmatpush.msra.mxu1 %v2068_v1  ;;  %2158 = vmatpush.msra.mxu2 %v2068_v1  ;;  %s2152_s27 = sshll.u32 %s3839_s15, 8  ;;  %292 = vst [vmem:[#allocation2 + $0x10] sm:$0xff] %v2306_v2  ;;  %v2060_v11 = vld [vmem:[%s3742_s1 + $0x1b0] sm:$0xff]  ;;  %v2059_v12 = vld [vmem:[%s3742_s1 + $0x1a8] sm:$0xff]  ;;  %v2058_v13 = vld [vmem:[%s3742_s1 + $0x1a0] sm:$0xff]  ;;  %s247_s25 = scalar_lea.vmem %s3744_s3, %s3839_s15 }
  0x10   : > { %2159 = vmatpush.msra.mxu3 %v2068_v1  ;;  %622 = vmatpush.msra.mxu0 %v2068_v1  ;;  %s2373_s30 = scalar_lea.vmem %s3741_s0, %s2152_s27  ;;  %293 = vst [vmem:[#allocation2 + $0x18] sm:$0xff] %v2306_v2  ;;  %v2057_v14 = vld [vmem:[%s3742_s1 + $0x198] sm:$0xff]  ;;  %v2056_v15 = vld [vmem:[%s3742_s1 + $0x190] sm:$0xff]  ;;  %v2055_v16 = vld [vmem:[%s3742_s1 + $0x188] sm:$0xff]  ;;  %s3429_s23 = scalar_lea.vmem %s3743_s2, %s2152_s27 }
  0x11   : > { %2160 = vmatpush.msra.mxu1 %v2067_v3  ;;  %2161 = vmatpush.msra.mxu2 %v2067_v3  ;;  %v2380_v6 = vld [vmem:[%s2373_s30 + $0x40] sm:$0xff]  ;;  %294 = vst [vmem:[#allocation2 + $0x20] sm:$0x1] %v2306_v2  ;;  %v2101_v19 = vld [vmem:[%s3742_s1 + $0x2f8] sm:$0xff]  ;;  %v2100_v21 = vld [vmem:[%s3742_s1 + $0x2f0] sm:$0xff]  ;;  %s253_s29 = scalar_lea.vmem %s3745_s4, %s3839_s15 }
  0x12   : > { %2162 = vmatpush.msra.mxu3 %v2067_v3  ;;  %623 = vmatpush.msra.mxu0 %v2067_v3  ;;  %389 = vst [vmem:[#allocation2 + $0xd8] sm:$0xff] %v2380_v6  ;;  %v2054_v17 = vld [vmem:[%s3742_s1 + $0x180] sm:$0xff]  ;;  %v539_v20 = vld [vmem:[%s3742_s1 + $0x78] sm:$0xff]  ;;  %v538_v22 = vld [vmem:[%s3742_s1 + $0x70] sm:$0xff] }
  0x13   : > { %2163 = vmatpush.msra.mxu1 %v2066_v4  ;;  %2164 = vmatpush.msra.mxu2 %v2066_v4  ;;  %296 = vst [vmem:[#allocation2 + $0x30] sm:$0xff] %v2306_v2  ;;  %v2085_v23 = vld [vmem:[%s3742_s1 + $0x278] sm:$0xff]  ;;  %v2099_v24 = vld [vmem:[%s3742_s1 + $0x2e8] sm:$0xff]  ;;  %v2084_v27 = vld [vmem:[%s3742_s1 + $0x270] sm:$0xff] }
  0x14   : > { %2165 = vmatpush.msra.mxu3 %v2066_v4  ;;  %624 = vmatpush.msra.mxu0 %v2066_v4  ;;  %299 = vst [vmem:[#allocation2 + $0x48] sm:$0x1] %v2306_v2  ;;  %v537_v25 = vld [vmem:[%s3742_s1 + $0x68] sm:$0xff]  ;;  %v555_v26 = vld [vmem:[%s3742_s1 + $0xf8] sm:$0xff]  ;;  %v2098_v28 = vld [vmem:[%s3742_s1 + $0x2e0] sm:$0xff] }
  0x15   : > { %2166 = vmatpush.msra.mxu1 %v2065_v5  ;;  %2167 = vmatpush.msra.mxu2 %v2065_v5  ;;  %301 = vst [vmem:[#allocation2 + $0x58] sm:$0xff] %v2306_v2  ;;  %v536_v29 = vld [vmem:[%s3742_s1 + $0x60] sm:$0xff]  ;;  %v554_v30 = vld [vmem:[%s3742_s1 + $0xf0] sm:$0xff]  ;;  %v2083_v31 = vld [vmem:[%s3742_s1 + $0x268] sm:$0xff] }
  0x16   : > { %2168 = vmatpush.msra.mxu3 %v2065_v5  ;;  %625 = vmatpush.msra.mxu0 %v2065_v5  ;;  %304 = vst [vmem:[#allocation2 + $0x70] sm:$0x1] %v2306_v2  ;;  %v2097_v32 = vld [vmem:[%s3742_s1 + $0x2d8] sm:$0xff]  ;;  %v553_v34 = vld [vmem:[%s3742_s1 + $0xe8] sm:$0xff]  ;;  %v2082_v35 = vld [vmem:[%s3742_s1 + $0x260] sm:$0xff] }
  0x17   : > { %2169 = vmatpush.msra.mxu1 %v2064_v7  ;;  %2170 = vmatpush.msra.mxu2 %v2064_v7  ;;  %306 = vst [vmem:[#allocation2 + $0x80] sm:$0xff] %v2306_v2  ;;  %v535_v33 = vld [vmem:[%s3742_s1 + $0x58] sm:$0xff]  ;;  %v2096_v36 = vld [vmem:[%s3742_s1 + $0x2d0] sm:$0xff]  ;;  %v552_v38 = vld [vmem:[%s3742_s1 + $0xe0] sm:$0xff] }
  0x18   : > { %2171 = vmatpush.msra.mxu3 %v2064_v7  ;;  %626 = vmatpush.msra.mxu0 %v2064_v7  ;;  %309 = vst [vmem:[#allocation2 + $0x98] sm:$0x1] %v2306_v2  ;;  %v534_v37 = vld [vmem:[%s3742_s1 + $0x50] sm:$0xff]  ;;  %v2514_v39 = vld [vmem:[%s2373_s30 + $0x80] sm:$0xff]  ;;  %v2524_v42 = vld [vmem:[%s2373_s30 + $0x48] sm:$0xff] }
  0x19   : > { %2172 = vmatpush.msra.mxu1 %v2063_v8  ;;  %2173 = vmatpush.msra.mxu2 %v2063_v8  ;;  %311 = vst [vmem:[#allocation2 + $0xa8] sm:$0xff] %v2306_v2  ;;  %v2430_v18 = vld [vmem:[#allocation2 + $0xd7] sm:$0xff]  ;;  %v282_v40 = vld [vmem:[%s2373_s30 + $0xc0] sm:$0xff]  ;;  %v2527_v43 = vld [vmem:[%s2373_s30 + $0x88] sm:$0xff] }
  0x1a   : > { %2174 = vmatpush.msra.mxu3 %v2063_v8  ;;  %627 = vmatpush.msra.mxu0 %v2063_v8  ;;  %314 = vst [vmem:[#allocation2 + $0xc0] sm:$0x1] %v2306_v2  ;;  %v2520_v41 = vld [vmem:[%s2373_s30] sm:$0xff]  ;;  %v283_v44 = vld [vmem:[%s2373_s30 + $0xc8] sm:$0xff]  ;;  %v2081_v45 = vld [vmem:[%s3742_s1 + $0x258] sm:$0xff] }
  0x1b   : > { %2175 = vmatpush.msra.mxu1 %v2062_v9  ;;  %2176 = vmatpush.msra.mxu2 %v2062_v9  ;;  %319 = vst [vmem:[#allocation2 + $0xe8] sm:$0x1] %v2306_v2  ;;  %v2095_v46 = vld [vmem:[%s3742_s1 + $0x2c8] sm:$0xff]  ;;  %v551_v48 = vld [vmem:[%s3742_s1 + $0xd8] sm:$0xff]  ;;  %v2080_v49 = vld [vmem:[%s3742_s1 + $0x250] sm:$0xff] }
  0x1c   : > { %2177 = vmatpush.msra.mxu3 %v2062_v9  ;;  %628 = vmatpush.msra.mxu0 %v2062_v9  ;;  %321 = vst [vmem:[#allocation2 + $0xf8] sm:$0xff] %v2306_v2  ;;  %v533_v47 = vld [vmem:[%s3742_s1 + $0x48] sm:$0xff]  ;;  %v2094_v50 = vld [vmem:[%s3742_s1 + $0x2c0] sm:$0xff]  ;;  %v550_v53 = vld [vmem:[%s3742_s1 + $0xd0] sm:$0xff] }
  0x1d   : > { %2178 = vmatpush.msra.mxu1 %v2061_v10  ;;  %2179 = vmatpush.msra.mxu2 %v2061_v10  ;;  %324 = vst [vmem:[#allocation2 + $0x110] sm:$0x1] %v2306_v2  ;;  %v2551_v51 = vld [vmem:[%s2373_s30 + $0x8] sm:$0xff]  ;;  %v532_v52 = vld [vmem:[%s3742_s1 + $0x40] sm:$0xff]  ;;  %v2561_v54 = vld [vmem:[%s2373_s30 + $0x50] sm:$0xff] }
  0x1e   : > { %2180 = vmatpush.msra.mxu3 %v2061_v10  ;;  %629 = vmatpush.msra.mxu0 %v2061_v10  ;;  %326 = vst [vmem:[#allocation2 + $0x120] sm:$0xff] %v2306_v2  ;;  %v2564_v55 = vld [vmem:[%s2373_s30 + $0x90] sm:$0xff]  ;;  %v2575_v59 = vld [vmem:[%s2373_s30 + $0x58] sm:$0xff]  ;;  %v2079_v0 = vld [vmem:[%s3742_s1 + $0x248] sm:$0xff] }
  0x1f   : > { %2181 = vmatpush.msra.mxu1 %v2060_v11  ;;  %2182 = vmatpush.msra.mxu2 %v2060_v11  ;;  %329 = vst [vmem:[#allocation2 + $0x138] sm:$0x1] %v2306_v2  ;;  %v284_v56 = vld [vmem:[%s2373_s30 + $0xd0] sm:$0xff]  ;;  %v2580_v61 = vld [vmem:[%s2373_s30 + $0x98] sm:$0xff]  ;;  %v549_v5 = vld [vmem:[%s3742_s1 + $0xc8] sm:$0xff] }
  0x20   : > { %2183 = vmatpush.msra.mxu3 %v2060_v11  ;;  %630 = vmatpush.msra.mxu0 %v2060_v11  ;;  %331 = vst [vmem:[#allocation2 + $0x148] sm:$0xff] %v2306_v2  ;;  %v2572_v58 = vld [vmem:[%s2373_s30 + $0x10] sm:$0xff]  ;;  %v285_v62 = vld [vmem:[%s2373_s30 + $0xd8] sm:$0xff]  ;;  %v2078_v8 = vld [vmem:[%s3742_s1 + $0x240] sm:$0xff] }
  0x21   : > { %2184 = vmatpush.msra.mxu1 %v2059_v12  ;;  %2185 = vmatpush.msra.mxu2 %v2059_v12  ;;  %334 = vst [vmem:[#allocation2 + $0x160] sm:$0x1] %v2306_v2  ;;  %v2093_v1 = vld [vmem:[%s3742_s1 + $0x2b8] sm:$0xff]  ;;  %v2092_v9 = vld [vmem:[%s3742_s1 + $0x2b0] sm:$0xff]  ;;  %v2614_v10 = vld [vmem:[%s2373_s30 + $0x60] sm:$0xff] }
  0x22   : > { %2186 = vmatpush.msra.mxu3 %v2059_v12  ;;  %631 = vmatpush.msra.mxu0 %v2059_v12  ;;  %336 = vst [vmem:[#allocation2 + $0x170] sm:$0xff] %v2306_v2  ;;  %v531_v4 = vld [vmem:[%s3742_s1 + $0x38] sm:$0xff]  ;;  %v530_v11 = vld [vmem:[%s3742_s1 + $0x30] sm:$0xff]  ;;  %v548_v12 = vld [vmem:[%s3742_s1 + $0xc0] sm:$0xff] }
  0x23   : > { %2187 = vmatpush.msra.mxu1 %v2058_v13  ;;  %2188 = vmatpush.msra.mxu2 %v2058_v13  ;;  %339 = vst [vmem:[#allocation2 + $0x188] sm:$0x1] %v2306_v2  ;;  %v2604_v7 = vld [vmem:[%s2373_s30 + $0x18] sm:$0xff] }
  0x24   : > { %2189 = vmatpush.msra.mxu3 %v2058_v13  ;;  %632 = vmatpush.msra.mxu0 %v2058_v13  ;;  %341 = vst [vmem:[#allocation2 + $0x198] sm:$0xff] %v2306_v2 }
  0x25   : > { %2190 = vmatpush.msra.mxu1 %v2057_v14  ;;  %2191 = vmatpush.msra.mxu2 %v2057_v14  ;;  %344 = vst [vmem:[#allocation2 + $0x1b0] sm:$0x1] %v2306_v2 }
  0x26   : > { %2192 = vmatpush.msra.mxu3 %v2057_v14  ;;  %633 = vmatpush.msra.mxu0 %v2057_v14  ;;  %346 = vst [vmem:[#allocation2 + $0x1c0] sm:$0xff] %v2306_v2  ;;  %v2625_v14 = vld [vmem:[%s2373_s30 + $0xa0] sm:$0xff] }
  0x27   : > { %2193 = vmatpush.msra.mxu1 %v2056_v15  ;;  %2194 = vmatpush.msra.mxu2 %v2056_v15  ;;  %349 = vst [vmem:[#allocation2 + $0x1d8] sm:$0x1] %v2306_v2 }
  0x28   : > { %2195 = vmatpush.msra.mxu3 %v2056_v15  ;;  %634 = vmatpush.msra.mxu0 %v2056_v15  ;;  %351 = vst [vmem:[#allocation2 + $0x1e8] sm:$0xff] %v2306_v2 }
  0x29   : > { %2196 = vmatpush.msra.mxu1 %v2055_v16  ;;  %2197 = vmatpush.msra.mxu2 %v2055_v16  ;;  %354 = vst [vmem:[#allocation2 + $0x200] sm:$0x1] %v2306_v2 }
  0x2a   : > { %2198 = vmatpush.msra.mxu3 %v2055_v16  ;;  %635 = vmatpush.msra.mxu0 %v2055_v16  ;;  %356 = vst [vmem:[#allocation2 + $0x210] sm:$0xff] %v2306_v2  ;;  %v286_v16 = vld [vmem:[%s2373_s30 + $0xe0] sm:$0xff] }
  0x2b   : > { %2199 = vmatpush.msra.mxu1 %v2054_v17  ;;  %2200 = vmatpush.msra.mxu2 %v2054_v17  ;;  %359 = vst [vmem:[#allocation2 + $0x228] sm:$0x1] %v2306_v2 }
  0x2c   : > { %2201 = vmatpush.msra.mxu3 %v2054_v17  ;;  %661 = vmatmul.f32.vlgmr.msra.gmra.mxu1 %v2430_v18  ;;  %361 = vst [vmem:[#allocation2 + $0x238] sm:$0xff] %v2306_v2 }
  0x2d   : > { %636 = vmatpush.msra.mxu0 %v2054_v17  ;;  %847 = vmatpush.msrb.mxu2 %v2101_v19  ;;  %364 = vst [vmem:[#allocation2 + $0x250] sm:$0x1] %v2306_v2  ;;  %v2633_v19 = vld [vmem:[%s2373_s30 + $0x20] sm:$0xff] }
  0x2e   : > { %960 = vmatpush.msrb.mxu3 %v539_v20  ;;  %734 = vmatpush.msrb.mxu1 %v2085_v23  ;;  %366 = vst [vmem:[#allocation2 + $0x260] sm:$0xff] %v2306_v2  ;;  %v2077_v23 = vld [vmem:[%s3742_s1 + $0x238] sm:$0xff] }
  0x2f   : > { %848 = vmatpush.msrb.mxu2 %v2100_v21  ;;  %1073 = vmatpush.msrb.mxu0 %v555_v26  ;;  %369 = vst [vmem:[#allocation2 + $0x278] sm:$0x1] %v2306_v2  ;;  %v2640_v21 = vld [vmem:[%s2373_s30 + $0x68] sm:$0xff] }
  0x30   : > { %961 = vmatpush.msrb.mxu3 %v538_v22  ;;  %735 = vmatpush.msrb.mxu1 %v2084_v27  ;;  %371 = vst [vmem:[#allocation2 + $0x288] sm:$0xff] %v2306_v2  ;;  %v2643_v22 = vld [vmem:[%s2373_s30 + $0xa8] sm:$0xff]  ;;  %v547_v27 = vld [vmem:[%s3742_s1 + $0xb8] sm:$0xff] }
  0x31   : > { %849 = vmatpush.msrb.mxu2 %v2099_v24  ;;  %1074 = vmatpush.msrb.mxu0 %v554_v30  ;;  %374 = vst [vmem:[#allocation2 + $0x2a0] sm:$0x1] %v2306_v2  ;;  %v2091_v24 = vld [vmem:[%s3742_s1 + $0x2a8] sm:$0xff] }
  0x32   : > { %962 = vmatpush.msrb.mxu3 %v537_v25  ;;  %736 = vmatpush.msrb.mxu1 %v2083_v31  ;;  %376 = vst [vmem:[#allocation2 + $0x2b0] sm:$0xff] %v2306_v2  ;;  %v287_v25 = vld [vmem:[%s2373_s30 + $0xe8] sm:$0xff]  ;;  %v528_v31 = vld [vmem:[%s3742_s1 + $0x20] sm:$0xff] }
  0x33   : > { %850 = vmatpush.msrb.mxu2 %v2098_v28  ;;  %1075 = vmatpush.msrb.mxu0 %v553_v34  ;;  %377 = vst [vmem:[#allocation2 + $0x2b8] sm:$0xff] %v2306_v2  ;;  %v529_v26 = vld [vmem:[%s3742_s1 + $0x28] sm:$0xff]  ;;  %v2076_v28 = vld [vmem:[%s3742_s1 + $0x230] sm:$0xff] }
  0x34   : > { %963 = vmatpush.msrb.mxu3 %v536_v29  ;;  %737 = vmatpush.msrb.mxu1 %v2082_v35  ;;  %378 = vst [vmem:[#allocation2 + $0x2c0] sm:$0xff] %v2306_v2  ;;  %v2090_v29 = vld [vmem:[%s3742_s1 + $0x2a0] sm:$0xff]  ;;  %v2669_v30 = vld [vmem:[%s2373_s30 + $0x28] sm:$0xff]  ;;  %v2684_v35 = vld [vmem:[%s2373_s30 + $0xb0] sm:$0xff] }
  0x35   : > { %851 = vmatpush.msrb.mxu2 %v2097_v32  ;;  %1076 = vmatpush.msrb.mxu0 %v552_v38  ;;  %379 = vst [vmem:[#allocation2 + $0x2c8] sm:$0x1] %v2306_v2  ;;  %v546_v32 = vld [vmem:[%s3742_s1 + $0xb0] sm:$0xff] }
  0x36   : > { %964 = vmatpush.msrb.mxu3 %v535_v33  ;;  %397 = vst [vmem:[#allocation2 + $0x178] sm:$0xff] %v2514_v39  ;;  %738 = vmatpush.msrb.mxu1 %v2081_v45  ;;  %v2679_v33 = vld [vmem:[%s2373_s30 + $0x70] sm:$0xff]  ;;  %v2699_v45 = vld [vmem:[%s2373_s30 + $0x78] sm:$0xff] }
  0x37   : > { %852 = vmatpush.msrb.mxu2 %v2096_v36  ;;  %405 = vst [vmem:[#allocation2 + $0x218] sm:$0xff] %v282_v40  ;;  %1077 = vmatpush.msrb.mxu0 %v551_v48  ;;  %v527_v48 = vld [vmem:[%s3742_s1 + $0x18] sm:$0xff] }
  0x38   : > { %965 = vmatpush.msrb.mxu3 %v534_v37  ;;  %381 = vst [vmem:[#allocation2 + $0x38] sm:$0xff] %v2520_v41  ;;  %739 = vmatpush.msrb.mxu1 %v2080_v49  ;;  %v288_v37 = vld [vmem:[%s2373_s30 + $0xf0] sm:$0xff]  ;;  %v545_v49 = vld [vmem:[%s3742_s1 + $0xa8] sm:$0xff] }
  0x39   : > { %853 = vmatpush.msrb.mxu2 %v2095_v46  ;;  %390 = vst [vmem:[#allocation2 + $0xe0] sm:$0xff] %v2524_v42  ;;  %1078 = vmatpush.msrb.mxu0 %v550_v53  ;;  %v2075_v46 = vld [vmem:[%s3742_s1 + $0x228] sm:$0xff]  ;;  %v526_v53 = vld [vmem:[%s3742_s1 + $0x10] sm:$0xff] }
  0x3a   : > { %966 = vmatpush.msrb.mxu3 %v533_v47  ;;  %398 = vst [vmem:[#allocation2 + $0x180] sm:$0xff] %v2527_v43  ;;  %740 = vmatpush.msrb.mxu1 %v2079_v0  ;;  %v2089_v47 = vld [vmem:[%s3742_s1 + $0x298] sm:$0xff] }
  0x3b   : > { %854 = vmatpush.msrb.mxu2 %v2094_v50  ;;  %406 = vst [vmem:[#allocation2 + $0x220] sm:$0xff] %v283_v44  ;;  %1079 = vmatpush.msrb.mxu0 %v549_v5  ;;  %v2696_v44 = vld [vmem:[%s2373_s30 + $0x30] sm:$0xff]  ;;  %v2074_v50 = vld [vmem:[%s3742_s1 + $0x220] sm:$0xff]  ;;  %v2735_v0 = vld [vmem:[%s2373_s30 + $0xf8] sm:$0xff] }
  0x3c   : > { %967 = vmatpush.msrb.mxu3 %v532_v52  ;;  %382 = vst [vmem:[#allocation2 + $0x40] sm:$0xff] %v2551_v51  ;;  %741 = vmatpush.msrb.mxu1 %v2078_v8  ;;  %v2088_v52 = vld [vmem:[%s3742_s1 + $0x290] sm:$0xff]  ;;  %v2747_v8 = vld [vmem:[%s2373_s30 + $0x38] sm:$0xff] }
  0x3d   : > { %v2568_v57 = vld [vmem:[#allocation2 + $0x177] sm:$0xff]  ;;  %391 = vst [vmem:[#allocation2 + $0x100] sm:$0xff] %v2561_v54  ;;  %855 = vmatpush.msrb.mxu2 %v2093_v1  ;;  %1080 = vmatpush.msrb.mxu0 %v548_v12  ;;  %v525_v12 = vld [vmem:[%s3742_s1 + $0x8] sm:$0xff] }
  0x3e   : > { %685 = vmatmul.f32.vlgmr.msra.gmra.mxu2 %v2568_v57  ;;  %v442_v60 = vld [vmem:[#allocation2 + $0x217] sm:$0xff]  ;;  %399 = vst [vmem:[#allocation2 + $0x1a0] sm:$0xff] %v2564_v55  ;;  %968 = vmatpush.msrb.mxu3 %v531_v4 }
  0x3f   : > { %709 = vmatmul.f32.vlgmr.msra.gmra.mxu3 %v442_v60  ;;  %v2583_v63 = vld [vmem:[#allocation2 + $0x37] sm:$0xff]  ;;  %407 = vst [vmem:[#allocation2 + $0x240] sm:$0xff] %v284_v56  ;;  %856 = vmatpush.msrb.mxu2 %v2092_v9  ;;  %v544_v56 = vld [vmem:[%s3742_s1 + $0xa0] sm:$0xff] }
  0x40   : > { %637 = vmatmul.f32.vlgmr.msra.gmra.mxu0 %v2583_v63  ;;  %v2592_v3 = vld [vmem:[#allocation2 + $0xdf] sm:$0xff]  ;;  %383 = vst [vmem:[#allocation2 + $0x60] sm:$0xff] %v2572_v58  ;;  %969 = vmatpush.msrb.mxu3 %v530_v11  ;;  %v2087_v11 = vld [vmem:[%s3742_s1 + $0x288] sm:$0xff] }
  0x41   : > { %664 = vmatmul.f32.gmra.mxu1 %v2592_v3  ;;  %392 = vst [vmem:[#allocation2 + $0x108] sm:$0xff] %v2575_v59  ;;  %v2622_v13 = vld [vmem:[#allocation2 + $0x17f] sm:$0xff]  ;;  %857 = vmatpush.msrb.mxu2 %v2091_v24 }
  0x42   : > { %400 = vst [vmem:[#allocation2 + $0x1a8] sm:$0xff] %v2580_v61  ;;  %v443_v15 = vld [vmem:[#allocation2 + $0x21f] sm:$0xff]  ;;  %742 = vmatpush.msrb.mxu1 %v2077_v23  ;;  %970 = vmatpush.msrb.mxu3 %v529_v26  ;;  %v2071_v26 = vld [vmem:[%s3742_s1 + $0x208] sm:$0xff] }
  0x43   : > { %408 = vst [vmem:[#allocation2 + $0x248] sm:$0xff] %v285_v62  ;;  %v2629_v17 = vld [vmem:[#allocation2 + $0x3f] sm:$0xff]  ;;  %1081 = vmatpush.msrb.mxu0 %v547_v27  ;;  %858 = vmatpush.msrb.mxu2 %v2090_v29 }
  0x44   : > { %384 = vst [vmem:[#allocation2 + $0x68] sm:$0xff] %v2604_v7  ;;  %v2636_v20 = vld [vmem:[#allocation2 + $0xff] sm:$0xff]  ;;  %743 = vmatpush.msrb.mxu1 %v2076_v28  ;;  %971 = vmatpush.msrb.mxu3 %v528_v31 }
  0x45   : > { %393 = vst [vmem:[#allocation2 + $0x128] sm:$0xff] %v2614_v10  ;;  %v2681_v34 = vld [vmem:[#allocation2 + $0x19f] sm:$0xff]  ;;  %1082 = vmatpush.msrb.mxu0 %v546_v32  ;;  %859 = vmatpush.msrb.mxu2 %v2089_v47 }
  0x46   : > { %688 = vmatmul.f32.gmra.mxu2 %v2622_v13  ;;  %401 = vst [vmem:[#allocation2 + $0x1c8] sm:$0xff] %v2625_v14  ;;  %v444_v36 = vld [vmem:[#allocation2 + $0x23f] sm:$0xff]  ;;  %744 = vmatpush.msrb.mxu1 %v2075_v46 }
  0x47   : > { %712 = vmatmul.f32.gmra.mxu3 %v443_v15  ;;  %409 = vst [vmem:[#allocation2 + $0x268] sm:$0xff] %v286_v16  ;;  %v2688_v38 = vld [vmem:[#allocation2 + $0x5f] sm:$0xff]  ;;  %1083 = vmatpush.msrb.mxu0 %v545_v49  ;;  %v2072_v16 = vld [vmem:[%s3742_s1 + $0x210] sm:$0xff] }
  0x48   : > { %640 = vmatmul.f32.gmra.mxu0 %v2629_v17  ;;  %385 = vst [vmem:[#allocation2 + $0x88] sm:$0xff] %v2633_v19  ;;  %v2692_v40 = vld [vmem:[#allocation2 + $0x107] sm:$0xff]  ;;  %972 = vmatpush.msrb.mxu3 %v527_v48  ;;  %v2732_v62 = vld [vmem:[%s2373_s30 + $0xb8] sm:$0xff] }
  0x49   : > { %667 = vmatmul.f32.gmra.mxu1 %v2636_v20  ;;  %394 = vst [vmem:[#allocation2 + $0x130] sm:$0xff] %v2640_v21  ;;  %v2729_v60 = vld [vmem:[#allocation2 + $0x1a7] sm:$0xff]  ;;  %860 = vmatpush.msrb.mxu2 %v2088_v52  ;;  %v2073_v9 = vld [vmem:[%s3742_s1 + $0x218] sm:$0xff] }
  0x4a   : > { %402 = vst [vmem:[#allocation2 + $0x1d0] sm:$0xff] %v2643_v22  ;;  %745 = vmatpush.msrb.mxu1 %v2074_v50  ;;  %v2737_v1 = vld [vmem:[#allocation2 + $0x247] sm:$0xff]  ;;  %973 = vmatpush.msrb.mxu3 %v526_v53  ;;  %v543_v15 = vld [vmem:[%s3742_s1 + $0x98] sm:$0xff] }
  0x4b   : > { %410 = vst [vmem:[#allocation2 + $0x270] sm:$0xff] %v287_v25  ;;  %1084 = vmatpush.msrb.mxu0 %v544_v56  ;;  %v2740_v4 = vld [vmem:[#allocation2 + $0x67] sm:$0xff]  ;;  %861 = vmatpush.msrb.mxu2 %v2087_v11  ;;  %v542_v25 = vld [vmem:[%s3742_s1 + $0x90] sm:$0xff]  ;;  %v2133_v46 = vld [vmem:[%s3742_s1 + $0x3f8] sm:$0xff] }
  0x4c   : > { %386 = vst [vmem:[#allocation2 + $0x90] sm:$0xff] %v2669_v30  ;;  %v2744_v5 = vld [vmem:[#allocation2 + $0x127] sm:$0xff]  ;;  %746 = vmatpush.msrb.mxu1 %v2073_v9  ;;  %974 = vmatpush.msrb.mxu3 %v525_v12  ;;  %v571_v53 = vld [vmem:[%s3742_s1 + $0x178] sm:$0xff] }
  0x4d   : > { %395 = vst [vmem:[#allocation2 + $0x150] sm:$0xff] %v2679_v33  ;;  %v2086_v23 = vld [vmem:[%s3742_s1 + $0x280] sm:$0xff]  ;;  %1085 = vmatpush.msrb.mxu0 %v543_v15  ;;  %v2149_v56 = vld [vmem:[%s3742_s1 + $0x478] sm:$0xff] }
  0x4e   : > { %691 = vmatmul.f32.gmra.mxu2 %v2681_v34  ;;  %403 = vst [vmem:[#allocation2 + $0x1f0] sm:$0xff] %v2684_v35  ;;  %v524_v24 = vld [vmem:[%s3742_s1] sm:$0xff]  ;;  %747 = vmatpush.msrb.mxu1 %v2072_v16  ;;  %v2116_v16 = vld [vmem:[%s3742_s1 + $0x370] sm:$0xff] }
  0x4f   : > { %715 = vmatmul.f32.gmra.mxu3 %v444_v36  ;;  %411 = vst [vmem:[#allocation2 + $0x290] sm:$0xff] %v288_v37  ;;  %v2780_v27 = vld [vmem:[#allocation2 + $0x1c7] sm:$0xff]  ;;  %862 = vmatpush.msrb.mxu2 %v2086_v23  ;;  %v2117_v37 = vld [vmem:[%s3742_s1 + $0x378] sm:$0xff]  ;;  %v2132_v23 = vld [vmem:[%s3742_s1 + $0x3f0] sm:$0xff] }
  0x50   : > { %643 = vmatmul.f32.gmra.mxu0 %v2688_v38  ;;  %387 = vst [vmem:[#allocation2 + $0xb0] sm:$0xff] %v2696_v44  ;;  %v2782_v28 = vld [vmem:[#allocation2 + $0x267] sm:$0xff]  ;;  %975 = vmatpush.msrb.mxu3 %v524_v24  ;;  %v2790_v32 = vld [vmem:[#allocation2 + $0x12f] sm:$0xff] }
  0x51   : > { %670 = vmatmul.f32.gmra.mxu1 %v2692_v40  ;;  %396 = vst [vmem:[#allocation2 + $0x158] sm:$0xff] %v2699_v45  ;;  %1086 = vmatpush.msrb.mxu0 %v542_v25  ;;  %v2070_v29 = vld [vmem:[%s3742_s1 + $0x200] sm:$0xff]  ;;  %v541_v36 = vld [vmem:[%s3742_s1 + $0x88] sm:$0xff] }
  0x52   : > { %404 = vst [vmem:[#allocation2 + $0x1f8] sm:$0xff] %v2732_v62  ;;  %v2787_v31 = vld [vmem:[#allocation2 + $0x87] sm:$0xff]  ;;  %748 = vmatpush.msrb.mxu1 %v2071_v26  ;;  %1348 = vmatpush.msra.mxu2 %v2117_v37  ;;  %v2807_v48 = vld [vmem:[#allocation2 + $0x1cf] sm:$0xff]  ;;  %v2853_v37 = vld [vmem:[#allocation2 + $0x39] sm:$0xff] }
  0x53   : > { %412 = vst [vmem:[#allocation2 + $0x298] sm:$0xff] %v2735_v0  ;;  %v540_v47 = vld [vmem:[%s3742_s1 + $0x80] sm:$0xff]  ;;  %1087 = vmatpush.msrb.mxu0 %v541_v36  ;;  %1461 = vmatpush.msra.mxu3 %v2133_v46  ;;  %v2809_v49 = vld [vmem:[#allocation2 + $0x26f] sm:$0xff] }
  0x54   : > { %388 = vst [vmem:[#allocation2 + $0xb8] sm:$0xff] %v2747_v8  ;;  %749 = vmatpush.msrb.mxu1 %v2070_v29  ;;  %v2811_v50 = vld [vmem:[#allocation2 + $0x8f] sm:$0xff]  ;;  %1349 = vmatpush.msra.mxu2 %v2116_v16 }
  0x55   : > { %1088 = vmatpush.msrb.mxu0 %v540_v47  ;;  %v2814_v52 = vld [vmem:[#allocation2 + $0x14f] sm:$0xff]  ;;  %1462 = vmatpush.msra.mxu3 %v2132_v23 }
  0x56   : > { %694 = vmatmul.f32.gmra.mxu2 %v2729_v60  ;;  %1186 = vmatpush.msra.mxu1 %v571_v53  ;;  %v2825_v9 = vld [vmem:[#allocation2 + $0x1ef] sm:$0xff] }
  0x57   : > { %718 = vmatmul.f32.gmra.mxu3 %v2737_v1  ;;  %1574 = vmatpush.msra.mxu0 %v2149_v56  ;;  %v448_v11 = vld [vmem:[#allocation2 + $0x28f] sm:$0xff]  ;;  %v2864_v56 = vld [vmem:[#allocation2 + $0x41] sm:$0xff] }
  0x58   : > { %646 = vmatmul.f32.gmra.mxu0 %v2740_v4  ;;  %v2827_v12 = vld [vmem:[#allocation2 + $0xaf] sm:$0xff]  ;;  %v2830_v15 = vld [vmem:[#allocation2 + $0x157] sm:$0xff] }
  0x59   : > { %673 = vmatmul.f32.gmra.mxu1 %v2744_v5  ;;  %v2840_v24 = vld [vmem:[#allocation2 + $0x1f7] sm:$0xff]  ;;  %v416_v46 = vld [vmem:[#allocation2 + $0xf] sm:$0xff] }
  0x5a   : > { %v449_v25 = vld [vmem:[#allocation2 + $0x297] sm:$0xff]  ;;  %v2115_v47 = vld [vmem:[%s3742_s1 + $0x368] sm:$0xff] }
  0x5b   : > { %v2842_v26 = vld [vmem:[#allocation2 + $0xb7] sm:$0xff]  ;;  %v2131_v53 = vld [vmem:[%s3742_s1 + $0x3e8] sm:$0xff]  ;;  %1350 = vmatpush.msra.mxu2 %v2115_v47 }
  0x5c   : > { %v570_v29 = vld [vmem:[%s3742_s1 + $0x170] sm:$0xff]  ;;  %1463 = vmatpush.msra.mxu3 %v2131_v53  ;;  %v569_v16 = vld [vmem:[%s3742_s1 + $0x168] sm:$0xff]  ;;  %v2129_v47 = vld [vmem:[%s3742_s1 + $0x3d8] sm:$0xff] }
  0x5d   : > { %v2148_v36 = vld [vmem:[%s3742_s1 + $0x470] sm:$0xff]  ;;  %1187 = vmatpush.msra.mxu1 %v570_v29  ;;  %v2147_v23 = vld [vmem:[%s3742_s1 + $0x468] sm:$0xff]  ;;  %v2114_v29 = vld [vmem:[%s3742_s1 + $0x360] sm:$0xff] }
  0x5e   : > { %697 = vmatmul.f32.gmra.mxu2 %v2780_v27  ;;  %1575 = vmatpush.msra.mxu0 %v2148_v36  ;;  %v2130_v36 = vld [vmem:[%s3742_s1 + $0x3e0] sm:$0xff]  ;;  %v2145_v53 = vld [vmem:[%s3742_s1 + $0x458] sm:$0xff] }
  0x5f   : > { %721 = vmatmul.f32.gmra.mxu3 %v2782_v28  ;;  %1188 = vmatpush.msra.mxu1 %v569_v16 }
  0x60   : > { %649 = vmatmul.f32.gmra.mxu0 %v2787_v31  ;;  %1351 = vmatpush.msra.mxu2 %v2114_v29 }
  0x61   : > { %676 = vmatmul.f32.gmra.mxu1 %v2790_v32  ;;  %1576 = vmatpush.msra.mxu0 %v2147_v23  ;;  %v2949_v23 = vld [vmem:[#allocation2 + $0xd9] sm:$0xff] }
  0x62   : > { %1464 = vmatpush.msra.mxu3 %v2130_v36  ;;  %3770 = vst [vmem:[#allocation5_spill] sm:$0xff] %v2949_v23  ;;  %v2111_v36 = vld [vmem:[%s3742_s1 + $0x348] sm:$0xff] }
  0x64   : > { %1465 = vmatpush.msra.mxu3 %v2129_v47 }
  0x66   : > { %700 = vmatmul.f32.gmra.mxu2 %v2807_v48 }
  0x67   : > { %724 = vmatmul.f32.gmra.mxu3 %v2809_v49 }
  0x68   : > { %652 = vmatmul.f32.gmra.mxu0 %v2811_v50 }
  0x69   : > { %679 = vmatmul.f32.gmra.mxu1 %v2814_v52 }
  0x6e   : > { %703 = vmatmul.f32.gmra.mxu2 %v2825_v9 }
  0x6f   : > { %727 = vmatmul.f32.gmra.mxu3 %v448_v11  ;;  %v417_v11 = vld [vmem:[#allocation2 + $0x17] sm:$0xff] }
  0x70   : > { %655 = vmatmul.f32.gmra.mxu0 %v2827_v12 }
  0x71   : > { %682 = vmatmul.f32.gmra.mxu1 %v2830_v15 }
  0x76   : > { %706 = vmatmul.f32.gmra.mxu2 %v2840_v24 }
  0x77   : > { %730 = vmatmul.f32.gmra.mxu3 %v449_v25  ;;  %v2875_v25 = vld [vmem:[#allocation2 + $0x61] sm:$0xff] }
  0x78   : > { %658 = vmatmul.f32.gmra.mxu0 %v2842_v26 }
  0x79   : > { %750 = vmatmul.f32.vlgmr.msrb.gmra.mxu1 %v2520_v41 }
  0x7e   : > { %863 = vmatmul.f32.vlgmr.msrb.gmra.mxu2 %v2853_v37 }
  0x7f   : > { %976 = vmatmul.f32.vlgmr.msrb.gmra.mxu3 %v416_v46  ;;  %v2146_v46 = vld [vmem:[%s3742_s1 + $0x460] sm:$0xff] }
  0x80   : > { %1089 = vmatmul.f32.vlgmr.msrb.gmra.mxu0 %v2306_v2 }
  0x81   : > { %753 = vmatmul.f32.gmra.mxu1 %v2551_v51  ;;  %1577 = vmatpush.msra.mxu0 %v2146_v46 }
  0x83   : > { %1578 = vmatpush.msra.mxu0 %v2145_v53 }
  0x86   : > { %866 = vmatmul.f32.gmra.mxu2 %v2864_v56 }
  0x87   : > { %979 = vmatmul.f32.gmra.mxu3 %v417_v11  ;;  %v2128_v11 = vld [vmem:[%s3742_s1 + $0x3d0] sm:$0xff] }
  0x88   : > { %1092 = vmatmul.f32.gmra.mxu0 %v2306_v2  ;;  %v2887_v2 = vld [vmem:[#allocation2 + $0x69] sm:$0xff]  ;;  %1466 = vmatpush.msra.mxu3 %v2128_v11  ;;  %v2989_v11 = vld [vmem:[#allocation2 + $0x101] sm:$0xff] }
  0x89   : > { %756 = vmatmul.f32.gmra.mxu1 %v2572_v58  ;;  %3774 = vst [vmem:[#allocation9_spill] sm:$0xff] %v2989_v11 }
  0x8e   : > { %869 = vmatmul.f32.gmra.mxu2 %v2875_v25 }
  0x8f   : > { %982 = vmatmul.f32.gmra.mxu3 %v2583_v63  ;;  %v568_v63 = vld [vmem:[%s3742_s1 + $0x160] sm:$0xff] }
  0x90   : > { %1095 = vmatmul.f32.gmra.mxu0 %v2520_v41  ;;  %1189 = vmatpush.msra.mxu1 %v568_v63  ;;  %v2899_v41 = vld [vmem:[#allocation2 + $0x89] sm:$0xff] }
  0x91   : > { %759 = vmatmul.f32.gmra.mxu1 %v2604_v7 }
  0x96   : > { %872 = vmatmul.f32.gmra.mxu2 %v2887_v2 }
  0x97   : > { %985 = vmatmul.f32.gmra.mxu3 %v2629_v17  ;;  %v2113_v17 = vld [vmem:[%s3742_s1 + $0x358] sm:$0xff] }
  0x98   : > { %1098 = vmatmul.f32.gmra.mxu0 %v2551_v51  ;;  %1352 = vmatpush.msra.mxu2 %v2113_v17  ;;  %v2911_v51 = vld [vmem:[#allocation2 + $0x91] sm:$0xff]  ;;  %v2969_v17 = vld [vmem:[#allocation2 + $0xe1] sm:$0xff] }
  0x99   : > { %762 = vmatmul.f32.gmra.mxu1 %v2633_v19  ;;  %3772 = vst [vmem:[#allocation7_spill] sm:$0xff] %v2969_v17 }
  0x9e   : > { %875 = vmatmul.f32.gmra.mxu2 %v2899_v41 }
  0x9f   : > { %988 = vmatmul.f32.gmra.mxu3 %v2688_v38  ;;  %v567_v38 = vld [vmem:[%s3742_s1 + $0x158] sm:$0xff] }
  0xa0   : > { %1101 = vmatmul.f32.gmra.mxu0 %v2572_v58  ;;  %1190 = vmatpush.msra.mxu1 %v567_v38  ;;  %v2923_v58 = vld [vmem:[#allocation2 + $0xb1] sm:$0xff]  ;;  %v2143_v38 = vld [vmem:[%s3742_s1 + $0x448] sm:$0xff] }
  0xa1   : > { %765 = vmatmul.f32.gmra.mxu1 %v2669_v30  ;;  %3768 = vst [vmem:[#allocation3_spill] sm:$0xff] %v2923_v58 }
  0xa6   : > { %878 = vmatmul.f32.gmra.mxu2 %v2911_v51 }
  0xa7   : > { %991 = vmatmul.f32.gmra.mxu3 %v2740_v4  ;;  %v2112_v4 = vld [vmem:[%s3742_s1 + $0x350] sm:$0xff] }
  0xa8   : > { %1104 = vmatmul.f32.gmra.mxu0 %v2604_v7  ;;  %1353 = vmatpush.msra.mxu2 %v2112_v4  ;;  %v2935_v7 = vld [vmem:[#allocation2 + $0xb9] sm:$0xff] }
  0xa9   : > { %768 = vmatmul.f32.gmra.mxu1 %v2696_v44  ;;  %3769 = vst [vmem:[#allocation4_spill] sm:$0xff] %v2935_v7  ;;  %v2937_v16 = vpop.f32.mrf.mxu1 }
  0xaa   : > { %1354 = vmatpush.msra.mxu2 %v2111_v36 }
  0xae   : > { %881 = vmatmul.f32.gmra.mxu2 %v2923_v58 }
  0xaf   : > { %994 = vmatmul.f32.gmra.mxu3 %v2787_v31  ;;  %v566_v31 = vld [vmem:[%s3742_s1 + $0x150] sm:$0xff] }
  0xb0   : > { %1107 = vmatmul.f32.gmra.mxu0 %v2633_v19  ;;  %v2144_v19 = vld [vmem:[%s3742_s1 + $0x450] sm:$0xff]  ;;  %1191 = vmatpush.msra.mxu1 %v566_v31 }
  0xb1   : > { %771 = vmatmul.f32.gmra.mxu1 %v2747_v8  ;;  %1579 = vmatpush.msra.mxu0 %v2144_v19  ;;  %v2126_v19 = vld [vmem:[%s3742_s1 + $0x3c0] sm:$0xff] }
  0xb3   : > { %1580 = vmatpush.msra.mxu0 %v2143_v38 }
  0xb6   : > { %884 = vmatmul.f32.gmra.mxu2 %v2935_v7 }
  0xb7   : > { %997 = vmatmul.f32.gmra.mxu3 %v2811_v50 }
  0xb8   : > { %1110 = vmatmul.f32.gmra.mxu0 %v2669_v30  ;;  %v2127_v30 = vld [vmem:[%s3742_s1 + $0x3c8] sm:$0xff] }
  0xb9   : > { %774 = vmatmul.f32.gmra.mxu1 %v2380_v6  ;;  %1467 = vmatpush.msra.mxu3 %v2127_v30 }
  0xbb   : > { %1468 = vmatpush.msra.mxu3 %v2126_v19 }
  0xbd   : > { %v2951_v29 = vpop.f32.mrf.mxu0 }
  0xbe   : > { %887 = vmatmul.f32.gmra.mxu2 %v2949_v23  ;;  %v2954_v50 = vpop.f32.mrf.mxu1 }
  0xbf   : > { %1000 = vmatmul.f32.gmra.mxu3 %v2827_v12 }
  0xc0   : > { %1113 = vmatmul.f32.gmra.mxu0 %v2696_v44  ;;  %v565_v44 = vld [vmem:[%s3742_s1 + $0x148] sm:$0xff] }
  0xc1   : > { %v2964_v63 = vpop.f32.mrf.mxu2  ;;  %777 = vmatmul.f32.gmra.mxu1 %v2524_v42 }
  0xc2   : > { %v2967_v46 = vpop.f32.mrf.mxu3  ;;  %1192 = vmatpush.msra.mxu1 %v565_v44  ;;  %v3009_v44 = vld [vmem:[#allocation2 + $0x109] sm:$0xff] }
  0xc3   : > { %3771 = vst [vmem:[#allocation6_spill] sm:$0xff] %v2967_v46 }
  0xc4   : > { %3776 = vst [vmem:[#allocation11_spill] sm:$0xff] %v3009_v44 }
  0xc5   : > { %v2971_v12 = vpop.f32.mrf.mxu0 }
  0xc6   : > { %890 = vmatmul.f32.gmra.mxu2 %v2969_v17  ;;  %v2974_v47 = vpop.f32.mrf.mxu1 }
  0xc7   : > { %1003 = vmatmul.f32.gmra.mxu3 %v2842_v26 }
  0xc8   : > { %1116 = vmatmul.f32.gmra.mxu0 %v2747_v8  ;;  %v2110_v8 = vld [vmem:[%s3742_s1 + $0x340] sm:$0xff] }
  0xc9   : > { %v2984_v53 = vpop.f32.mrf.mxu2  ;;  %780 = vmatmul.f32.gmra.mxu1 %v2561_v54  ;;  %1355 = vmatpush.msra.mxu2 %v2110_v8  ;;  %v2142_v8 = vld [vmem:[%s3742_s1 + $0x440] sm:$0xff] }
  0xca   : > { %v2987_v4 = vpop.f32.mrf.mxu3  ;;  %1581 = vmatpush.msra.mxu0 %v2142_v8 }
  0xcb   : > { %3773 = vst [vmem:[#allocation8_spill] sm:$0xff] %v2987_v4 }
  0xcd   : > { %v2991_v26 = vpop.f32.mrf.mxu0 }
  0xce   : > { %893 = vmatmul.f32.gmra.mxu2 %v2989_v11  ;;  %v2994_v31 = vpop.f32.mrf.mxu1 }
  0xcf   : > { %1006 = vmatmul.f32.gmra.mxu3 %v2430_v18 }
  0xd0   : > { %1119 = vmatmul.f32.gmra.mxu0 %v2380_v6  ;;  %v564_v6 = vld [vmem:[%s3742_s1 + $0x140] sm:$0xff] }
  0xd1   : > { %v3004_v36 = vpop.f32.mrf.mxu2  ;;  %783 = vmatmul.f32.gmra.mxu1 %v2575_v59 }
  0xd2   : > { %v3007_v30 = vpop.f32.mrf.mxu3  ;;  %1193 = vmatpush.msra.mxu1 %v564_v6  ;;  %v2125_v6 = vld [vmem:[%s3742_s1 + $0x3b8] sm:$0xff] }
  0xd3   : > { %3775 = vst [vmem:[#allocation10_spill] sm:$0xff] %v3007_v30  ;;  %1469 = vmatpush.msra.mxu3 %v2125_v6 }
  0xd5   : > { %v3011_v18 = vpop.f32.mrf.mxu0 }
  0xd6   : > { %896 = vmatmul.f32.gmra.mxu2 %v3009_v44  ;;  %v3014_v38 = vpop.f32.mrf.mxu1  ;;  %v3029_v44 = vld [vmem:[#allocation2 + $0x129] sm:$0xff] }
  0xd7   : > { %1009 = vmatmul.f32.gmra.mxu3 %v2592_v3  ;;  %3778 = vst [vmem:[#allocation13_spill] sm:$0xff] %v3029_v44 }
  0xd8   : > { %1122 = vmatmul.f32.gmra.mxu0 %v2524_v42  ;;  %v2109_v42 = vld [vmem:[%s3742_s1 + $0x338] sm:$0xff] }
  0xd9   : > { %v3024_v19 = vpop.f32.mrf.mxu2  ;;  %786 = vmatmul.f32.gmra.mxu1 %v2614_v10  ;;  %1356 = vmatpush.msra.mxu2 %v2109_v42  ;;  %v2141_v42 = vld [vmem:[%s3742_s1 + $0x438] sm:$0xff] }
  0xda   : > { %v3027_v30 = vpop.f32.mrf.mxu3  ;;  %1582 = vmatpush.msra.mxu0 %v2141_v42 }
  0xdb   : > { %3777 = vst [vmem:[#allocation12_spill] sm:$0xff] %v3027_v30 }
  0xdd   : > { %v3031_v3 = vpop.f32.mrf.mxu0 }
  0xde   : > { %899 = vmatmul.f32.gmra.mxu2 %v3029_v44  ;;  %v3034_v4 = vpop.f32.mrf.mxu1  ;;  %v3049_v44 = vld [vmem:[#allocation2 + $0x131] sm:$0xff] }
  0xdf   : > { %1012 = vmatmul.f32.gmra.mxu3 %v2636_v20  ;;  %3780 = vst [vmem:[#allocation15_spill] sm:$0xff] %v3049_v44 }
  0xe0   : > { %1125 = vmatmul.f32.gmra.mxu0 %v2561_v54  ;;  %v563_v54 = vld [vmem:[%s3742_s1 + $0x138] sm:$0xff] }
  0xe1   : > { %v3044_v8 = vpop.f32.mrf.mxu2  ;;  %789 = vmatmul.f32.gmra.mxu1 %v2640_v21 }
  0xe2   : > { %v3047_v30 = vpop.f32.mrf.mxu3  ;;  %1194 = vmatpush.msra.mxu1 %v563_v54  ;;  %v2124_v54 = vld [vmem:[%s3742_s1 + $0x3b0] sm:$0xff] }
  0xe3   : > { %3779 = vst [vmem:[#allocation14_spill] sm:$0xff] %v3047_v30  ;;  %1470 = vmatpush.msra.mxu3 %v2124_v54 }
  0xe5   : > { %v3051_v20 = vpop.f32.mrf.mxu0 }
  0xe6   : > { %902 = vmatmul.f32.gmra.mxu2 %v3049_v44  ;;  %v3054_v11 = vpop.f32.mrf.mxu1  ;;  %v3069_v44 = vld [vmem:[#allocation2 + $0x151] sm:$0xff] }
  0xe7   : > { %1015 = vmatmul.f32.gmra.mxu3 %v2692_v40  ;;  %3783 = vst [vmem:[#allocation18_spill] sm:$0xff] %v3069_v44 }
  0xe8   : > { %1128 = vmatmul.f32.gmra.mxu0 %v2575_v59  ;;  %v2108_v59 = vld [vmem:[%s3742_s1 + $0x330] sm:$0xff] }
  0xe9   : > { %v3064_v6 = vpop.f32.mrf.mxu2  ;;  %792 = vmatmul.f32.gmra.mxu1 %v2679_v33  ;;  %1357 = vmatpush.msra.mxu2 %v2108_v59  ;;  %v2140_v59 = vld [vmem:[%s3742_s1 + $0x430] sm:$0xff] }
  0xea   : > { %3781 = vst [vmem:[#allocation16_spill] sm:$0xff] %v3064_v6  ;;  %v3067_v30 = vpop.f32.mrf.mxu3  ;;  %1583 = vmatpush.msra.mxu0 %v2140_v59 }
  0xeb   : > { %3782 = vst [vmem:[#allocation17_spill] sm:$0xff] %v3067_v30 }
  0xed   : > { %v3071_v40 = vpop.f32.mrf.mxu0 }
  0xee   : > { %905 = vmatmul.f32.gmra.mxu2 %v3069_v44  ;;  %v3074_v46 = vpop.f32.mrf.mxu1  ;;  %v3089_v44 = vld [vmem:[#allocation2 + $0x159] sm:$0xff] }
  0xef   : > { %1018 = vmatmul.f32.gmra.mxu3 %v2744_v5  ;;  %3786 = vst [vmem:[#allocation21_spill] sm:$0xff] %v3089_v44 }
  0xf0   : > { %1131 = vmatmul.f32.gmra.mxu0 %v2614_v10  ;;  %v562_v10 = vld [vmem:[%s3742_s1 + $0x130] sm:$0xff] }
  0xf1   : > { %v3084_v42 = vpop.f32.mrf.mxu2  ;;  %795 = vmatmul.f32.gmra.mxu1 %v2699_v45 }
  0xf2   : > { %3784 = vst [vmem:[#allocation19_spill] sm:$0xff] %v3084_v42  ;;  %v3087_v30 = vpop.f32.mrf.mxu3  ;;  %1195 = vmatpush.msra.mxu1 %v562_v10  ;;  %v2123_v10 = vld [vmem:[%s3742_s1 + $0x3a8] sm:$0xff] }
  0xf3   : > { %3785 = vst [vmem:[#allocation20_spill] sm:$0xff] %v3087_v30  ;;  %1471 = vmatpush.msra.mxu3 %v2123_v10 }
  0xf5   : > { %v3091_v5 = vpop.f32.mrf.mxu0 }
  0xf6   : > { %908 = vmatmul.f32.gmra.mxu2 %v3089_v44  ;;  %v751_v17 = vpop.f32.mrf.mxu1  ;;  %v3107_v44 = vld [vmem:[#allocation2 + $0x179] sm:$0xff] }
  0xf7   : > { %1021 = vmatmul.f32.gmra.mxu3 %v2790_v32  ;;  %3789 = vst [vmem:[#allocation24_spill] sm:$0xff] %v3107_v44  ;;  %v752_v59 = vadd.f32 %v751_v17, %v2951_v29  ;;  %v2139_v29 = vld [vmem:[%s3742_s1 + $0x428] sm:$0xff] }
  0xf8   : > { %1134 = vmatmul.f32.gmra.mxu0 %v2640_v21  ;;  %v2107_v21 = vld [vmem:[%s3742_s1 + $0x328] sm:$0xff] }
  0xf9   : > { %v3102_v54 = vpop.f32.mrf.mxu2  ;;  %798 = vmatmul.f32.gmra.mxu1 %v2514_v39  ;;  %1358 = vmatpush.msra.mxu2 %v2107_v21 }
  0xfa   : > { %3787 = vst [vmem:[#allocation22_spill] sm:$0xff] %v3102_v54  ;;  %v3105_v30 = vpop.f32.mrf.mxu3  ;;  %1584 = vmatpush.msra.mxu0 %v2139_v29 }
  0xfb   : > { %3788 = vst [vmem:[#allocation23_spill] sm:$0xff] %v3105_v30 }
  0xfd   : > { %v1090_v32 = vpop.f32.mrf.mxu0 }
  0xfe   : > { %911 = vmatmul.f32.gmra.mxu2 %v3107_v44  ;;  %v754_v23 = vpop.f32.mrf.mxu1 }
  0xff   : > { %1024 = vmatmul.f32.gmra.mxu3 %v2814_v52  ;;  %v3120_v52 = vld [vmem:[#allocation2 + $0x181] sm:$0xff]  ;;  %v755_v17 = vadd.f32 %v754_v23, %v2971_v12 }
 0x100   : > { %1137 = vmatmul.f32.gmra.mxu0 %v2679_v33  ;;  %v561_v33 = vld [vmem:[%s3742_s1 + $0x128] sm:$0xff]  ;;  %v2122_v23 = vld [vmem:[%s3742_s1 + $0x3a0] sm:$0xff] }
 0x101   : > { %v864_v30 = vpop.f32.mrf.mxu2  ;;  %801 = vmatmul.f32.gmra.mxu1 %v2527_v43  ;;  %1472 = vmatpush.msra.mxu3 %v2122_v23 }
 0x102   : > { %v865_v44 = vadd.f32 %v864_v30, %v752_v59  ;;  %v977_v54 = vpop.f32.mrf.mxu3  ;;  %1196 = vmatpush.msra.mxu1 %v561_v33 }
 0x104   : > { %v978_v42 = vadd.f32 %v977_v54, %v865_v44 }
 0x105   : > { %v1093_v7 = vpop.f32.mrf.mxu0 }
 0x106   : > { %v3122_v6 = vadd.f32 %v1090_v32, %v978_v42  ;;  %914 = vmatmul.f32.gmra.mxu2 %v3120_v52  ;;  %v757_v58 = vpop.f32.mrf.mxu1 }
 0x107   : > { %1027 = vmatmul.f32.gmra.mxu3 %v2830_v15  ;;  %v3135_v15 = vld [vmem:[#allocation2 + $0x1a1] sm:$0xff]  ;;  %v758_v12 = vadd.f32 %v757_v58, %v2991_v26 }
 0x108   : > { %1140 = vmatmul.f32.gmra.mxu0 %v2699_v45  ;;  %v2106_v45 = vld [vmem:[%s3742_s1 + $0x320] sm:$0xff] }
 0x109   : > { %v867_v30 = vpop.f32.mrf.mxu2  ;;  %804 = vmatmul.f32.gmra.mxu1 %v2564_v55  ;;  %1359 = vmatpush.msra.mxu2 %v2106_v45  ;;  %v2138_v58 = vld [vmem:[%s3742_s1 + $0x420] sm:$0xff] }
 0x10a   : > { %v868_v44 = vadd.f32 %v867_v30, %v755_v17  ;;  %v980_v42 = vpop.f32.mrf.mxu3  ;;  %1585 = vmatpush.msra.mxu0 %v2138_v58 }
 0x10c   : > { %v981_v54 = vadd.f32 %v980_v42, %v868_v44 }
 0x10d   : > { %v1096_v32 = vpop.f32.mrf.mxu0 }
 0x10e   : > { %v3137_v21 = vadd.f32 %v1093_v7, %v981_v54  ;;  %917 = vmatmul.f32.gmra.mxu2 %v3135_v15  ;;  %v760_v10 = vpop.f32.mrf.mxu1 }
 0x10f   : > { %1030 = vmatmul.f32.gmra.mxu3 %v2568_v57  ;;  %v3150_v57 = vld [vmem:[#allocation2 + $0x1a9] sm:$0xff]  ;;  %v761_v26 = vadd.f32 %v760_v10, %v3011_v18  ;;  %v2121_v18 = vld [vmem:[%s3742_s1 + $0x398] sm:$0xff] }
 0x110   : > { %1143 = vmatmul.f32.gmra.mxu0 %v2514_v39  ;;  %v560_v39 = vld [vmem:[%s3742_s1 + $0x120] sm:$0xff]  ;;  %1473 = vmatpush.msra.mxu3 %v2121_v18 }
 0x111   : > { %v870_v7 = vpop.f32.mrf.mxu2  ;;  %807 = vmatmul.f32.gmra.mxu1 %v2580_v61 }
 0x112   : > { %v871_v59 = vadd.f32 %v870_v7, %v758_v12  ;;  %v983_v33 = vpop.f32.mrf.mxu3  ;;  %1197 = vmatpush.msra.mxu1 %v560_v39 }
 0x114   : > { %v984_v29 = vadd.f32 %v983_v33, %v871_v59 }
 0x115   : > { %v1099_v17 = vpop.f32.mrf.mxu0 }
 0x116   : > { %v3152_v30 = vadd.f32 %v1096_v32, %v984_v29  ;;  %920 = vmatmul.f32.gmra.mxu2 %v3150_v57  ;;  %v763_v44 = vpop.f32.mrf.mxu1 }
 0x117   : > { %1033 = vmatmul.f32.gmra.mxu3 %v2622_v13  ;;  %v3165_v13 = vld [vmem:[#allocation2 + $0x1c9] sm:$0xff]  ;;  %v764_v10 = vadd.f32 %v763_v44, %v3031_v3  ;;  %v2137_v3 = vld [vmem:[%s3742_s1 + $0x418] sm:$0xff] }
 0x118   : > { %1146 = vmatmul.f32.gmra.mxu0 %v2527_v43  ;;  %v2105_v43 = vld [vmem:[%s3742_s1 + $0x318] sm:$0xff] }
 0x119   : > { %v873_v42 = vpop.f32.mrf.mxu2  ;;  %810 = vmatmul.f32.gmra.mxu1 %v2625_v14  ;;  %1360 = vmatpush.msra.mxu2 %v2105_v43 }
 0x11a   : > { %v874_v54 = vadd.f32 %v873_v42, %v761_v26  ;;  %v986_v32 = vpop.f32.mrf.mxu3  ;;  %1586 = vmatpush.msra.mxu0 %v2137_v3  ;;  %v3215_v3 = vld [vmem:[#allocation2 + $0x218] sm:$0xff] }
 0x11c   : > { %v987_v45 = vadd.f32 %v986_v32, %v874_v54 }
 0x11d   : > { %v1102_v23 = vpop.f32.mrf.mxu0 }
 0x11e   : > { %v3167_v12 = vadd.f32 %v1099_v17, %v987_v45  ;;  %923 = vmatmul.f32.gmra.mxu2 %v3165_v13  ;;  %v766_v7 = vpop.f32.mrf.mxu1 }
 0x11f   : > { %1036 = vmatmul.f32.gmra.mxu3 %v2681_v34  ;;  %v3180_v34 = vld [vmem:[#allocation2 + $0x1d1] sm:$0xff]  ;;  %v767_v44 = vadd.f32 %v766_v7, %v3051_v20 }
 0x120   : > { %1149 = vmatmul.f32.gmra.mxu0 %v2564_v55  ;;  %v559_v55 = vld [vmem:[%s3742_s1 + $0x118] sm:$0xff]  ;;  %v2120_v20 = vld [vmem:[%s3742_s1 + $0x390] sm:$0xff] }
 0x121   : > { %v876_v59 = vpop.f32.mrf.mxu2  ;;  %813 = vmatmul.f32.gmra.mxu1 %v2643_v22  ;;  %1474 = vmatpush.msra.mxu3 %v2120_v20  ;;  %v3232_v20 = vld [vmem:[#allocation2 + $0x220] sm:$0xff] }
 0x122   : > { %v877_v33 = vadd.f32 %v876_v59, %v764_v10  ;;  %v989_v29 = vpop.f32.mrf.mxu3  ;;  %1198 = vmatpush.msra.mxu1 %v559_v55 }
 0x124   : > { %v990_v17 = vadd.f32 %v989_v29, %v877_v33 }
 0x125   : > { %v1105_v39 = vpop.f32.mrf.mxu0 }
 0x126   : > { %v3182_v58 = vadd.f32 %v1102_v23, %v990_v17  ;;  %926 = vmatmul.f32.gmra.mxu2 %v3180_v34  ;;  %v769_v26 = vpop.f32.mrf.mxu1 }
 0x127   : > { %1039 = vmatmul.f32.gmra.mxu3 %v2729_v60  ;;  %v3195_v60 = vld [vmem:[#allocation2 + $0x1f1] sm:$0xff]  ;;  %v770_v7 = vadd.f32 %v769_v26, %v3071_v40 }
 0x128   : > { %1152 = vmatmul.f32.gmra.mxu0 %v2580_v61  ;;  %v2104_v61 = vld [vmem:[%s3742_s1 + $0x310] sm:$0xff] }
 0x129   : > { %v879_v42 = vpop.f32.mrf.mxu2  ;;  %816 = vmatmul.f32.gmra.mxu1 %v2684_v35  ;;  %1361 = vmatpush.msra.mxu2 %v2104_v61  ;;  %v2136_v40 = vld [vmem:[%s3742_s1 + $0x410] sm:$0xff] }
 0x12a   : > { %v880_v54 = vadd.f32 %v879_v42, %v767_v44  ;;  %v992_v32 = vpop.f32.mrf.mxu3  ;;  %1587 = vmatpush.msra.mxu0 %v2136_v40  ;;  %v3249_v40 = vld [vmem:[#allocation2 + $0x240] sm:$0xff] }
 0x12c   : > { %v993_v45 = vadd.f32 %v992_v32, %v880_v54 }
 0x12d   : > { %v1108_v23 = vpop.f32.mrf.mxu0 }
 0x12e   : > { %v3197_v43 = vadd.f32 %v1105_v39, %v993_v45  ;;  %929 = vmatmul.f32.gmra.mxu2 %v3195_v60  ;;  %v772_v18 = vpop.f32.mrf.mxu1 }
 0x12f   : > { %1042 = vmatmul.f32.gmra.mxu3 %v2780_v27  ;;  %v3210_v27 = vld [vmem:[#allocation2 + $0x1f9] sm:$0xff]  ;;  %v773_v26 = vadd.f32 %v772_v18, %v3091_v5  ;;  %v2119_v5 = vld [vmem:[%s3742_s1 + $0x388] sm:$0xff] }
 0x130   : > { %1155 = vmatmul.f32.gmra.mxu0 %v2625_v14  ;;  %v558_v14 = vld [vmem:[%s3742_s1 + $0x110] sm:$0xff]  ;;  %1475 = vmatpush.msra.mxu3 %v2119_v5  ;;  %v3266_v5 = vld [vmem:[#allocation2 + $0x248] sm:$0xff] }
 0x131   : > { %v882_v10 = vpop.f32.mrf.mxu2  ;;  %819 = vmatmul.f32.gmra.mxu1 %v2732_v62 }
 0x132   : > { %v883_v59 = vadd.f32 %v882_v10, %v770_v7  ;;  %v995_v33 = vpop.f32.mrf.mxu3  ;;  %1199 = vmatpush.msra.mxu1 %v558_v14 }
 0x134   : > { %v996_v29 = vadd.f32 %v995_v33, %v883_v59 }
 0x135   : > { %v1111_v17 = vpop.f32.mrf.mxu0 }
 0x136   : > { %v3212_v39 = vadd.f32 %v1108_v23, %v996_v29  ;;  %932 = vmatmul.f32.gmra.mxu2 %v3210_v27  ;;  %v775_v55 = vpop.f32.mrf.mxu1 }
 0x137   : > { %1045 = vmatmul.f32.gmra.mxu3 %v2807_v48  ;;  %v3227_v48 = vld [vmem:[#allocation2 + $0x219] sm:$0xff]  ;;  %v776_v18 = vadd.f32 %v775_v55, %v2937_v16  ;;  %v2135_v16 = vld [vmem:[%s3742_s1 + $0x408] sm:$0xff] }
 0x138   : > { %1158 = vmatmul.f32.gmra.mxu0 %v2643_v22  ;;  %v2103_v22 = vld [vmem:[%s3742_s1 + $0x308] sm:$0xff] }
 0x139   : > { %v885_v44 = vpop.f32.mrf.mxu2  ;;  %822 = vmatmul.f32.gmra.mxu1 %v3215_v3  ;;  %1362 = vmatpush.msra.mxu2 %v2103_v22 }
 0x13a   : > { %v886_v42 = vadd.f32 %v885_v44, %v773_v26  ;;  %v998_v54 = vpop.f32.mrf.mxu3  ;;  %1588 = vmatpush.msra.mxu0 %v2135_v16 }
 0x13c   : > { %v999_v32 = vadd.f32 %v998_v54, %v886_v42 }
 0x13d   : > { %v1114_v45 = vpop.f32.mrf.mxu0 }
 0x13e   : > { %v3229_v23 = vadd.f32 %v1111_v17, %v999_v32  ;;  %935 = vmatmul.f32.gmra.mxu2 %v3227_v48  ;;  %v778_v61 = vpop.f32.mrf.mxu1 }
 0x13f   : > { %1048 = vmatmul.f32.gmra.mxu3 %v2825_v9  ;;  %v3244_v9 = vld [vmem:[#allocation2 + $0x221] sm:$0xff]  ;;  %v779_v55 = vadd.f32 %v778_v61, %v2954_v50  ;;  %v3268_v50 = vld [vmem:[#allocation2 + $0x217] sm:$0xff] }
 0x140   : > { %1161 = vmatmul.f32.gmra.mxu0 %v2684_v35  ;;  %v557_v35 = vld [vmem:[%s3742_s1 + $0x108] sm:$0xff]  ;;  %v2118_v61 = vld [vmem:[%s3742_s1 + $0x380] sm:$0xff] }
 0x141   : > { %v888_v7 = vpop.f32.mrf.mxu2  ;;  %825 = vmatmul.f32.gmra.mxu1 %v3232_v20  ;;  %1476 = vmatpush.msra.mxu3 %v2118_v61  ;;  %v3299_v61 = vld [vmem:[#allocation2 + $0x269] sm:$0xff] }
 0x142   : > { %v889_v10 = vadd.f32 %v888_v7, %v776_v18  ;;  %v1001_v59 = vpop.f32.mrf.mxu3  ;;  %1200 = vmatpush.msra.mxu1 %v557_v35 }
 0x144   : > { %v1002_v33 = vadd.f32 %v1001_v59, %v889_v10 }
 0x145   : > { %v1117_v29 = vpop.f32.mrf.mxu0 }
 0x146   : > { %v3246_v17 = vadd.f32 %v1114_v45, %v1002_v33  ;;  %938 = vmatmul.f32.gmra.mxu2 %v3244_v9  ;;  %v781_v14 = vpop.f32.mrf.mxu1  ;;  %v3280_v33 = vld [vmem:[#allocation2 + $0x249] sm:$0xff] }
 0x147   : > { %1051 = vmatmul.f32.gmra.mxu3 %v2840_v24  ;;  %v3261_v24 = vld [vmem:[#allocation2 + $0x241] sm:$0xff]  ;;  %v782_v18 = vadd.f32 %v781_v14, %v2974_v47 }
 0x148   : > { %1164 = vmatmul.f32.gmra.mxu0 %v2732_v62  ;;  %v2102_v62 = vld [vmem:[%s3742_s1 + $0x300] sm:$0xff] }
 0x149   : > { %v891_v26 = vpop.f32.mrf.mxu2  ;;  %828 = vmatmul.f32.gmra.mxu1 %v3249_v40  ;;  %1363 = vmatpush.msra.mxu2 %v2102_v62  ;;  %v3287_v47 = vld [vmem:[#allocation2 + $0x21f] sm:$0xff] }
 0x14a   : > { %v892_v44 = vadd.f32 %v891_v26, %v779_v55  ;;  %v1004_v42 = vpop.f32.mrf.mxu3  ;;  %v3285_v26 = vld [vmem:[#allocation2 + $0x268] sm:$0xff]  ;;  %v556_v14 = vld [vmem:[%s3742_s1 + $0x100] sm:$0xff] }
 0x14b   : > { %1201 = vmatpush.msra.mxu1 %v556_v14 }
 0x14c   : > { %v1005_v54 = vadd.f32 %v1004_v42, %v892_v44  ;;  %v2134_v44 = vld [vmem:[%s3742_s1 + $0x400] sm:$0xff] }
 0x14d   : > { %v1120_v32 = vpop.f32.mrf.mxu0  ;;  %1589 = vmatpush.msra.mxu0 %v2134_v44 }
 0x14e   : > { %v3263_v45 = vadd.f32 %v1117_v29, %v1005_v54  ;;  %941 = vmatmul.f32.gmra.mxu2 %v3261_v24  ;;  %v784_v22 = vpop.f32.mrf.mxu1 }
 0x14f   : > { %1054 = vmatmul.f32.gmra.mxu3 %v3268_v50  ;;  %v785_v42 = vadd.f32 %v784_v22, %v2994_v31  ;;  %v3306_v31 = vld [vmem:[#allocation2 + $0x23f] sm:$0xff] }
 0x150   : > { %1167 = vmatmul.f32.gmra.mxu0 %v3215_v3 }
 0x151   : > { %v894_v7 = vpop.f32.mrf.mxu2  ;;  %831 = vmatmul.f32.gmra.mxu1 %v3266_v5 }
 0x152   : > { %v895_v10 = vadd.f32 %v894_v7, %v782_v18  ;;  %v1007_v59 = vpop.f32.mrf.mxu3 }
 0x154   : > { %v1008_v29 = vadd.f32 %v1007_v59, %v895_v10 }
 0x155   : > { %v1123_v35 = vpop.f32.mrf.mxu0 }
 0x156   : > { %v3282_v16 = vadd.f32 %v1120_v32, %v1008_v29  ;;  %944 = vmatmul.f32.gmra.mxu2 %v3280_v33  ;;  %v787_v55 = vpop.f32.mrf.mxu1  ;;  %v3304_v29 = vld [vmem:[#allocation2 + $0x270] sm:$0xff] }
 0x157   : > { %1057 = vmatmul.f32.gmra.mxu3 %v3287_v47  ;;  %v788_v22 = vadd.f32 %v787_v55, %v3014_v38 }
 0x158   : > { %1170 = vmatmul.f32.gmra.mxu0 %v3232_v20 }
 0x159   : > { %v897_v54 = vpop.f32.mrf.mxu2  ;;  %834 = vmatmul.f32.gmra.mxu1 %v3285_v26 }
 0x15a   : > { %v898_v32 = vadd.f32 %v897_v54, %v785_v42  ;;  %v1010_v62 = vpop.f32.mrf.mxu3 }
 0x15c   : > { %v1011_v18 = vadd.f32 %v1010_v62, %v898_v32 }
 0x15d   : > { %v1126_v7 = vpop.f32.mrf.mxu0 }
 0x15e   : > { %v3301_v10 = vadd.f32 %v1123_v35, %v1011_v18  ;;  %947 = vmatmul.f32.gmra.mxu2 %v3299_v61  ;;  %v790_v59 = vpop.f32.mrf.mxu1  ;;  %v3312_v35 = vld [vmem:[#allocation2 + $0x271] sm:$0xff] }
 0x15f   : > { %1060 = vmatmul.f32.gmra.mxu3 %v3306_v31  ;;  %v791_v38 = vadd.f32 %v790_v59, %v3034_v4 }
 0x160   : > { %3790 = vst [vmem:[#allocation25_spill] sm:$0xff] %v3301_v10  ;;  %1173 = vmatmul.f32.gmra.mxu0 %v3249_v40  ;;  %v3320_v10 = vld [vmem:[#allocation2 + $0x290] sm:$0xff] }
 0x161   : > { %v900_v14 = vpop.f32.mrf.mxu2  ;;  %837 = vmatmul.f32.gmra.mxu1 %v3304_v29 }
 0x162   : > { %v901_v44 = vadd.f32 %v900_v14, %v788_v22  ;;  %v1013_v42 = vpop.f32.mrf.mxu3 }
 0x164   : > { %v1014_v54 = vadd.f32 %v1013_v42, %v901_v44  ;;  %v3323_v44 = vld [vmem:[#allocation2 + $0x291] sm:$0xff] }
 0x165   : > { %v1129_v32 = vpop.f32.mrf.mxu0 }
 0x166   : > { %v3314_v62 = vadd.f32 %v1126_v7, %v1014_v54  ;;  %950 = vmatmul.f32.gmra.mxu2 %v3312_v35  ;;  %v793_v18 = vpop.f32.mrf.mxu1 }
 0x167   : > { %1063 = vmatmul.f32.gmra.mxu3 %v2737_v1  ;;  %v794_v4 = vadd.f32 %v793_v18, %v3054_v11 }
 0x168   : > { %3791 = vst [vmem:[#allocation26_spill] sm:$0xff] %v3314_v62  ;;  %1176 = vmatmul.f32.gmra.mxu0 %v3266_v5  ;;  %v3332_v62 = vld [vmem:[#allocation2 + $0x299] sm:$0xff] }
 0x169   : > { %v903_v55 = vpop.f32.mrf.mxu2  ;;  %840 = vmatmul.f32.gmra.mxu1 %v3320_v10 }
 0x16a   : > { %v904_v22 = vadd.f32 %v903_v55, %v791_v38  ;;  %v1016_v14 = vpop.f32.mrf.mxu3 }
 0x16c   : > { %v1017_v7 = vadd.f32 %v1016_v14, %v904_v22 }
 0x16d   : > { %v1132_v42 = vpop.f32.mrf.mxu0 }
 0x16e   : > { %v3325_v54 = vadd.f32 %v1129_v32, %v1017_v7  ;;  %953 = vmatmul.f32.gmra.mxu2 %v3323_v44  ;;  %v796_v1 = vpop.f32.mrf.mxu1 }
 0x16f   : > { %1066 = vmatmul.f32.gmra.mxu3 %v2782_v28  ;;  %v797_v28 = vadd.f32 %v796_v1, %v3074_v46 }
 0x170   : > { %3792 = vst [vmem:[#allocation27_spill] sm:$0xff] %v3325_v54  ;;  %1179 = vmatmul.f32.gmra.mxu0 %v3285_v26  ;;  %v488_v54 = vld [vmem:[#allocation2 + $0x11] sm:$0xff] }
 0x171   : > { %v906_v59 = vpop.f32.mrf.mxu2  ;;  %843 = vmatmul.f32.gmra.mxu1 %v2735_v0 }
 0x172   : > { %v907_v38 = vadd.f32 %v906_v59, %v794_v4  ;;  %v1019_v55 = vpop.f32.mrf.mxu3 }
 0x174   : > { %v1020_v22 = vadd.f32 %v1019_v55, %v907_v38 }
 0x175   : > { %v1135_v14 = vpop.f32.mrf.mxu0 }
 0x176   : > { %v3334_v32 = vadd.f32 %v1132_v42, %v1020_v22  ;;  %956 = vmatmul.f32.gmra.mxu2 %v3332_v62  ;;  %v799_v7 = vpop.f32.mrf.mxu1  ;;  %v2231_v42 = vld [vmem:[#allocation2 + $0x5f] sm:$0xff] }
 0x177   : > { %1069 = vmatmul.f32.gmra.mxu3 %v2809_v49  ;;  %v489_v22 = vld [vmem:[#allocation2 + $0x19] sm:$0xff]  ;;  %v800_v49 = vadd.f32 %v799_v7, %v2964_v63 }
 0x178   : > { %3793 = vst [vmem:[#allocation28_spill] sm:$0xff] %v3334_v32  ;;  %1182 = vmatmul.f32.gmra.mxu0 %v3304_v29  ;;  %v2232_v32 = vld [vmem:[#allocation2 + $0x60] sm:$0xff] }
 0x179   : > { %v909_v11 = vpop.f32.mrf.mxu2  ;;  %1202 = vmatmul.f32.vlgmr.msra.gmra.mxu1 %v488_v54 }
 0x17a   : > { %v910_v0 = vadd.f32 %v909_v11, %v797_v28  ;;  %v1022_v18 = vpop.f32.mrf.mxu3 }
 0x17c   : > { %v1023_v4 = vadd.f32 %v1022_v18, %v910_v0 }
 0x17d   : > { %v1138_v59 = vpop.f32.mrf.mxu0 }
 0x17e   : > { %v3340_v38 = vadd.f32 %v1135_v14, %v1023_v4  ;;  %1364 = vmatmul.f32.vlgmr.msra.gmra.mxu2 %v2231_v42  ;;  %v802_v55 = vpop.f32.mrf.mxu1  ;;  %v2233_v14 = vld [vmem:[#allocation2 + $0x67] sm:$0xff] }
 0x17f   : > { %1477 = vmatmul.f32.vlgmr.msra.gmra.mxu3 %v2232_v32  ;;  %v2234_v4 = vld [vmem:[#allocation2 + $0x68] sm:$0xff]  ;;  %v803_v42 = vadd.f32 %v802_v55, %v2984_v53 }
 0x180   : > { %1590 = vmatmul.f32.vlgmr.msra.gmra.mxu0 %v2875_v25 }
 0x181   : > { %v912_v46 = vpop.f32.mrf.mxu2  ;;  %1205 = vmatmul.f32.gmra.mxu1 %v489_v22 }
 0x182   : > { %v913_v1 = vadd.f32 %v912_v46, %v800_v49  ;;  %v1025_v54 = vpop.f32.mrf.mxu3 }
 0x184   : > { %v1026_v28 = vadd.f32 %v1025_v54, %v913_v1  ;;  %v2236_v54 = vld [vmem:[#allocation2 + $0x88] sm:$0xff] }
 0x185   : > { %v1141_v11 = vpop.f32.mrf.mxu0 }
 0x186   : > { %v3344_v0 = vadd.f32 %v1138_v59, %v1026_v28  ;;  %1367 = vmatmul.f32.gmra.mxu2 %v2233_v14  ;;  %v805_v18 = vpop.f32.mrf.mxu1  ;;  %v2235_v59 = vld [vmem:[#allocation2 + $0x87] sm:$0xff] }
 0x187   : > { %1480 = vmatmul.f32.gmra.mxu3 %v2234_v4  ;;  %v806_v28 = vadd.f32 %v805_v18, %v3004_v36 }
 0x188   : > { %1593 = vmatmul.f32.gmra.mxu0 %v2887_v2 }
 0x189   : > { %v915_v63 = vpop.f32.mrf.mxu2  ;;  %1208 = vmatmul.f32.gmra.mxu1 %v2853_v37 }
 0x18a   : > { %v916_v32 = vadd.f32 %v915_v63, %v803_v42  ;;  %v1028_v7 = vpop.f32.mrf.mxu3 }
 0x18c   : > { %v1029_v22 = vadd.f32 %v1028_v7, %v916_v32  ;;  %v2238_v32 = vld [vmem:[#allocation2 + $0x90] sm:$0xff] }
 0x18d   : > { %v1144_v49 = vpop.f32.mrf.mxu0 }
 0x18e   : > { %v3349_v46 = vadd.f32 %v1141_v11, %v1029_v22  ;;  %1370 = vmatmul.f32.gmra.mxu2 %v2235_v59  ;;  %v808_v1 = vpop.f32.mrf.mxu1  ;;  %v2237_v11 = vld [vmem:[#allocation2 + $0x8f] sm:$0xff] }
 0x18f   : > { %1483 = vmatmul.f32.gmra.mxu3 %v2236_v54  ;;  %v809_v7 = vadd.f32 %v808_v1, %v3024_v19 }
 0x190   : > { %1596 = vmatmul.f32.gmra.mxu0 %v2899_v41 }
 0x191   : > { %v918_v53 = vpop.f32.mrf.mxu2  ;;  %1211 = vmatmul.f32.gmra.mxu1 %v2864_v56 }
 0x192   : > { %v919_v55 = vadd.f32 %v918_v53, %v806_v28  ;;  %v1031_v37 = vpop.f32.mrf.mxu3  ;;  %v2240_v53 = vld [vmem:[#allocation2 + $0xb0] sm:$0xff] }
 0x194   : > { %v1032_v14 = vadd.f32 %v1031_v37, %v919_v55  ;;  %v3794_v37 = vld [vmem:[#allocation3_spill] sm:$0xff] }
 0x195   : > { %v1147_v4 = vpop.f32.mrf.mxu0 }
 0x196   : > { %v3354_v42 = vadd.f32 %v1144_v49, %v1032_v14  ;;  %1373 = vmatmul.f32.gmra.mxu2 %v2237_v11  ;;  %v811_v63 = vpop.f32.mrf.mxu1  ;;  %v2239_v49 = vld [vmem:[#allocation2 + $0xaf] sm:$0xff] }
 0x197   : > { %1486 = vmatmul.f32.gmra.mxu3 %v2238_v32  ;;  %v812_v55 = vadd.f32 %v811_v63, %v3044_v8 }
 0x198   : > { %1599 = vmatmul.f32.gmra.mxu0 %v2911_v51 }
 0x199   : > { %v921_v36 = vpop.f32.mrf.mxu2  ;;  %1214 = vmatmul.f32.gmra.mxu1 %v2875_v25 }
 0x19a   : > { %v922_v18 = vadd.f32 %v921_v36, %v809_v7  ;;  %v1034_v56 = vpop.f32.mrf.mxu3  ;;  %v2242_v36 = vld [vmem:[#allocation2 + $0xb8] sm:$0xff] }
 0x19c   : > { %v1035_v22 = vadd.f32 %v1034_v56, %v922_v18  ;;  %v3795_v18 = vld [vmem:[#allocation16_spill] sm:$0xff] }
 0x19d   : > { %v1150_v59 = vpop.f32.mrf.mxu0 }
 0x19e   : > { %v3359_v54 = vadd.f32 %v1147_v4, %v1035_v22  ;;  %1376 = vmatmul.f32.gmra.mxu2 %v2239_v49  ;;  %v814_v28 = vpop.f32.mrf.mxu1  ;;  %v2241_v4 = vld [vmem:[#allocation2 + $0xb7] sm:$0xff] }
 0x19f   : > { %1489 = vmatmul.f32.gmra.mxu3 %v2240_v53  ;;  %v815_v56 = vadd.f32 %v814_v28, %v3795_v18  ;;  %v3796_v22 = vld [vmem:[#allocation4_spill] sm:$0xff] }
 0x1a0   : > { %1602 = vmatmul.f32.gmra.mxu0 %v3794_v37 }
 0x1a1   : > { %v924_v19 = vpop.f32.mrf.mxu2  ;;  %1217 = vmatmul.f32.gmra.mxu1 %v2887_v2 }
 0x1a2   : > { %v925_v1 = vadd.f32 %v924_v19, %v812_v55  ;;  %v1037_v25 = vpop.f32.mrf.mxu3 }
 0x1a4   : > { %v1038_v14 = vadd.f32 %v1037_v25, %v925_v1  ;;  %v2244_v1 = vld [vmem:[#allocation2 + $0xd8] sm:$0xff]  ;;  %v3797_v25 = vld [vmem:[#allocation19_spill] sm:$0xff] }
 0x1a5   : > { %v1153_v11 = vpop.f32.mrf.mxu0 }
 0x1a6   : > { %v3364_v32 = vadd.f32 %v1150_v59, %v1038_v14  ;;  %1379 = vmatmul.f32.gmra.mxu2 %v2241_v4  ;;  %v817_v7 = vpop.f32.mrf.mxu1  ;;  %v2243_v59 = vld [vmem:[#allocation2 + $0xd7] sm:$0xff]  ;;  %v3798_v4 = vld [vmem:[#allocation5_spill] sm:$0xff] }
 0x1a7   : > { %1492 = vmatmul.f32.gmra.mxu3 %v2242_v36  ;;  %v818_v14 = vadd.f32 %v817_v7, %v3797_v25 }
 0x1a8   : > { %1605 = vmatmul.f32.gmra.mxu0 %v3796_v22 }
 0x1a9   : > { %v927_v8 = vpop.f32.mrf.mxu2  ;;  %1220 = vmatmul.f32.gmra.mxu1 %v2899_v41 }
 0x1aa   : > { %v928_v63 = vadd.f32 %v927_v8, %v815_v56  ;;  %v1040_v2 = vpop.f32.mrf.mxu3 }
 0x1ac   : > { %v1041_v49 = vadd.f32 %v1040_v2, %v928_v63  ;;  %v2246_v2 = vld [vmem:[#allocation2 + $0xe0] sm:$0xff] }
 0x1ad   : > { %v1156_v53 = vpop.f32.mrf.mxu0 }
 0x1ae   : > { %v3369_v55 = vadd.f32 %v1153_v11, %v1041_v49  ;;  %1382 = vmatmul.f32.gmra.mxu2 %v2243_v59  ;;  %v820_v19 = vpop.f32.mrf.mxu1  ;;  %v2245_v11 = vld [vmem:[#allocation2 + $0xdf] sm:$0xff]  ;;  %v3800_v49 = vld [vmem:[#allocation22_spill] sm:$0xff] }
 0x1af   : > { %1495 = vmatmul.f32.gmra.mxu3 %v2244_v1  ;;  %v821_v59 = vadd.f32 %v820_v19, %v3800_v49  ;;  %v3801_v1 = vld [vmem:[#allocation7_spill] sm:$0xff] }
 0x1b0   : > { %1608 = vmatmul.f32.gmra.mxu0 %v3798_v4 }
 0x1b1   : > { %v930_v28 = vpop.f32.mrf.mxu2  ;;  %1223 = vmatmul.f32.gmra.mxu1 %v2911_v51 }
 0x1b2   : > { %v931_v36 = vadd.f32 %v930_v28, %v818_v14  ;;  %v1043_v41 = vpop.f32.mrf.mxu3 }
 0x1b4   : > { %v1044_v18 = vadd.f32 %v1043_v41, %v931_v36 }
 0x1b5   : > { %v1159_v56 = vpop.f32.mrf.mxu0 }
 0x1b6   : > { %v3374_v8 = vadd.f32 %v1156_v53, %v1044_v18  ;;  %1385 = vmatmul.f32.gmra.mxu2 %v2245_v11  ;;  %v823_v63 = vpop.f32.mrf.mxu1  ;;  %v2247_v53 = vld [vmem:[#allocation2 + $0xff] sm:$0xff]  ;;  %v3803_v11 = vld [vmem:[#allocation6_spill] sm:$0xff] }
 0x1b7   : > { %1498 = vmatmul.f32.gmra.mxu3 %v2246_v2  ;;  %v2248_v18 = vld [vmem:[#allocation2 + $0x100] sm:$0xff]  ;;  %v824_v2 = vadd.f32 %v823_v63, %v3803_v11 }
 0x1b8   : > { %3799 = vst [vmem:[#allocation3_spill] sm:$0xff] %v3374_v8  ;;  %1611 = vmatmul.f32.gmra.mxu0 %v3801_v1  ;;  %v3804_v8 = vld [vmem:[#allocation9_spill] sm:$0xff] }
 0x1b9   : > { %v933_v7 = vpop.f32.mrf.mxu2  ;;  %1226 = vmatmul.f32.gmra.mxu1 %v3794_v37 }
 0x1ba   : > { %v934_v25 = vadd.f32 %v933_v7, %v821_v59  ;;  %v1046_v51 = vpop.f32.mrf.mxu3 }
 0x1bc   : > { %v1047_v14 = vadd.f32 %v1046_v51, %v934_v25 }
 0x1bd   : > { %v1162_v28 = vpop.f32.mrf.mxu0 }
 0x1be   : > { %v3379_v36 = vadd.f32 %v1159_v56, %v1047_v14  ;;  %1388 = vmatmul.f32.gmra.mxu2 %v2247_v53  ;;  %v826_v41 = vpop.f32.mrf.mxu1  ;;  %v2249_v56 = vld [vmem:[#allocation2 + $0x107] sm:$0xff]  ;;  %v3806_v53 = vld [vmem:[#allocation8_spill] sm:$0xff] }
 0x1bf   : > { %1501 = vmatmul.f32.gmra.mxu3 %v2248_v18  ;;  %v2250_v14 = vld [vmem:[#allocation2 + $0x108] sm:$0xff]  ;;  %v827_v18 = vadd.f32 %v826_v41, %v3806_v53 }
 0x1c0   : > { %3802 = vst [vmem:[#allocation16_spill] sm:$0xff] %v3379_v36  ;;  %1614 = vmatmul.f32.gmra.mxu0 %v3804_v8  ;;  %v3807_v36 = vld [vmem:[#allocation11_spill] sm:$0xff] }
 0x1c1   : > { %v936_v19 = vpop.f32.mrf.mxu2  ;;  %1229 = vmatmul.f32.gmra.mxu1 %v3796_v22 }
 0x1c2   : > { %v937_v49 = vadd.f32 %v936_v19, %v824_v2  ;;  %v1049_v37 = vpop.f32.mrf.mxu3 }
 0x1c4   : > { %v1050_v59 = vadd.f32 %v1049_v37, %v937_v49 }
 0x1c5   : > { %v1165_v7 = vpop.f32.mrf.mxu0 }
 0x1c6   : > { %v3384_v25 = vadd.f32 %v1162_v28, %v1050_v59  ;;  %1391 = vmatmul.f32.gmra.mxu2 %v2249_v56  ;;  %v829_v51 = vpop.f32.mrf.mxu1  ;;  %v2251_v28 = vld [vmem:[#allocation2 + $0x127] sm:$0xff] }
 0x1c7   : > { %1504 = vmatmul.f32.gmra.mxu3 %v2250_v14  ;;  %v2252_v59 = vld [vmem:[#allocation2 + $0x128] sm:$0xff] }
 0x1c8   : > { %3805 = vst [vmem:[#allocation4_spill] sm:$0xff] %v3384_v25  ;;  %1617 = vmatmul.f32.gmra.mxu0 %v3807_v36  ;;  %v3809_v56 = vld [vmem:[#allocation10_spill] sm:$0xff]  ;;  %v3810_v25 = vld [vmem:[#allocation13_spill] sm:$0xff] }
 0x1c9   : > { %v939_v63 = vpop.f32.mrf.mxu2  ;;  %1232 = vmatmul.f32.gmra.mxu1 %v3798_v4  ;;  %v830_v14 = vadd.f32 %v829_v51, %v3809_v56 }
 0x1ca   : > { %v940_v11 = vadd.f32 %v939_v63, %v827_v18  ;;  %v1052_v22 = vpop.f32.mrf.mxu3 }
 0x1cc   : > { %v1053_v2 = vadd.f32 %v1052_v22, %v940_v11 }
 0x1cd   : > { %v1168_v19 = vpop.f32.mrf.mxu0 }
 0x1ce   : > { %v3389_v49 = vadd.f32 %v1165_v7, %v1053_v2  ;;  %1394 = vmatmul.f32.gmra.mxu2 %v2251_v28  ;;  %v832_v37 = vpop.f32.mrf.mxu1  ;;  %v2253_v7 = vld [vmem:[#allocation2 + $0x12f] sm:$0xff]  ;;  %v3812_v28 = vld [vmem:[#allocation12_spill] sm:$0xff] }
 0x1cf   : > { %1507 = vmatmul.f32.gmra.mxu3 %v2252_v59  ;;  %v2254_v2 = vld [vmem:[#allocation2 + $0x130] sm:$0xff]  ;;  %v833_v59 = vadd.f32 %v832_v37, %v3812_v28 }
 0x1d0   : > { %3808 = vst [vmem:[#allocation19_spill] sm:$0xff] %v3389_v49  ;;  %1620 = vmatmul.f32.gmra.mxu0 %v3810_v25  ;;  %v3813_v49 = vld [vmem:[#allocation15_spill] sm:$0xff] }
 0x1d1   : > { %v942_v41 = vpop.f32.mrf.mxu2  ;;  %1235 = vmatmul.f32.gmra.mxu1 %v3801_v1 }
 0x1d2   : > { %v943_v53 = vadd.f32 %v942_v41, %v830_v14  ;;  %v1055_v4 = vpop.f32.mrf.mxu3 }
 0x1d4   : > { %v1056_v18 = vadd.f32 %v1055_v4, %v943_v53 }
 0x1d5   : > { %v1171_v63 = vpop.f32.mrf.mxu0 }
 0x1d6   : > { %v3394_v11 = vadd.f32 %v1168_v19, %v1056_v18  ;;  %1397 = vmatmul.f32.gmra.mxu2 %v2253_v7  ;;  %v835_v22 = vpop.f32.mrf.mxu1  ;;  %v2255_v19 = vld [vmem:[#allocation2 + $0x14f] sm:$0xff] }
 0x1d7   : > { %1510 = vmatmul.f32.gmra.mxu3 %v2254_v2  ;;  %v2256_v18 = vld [vmem:[#allocation2 + $0x150] sm:$0xff]  ;;  %v3815_v7 = vld [vmem:[#allocation14_spill] sm:$0xff] }
 0x1d8   : > { %3811 = vst [vmem:[#allocation5_spill] sm:$0xff] %v3394_v11  ;;  %1623 = vmatmul.f32.gmra.mxu0 %v3813_v49  ;;  %v836_v2 = vadd.f32 %v835_v22, %v3815_v7  ;;  %v3816_v11 = vld [vmem:[#allocation18_spill] sm:$0xff] }
 0x1d9   : > { %v945_v51 = vpop.f32.mrf.mxu2  ;;  %1238 = vmatmul.f32.gmra.mxu1 %v3804_v8 }
 0x1da   : > { %v946_v56 = vadd.f32 %v945_v51, %v833_v59  ;;  %v1058_v1 = vpop.f32.mrf.mxu3 }
 0x1dc   : > { %v1059_v14 = vadd.f32 %v1058_v1, %v946_v56 }
 0x1dd   : > { %v1174_v41 = vpop.f32.mrf.mxu0 }
 0x1de   : > { %v3399_v53 = vadd.f32 %v1171_v63, %v1059_v14  ;;  %1400 = vmatmul.f32.gmra.mxu2 %v2255_v19  ;;  %v838_v4 = vpop.f32.mrf.mxu1  ;;  %v2257_v63 = vld [vmem:[#allocation2 + $0x157] sm:$0xff]  ;;  %v3818_v19 = vld [vmem:[#allocation17_spill] sm:$0xff] }
 0x1df   : > { %1513 = vmatmul.f32.gmra.mxu3 %v2256_v18  ;;  %v2258_v14 = vld [vmem:[#allocation2 + $0x158] sm:$0xff]  ;;  %v839_v18 = vadd.f32 %v838_v4, %v3818_v19 }
 0x1e0   : > { %3814 = vst [vmem:[#allocation22_spill] sm:$0xff] %v3399_v53  ;;  %1626 = vmatmul.f32.gmra.mxu0 %v3816_v11  ;;  %v3819_v53 = vld [vmem:[#allocation21_spill] sm:$0xff] }
 0x1e1   : > { %v948_v37 = vpop.f32.mrf.mxu2  ;;  %1241 = vmatmul.f32.gmra.mxu1 %v3807_v36 }
 0x1e2   : > { %v949_v28 = vadd.f32 %v948_v37, %v836_v2  ;;  %v1061_v8 = vpop.f32.mrf.mxu3 }
 0x1e4   : > { %v1062_v59 = vadd.f32 %v1061_v8, %v949_v28 }
 0x1e5   : > { %v1177_v51 = vpop.f32.mrf.mxu0 }
 0x1e6   : > { %v3404_v56 = vadd.f32 %v1174_v41, %v1062_v59  ;;  %1403 = vmatmul.f32.gmra.mxu2 %v2257_v63  ;;  %v841_v1 = vpop.f32.mrf.mxu1  ;;  %v2259_v41 = vld [vmem:[#allocation2 + $0x177] sm:$0xff] }
 0x1e7   : > { %1516 = vmatmul.f32.gmra.mxu3 %v2258_v14  ;;  %v2260_v59 = vld [vmem:[#allocation2 + $0x178] sm:$0xff] }
 0x1e8   : > { %3817 = vst [vmem:[#allocation7_spill] sm:$0xff] %v3404_v56  ;;  %1629 = vmatmul.f32.gmra.mxu0 %v3819_v53  ;;  %v3820_v63 = vld [vmem:[#allocation20_spill] sm:$0xff] }
 0x1e9   : > { %v951_v22 = vpop.f32.mrf.mxu2  ;;  %1244 = vmatmul.f32.gmra.mxu1 %v3810_v25  ;;  %v842_v14 = vadd.f32 %v841_v1, %v3820_v63  ;;  %v3821_v56 = vld [vmem:[#allocation24_spill] sm:$0xff] }
 0x1ea   : > { %v952_v7 = vadd.f32 %v951_v22, %v839_v18  ;;  %v1064_v36 = vpop.f32.mrf.mxu3 }
 0x1ec   : > { %v1065_v2 = vadd.f32 %v1064_v36, %v952_v7 }
 0x1ed   : > { %v1180_v37 = vpop.f32.mrf.mxu0 }
 0x1ee   : > { %v3409_v28 = vadd.f32 %v1177_v51, %v1065_v2  ;;  %1406 = vmatmul.f32.gmra.mxu2 %v2259_v41  ;;  %v844_v8 = vpop.f32.mrf.mxu1  ;;  %v2261_v51 = vld [vmem:[#allocation2 + $0x17f] sm:$0xff]  ;;  %v3822_v41 = vld [vmem:[#allocation23_spill] sm:$0xff] }
 0x1ef   : > { %1519 = vmatmul.f32.gmra.mxu3 %v2260_v59  ;;  %v2262_v2 = vld [vmem:[#allocation2 + $0x180] sm:$0xff]  ;;  %v845_v59 = vadd.f32 %v844_v8, %v3822_v41 }
 0x1f0   : > { %1632 = vmatmul.f32.gmra.mxu0 %v3821_v56 }
 0x1f1   : > { %v954_v4 = vpop.f32.mrf.mxu2  ;;  %1247 = vmatmul.f32.gmra.mxu1 %v3813_v49 }
 0x1f2   : > { %v955_v19 = vadd.f32 %v954_v4, %v842_v14  ;;  %v1067_v25 = vpop.f32.mrf.mxu3 }
 0x1f4   : > { %v1068_v18 = vadd.f32 %v1067_v25, %v955_v19 }
 0x1f5   : > { %v1183_v22 = vpop.f32.mrf.mxu0 }
 0x1f6   : > { %v3414_v7 = vadd.f32 %v1180_v37, %v1068_v18  ;;  %1409 = vmatmul.f32.gmra.mxu2 %v2261_v51  ;;  %v1203_v36 = vpop.f32.mrf.mxu1  ;;  %v2263_v37 = vld [vmem:[#allocation2 + $0x19f] sm:$0xff] }
 0x1f7   : > { %1522 = vmatmul.f32.gmra.mxu3 %v2262_v2  ;;  %v2264_v18 = vld [vmem:[#allocation2 + $0x1a0] sm:$0xff] }
 0x1f8   : > { %1635 = vmatmul.f32.gmra.mxu0 %v3120_v52 }
 0x1f9   : > { %v957_v1 = vpop.f32.mrf.mxu2  ;;  %1250 = vmatmul.f32.gmra.mxu1 %v3816_v11  ;;  %v1204_v11 = vadd.f32 %v1203_v36, %v3122_v6 }
 0x1fa   : > { %v958_v63 = vadd.f32 %v957_v1, %v845_v59  ;;  %v1070_v49 = vpop.f32.mrf.mxu3 }
 0x1fc   : > { %v1071_v14 = vadd.f32 %v1070_v49, %v958_v63  ;;  %v2266_v49 = vld [vmem:[#allocation2 + $0x1a8] sm:$0xff] }
 0x1fd   : > { %v1591_v4 = vpop.f32.mrf.mxu0 }
 0x1fe   : > { %v3419_v19 = vadd.f32 %v1183_v22, %v1071_v14  ;;  %1412 = vmatmul.f32.gmra.mxu2 %v2263_v37  ;;  %v1206_v25 = vpop.f32.mrf.mxu1  ;;  %v2265_v22 = vld [vmem:[#allocation2 + $0x1a7] sm:$0xff] }
 0x1ff   : > { %1525 = vmatmul.f32.gmra.mxu3 %v2264_v18  ;;  %v1207_v14 = vadd.f32 %v1206_v25, %v3137_v21  ;;  %v2267_v18 = vld [vmem:[#allocation2 + $0x1c7] sm:$0xff] }
 0x200   : > { %1638 = vmatmul.f32.gmra.mxu0 %v3135_v15 }
 0x201   : > { %v1365_v8 = vpop.f32.mrf.mxu2  ;;  %1253 = vmatmul.f32.gmra.mxu1 %v3819_v53 }
 0x202   : > { %v1478_v51 = vpop.f32.mrf.mxu3 }
 0x203   : > { %v1479_v2 = vadd.f32 %v1478_v51, %v1365_v8 }
 0x205   : > { %v1592_v41 = vadd.f32 %v1591_v4, %v1479_v2  ;;  %v1594_v59 = vpop.f32.mrf.mxu0  ;;  %v2268_v2 = vld [vmem:[#allocation2 + $0x1c8] sm:$0xff] }
 0x206   : > { %1415 = vmatmul.f32.gmra.mxu2 %v2265_v22  ;;  %v1209_v1 = vpop.f32.mrf.mxu1  ;;  %v2269_v22 = vld [vmem:[#allocation2 + $0x1cf] sm:$0xff] }
 0x207   : > { %v3431_v63 = vadd.f32 %v1592_v41, %v1204_v11  ;;  %1528 = vmatmul.f32.gmra.mxu3 %v2266_v49  ;;  %v1210_v21 = vadd.f32 %v1209_v1, %v3152_v30 }
 0x208   : > { %1641 = vmatmul.f32.gmra.mxu0 %v3150_v57 }
 0x209   : > { %1719 = vst [vmem:[%s3429_s23] sm:$0xff] %v3431_v63  ;;  %v1368_v6 = vpop.f32.mrf.mxu2  ;;  %1256 = vmatmul.f32.gmra.mxu1 %v3821_v56 }
 0x20a   : > { %v1481_v53 = vpop.f32.mrf.mxu3 }
 0x20b   : > { %v1482_v36 = vadd.f32 %v1481_v53, %v1368_v6  ;;  %v2270_v53 = vld [vmem:[#allocation2 + $0x1d0] sm:$0xff] }
 0x20d   : > { %v1595_v4 = vadd.f32 %v1594_v59, %v1482_v36  ;;  %v1597_v37 = vpop.f32.mrf.mxu0 }
 0x20e   : > { %1418 = vmatmul.f32.gmra.mxu2 %v2267_v18  ;;  %v1212_v8 = vpop.f32.mrf.mxu1 }
 0x20f   : > { %v3438_v51 = vadd.f32 %v1595_v4, %v1207_v14  ;;  %1531 = vmatmul.f32.gmra.mxu3 %v2268_v2  ;;  %v1213_v30 = vadd.f32 %v1212_v8, %v3167_v12 }
 0x210   : > { %1644 = vmatmul.f32.gmra.mxu0 %v3165_v13 }
 0x211   : > { %1720 = vst [vmem:[%s3429_s23 + $0x8] sm:$0xff] %v3438_v51  ;;  %v1371_v11 = vpop.f32.mrf.mxu2  ;;  %1259 = vmatmul.f32.gmra.mxu1 %v3120_v52 }
 0x212   : > { %v1484_v56 = vpop.f32.mrf.mxu3 }
 0x213   : > { %v1485_v41 = vadd.f32 %v1484_v56, %v1371_v11  ;;  %v2272_v11 = vld [vmem:[#allocation2 + $0x1f0] sm:$0xff] }
 0x215   : > { %v1598_v25 = vadd.f32 %v1597_v37, %v1485_v41  ;;  %v1600_v59 = vpop.f32.mrf.mxu0  ;;  %v2271_v37 = vld [vmem:[#allocation2 + $0x1ef] sm:$0xff] }
 0x216   : > { %1421 = vmatmul.f32.gmra.mxu2 %v2269_v22  ;;  %v1215_v49 = vpop.f32.mrf.mxu1 }
 0x217   : > { %v3445_v6 = vadd.f32 %v1598_v25, %v1210_v21  ;;  %1534 = vmatmul.f32.gmra.mxu3 %v2270_v53  ;;  %v1216_v12 = vadd.f32 %v1215_v49, %v3182_v58  ;;  %v2273_v25 = vld [vmem:[#allocation2 + $0x1f7] sm:$0xff] }
 0x218   : > { %1647 = vmatmul.f32.gmra.mxu0 %v3180_v34  ;;  %v2274_v53 = vld [vmem:[#allocation2 + $0x1f8] sm:$0xff] }
 0x219   : > { %1721 = vst [vmem:[%s3429_s23 + $0x10] sm:$0xff] %v3445_v6  ;;  %v1374_v36 = vpop.f32.mrf.mxu2  ;;  %1262 = vmatmul.f32.gmra.mxu1 %v3135_v15 }
 0x21a   : > { %v1487_v52 = vpop.f32.mrf.mxu3 }
 0x21b   : > { %v1488_v14 = vadd.f32 %v1487_v52, %v1374_v36 }
 0x21d   : > { %v1601_v1 = vadd.f32 %v1600_v59, %v1488_v14  ;;  %v1603_v4 = vpop.f32.mrf.mxu0 }
 0x21e   : > { %1424 = vmatmul.f32.gmra.mxu2 %v2271_v37  ;;  %v1218_v18 = vpop.f32.mrf.mxu1 }
 0x21f   : > { %v3452_v2 = vadd.f32 %v1601_v1, %v1213_v30  ;;  %1537 = vmatmul.f32.gmra.mxu3 %v2272_v11  ;;  %v1219_v58 = vadd.f32 %v1218_v18, %v3197_v43 }
 0x220   : > { %1650 = vmatmul.f32.gmra.mxu0 %v3195_v60 }
 0x221   : > { %1722 = vst [vmem:[%s3429_s23 + $0x18] sm:$0xff] %v3452_v2  ;;  %v1377_v56 = vpop.f32.mrf.mxu2  ;;  %1265 = vmatmul.f32.gmra.mxu1 %v3150_v57 }
 0x222   : > { %v1490_v15 = vpop.f32.mrf.mxu3 }
 0x223   : > { %v1491_v41 = vadd.f32 %v1490_v15, %v1377_v56 }
 0x225   : > { %v1604_v8 = vadd.f32 %v1603_v4, %v1491_v41  ;;  %v1606_v21 = vpop.f32.mrf.mxu0 }
 0x226   : > { %1427 = vmatmul.f32.gmra.mxu2 %v2273_v25  ;;  %v1221_v59 = vpop.f32.mrf.mxu1 }
 0x227   : > { %v3459_v22 = vadd.f32 %v1604_v8, %v1216_v12  ;;  %1540 = vmatmul.f32.gmra.mxu3 %v2274_v53  ;;  %v1222_v43 = vadd.f32 %v1221_v59, %v3212_v39 }
 0x228   : > { %1653 = vmatmul.f32.gmra.mxu0 %v3210_v27 }
 0x229   : > { %1723 = vst [vmem:[%s3429_s23 + $0x20] sm:$0xff] %v3459_v22  ;;  %v1380_v36 = vpop.f32.mrf.mxu2  ;;  %1268 = vmatmul.f32.gmra.mxu1 %v3165_v13 }
 0x22a   : > { %v1493_v57 = vpop.f32.mrf.mxu3 }
 0x22b   : > { %v1494_v52 = vadd.f32 %v1493_v57, %v1380_v36 }
 0x22d   : > { %v1607_v49 = vadd.f32 %v1606_v21, %v1494_v52  ;;  %v1609_v14 = vpop.f32.mrf.mxu0 }
 0x22e   : > { %1430 = vmatmul.f32.gmra.mxu2 %v3268_v50  ;;  %v1224_v30 = vpop.f32.mrf.mxu1 }
 0x22f   : > { %v3467_v1 = vadd.f32 %v1607_v49, %v1219_v58  ;;  %1543 = vmatmul.f32.gmra.mxu3 %v3215_v3  ;;  %v1225_v39 = vadd.f32 %v1224_v30, %v3229_v23  ;;  %v2276_v49 = vld [vmem:[#allocation2 + $0x267] sm:$0xff] }
 0x230   : > { %1656 = vmatmul.f32.gmra.mxu0 %v3227_v48 }
 0x231   : > { %1724 = vst [vmem:[%s3429_s23 + $0x28] sm:$0xff] %v3467_v1  ;;  %v1383_v4 = vpop.f32.mrf.mxu2  ;;  %1271 = vmatmul.f32.gmra.mxu1 %v3180_v34 }
 0x232   : > { %v1496_v13 = vpop.f32.mrf.mxu3 }
 0x233   : > { %v1497_v37 = vadd.f32 %v1496_v13, %v1383_v4 }
 0x235   : > { %v1610_v18 = vadd.f32 %v1609_v14, %v1497_v37  ;;  %v1612_v11 = vpop.f32.mrf.mxu0 }
 0x236   : > { %1433 = vmatmul.f32.gmra.mxu2 %v3287_v47  ;;  %v1227_v50 = vpop.f32.mrf.mxu1 }
 0x237   : > { %v3476_v56 = vadd.f32 %v1610_v18, %v1222_v43  ;;  %1546 = vmatmul.f32.gmra.mxu3 %v3232_v20  ;;  %v1228_v23 = vadd.f32 %v1227_v50, %v3246_v17  ;;  %v2277_v43 = vld [vmem:[#allocation2 + $0x26f] sm:$0xff] }
 0x238   : > { %1659 = vmatmul.f32.gmra.mxu0 %v3244_v9 }
 0x239   : > { %1725 = vst [vmem:[%s3429_s23 + $0x30] sm:$0xff] %v3476_v56  ;;  %v1386_v3 = vpop.f32.mrf.mxu2  ;;  %1274 = vmatmul.f32.gmra.mxu1 %v3195_v60 }
 0x23a   : > { %v1499_v34 = vpop.f32.mrf.mxu3 }
 0x23b   : > { %v1500_v15 = vadd.f32 %v1499_v34, %v1386_v3 }
 0x23d   : > { %v1613_v41 = vadd.f32 %v1612_v11, %v1500_v15  ;;  %v1615_v12 = vpop.f32.mrf.mxu0 }
 0x23e   : > { %1436 = vmatmul.f32.gmra.mxu2 %v3306_v31  ;;  %v1230_v47 = vpop.f32.mrf.mxu1  ;;  %v2275_v31 = vld [vmem:[#allocation2 + $0x247] sm:$0xff] }
 0x23f   : > { %v3485_v8 = vadd.f32 %v1613_v41, %v1225_v39  ;;  %1549 = vmatmul.f32.gmra.mxu3 %v3249_v40  ;;  %v1231_v17 = vadd.f32 %v1230_v47, %v3263_v45  ;;  %v2278_v39 = vld [vmem:[#allocation2 + $0x28f] sm:$0xff] }
 0x240   : > { %1662 = vmatmul.f32.gmra.mxu0 %v3261_v24 }
 0x241   : > { %1726 = vst [vmem:[%s3429_s23 + $0x38] sm:$0xff] %v3485_v8  ;;  %v1389_v20 = vpop.f32.mrf.mxu2  ;;  %1277 = vmatmul.f32.gmra.mxu1 %v3210_v27 }
 0x242   : > { %v1502_v60 = vpop.f32.mrf.mxu3 }
 0x243   : > { %v1503_v21 = vadd.f32 %v1502_v60, %v1389_v20  ;;  %v3824_v20 = vld [vmem:[#allocation26_spill] sm:$0xff] }
 0x245   : > { %v1616_v25 = vadd.f32 %v1615_v12, %v1503_v21  ;;  %v1618_v59 = vpop.f32.mrf.mxu0 }
 0x246   : > { %1439 = vmatmul.f32.gmra.mxu2 %v2275_v31  ;;  %v1233_v53 = vpop.f32.mrf.mxu1 }
 0x247   : > { %v3493_v36 = vadd.f32 %v1616_v25, %v1228_v23  ;;  %1552 = vmatmul.f32.gmra.mxu3 %v3266_v5  ;;  %v1234_v45 = vadd.f32 %v1233_v53, %v3282_v16  ;;  %v3823_v16 = vld [vmem:[#allocation25_spill] sm:$0xff]  ;;  %v2279_v25 = vld [vmem:[#allocation2 + $0x297] sm:$0xff] }
 0x248   : > { %1665 = vmatmul.f32.gmra.mxu0 %v3280_v33 }
 0x249   : > { %1727 = vst [vmem:[%s3429_s23 + $0x40] sm:$0xff] %v3493_v36  ;;  %v1392_v40 = vpop.f32.mrf.mxu2  ;;  %1280 = vmatmul.f32.gmra.mxu1 %v3227_v48 }
 0x24a   : > { %v1505_v27 = vpop.f32.mrf.mxu3 }
 0x24b   : > { %v1506_v57 = vadd.f32 %v1505_v27, %v1392_v40  ;;  %v450_v40 = vld [vmem:[#allocation2 + $0x2b7] sm:$0xff] }
 0x24c   : > { %v3825_v27 = vld [vmem:[#allocation27_spill] sm:$0xff] }
 0x24d   : > { %v1619_v52 = vadd.f32 %v1618_v59, %v1506_v57  ;;  %v1621_v58 = vpop.f32.mrf.mxu0 }
 0x24e   : > { %1442 = vmatmul.f32.gmra.mxu2 %v2276_v49  ;;  %v1236_v14 = vpop.f32.mrf.mxu1 }
 0x24f   : > { %v3501_v30 = vadd.f32 %v1619_v52, %v1231_v17  ;;  %1555 = vmatmul.f32.gmra.mxu3 %v3285_v26  ;;  %v1237_v3 = vadd.f32 %v1236_v14, %v3823_v16 }
 0x250   : > { %1668 = vmatmul.f32.gmra.mxu0 %v3299_v61 }
 0x251   : > { %1728 = vst [vmem:[%s3429_s23 + $0x48] sm:$0xff] %v3501_v30  ;;  %v1395_v5 = vpop.f32.mrf.mxu2  ;;  %1283 = vmatmul.f32.gmra.mxu1 %v3244_v9 }
 0x252   : > { %v1508_v48 = vpop.f32.mrf.mxu3 }
 0x253   : > { %v1509_v4 = vadd.f32 %v1508_v48, %v1395_v5  ;;  %v2281_v5 = vld [vmem:[#allocation2 + $0xd0] sm:$0xff] }
 0x255   : > { %v1622_v13 = vadd.f32 %v1621_v58, %v1509_v4  ;;  %v1624_v37 = vpop.f32.mrf.mxu0  ;;  %v522_v58 = vld [vmem:[#allocation2 + $0x2b9] sm:$0xff] }
 0x256   : > { %1445 = vmatmul.f32.gmra.mxu2 %v2277_v43  ;;  %v1239_v18 = vpop.f32.mrf.mxu1  ;;  %v451_v4 = vld [vmem:[#allocation2 + $0x2bf] sm:$0xff] }
 0x257   : > { %v3509_v11 = vadd.f32 %v1622_v13, %v1234_v45  ;;  %1558 = vmatmul.f32.gmra.mxu3 %v3304_v29  ;;  %v1240_v60 = vadd.f32 %v1239_v18, %v3824_v20  ;;  %v3826_v45 = vld [vmem:[#allocation28_spill] sm:$0xff]  ;;  %v523_v18 = vld [vmem:[#allocation2 + $0x2c1] sm:$0xff] }
 0x258   : > { %1671 = vmatmul.f32.gmra.mxu0 %v3312_v35 }
 0x259   : > { %1729 = vst [vmem:[%s3429_s23 + $0x50] sm:$0xff] %v3509_v11  ;;  %v1398_v26 = vpop.f32.mrf.mxu2  ;;  %1286 = vmatmul.f32.gmra.mxu1 %v3261_v24 }
 0x25a   : > { %v1511_v9 = vpop.f32.mrf.mxu3 }
 0x25b   : > { %v1512_v50 = vadd.f32 %v1511_v9, %v1398_v26 }
 0x25d   : > { %v1625_v34 = vadd.f32 %v1624_v37, %v1512_v50  ;;  %v1627_v15 = vpop.f32.mrf.mxu0 }
 0x25e   : > { %1448 = vmatmul.f32.gmra.mxu2 %v2278_v39  ;;  %v1242_v41 = vpop.f32.mrf.mxu1 }
 0x25f   : > { %v3517_v12 = vadd.f32 %v1625_v34, %v1237_v3  ;;  %1561 = vmatmul.f32.gmra.mxu3 %v3320_v10  ;;  %v2280_v10 = vld [vmem:[#allocation2 + $0x298] sm:$0xff]  ;;  %v1243_v57 = vadd.f32 %v1242_v41, %v3825_v27 }
 0x260   : > { %1674 = vmatmul.f32.gmra.mxu0 %v3323_v44 }
 0x261   : > { %1730 = vst [vmem:[%s3429_s23 + $0x58] sm:$0xff] %v3517_v12  ;;  %v1401_v29 = vpop.f32.mrf.mxu2  ;;  %1289 = vmatmul.f32.gmra.mxu1 %v3280_v33 }
 0x262   : > { %v1514_v24 = vpop.f32.mrf.mxu3 }
 0x263   : > { %v1515_v47 = vadd.f32 %v1514_v24, %v1401_v29 }
 0x265   : > { %v1628_v21 = vadd.f32 %v1627_v15, %v1515_v47  ;;  %v1630_v23 = vpop.f32.mrf.mxu0 }
 0x266   : > { %1451 = vmatmul.f32.gmra.mxu2 %v2279_v25  ;;  %v1245_v59 = vpop.f32.mrf.mxu1 }
 0x267   : > { %v3525_v31 = vadd.f32 %v1628_v21, %v1240_v60  ;;  %1564 = vmatmul.f32.gmra.mxu3 %v2280_v10  ;;  %v1246_v13 = vadd.f32 %v1245_v59, %v3826_v45 }
 0x268   : > { %1677 = vmatmul.f32.gmra.mxu0 %v3332_v62 }
 0x269   : > { %1731 = vst [vmem:[%s3429_s23 + $0x60] sm:$0xff] %v3525_v31  ;;  %v1404_v44 = vpop.f32.mrf.mxu2  ;;  %1292 = vmatmul.f32.gmra.mxu1 %v3299_v61 }
 0x26a   : > { %v1517_v33 = vpop.f32.mrf.mxu3 }
 0x26b   : > { %v1518_v53 = vadd.f32 %v1517_v33, %v1404_v44 }
 0x26d   : > { %v1631_v17 = vadd.f32 %v1630_v23, %v1518_v53  ;;  %v1633_v52 = vpop.f32.mrf.mxu0 }
 0x26e   : > { %1454 = vmatmul.f32.gmra.mxu2 %v450_v40  ;;  %v1248_v49 = vpop.f32.mrf.mxu1 }
 0x26f   : > { %v3532_v14 = vadd.f32 %v1631_v17, %v1243_v57  ;;  %1567 = vmatmul.f32.gmra.mxu3 %v2281_v5  ;;  %v1249_v3 = vadd.f32 %v1248_v49, %v3340_v38 }
 0x270   : > { %1680 = vmatmul.f32.gmra.mxu0 %v522_v58 }
 0x271   : > { %1732 = vst [vmem:[%s3429_s23 + $0x68] sm:$0xff] %v3532_v14  ;;  %v1407_v62 = vpop.f32.mrf.mxu2  ;;  %1295 = vmatmul.f32.gmra.mxu1 %v3312_v35 }
 0x272   : > { %v1520_v61 = vpop.f32.mrf.mxu3 }
 0x273   : > { %v1521_v48 = vadd.f32 %v1520_v61, %v1407_v62 }
 0x275   : > { %v1634_v37 = vadd.f32 %v1633_v52, %v1521_v48  ;;  %v1636_v43 = vpop.f32.mrf.mxu0 }
 0x276   : > { %1457 = vmatmul.f32.gmra.mxu2 %v451_v4  ;;  %v1251_v26 = vpop.f32.mrf.mxu1 }
 0x277   : > { %v3538_v9 = vadd.f32 %v1634_v37, %v1246_v13  ;;  %1570 = vmatmul.f32.gmra.mxu3 %v2281_v5  ;;  %v1252_v20 = vadd.f32 %v1251_v26, %v3344_v0 }
 0x278   : > { %1683 = vmatmul.f32.gmra.mxu0 %v523_v18 }
 0x279   : > { %1733 = vst [vmem:[%s3429_s23 + $0x70] sm:$0xff] %v3538_v9  ;;  %v1410_v50 = vpop.f32.mrf.mxu2 }
 0x27a   : > { %v1523_v16 = vpop.f32.mrf.mxu3 }
 0x27b   : > { %v1524_v35 = vadd.f32 %v1523_v16, %v1410_v50 }
 0x27d   : > { %v1637_v34 = vadd.f32 %v1636_v43, %v1524_v35  ;;  %v1639_v15 = vpop.f32.mrf.mxu0 }
 0x27e   : > { %v1254_v39 = vpop.f32.mrf.mxu1 }
 0x27f   : > { %v3543_v41 = vadd.f32 %v1637_v34, %v1249_v3  ;;  %v1255_v44 = vadd.f32 %v1254_v39, %v3349_v46 }
 0x281   : > { %1734 = vst [vmem:[%s3429_s23 + $0x78] sm:$0xff] %v3543_v41  ;;  %v1413_v29 = vpop.f32.mrf.mxu2 }
 0x282   : > { %v1526_v24 = vpop.f32.mrf.mxu3 }
 0x283   : > { %v1527_v47 = vadd.f32 %v1526_v24, %v1413_v29  ;;  %v1751_v29 = vadd.f32 %v3438_v51, %v3431_v63 }
 0x285   : > { %v1640_v60 = vadd.f32 %v1639_v15, %v1527_v47  ;;  %v1642_v21 = vpop.f32.mrf.mxu0 }
 0x286   : > { %v1257_v23 = vpop.f32.mrf.mxu1 }
 0x287   : > { %v3548_v25 = vadd.f32 %v1640_v60, %v1252_v20  ;;  %v1258_v52 = vadd.f32 %v1257_v23, %v3354_v42 }
 0x289   : > { %1735 = vst [vmem:[%s3429_s23 + $0x80] sm:$0xff] %v3548_v25  ;;  %v1416_v38 = vpop.f32.mrf.mxu2 }
 0x28a   : > { %v1529_v59 = vpop.f32.mrf.mxu3 }
 0x28b   : > { %v1530_v10 = vadd.f32 %v1529_v59, %v1416_v38 }
 0x28d   : > { %v1643_v33 = vadd.f32 %v1642_v21, %v1530_v10  ;;  %v1645_v53 = vpop.f32.mrf.mxu0 }
 0x28e   : > { %v1260_v40 = vpop.f32.mrf.mxu1 }
 0x28f   : > { %v3553_v27 = vadd.f32 %v1643_v33, %v1255_v44  ;;  %v1261_v4 = vadd.f32 %v1260_v40, %v3359_v54 }
 0x291   : > { %1736 = vst [vmem:[%s3429_s23 + $0x88] sm:$0xff] %v3553_v27  ;;  %v1419_v0 = vpop.f32.mrf.mxu2 }
 0x292   : > { %v1532_v57 = vpop.f32.mrf.mxu3 }
 0x293   : > { %v1533_v17 = vadd.f32 %v1532_v57, %v1419_v0 }
 0x295   : > { %v1646_v58 = vadd.f32 %v1645_v53, %v1533_v17  ;;  %v1648_v49 = vpop.f32.mrf.mxu0 }
 0x296   : > { %v1263_v5 = vpop.f32.mrf.mxu1 }
 0x297   : > { %v3558_v62 = vadd.f32 %v1646_v58, %v1258_v52  ;;  %v1264_v50 = vadd.f32 %v1263_v5, %v3364_v32  ;;  %v1752_v32 = vadd.f32 %v1751_v29, %v3445_v6 }
 0x299   : > { %1737 = vst [vmem:[%s3429_s23 + $0x90] sm:$0xff] %v3558_v62  ;;  %v1422_v46 = vpop.f32.mrf.mxu2  ;;  %v1753_v23 = vadd.f32 %v1752_v32, %v3452_v2 }
 0x29a   : > { %v1535_v61 = vpop.f32.mrf.mxu3 }
 0x29b   : > { %v1536_v48 = vadd.f32 %v1535_v61, %v1422_v46  ;;  %v1754_v10 = vadd.f32 %v1753_v23, %v3459_v22 }
 0x29d   : > { %v1649_v45 = vadd.f32 %v1648_v49, %v1536_v48  ;;  %v1651_v13 = vpop.f32.mrf.mxu0  ;;  %v1755_v33 = vadd.f32 %v1754_v10, %v3467_v1 }
 0x29e   : > { %v1266_v37 = vpop.f32.mrf.mxu1 }
 0x29f   : > { %v3563_v43 = vadd.f32 %v1649_v45, %v1261_v4  ;;  %v1267_v24 = vadd.f32 %v1266_v37, %v3369_v55  ;;  %v3827_v55 = vld [vmem:[#allocation3_spill] sm:$0xff]  ;;  %v1756_v17 = vadd.f32 %v1755_v33, %v3476_v56  ;;  %v3828_v4 = vld [vmem:[#allocation16_spill] sm:$0xff] }
 0x2a1   : > { %1738 = vst [vmem:[%s3429_s23 + $0x98] sm:$0xff] %v3563_v43  ;;  %v1425_v42 = vpop.f32.mrf.mxu2  ;;  %v1757_v58 = vadd.f32 %v1756_v17, %v3485_v8 }
 0x2a2   : > { %v1538_v18 = vpop.f32.mrf.mxu3 }
 0x2a3   : > { %v1539_v26 = vadd.f32 %v1538_v18, %v1425_v42  ;;  %v1758_v46 = vadd.f32 %v1757_v58, %v3493_v36 }
 0x2a5   : > { %v1652_v16 = vadd.f32 %v1651_v13, %v1539_v26  ;;  %v1654_v35 = vpop.f32.mrf.mxu0  ;;  %v1759_v48 = vadd.f32 %v1758_v46, %v3501_v30 }
 0x2a6   : > { %v1269_v3 = vpop.f32.mrf.mxu1 }
 0x2a7   : > { %v3568_v34 = vadd.f32 %v1652_v16, %v1264_v50  ;;  %v1270_v53 = vadd.f32 %v1269_v3, %v3827_v55  ;;  %v1760_v18 = vadd.f32 %v1759_v48, %v3509_v11  ;;  %v3830_v55 = vld [vmem:[#allocation19_spill] sm:$0xff] }
 0x2a9   : > { %1739 = vst [vmem:[%s3429_s23 + $0xa0] sm:$0xff] %v3568_v34  ;;  %v1428_v54 = vpop.f32.mrf.mxu2  ;;  %v1761_v50 = vadd.f32 %v1760_v18, %v3517_v12 }
 0x2aa   : > { %v1541_v15 = vpop.f32.mrf.mxu3 }
 0x2ab   : > { %v1542_v39 = vadd.f32 %v1541_v15, %v1428_v54  ;;  %v1762_v3 = vadd.f32 %v1761_v50, %v3525_v31 }
 0x2ad   : > { %v1655_v47 = vadd.f32 %v1654_v35, %v1542_v39  ;;  %v1657_v20 = vpop.f32.mrf.mxu0  ;;  %v1763_v15 = vadd.f32 %v1762_v3, %v3532_v14  ;;  %v3829_v39 = vld [vmem:[#allocation4_spill] sm:$0xff] }
 0x2ae   : > { %v1272_v60 = vpop.f32.mrf.mxu1 }
 0x2af   : > { %v3576_v21 = vadd.f32 %v1655_v47, %v1267_v24  ;;  %v1273_v45 = vadd.f32 %v1272_v60, %v3828_v4 }
 0x2b1   : > { %1740 = vst [vmem:[%s3429_s23 + $0xa8] sm:$0xff] %v3576_v21  ;;  %v1431_v38 = vpop.f32.mrf.mxu2 }
 0x2b2   : > { %v1544_v59 = vpop.f32.mrf.mxu3 }
 0x2b3   : > { %v1545_v44 = vadd.f32 %v1544_v59, %v1431_v38 }
 0x2b5   : > { %v1658_v40 = vadd.f32 %v1657_v20, %v1545_v44  ;;  %v1660_v0 = vpop.f32.mrf.mxu0  ;;  %v1764_v20 = vadd.f32 %v1763_v15, %v3538_v9 }
 0x2b6   : > { %v1275_v57 = vpop.f32.mrf.mxu1 }
 0x2b7   : > { %v3585_v52 = vadd.f32 %v1658_v40, %v1270_v53  ;;  %v1276_v29 = vadd.f32 %v1275_v57, %v3829_v39  ;;  %v1765_v23 = vadd.f32 %v1764_v20, %v3543_v41 }
 0x2b9   : > { %1741 = vst [vmem:[%s3429_s23 + $0xb0] sm:$0xff] %v3585_v52  ;;  %v1434_v49 = vpop.f32.mrf.mxu2  ;;  %v1766_v10 = vadd.f32 %v1765_v23, %v3548_v25 }
 0x2ba   : > { %v1547_v5 = vpop.f32.mrf.mxu3 }
 0x2bb   : > { %v1548_v61 = vadd.f32 %v1547_v5, %v1434_v49  ;;  %v1767_v33 = vadd.f32 %v1766_v10, %v3553_v27 }
 0x2bd   : > { %v1661_v13 = vadd.f32 %v1660_v0, %v1548_v61  ;;  %v1663_v37 = vpop.f32.mrf.mxu0  ;;  %v1768_v57 = vadd.f32 %v1767_v33, %v3558_v62 }
 0x2be   : > { %v1278_v42 = vpop.f32.mrf.mxu1 }
 0x2bf   : > { %v3594_v26 = vadd.f32 %v1661_v13, %v1273_v45  ;;  %v1279_v53 = vadd.f32 %v1278_v42, %v3830_v55  ;;  %v1769_v58 = vadd.f32 %v1768_v57, %v3563_v43  ;;  %v3831_v45 = vld [vmem:[#allocation5_spill] sm:$0xff]  ;;  %v3833_v55 = vld [vmem:[#allocation7_spill] sm:$0xff] }
 0x2c1   : > { %1742 = vst [vmem:[%s3429_s23 + $0xb8] sm:$0xff] %v3594_v26  ;;  %v1437_v16 = vpop.f32.mrf.mxu2  ;;  %v1770_v61 = vadd.f32 %v1769_v58, %v3568_v34 }
 0x2c2   : > { %v1550_v35 = vpop.f32.mrf.mxu3 }
 0x2c3   : > { %v1551_v54 = vadd.f32 %v1550_v35, %v1437_v16  ;;  %v1771_v4 = vadd.f32 %v1770_v61, %v3576_v21 }
 0x2c5   : > { %v1664_v24 = vadd.f32 %v1663_v37, %v1551_v54  ;;  %v1666_v47 = vpop.f32.mrf.mxu0  ;;  %v1772_v18 = vadd.f32 %v1771_v4, %v3585_v52 }
 0x2c6   : > { %v1281_v32 = vpop.f32.mrf.mxu1 }
 0x2c7   : > { %v3603_v60 = vadd.f32 %v1664_v24, %v1276_v29  ;;  %v1282_v13 = vadd.f32 %v1281_v32, %v3831_v45  ;;  %v1773_v16 = vadd.f32 %v1772_v18, %v3594_v26  ;;  %v3832_v24 = vld [vmem:[#allocation22_spill] sm:$0xff] }
 0x2c9   : > { %1743 = vst [vmem:[%s3429_s23 + $0xc0] sm:$0xff] %v3603_v60  ;;  %v1440_v38 = vpop.f32.mrf.mxu2  ;;  %v1774_v54 = vadd.f32 %v1773_v16, %v3603_v60 }
 0x2ca   : > { %v1553_v59 = vpop.f32.mrf.mxu3 }
 0x2cb   : > { %v1554_v44 = vadd.f32 %v1553_v59, %v1440_v38 }
 0x2cd   : > { %v1667_v40 = vadd.f32 %v1666_v47, %v1554_v44  ;;  %v1669_v0 = vpop.f32.mrf.mxu0 }
 0x2ce   : > { %v1284_v5 = vpop.f32.mrf.mxu1 }
 0x2cf   : > { %v3612_v17 = vadd.f32 %v1667_v40, %v1279_v53  ;;  %v1285_v47 = vadd.f32 %v1284_v5, %v3832_v24 }
 0x2d1   : > { %1744 = vst [vmem:[%s3429_s23 + $0xc8] sm:$0xff] %v3612_v17  ;;  %v1443_v49 = vpop.f32.mrf.mxu2  ;;  %v1775_v29 = vadd.f32 %v1774_v54, %v3612_v17 }
 0x2d2   : > { %v1556_v46 = vpop.f32.mrf.mxu3 }
 0x2d3   : > { %v1557_v48 = vadd.f32 %v1556_v46, %v1443_v49 }
 0x2d5   : > { %v1670_v37 = vadd.f32 %v1669_v0, %v1557_v48  ;;  %v1672_v42 = vpop.f32.mrf.mxu0 }
 0x2d6   : > { %v1287_v39 = vpop.f32.mrf.mxu1 }
 0x2d7   : > { %v3621_v50 = vadd.f32 %v1670_v37, %v1282_v13  ;;  %v1288_v53 = vadd.f32 %v1287_v39, %v3833_v55 }
 0x2d9   : > { %1745 = vst [vmem:[%s3429_s23 + $0xd0] sm:$0xff] %v3621_v50  ;;  %v1446_v35 = vpop.f32.mrf.mxu2  ;;  %v1776_v23 = vadd.f32 %v1775_v29, %v3621_v50 }
 0x2da   : > { %v1559_v3 = vpop.f32.mrf.mxu3 }
 0x2db   : > { %v1560_v15 = vadd.f32 %v1559_v3, %v1446_v35 }
 0x2dd   : > { %v1673_v20 = vadd.f32 %v1672_v42, %v1560_v15  ;;  %v1675_v32 = vpop.f32.mrf.mxu0 }
 0x2de   : > { %v1290_v40 = vpop.f32.mrf.mxu1 }
 0x2df   : > { %v1714_v38 = vadd.f32 %v1673_v20, %v1285_v47  ;;  %v1291_v48 = vadd.f32 %v1290_v40, %v3409_v28 }
 0x2e1   : > { %1746 = vst [vmem:[%s3429_s23 + $0xd8] sm:$0xff] %v1714_v38  ;;  %v1777_v59 = vadd.f32 %v1776_v23, %v1714_v38  ;;  %v1449_v10 = vpop.f32.mrf.mxu2 }
 0x2e2   : > { %v1562_v44 = vpop.f32.mrf.mxu3 }
 0x2e3   : > { %v1563_v33 = vadd.f32 %v1562_v44, %v1449_v10 }
 0x2e5   : > { %v1676_v0 = vadd.f32 %v1675_v32, %v1563_v33  ;;  %v1678_v57 = vpop.f32.mrf.mxu0 }
 0x2e6   : > { %v1293_v45 = vpop.f32.mrf.mxu1 }
 0x2e7   : > { %v1715_v58 = vadd.f32 %v1676_v0, %v1288_v53  ;;  %v1294_v3 = vadd.f32 %v1293_v45, %v3414_v7 }
 0x2e9   : > { %1747 = vst [vmem:[%s3429_s23 + $0xe0] sm:$0xff] %v1715_v58  ;;  %v1778_v49 = vadd.f32 %v1777_v59, %v1715_v58  ;;  %v1452_v5 = vpop.f32.mrf.mxu2 }
 0x2ea   : > { %v1565_v46 = vpop.f32.mrf.mxu3 }
 0x2eb   : > { %v1566_v61 = vadd.f32 %v1565_v46, %v1452_v5 }
 0x2ed   : > { %v1679_v4 = vadd.f32 %v1678_v57, %v1566_v61  ;;  %v1681_v37 = vpop.f32.mrf.mxu0 }
 0x2ee   : > { %v1296_v39 = vpop.f32.mrf.mxu1 }
 0x2ef   : > { %v1716_v13 = vadd.f32 %v1679_v4, %v1291_v48  ;;  %v1297_v32 = vadd.f32 %v1296_v39, %v3419_v19 }
 0x2f1   : > { %1748 = vst [vmem:[%s3429_s23 + $0xe8] sm:$0xff] %v1716_v13  ;;  %v1779_v42 = vadd.f32 %v1778_v49, %v1716_v13  ;;  %v1455_v18 = vpop.f32.mrf.mxu2 }
 0x2f2   : > { %v1568_v16 = vpop.f32.mrf.mxu3 }
 0x2f3   : > { %v1569_v35 = vadd.f32 %v1568_v16, %v1455_v18 }
 0x2f5   : > { %v1682_v54 = vadd.f32 %v1681_v37, %v1569_v35  ;;  %v1684_v47 = vpop.f32.mrf.mxu0 }
 0x2f7   : > { %v1717_v15 = vadd.f32 %v1682_v54, %v1294_v3 }
 0x2f9   : > { %1749 = vst [vmem:[%s3429_s23 + $0xf0] sm:$0xff] %v1717_v15  ;;  %v1780_v29 = vadd.f32 %v1779_v42, %v1717_v15  ;;  %v1458_v24 = vpop.f32.mrf.mxu2 }
 0x2fa   : > { %v1571_v28 = vpop.f32.mrf.mxu3 }
 0x2fb   : > { %v1572_v20 = vadd.f32 %v1571_v28, %v1458_v24 }
 0x2fd   : > { %v1685_v23 = vadd.f32 %v1684_v47, %v1572_v20 }
 0x2ff   : > { %v1718_v59 = vadd.f32 %v1685_v23, %v1297_v32 }
 0x301   : > { %1750 = vst [vmem:[%s3429_s23 + $0xf8] sm:$0xff] %v1718_v59  ;;  %v1781_v10 = vadd.f32 %v1780_v29, %v1718_v59 }
 0x303   : > { %v1782_v44 = vrot.slane %v1781_v10, 4 }
 0x305   : > { %v1783_v33 = vadd.f32 %v1782_v44, %v1781_v10 }
 0x307   : > { %v1784_v55 = vrot.slane %v1783_v33, 2 }
 0x309   : > { %v1785_v7 = vadd.f32 %v1784_v55, %v1783_v33 }
 0x30b   : > { %v1786_v53 = vrot.slane %v1785_v7, 1 }
 0x30d   : > { %v1787_v40 = vadd.f32 %v1786_v53, %v1785_v7 }
 0x30f   : > { %1821 = vst [vmem:[%s247_s25] sm:$0x1] %v1787_v40  ;;  %v3643_v0 = vmul.f32 0.00390625, %v1787_v40 }
 0x311   : > { %v3647_v19 = vsub.f32 %v3621_v50, %v3643_v0  ;;  %v3650_v57 = vsub.f32 %v1714_v38, %v3643_v0  ;;  %v3653_v49 = vsub.f32 %v1715_v58, %v3643_v0  ;;  %v3656_v5 = vsub.f32 %v1716_v13, %v3643_v0 }
 0x312   : > { %v3659_v46 = vsub.f32 %v1717_v15, %v3643_v0  ;;  %v3662_v61 = vsub.f32 %v1718_v59, %v3643_v0  ;;  %v1789_v48 = vsub.f32 %v3431_v63, %v3643_v0  ;;  %v1790_v50 = vsub.f32 %v3438_v51, %v3643_v0 }
 0x313   : > { %v1791_v38 = vsub.f32 %v3445_v6, %v3643_v0  ;;  %v1792_v45 = vsub.f32 %v3452_v2, %v3643_v0  ;;  %v1793_v13 = vsub.f32 %v3459_v22, %v3643_v0  ;;  %v1794_v18 = vsub.f32 %v3467_v1, %v3643_v0 }
 0x314   : > { %v1822_v58 = vmul.f32 %v1789_v48, %v1789_v48  ;;  %v1823_v4 = vmul.f32 %v1790_v50, %v1790_v50  ;;  %v1795_v51 = vsub.f32 %v3476_v56, %v3643_v0  ;;  %v1796_v3 = vsub.f32 %v3485_v8, %v3643_v0 }
 0x315   : > { %v1824_v37 = vmul.f32 %v1791_v38, %v1791_v38  ;;  %v1825_v63 = vmul.f32 %v1792_v45, %v1792_v45  ;;  %v1826_v35 = vmul.f32 %v1793_v13, %v1793_v13  ;;  %v1827_v54 = vmul.f32 %v1794_v18, %v1794_v18 }
 0x316   : > { %v1854_v42 = vadd.f32 %v1823_v4, %v1822_v58  ;;  %v1797_v22 = vsub.f32 %v3493_v36, %v3643_v0  ;;  %v1828_v15 = vmul.f32 %v1795_v51, %v1795_v51  ;;  %v1798_v1 = vsub.f32 %v3501_v30, %v3643_v0 }
 0x317   : > { %v1829_v29 = vmul.f32 %v1796_v3, %v1796_v3  ;;  %v1799_v56 = vsub.f32 %v3509_v11, %v3643_v0  ;;  %v1800_v8 = vsub.f32 %v3517_v12, %v3643_v0  ;;  %v1801_v36 = vsub.f32 %v3525_v31, %v3643_v0 }
 0x318   : > { %v1855_v16 = vadd.f32 %v1854_v42, %v1824_v37  ;;  %v1830_v28 = vmul.f32 %v1797_v22, %v1797_v22  ;;  %v1831_v20 = vmul.f32 %v1798_v1, %v1798_v1  ;;  %v1802_v30 = vsub.f32 %v3532_v14, %v3643_v0 }
 0x319   : > { %v1832_v23 = vmul.f32 %v1799_v56, %v1799_v56  ;;  %v1833_v10 = vmul.f32 %v1800_v8, %v1800_v8  ;;  %v1803_v11 = vsub.f32 %v3538_v9, %v3643_v0  ;;  %v1834_v33 = vmul.f32 %v1801_v36, %v1801_v36 }
 0x31a   : > { %v1856_v6 = vadd.f32 %v1855_v16, %v1825_v63  ;;  %v1804_v12 = vsub.f32 %v3543_v41, %v3643_v0  ;;  %v1835_v7 = vmul.f32 %v1802_v30, %v1802_v30  ;;  %v1805_v31 = vsub.f32 %v3548_v25, %v3643_v0 }
 0x31b   : > { %v1836_v40 = vmul.f32 %v1803_v11, %v1803_v11  ;;  %v1806_v14 = vsub.f32 %v3553_v27, %v3643_v0  ;;  %v1807_v9 = vsub.f32 %v3558_v62, %v3643_v0  ;;  %v1808_v41 = vsub.f32 %v3563_v43, %v3643_v0 }
 0x31c   : > { %v1857_v2 = vadd.f32 %v1856_v6, %v1826_v35  ;;  %v1837_v50 = vmul.f32 %v1804_v12, %v1804_v12  ;;  %v1838_v58 = vmul.f32 %v1805_v31, %v1805_v31  ;;  %v1809_v25 = vsub.f32 %v3568_v34, %v3643_v0 }
 0x31d   : > { %v1839_v45 = vmul.f32 %v1806_v14, %v1806_v14  ;;  %v1840_v37 = vmul.f32 %v1807_v9, %v1807_v9  ;;  %v1810_v27 = vsub.f32 %v3576_v21, %v3643_v0  ;;  %v1841_v18 = vmul.f32 %v1808_v41, %v1808_v41 }
 0x31e   : > { %v1858_v39 = vadd.f32 %v1857_v2, %v1827_v54  ;;  %v1811_v62 = vsub.f32 %v3585_v52, %v3643_v0  ;;  %v1842_v16 = vmul.f32 %v1809_v25, %v1809_v25  ;;  %v1812_v43 = vsub.f32 %v3594_v26, %v3643_v0 }
 0x31f   : > { %v1843_v35 = vmul.f32 %v1810_v27, %v1810_v27  ;;  %v1813_v34 = vsub.f32 %v3603_v60, %v3643_v0  ;;  %v1814_v21 = vsub.f32 %v3612_v17, %v3643_v0  ;;  %v1850_v56 = vmul.f32 %v3653_v49, %v3653_v49 }
 0x320   : > { %v1859_v24 = vadd.f32 %v1858_v39, %v1828_v15  ;;  %v1844_v3 = vmul.f32 %v1811_v62, %v1811_v62  ;;  %v1845_v2 = vmul.f32 %v1812_v43, %v1812_v43  ;;  %v1851_v17 = vmul.f32 %v3656_v5, %v3656_v5 }
 0x321   : > { %v1846_v15 = vmul.f32 %v1813_v34, %v1813_v34  ;;  %v1847_v52 = vmul.f32 %v1814_v21, %v1814_v21 }
 0x322   : > { %v1860_v47 = vadd.f32 %v1859_v24, %v1829_v29  ;;  %v1848_v29 = vmul.f32 %v3647_v19, %v3647_v19  ;;  %v1849_v24 = vmul.f32 %v3650_v57, %v3650_v57  ;;  %v1853_v19 = vmul.f32 %v3662_v61, %v3662_v61 }
 0x324   : > { %v1861_v32 = vadd.f32 %v1860_v47, %v1830_v28  ;;  %v1852_v47 = vmul.f32 %v3659_v46, %v3659_v46 }
 0x326   : > { %v1862_v59 = vadd.f32 %v1861_v32, %v1831_v20 }
 0x328   : > { %v1863_v44 = vadd.f32 %v1862_v59, %v1832_v23 }
 0x32a   : > { %v1864_v55 = vadd.f32 %v1863_v44, %v1833_v10 }
 0x32c   : > { %v1865_v53 = vadd.f32 %v1864_v55, %v1834_v33 }
 0x32e   : > { %v1866_v48 = vadd.f32 %v1865_v53, %v1835_v7 }
 0x330   : > { %v1867_v38 = vadd.f32 %v1866_v48, %v1836_v40 }
 0x332   : > { %v1868_v4 = vadd.f32 %v1867_v38, %v1837_v50 }
 0x334   : > { %v1869_v13 = vadd.f32 %v1868_v4, %v1838_v58 }
 0x336   : > { %v1870_v42 = vadd.f32 %v1869_v13, %v1839_v45 }
 0x338   : > { %v1871_v63 = vadd.f32 %v1870_v42, %v1840_v37 }
 0x33a   : > { %v1872_v51 = vadd.f32 %v1871_v63, %v1841_v18 }
 0x33c   : > { %v1873_v6 = vadd.f32 %v1872_v51, %v1842_v16 }
 0x33e   : > { %v1874_v54 = vadd.f32 %v1873_v6, %v1843_v35 }
 0x340   : > { %v1875_v22 = vadd.f32 %v1874_v54, %v1844_v3 }
 0x342   : > { %v1876_v39 = vadd.f32 %v1875_v22, %v1845_v2 }
 0x344   : > { %v1877_v1 = vadd.f32 %v1876_v39, %v1846_v15 }
 0x346   : > { %v1878_v26 = vadd.f32 %v1877_v1, %v1847_v52 }
 0x348   : > { %v1879_v60 = vadd.f32 %v1878_v26, %v1848_v29 }
 0x34a   : > { %v1880_v28 = vadd.f32 %v1879_v60, %v1849_v24 }
 0x34c   : > { %v1881_v0 = vadd.f32 %v1880_v28, %v1850_v56 }
 0x34e   : > { %v1882_v8 = vadd.f32 %v1881_v0, %v1851_v17 }
 0x350   : > { %v1883_v20 = vadd.f32 %v1882_v8, %v1852_v47 }
 0x352   : > { %v1884_v32 = vadd.f32 %v1883_v20, %v1853_v19 }
 0x354   : > { %v1885_v57 = vrot.slane %v1884_v32, 4 }
 0x356   : > { %v1886_v36 = vadd.f32 %v1885_v57, %v1884_v32 }
 0x358   : > { %v1887_v23 = vrot.slane %v1886_v36, 2 }
 0x35a   : > { %v1888_v59 = vadd.f32 %v1887_v23, %v1886_v36 }
 0x35c   : > { %v1889_v30 = vrot.slane %v1888_v59, 1 }
 0x35e   : > { %v1890_v49 = vadd.f32 %v1889_v30, %v1888_v59 }
 0x360   : > { %1891 = vst [vmem:[%s253_s29] sm:$0x1] %v1890_v49 }
 0x361 PF: > { %s15_s17 = sadd.s32 1, %s2304_s17   ;;  %s3834_s15 = smov %s2300_s16 }
 0x362   : > { %p12_p5 = scmp.ge.s32.totalorder %s15_s17, 4   ;;  %s3835_s16 = smov %s3837_s18 }
 0x364   :  { %14 = sbr.rel (!%p12_p5) target bundleno = 2 (0x2), region = 90 }

// kernel: basic_block_forward.5
= control target key start
LH: loop header
LB: loop body
LE: loop exit
PB: predicated region body
PF: predicated region fallthrough
CT: control target
= control target key end

     0   :  { %s2499_s21 = smov 0   ;;  %s2501_s22 = smov 0   ;;  %s3983_s0 = inlined_call_operand.vmem [shape: f32[2,16,16,128], index: 0, kind: input, shape index: {}]   ;;  %s3984_s1 = inlined_call_operand.vmem [shape: f32[3,384,128], index: 1, kind: input, shape index: {}]   ;;  %s3985_s2 = inlined_call_operand.vmem [shape: f32[1,128], index: 2, kind: input, shape index: {}]   ;;  %s3986_s3 = inlined_call_operand.vmem [shape: f32[1,128], index: 3, kind: input, shape index: {}]   ;;  %s3987_s4 = inlined_call_operand.vmem [shape: f32[2,256,128], index: 4, kind: output, shape index: {0}]   ;;  %s3988_s5 = inlined_call_operand.vmem [shape: f32[2,1,1,128], index: 5, kind: output, shape index: {1}]   ;;  %s3989_s6 = inlined_call_operand.vmem [shape: f32[2,1,1,128], index: 6, kind: output, shape index: {2}]  }
   0x1   :  { %s2503_s23 = smov 0  }
   0x2 LB: > { %s29_s24 = sadd.s32 1, %s2457_s22  ;;  %p2207_p0 = scmp.ge.s32.totalorder %s2461_s23, 1  ;;  %s2461_s23 = sphi %s2503_s23, %s17_s23   ;;  %s2457_s22 = sphi %s2501_s22, %s4087_s22   ;;  %s2453_s21 = sphi %s2499_s21, %s4086_s21  }
   0x3   : > { %p31_p1 = scmp.ge.s32.totalorder %s29_s24, 2  ;;  %p235_p2 = scmp.lt.s32.totalorder %s2461_s23, 3 }
   0x5   : > { %s4089_s24 = smov (%p31_p1, %s29_s24), 0  ;;  %p236_p3 = pnand %p2207_p0, %p235_p2 }
   0x7   : > { %239 = sbr.rel (%p236_p3) target bundleno = 865 (0x361), region = 36 }
   0xc   : > { %v2227_v0 = vld [vmem:[%s3984_s1 + $0x1f8] sm:$0xff]  ;;  %v2226_v1 = vld [vmem:[%s3984_s1 + $0x1f0] sm:$0xff]  ;;  %p281_p4 = scmp.lt.s32.totalorder %s2453_s21, 1  ;;  %v2463_v2 = vmov 0.0   ;;  %v2225_v3 = vld [vmem:[%s3984_s1 + $0x1e8] sm:$0xff] }
   0xd   : > { %2312 = vmatpush.msra.mxu1 %v2227_v0  ;;  %2313 = vmatpush.msra.mxu2 %v2227_v0  ;;  %474 = vst [vmem:[#allocation2 + $0xd0] sm:$0xff] %v2463_v2  ;;  %v2224_v4 = vld [vmem:[%s3984_s1 + $0x1e0] sm:$0xff]  ;;  %v2223_v5 = vld [vmem:[%s3984_s1 + $0x1d8] sm:$0xff]  ;;  %v2222_v9 = vld [vmem:[%s3984_s1 + $0x1d0] sm:$0xff] }
   0xe   : > { %2314 = vmatpush.msra.mxu3 %v2227_v0  ;;  %779 = vmatpush.msra.mxu0 %v2227_v0  ;;  %s4091_s21 = smov (!%p281_p4, %s2453_s21), 1  ;;  %449 = vst [vmem:[#allocation2 + $0x8] sm:$0xff] %v2463_v2  ;;  %v2550_v7 = vld [vmem:[%s3985_s2] ss:$0 sm:$0xff]  ;;  %v2221_v11 = vld [vmem:[%s3984_s1 + $0x1c8] sm:$0xff]  ;;  %v2219_v15 = vld [vmem:[%s3984_s1 + $0x1b8] sm:$0xff] }
   0xf   : > { %2315 = vmatpush.msra.mxu1 %v2226_v1  ;;  %2316 = vmatpush.msra.mxu2 %v2226_v1  ;;  %s2310_s9 = sshll.u32 %s4091_s21, 8  ;;  %450 = vst [vmem:[#allocation2 + $0x10] sm:$0xff] %v2463_v2  ;;  %v2555_v8 = vld [vmem:[%s3986_s3] ss:$0 sm:$0xff]  ;;  %v2218_v16 = vld [vmem:[%s3984_s1 + $0x1b0] sm:$0xff]  ;;  %v2217_v17 = vld [vmem:[%s3984_s1 + $0x1a8] sm:$0xff]  ;;  %s301_s26 = scalar_lea.vmem %s3988_s5, %s4091_s21 }
  0x10   : > { %2317 = vmatpush.msra.mxu3 %v2226_v1  ;;  %780 = vmatpush.msra.mxu0 %v2226_v1  ;;  %s2543_s14 = scalar_lea.vmem %s3983_s0, %s2310_s9  ;;  %451 = vst [vmem:[#allocation2 + $0x18] sm:$0xff] %v2463_v2  ;;  %v2220_v13 = vld [vmem:[%s3984_s1 + $0x1c0] sm:$0xff]  ;;  %v2215_v19 = vld [vmem:[%s3984_s1 + $0x198] sm:$0xff]  ;;  %v2214_v20 = vld [vmem:[%s3984_s1 + $0x190] sm:$0xff]  ;;  %s3671_s20 = scalar_lea.vmem %s3987_s4, %s2310_s9 }
  0x11   : > { %2318 = vmatpush.msra.mxu1 %v2225_v3  ;;  %2319 = vmatpush.msra.mxu2 %v2225_v3  ;;  %v320_v6 = vld [vmem:[%s2543_s14 + $0x40] sm:$0xff]  ;;  %452 = vst [vmem:[#allocation2 + $0x20] sm:$0x1] %v2463_v2  ;;  %v2213_v21 = vld [vmem:[%s3984_s1 + $0x188] sm:$0xff]  ;;  %v2259_v24 = vld [vmem:[%s3984_s1 + $0x2f8] sm:$0xff]  ;;  %s307_s29 = scalar_lea.vmem %s3989_s6, %s4091_s21 }
  0x12   : > { %2320 = vmatpush.msra.mxu3 %v2225_v3  ;;  %781 = vmatpush.msra.mxu0 %v2225_v3  ;;  %v357_v10 = vmul.f32 %v2550_v7, %v320_v6  ;;  %454 = vst [vmem:[#allocation2 + $0x30] sm:$0xff] %v2463_v2  ;;  %v2216_v18 = vld [vmem:[%s3984_s1 + $0x1a0] sm:$0xff]  ;;  %v697_v25 = vld [vmem:[%s3984_s1 + $0x78] sm:$0xff]  ;;  %v2258_v26 = vld [vmem:[%s3984_s1 + $0x2f0] sm:$0xff] }
  0x13   : > { %2321 = vmatpush.msra.mxu1 %v2224_v4  ;;  %2322 = vmatpush.msra.mxu2 %v2224_v4  ;;  %457 = vst [vmem:[#allocation2 + $0x48] sm:$0x1] %v2463_v2  ;;  %v2212_v22 = vld [vmem:[%s3984_s1 + $0x180] sm:$0xff]  ;;  %v696_v27 = vld [vmem:[%s3984_s1 + $0x70] sm:$0xff]  ;;  %v2243_v30 = vld [vmem:[%s3984_s1 + $0x278] sm:$0xff] }
  0x14   : > { %2323 = vmatpush.msra.mxu3 %v2224_v4  ;;  %782 = vmatpush.msra.mxu0 %v2224_v4  ;;  %v392_v12 = vadd.f32 %v2555_v8, %v357_v10  ;;  %459 = vst [vmem:[#allocation2 + $0x58] sm:$0xff] %v2463_v2  ;;  %v328_v28 = vld [vmem:[%s2543_s14 + $0x80] sm:$0xff]  ;;  %v2257_v31 = vld [vmem:[%s3984_s1 + $0x2e8] sm:$0xff]  ;;  %v713_v33 = vld [vmem:[%s3984_s1 + $0xf8] sm:$0xff] }
  0x15   : > { %2324 = vmatpush.msra.mxu1 %v2223_v5  ;;  %2325 = vmatpush.msra.mxu2 %v2223_v5  ;;  %462 = vst [vmem:[#allocation2 + $0x70] sm:$0x1] %v2463_v2  ;;  %v336_v29 = vld [vmem:[%s2543_s14 + $0xc0] sm:$0xff]  ;;  %v695_v32 = vld [vmem:[%s3984_s1 + $0x68] sm:$0xff]  ;;  %v2242_v34 = vld [vmem:[%s3984_s1 + $0x270] sm:$0xff]  ;;  %v365_v39 = vmul.f32 %v2550_v7, %v328_v28 }
  0x16   : > { %2326 = vmatpush.msra.mxu3 %v2223_v5  ;;  %783 = vmatpush.msra.mxu0 %v2223_v5  ;;  %v424_v14 = vmax.f32 %v392_v12, 0.0  ;;  %464 = vst [vmem:[#allocation2 + $0x80] sm:$0xff] %v2463_v2  ;;  %v2256_v35 = vld [vmem:[%s3984_s1 + $0x2e0] sm:$0xff]  ;;  %v712_v38 = vld [vmem:[%s3984_s1 + $0xf0] sm:$0xff]  ;;  %v321_v40 = vld [vmem:[%s2543_s14 + $0x48] sm:$0xff]  ;;  %v373_v41 = vmul.f32 %v2550_v7, %v336_v29 }
  0x17   : > { %2327 = vmatpush.msra.mxu1 %v2222_v9  ;;  %2328 = vmatpush.msra.mxu2 %v2222_v9  ;;  %467 = vst [vmem:[#allocation2 + $0x98] sm:$0x1] %v2463_v2  ;;  %v312_v36 = vld [vmem:[%s2543_s14] sm:$0xff]  ;;  %v329_v42 = vld [vmem:[%s2543_s14 + $0x88] sm:$0xff]  ;;  %v358_v45 = vmul.f32 %v2550_v7, %v321_v40  ;;  %v400_v47 = vadd.f32 %v2555_v8, %v365_v39  ;;  %v322_v49 = vld [vmem:[%s2543_s14 + $0x50] sm:$0xff] }
  0x18   : > { %2329 = vmatpush.msra.mxu3 %v2222_v9  ;;  %784 = vmatpush.msra.mxu0 %v2222_v9  ;;  %547 = vst [vmem:[#allocation2 + $0xd8] sm:$0xff] %v424_v14  ;;  %v694_v37 = vld [vmem:[%s3984_s1 + $0x60] sm:$0xff]  ;;  %v349_v43 = vmul.f32 %v2550_v7, %v312_v36  ;;  %v337_v44 = vld [vmem:[%s2543_s14 + $0xc8] sm:$0xff]  ;;  %v366_v48 = vmul.f32 %v2550_v7, %v329_v42  ;;  %v330_v50 = vld [vmem:[%s2543_s14 + $0x90] sm:$0xff] }
  0x19   : > { %2330 = vmatpush.msra.mxu1 %v2221_v11  ;;  %2331 = vmatpush.msra.mxu2 %v2221_v11  ;;  %469 = vst [vmem:[#allocation2 + $0xa8] sm:$0xff] %v2463_v2  ;;  %v313_v46 = vld [vmem:[%s2543_s14 + $0x8] sm:$0xff]  ;;  %v338_v51 = vld [vmem:[%s2543_s14 + $0xd0] sm:$0xff]  ;;  %v408_v52 = vadd.f32 %v2555_v8, %v373_v41  ;;  %v374_v53 = vmul.f32 %v2550_v7, %v337_v44  ;;  %v2255_v55 = vld [vmem:[%s3984_s1 + $0x2d8] sm:$0xff]  ;;  %v432_v4 = vmax.f32 %v400_v47, 0.0 }
  0x1a   : > { %2332 = vmatpush.msra.mxu3 %v2221_v11  ;;  %785 = vmatpush.msra.mxu0 %v2221_v11  ;;  %472 = vst [vmem:[#allocation2 + $0xc0] sm:$0x1] %v2463_v2  ;;  %v2241_v54 = vld [vmem:[%s3984_s1 + $0x268] sm:$0xff]  ;;  %v693_v56 = vld [vmem:[%s3984_s1 + $0x58] sm:$0xff]  ;;  %v384_v57 = vadd.f32 %v2555_v8, %v349_v43  ;;  %v350_v58 = vmul.f32 %v2550_v7, %v313_v46  ;;  %v2240_v60 = vld [vmem:[%s3984_s1 + $0x260] sm:$0xff] }
  0x1b   : > { %2333 = vmatpush.msra.mxu1 %v2220_v13  ;;  %2334 = vmatpush.msra.mxu2 %v2220_v13  ;;  %477 = vst [vmem:[#allocation2 + $0xe8] sm:$0x1] %v2463_v2  ;;  %v711_v59 = vld [vmem:[%s3984_s1 + $0xe8] sm:$0xff]  ;;  %v2254_v61 = vld [vmem:[%s3984_s1 + $0x2d0] sm:$0xff]  ;;  %v393_v62 = vadd.f32 %v2555_v8, %v358_v45  ;;  %v359_v63 = vmul.f32 %v2550_v7, %v322_v49  ;;  %v710_v1 = vld [vmem:[%s3984_s1 + $0xe0] sm:$0xff]  ;;  %v440_v10 = vmax.f32 %v408_v52, 0.0 }
  0x1c   : > { %2335 = vmatpush.msra.mxu3 %v2220_v13  ;;  %786 = vmatpush.msra.mxu0 %v2220_v13  ;;  %479 = vst [vmem:[#allocation2 + $0xf8] sm:$0xff] %v2463_v2  ;;  %v692_v0 = vld [vmem:[%s3984_s1 + $0x50] sm:$0xff]  ;;  %v401_v5 = vadd.f32 %v2555_v8, %v366_v48  ;;  %v367_v6 = vmul.f32 %v2550_v7, %v330_v50  ;;  %v323_v9 = vld [vmem:[%s2543_s14 + $0x58] sm:$0xff]  ;;  %v2719_v14 = vmax.f32 %v384_v57, 0.0  ;;  %v340_v28 = vld [vmem:[%s2543_s14 + $0xe0] sm:$0xff] }
  0x1d   : > { %2336 = vmatpush.msra.mxu1 %v2219_v15  ;;  %2337 = vmatpush.msra.mxu2 %v2219_v15  ;;  %482 = vst [vmem:[#allocation2 + $0x110] sm:$0x1] %v2463_v2  ;;  %v314_v3 = vld [vmem:[%s2543_s14 + $0x10] sm:$0xff]  ;;  %v409_v11 = vadd.f32 %v2555_v8, %v374_v53  ;;  %v375_v12 = vmul.f32 %v2550_v7, %v338_v51  ;;  %v331_v13 = vld [vmem:[%s2543_s14 + $0x98] sm:$0xff]  ;;  %v690_v42 = vld [vmem:[%s3984_s1 + $0x40] sm:$0xff] }
  0x1e   : > { %2338 = vmatpush.msra.mxu3 %v2219_v15  ;;  %787 = vmatpush.msra.mxu0 %v2219_v15  ;;  %484 = vst [vmem:[#allocation2 + $0x120] sm:$0xff] %v2463_v2  ;;  %v385_v15 = vadd.f32 %v2555_v8, %v350_v58  ;;  %v709_v36 = vld [vmem:[%s3984_s1 + $0xd8] sm:$0xff]  ;;  %v708_v43 = vld [vmem:[%s3984_s1 + $0xd0] sm:$0xff]  ;;  %v316_v45 = vld [vmem:[%s2543_s14 + $0x20] sm:$0xff]  ;;  %v377_v52 = vmul.f32 %v2550_v7, %v340_v28 }
  0x1f   : > { %2339 = vmatpush.msra.mxu1 %v2218_v16  ;;  %2340 = vmatpush.msra.mxu2 %v2218_v16  ;;  %487 = vst [vmem:[#allocation2 + $0x138] sm:$0x1] %v2463_v2  ;;  %v2606_v23 = vld [vmem:[#allocation2 + $0xd7] sm:$0xff]  ;;  %v441_v29 = vmax.f32 %v409_v11, 0.0  ;;  %v325_v49 = vld [vmem:[%s2543_s14 + $0x68] sm:$0xff] }
  0x20   : > { %2341 = vmatpush.msra.mxu3 %v2218_v16  ;;  %788 = vmatpush.msra.mxu0 %v2218_v16  ;;  %489 = vst [vmem:[#allocation2 + $0x148] sm:$0xff] %v2463_v2  ;;  %v351_v16 = vmul.f32 %v2550_v7, %v314_v3  ;;  %v333_v53 = vld [vmem:[%s2543_s14 + $0xa8] sm:$0xff] }
  0x21   : > { %2342 = vmatpush.msra.mxu1 %v2217_v17  ;;  %2343 = vmatpush.msra.mxu2 %v2217_v17  ;;  %492 = vst [vmem:[#allocation2 + $0x160] sm:$0x1] %v2463_v2  ;;  %v341_v57 = vld [vmem:[%s2543_s14 + $0xe8] sm:$0xff] }
  0x22   : > { %2344 = vmatpush.msra.mxu3 %v2217_v17  ;;  %789 = vmatpush.msra.mxu0 %v2217_v17  ;;  %494 = vst [vmem:[#allocation2 + $0x170] sm:$0xff] %v2463_v2  ;;  %v339_v17 = vld [vmem:[%s2543_s14 + $0xd8] sm:$0xff] }
  0x23   : > { %2345 = vmatpush.msra.mxu1 %v2216_v18  ;;  %2346 = vmatpush.msra.mxu2 %v2216_v18  ;;  %497 = vst [vmem:[#allocation2 + $0x188] sm:$0x1] %v2463_v2 }
  0x24   : > { %2347 = vmatpush.msra.mxu3 %v2216_v18  ;;  %790 = vmatpush.msra.mxu0 %v2216_v18  ;;  %499 = vst [vmem:[#allocation2 + $0x198] sm:$0xff] %v2463_v2  ;;  %v2725_v18 = vmax.f32 %v393_v62, 0.0 }
  0x25   : > { %2348 = vmatpush.msra.mxu1 %v2215_v19  ;;  %2349 = vmatpush.msra.mxu2 %v2215_v19  ;;  %502 = vst [vmem:[#allocation2 + $0x1b0] sm:$0x1] %v2463_v2 }
  0x26   : > { %2350 = vmatpush.msra.mxu3 %v2215_v19  ;;  %791 = vmatpush.msra.mxu0 %v2215_v19  ;;  %504 = vst [vmem:[#allocation2 + $0x1c0] sm:$0xff] %v2463_v2  ;;  %v394_v19 = vadd.f32 %v2555_v8, %v359_v63 }
  0x27   : > { %2351 = vmatpush.msra.mxu1 %v2214_v20  ;;  %2352 = vmatpush.msra.mxu2 %v2214_v20  ;;  %507 = vst [vmem:[#allocation2 + $0x1d8] sm:$0x1] %v2463_v2 }
  0x28   : > { %2353 = vmatpush.msra.mxu3 %v2214_v20  ;;  %792 = vmatpush.msra.mxu0 %v2214_v20  ;;  %509 = vst [vmem:[#allocation2 + $0x1e8] sm:$0xff] %v2463_v2  ;;  %v360_v20 = vmul.f32 %v2550_v7, %v323_v9  ;;  %v2761_v40 = vmax.f32 %v394_v19, 0.0  ;;  %v2251_v9 = vld [vmem:[%s3984_s1 + $0x2b8] sm:$0xff]  ;;  %v2236_v19 = vld [vmem:[%s3984_s1 + $0x240] sm:$0xff] }
  0x29   : > { %2354 = vmatpush.msra.mxu1 %v2213_v21  ;;  %2355 = vmatpush.msra.mxu2 %v2213_v21  ;;  %512 = vst [vmem:[#allocation2 + $0x200] sm:$0x1] %v2463_v2 }
  0x2a   : > { %2356 = vmatpush.msra.mxu3 %v2213_v21  ;;  %793 = vmatpush.msra.mxu0 %v2213_v21  ;;  %514 = vst [vmem:[#allocation2 + $0x210] sm:$0xff] %v2463_v2  ;;  %v315_v21 = vld [vmem:[%s2543_s14 + $0x18] sm:$0xff]  ;;  %v395_v41 = vadd.f32 %v2555_v8, %v360_v20  ;;  %v2250_v20 = vld [vmem:[%s3984_s1 + $0x2b0] sm:$0xff] }
  0x2b   : > { %2357 = vmatpush.msra.mxu1 %v2212_v22  ;;  %2358 = vmatpush.msra.mxu2 %v2212_v22  ;;  %517 = vst [vmem:[#allocation2 + $0x228] sm:$0x1] %v2463_v2  ;;  %v352_v39 = vmul.f32 %v2550_v7, %v315_v21 }
  0x2c   : > { %2359 = vmatpush.msra.mxu3 %v2212_v22  ;;  %819 = vmatmul.f32.vlgmr.msra.gmra.mxu1 %v2606_v23  ;;  %519 = vst [vmem:[#allocation2 + $0x238] sm:$0xff] %v2463_v2 }
  0x2d   : > { %794 = vmatpush.msra.mxu0 %v2212_v22  ;;  %1005 = vmatpush.msrb.mxu2 %v2259_v24  ;;  %522 = vst [vmem:[#allocation2 + $0x250] sm:$0x1] %v2463_v2  ;;  %v433_v22 = vmax.f32 %v401_v5, 0.0  ;;  %v402_v24 = vadd.f32 %v2555_v8, %v367_v6  ;;  %v412_v5 = vadd.f32 %v2555_v8, %v377_v52  ;;  %v2237_v6 = vld [vmem:[%s3984_s1 + $0x248] sm:$0xff] }
  0x2e   : > { %1118 = vmatpush.msrb.mxu3 %v697_v25  ;;  %892 = vmatpush.msrb.mxu1 %v2243_v30  ;;  %524 = vst [vmem:[#allocation2 + $0x260] sm:$0xff] %v2463_v2  ;;  %v368_v25 = vmul.f32 %v2550_v7, %v331_v13  ;;  %v376_v30 = vmul.f32 %v2550_v7, %v339_v17  ;;  %v689_v13 = vld [vmem:[%s3984_s1 + $0x38] sm:$0xff] }
  0x2f   : > { %1006 = vmatpush.msrb.mxu2 %v2258_v26  ;;  %1231 = vmatpush.msrb.mxu0 %v713_v33  ;;  %527 = vst [vmem:[#allocation2 + $0x278] sm:$0x1] %v2463_v2  ;;  %v324_v26 = vld [vmem:[%s2543_s14 + $0x60] sm:$0xff]  ;;  %v691_v33 = vld [vmem:[%s3984_s1 + $0x48] sm:$0xff]  ;;  %v2772_v46 = vmax.f32 %v402_v24, 0.0  ;;  %v688_v24 = vld [vmem:[%s3984_s1 + $0x30] sm:$0xff] }
  0x30   : > { %1119 = vmatpush.msrb.mxu3 %v696_v27  ;;  %893 = vmatpush.msrb.mxu1 %v2242_v34  ;;  %529 = vst [vmem:[#allocation2 + $0x288] sm:$0xff] %v2463_v2  ;;  %v332_v27 = vld [vmem:[%s2543_s14 + $0xa0] sm:$0xff]  ;;  %v2747_v34 = vmax.f32 %v385_v15, 0.0  ;;  %v361_v44 = vmul.f32 %v2550_v7, %v324_v26  ;;  %v403_v47 = vadd.f32 %v2555_v8, %v368_v25  ;;  %v707_v15 = vld [vmem:[%s3984_s1 + $0xc8] sm:$0xff]  ;;  %v444_v28 = vmax.f32 %v412_v5, 0.0 }
  0x31   : > { %1007 = vmatpush.msrb.mxu2 %v2257_v31  ;;  %1232 = vmatpush.msrb.mxu0 %v712_v38  ;;  %532 = vst [vmem:[#allocation2 + $0x2a0] sm:$0x1] %v2463_v2  ;;  %v2239_v31 = vld [vmem:[%s3984_s1 + $0x258] sm:$0xff]  ;;  %v2252_v38 = vld [vmem:[%s3984_s1 + $0x2c0] sm:$0xff]  ;;  %v369_v48 = vmul.f32 %v2550_v7, %v332_v27  ;;  %v411_v51 = vadd.f32 %v2555_v8, %v376_v30  ;;  %v326_v30 = vld [vmem:[%s2543_s14 + $0x70] sm:$0xff] }
  0x32   : > { %1120 = vmatpush.msrb.mxu3 %v695_v32  ;;  %894 = vmatpush.msrb.mxu1 %v2241_v54  ;;  %534 = vst [vmem:[#allocation2 + $0x2b0] sm:$0xff] %v2463_v2  ;;  %v2253_v32 = vld [vmem:[%s3984_s1 + $0x2c8] sm:$0xff]  ;;  %v2795_v63 = vmax.f32 %v403_v47, 0.0  ;;  %v706_v25 = vld [vmem:[%s3984_s1 + $0xc0] sm:$0xff] }
  0x33   : > { %1008 = vmatpush.msrb.mxu2 %v2256_v35  ;;  %1233 = vmatpush.msrb.mxu0 %v711_v59  ;;  %535 = vst [vmem:[#allocation2 + $0x2b8] sm:$0xff] %v2463_v2  ;;  %v386_v35 = vadd.f32 %v2555_v8, %v351_v16  ;;  %v2789_v59 = vmax.f32 %v395_v41, 0.0 }
  0x34   : > { %1121 = vmatpush.msrb.mxu3 %v694_v37  ;;  %895 = vmatpush.msrb.mxu1 %v2240_v60  ;;  %536 = vst [vmem:[#allocation2 + $0x2c0] sm:$0xff] %v2463_v2  ;;  %v2238_v37 = vld [vmem:[%s3984_s1 + $0x250] sm:$0xff]  ;;  %v396_v60 = vadd.f32 %v2555_v8, %v361_v44 }
  0x35   : > { %1009 = vmatpush.msrb.mxu2 %v2255_v55  ;;  %1234 = vmatpush.msrb.mxu0 %v710_v1  ;;  %537 = vst [vmem:[#allocation2 + $0x2c8] sm:$0x1] %v2463_v2  ;;  %v410_v2 = vadd.f32 %v2555_v8, %v375_v12  ;;  %v2781_v54 = vmax.f32 %v386_v35, 0.0  ;;  %v387_v55 = vadd.f32 %v2555_v8, %v352_v39 }
  0x36   : > { %1122 = vmatpush.msrb.mxu3 %v693_v56  ;;  %555 = vst [vmem:[#allocation2 + $0x178] sm:$0xff] %v432_v4  ;;  %896 = vmatpush.msrb.mxu1 %v2239_v31  ;;  %v353_v56 = vmul.f32 %v2550_v7, %v316_v45  ;;  %v370_v1 = vmul.f32 %v2550_v7, %v333_v53  ;;  %v443_v4 = vmax.f32 %v411_v51, 0.0  ;;  %v2824_v17 = vmax.f32 %v396_v60, 0.0  ;;  %v687_v53 = vld [vmem:[%s3984_s1 + $0x28] sm:$0xff]  ;;  %v2248_v60 = vld [vmem:[%s3984_s1 + $0x2a0] sm:$0xff] }
  0x37   : > { %1010 = vmatpush.msrb.mxu2 %v2254_v61  ;;  %563 = vst [vmem:[#allocation2 + $0x218] sm:$0xff] %v440_v10  ;;  %1235 = vmatpush.msrb.mxu0 %v709_v36  ;;  %v442_v50 = vmax.f32 %v410_v2, 0.0  ;;  %v362_v61 = vmul.f32 %v2550_v7, %v325_v49  ;;  %v378_v10 = vmul.f32 %v2550_v7, %v341_v57  ;;  %v2813_v12 = vmax.f32 %v387_v55, 0.0  ;;  %v317_v2 = vld [vmem:[%s2543_s14 + $0x28] sm:$0xff]  ;;  %v334_v36 = vld [vmem:[%s2543_s14 + $0xb0] sm:$0xff]  ;;  %v2235_v49 = vld [vmem:[%s3984_s1 + $0x238] sm:$0xff] }
  0x38   : > { %1123 = vmatpush.msrb.mxu3 %v692_v0  ;;  %539 = vst [vmem:[#allocation2 + $0x38] sm:$0xff] %v2719_v14  ;;  %897 = vmatpush.msrb.mxu1 %v2238_v37  ;;  %v404_v0 = vadd.f32 %v2555_v8, %v369_v48  ;;  %v388_v16 = vadd.f32 %v2555_v8, %v353_v56  ;;  %v342_v37 = vld [vmem:[%s2543_s14 + $0xf0] sm:$0xff]  ;;  %v705_v55 = vld [vmem:[%s3984_s1 + $0xb8] sm:$0xff] }
  0x39   : > { %1011 = vmatpush.msrb.mxu2 %v2253_v32  ;;  %548 = vst [vmem:[#allocation2 + $0xe0] sm:$0xff] %v2725_v18  ;;  %1236 = vmatpush.msrb.mxu0 %v708_v43  ;;  %v397_v21 = vadd.f32 %v2555_v8, %v362_v61  ;;  %v405_v26 = vadd.f32 %v2555_v8, %v370_v1  ;;  %v2234_v57 = vld [vmem:[%s3984_s1 + $0x230] sm:$0xff] }
  0x3a   : > { %1124 = vmatpush.msrb.mxu3 %v691_v33  ;;  %556 = vst [vmem:[#allocation2 + $0x180] sm:$0xff] %v433_v22  ;;  %898 = vmatpush.msrb.mxu1 %v2237_v6  ;;  %v2834_v22 = vmax.f32 %v404_v0, 0.0  ;;  %v2849_v32 = vmax.f32 %v388_v16, 0.0  ;;  %v354_v33 = vmul.f32 %v2550_v7, %v317_v2  ;;  %v363_v35 = vmul.f32 %v2550_v7, %v326_v30  ;;  %v704_v0 = vld [vmem:[%s3984_s1 + $0xb0] sm:$0xff]  ;;  %v335_v16 = vld [vmem:[%s2543_s14 + $0xb8] sm:$0xff] }
  0x3b   : > { %1012 = vmatpush.msrb.mxu2 %v2252_v38  ;;  %564 = vst [vmem:[#allocation2 + $0x220] sm:$0xff] %v441_v29  ;;  %1237 = vmatpush.msrb.mxu0 %v707_v15  ;;  %v413_v29 = vadd.f32 %v2555_v8, %v378_v10  ;;  %v2858_v39 = vmax.f32 %v397_v21, 0.0  ;;  %v371_v41 = vmul.f32 %v2550_v7, %v334_v36  ;;  %v2866_v44 = vmax.f32 %v405_v26, 0.0  ;;  %v318_v6 = vld [vmem:[%s2543_s14 + $0x30] sm:$0xff]  ;;  %v2247_v2 = vld [vmem:[%s3984_s1 + $0x298] sm:$0xff] }
  0x3c   : > { %1125 = vmatpush.msrb.mxu3 %v690_v42  ;;  %540 = vst [vmem:[#allocation2 + $0x40] sm:$0xff] %v2747_v34  ;;  %899 = vmatpush.msrb.mxu1 %v2236_v19  ;;  %v379_v42 = vmul.f32 %v2550_v7, %v342_v37  ;;  %v389_v45 = vadd.f32 %v2555_v8, %v354_v33  ;;  %v343_v19 = vld [vmem:[%s2543_s14 + $0xf8] sm:$0xff] }
  0x3d   : > { %v2786_v58 = vld [vmem:[#allocation2 + $0x177] sm:$0xff]  ;;  %549 = vst [vmem:[#allocation2 + $0x100] sm:$0xff] %v2761_v40  ;;  %1013 = vmatpush.msrb.mxu2 %v2251_v9  ;;  %1238 = vmatpush.msrb.mxu0 %v706_v25  ;;  %v398_v47 = vadd.f32 %v2555_v8, %v363_v35  ;;  %v445_v48 = vmax.f32 %v413_v29, 0.0  ;;  %v406_v51 = vadd.f32 %v2555_v8, %v371_v41  ;;  %v2233_v29 = vld [vmem:[%s3984_s1 + $0x228] sm:$0xff]  ;;  %v2232_v41 = vld [vmem:[%s3984_s1 + $0x220] sm:$0xff] }
  0x3e   : > { %843 = vmatmul.f32.vlgmr.msra.gmra.mxu2 %v2786_v58  ;;  %v600_v62 = vld [vmem:[#allocation2 + $0x217] sm:$0xff]  ;;  %557 = vst [vmem:[#allocation2 + $0x1a0] sm:$0xff] %v2772_v46  ;;  %1126 = vmatpush.msrb.mxu3 %v689_v13  ;;  %v414_v52 = vadd.f32 %v2555_v8, %v379_v42  ;;  %v2886_v56 = vmax.f32 %v389_v45, 0.0  ;;  %v355_v13 = vmul.f32 %v2550_v7, %v318_v6  ;;  %v703_v35 = vld [vmem:[%s3984_s1 + $0xa8] sm:$0xff]  ;;  %v2244_v6 = vld [vmem:[%s3984_s1 + $0x280] sm:$0xff] }
  0x3f   : > { %867 = vmatmul.f32.vlgmr.msra.gmra.mxu3 %v600_v62  ;;  %v2799_v3 = vld [vmem:[#allocation2 + $0x37] sm:$0xff]  ;;  %565 = vst [vmem:[#allocation2 + $0x240] sm:$0xff] %v442_v50  ;;  %1014 = vmatpush.msrb.mxu2 %v2250_v20  ;;  %v2249_v50 = vld [vmem:[%s3984_s1 + $0x2a8] sm:$0xff]  ;;  %v2896_v61 = vmax.f32 %v398_v47, 0.0  ;;  %v686_v62 = vld [vmem:[%s3984_s1 + $0x20] sm:$0xff]  ;;  %v2905_v1 = vmax.f32 %v406_v51, 0.0  ;;  %v372_v21 = vmul.f32 %v2550_v7, %v335_v16 }
  0x40   : > { %795 = vmatmul.f32.vlgmr.msra.gmra.mxu0 %v2799_v3  ;;  %v2810_v11 = vld [vmem:[#allocation2 + $0xdf] sm:$0xff]  ;;  %541 = vst [vmem:[#allocation2 + $0x60] sm:$0xff] %v2781_v54  ;;  %1127 = vmatpush.msrb.mxu3 %v688_v24  ;;  %v446_v5 = vmax.f32 %v414_v52, 0.0  ;;  %v380_v24 = vmul.f32 %v2550_v7, %v343_v19  ;;  %v390_v26 = vadd.f32 %v2555_v8, %v355_v13  ;;  %v2246_v42 = vld [vmem:[%s3984_s1 + $0x290] sm:$0xff] }
  0x41   : > { %822 = vmatmul.f32.gmra.mxu1 %v2810_v11  ;;  %550 = vst [vmem:[#allocation2 + $0x108] sm:$0xff] %v2789_v59  ;;  %v2843_v27 = vld [vmem:[#allocation2 + $0x17f] sm:$0xff]  ;;  %1015 = vmatpush.msrb.mxu2 %v2249_v50  ;;  %v407_v30 = vadd.f32 %v2555_v8, %v372_v21  ;;  %v700_v13 = vld [vmem:[%s3984_s1 + $0x90] sm:$0xff] }
  0x42   : > { %558 = vst [vmem:[#allocation2 + $0x1a8] sm:$0xff] %v2795_v63  ;;  %v601_v31 = vld [vmem:[#allocation2 + $0x21f] sm:$0xff]  ;;  %900 = vmatpush.msrb.mxu1 %v2235_v49  ;;  %1128 = vmatpush.msrb.mxu3 %v687_v53  ;;  %v2944_v36 = vmax.f32 %v390_v26, 0.0 }
  0x43   : > { %566 = vst [vmem:[#allocation2 + $0x248] sm:$0xff] %v443_v4  ;;  %v2855_v38 = vld [vmem:[#allocation2 + $0x3f] sm:$0xff]  ;;  %1239 = vmatpush.msrb.mxu0 %v705_v55  ;;  %1016 = vmatpush.msrb.mxu2 %v2248_v60  ;;  %v2955_v45 = vmax.f32 %v407_v30, 0.0 }
  0x44   : > { %542 = vst [vmem:[#allocation2 + $0x68] sm:$0xff] %v2813_v12  ;;  %v2863_v43 = vld [vmem:[#allocation2 + $0xff] sm:$0xff]  ;;  %901 = vmatpush.msrb.mxu1 %v2234_v57  ;;  %1129 = vmatpush.msrb.mxu3 %v686_v62 }
  0x45   : > { %551 = vst [vmem:[#allocation2 + $0x128] sm:$0xff] %v2824_v17  ;;  %v2907_v4 = vld [vmem:[#allocation2 + $0x19f] sm:$0xff]  ;;  %1240 = vmatpush.msrb.mxu0 %v704_v0  ;;  %1017 = vmatpush.msrb.mxu2 %v2247_v2  ;;  %v683_v0 = vld [vmem:[%s3984_s1 + $0x8] sm:$0xff] }
  0x46   : > { %846 = vmatmul.f32.gmra.mxu2 %v2843_v27  ;;  %559 = vst [vmem:[#allocation2 + $0x1c8] sm:$0xff] %v2834_v22  ;;  %v327_v9 = vld [vmem:[%s2543_s14 + $0x78] sm:$0xff]  ;;  %902 = vmatpush.msrb.mxu1 %v2233_v29  ;;  %v702_v49 = vld [vmem:[%s3984_s1 + $0xa0] sm:$0xff] }
  0x47   : > { %870 = vmatmul.f32.gmra.mxu3 %v601_v31  ;;  %567 = vst [vmem:[#allocation2 + $0x268] sm:$0xff] %v444_v28  ;;  %v602_v10 = vld [vmem:[#allocation2 + $0x23f] sm:$0xff]  ;;  %v364_v15 = vmul.f32 %v2550_v7, %v327_v9  ;;  %v2935_v31 = vadd.f32 %v2555_v8, %v380_v24  ;;  %1241 = vmatpush.msrb.mxu0 %v703_v35 }
  0x48   : > { %798 = vmatmul.f32.gmra.mxu0 %v2855_v38  ;;  %543 = vst [vmem:[#allocation2 + $0x88] sm:$0xff] %v2849_v32  ;;  %v2916_v20 = vld [vmem:[#allocation2 + $0x5f] sm:$0xff]  ;;  %v2922_v25 = vld [vmem:[#allocation2 + $0x107] sm:$0xff]  ;;  %903 = vmatpush.msrb.mxu1 %v2232_v41 }
  0x49   : > { %825 = vmatmul.f32.gmra.mxu1 %v2863_v43  ;;  %552 = vst [vmem:[#allocation2 + $0x130] sm:$0xff] %v2858_v39  ;;  %v399_v28 = vadd.f32 %v2555_v8, %v364_v15  ;;  %v685_v33 = vld [vmem:[%s3984_s1 + $0x18] sm:$0xff]  ;;  %v3990_v47 = vmax.f32 %v2935_v31, 0.0  ;;  %v2965_v50 = vld [vmem:[#allocation2 + $0x1a7] sm:$0xff]  ;;  %1018 = vmatpush.msrb.mxu2 %v2246_v42 }
  0x4a   : > { %560 = vst [vmem:[#allocation2 + $0x1d0] sm:$0xff] %v2866_v44  ;;  %1130 = vmatpush.msrb.mxu3 %v685_v33  ;;  %v319_v51 = vld [vmem:[%s2543_s14 + $0x38] sm:$0xff]  ;;  %v2969_v52 = vld [vmem:[#allocation2 + $0x247] sm:$0xff]  ;;  %1242 = vmatpush.msrb.mxu0 %v702_v49 }
  0x4b   : > { %568 = vst [vmem:[#allocation2 + $0x270] sm:$0xff] %v445_v48  ;;  %v2946_v37 = vmax.f32 %v399_v28, 0.0  ;;  %v684_v48 = vld [vmem:[%s3984_s1 + $0x10] sm:$0xff]  ;;  %v356_v53 = vmul.f32 %v2550_v7, %v319_v51  ;;  %v2973_v55 = vld [vmem:[#allocation2 + $0x67] sm:$0xff]  ;;  %v2231_v62 = vld [vmem:[%s3984_s1 + $0x218] sm:$0xff] }
  0x4c   : > { %544 = vst [vmem:[#allocation2 + $0x90] sm:$0xff] %v2886_v56  ;;  %1131 = vmatpush.msrb.mxu3 %v684_v48  ;;  %v2978_v57 = vld [vmem:[#allocation2 + $0x127] sm:$0xff]  ;;  %904 = vmatpush.msrb.mxu1 %v2231_v62  ;;  %v2275_v29 = vld [vmem:[%s3984_s1 + $0x378] sm:$0xff] }
  0x4d   : > { %553 = vst [vmem:[#allocation2 + $0x150] sm:$0xff] %v2896_v61  ;;  %v391_v60 = vadd.f32 %v2555_v8, %v356_v53  ;;  %v2245_v7 = vld [vmem:[%s3984_s1 + $0x288] sm:$0xff]  ;;  %v701_v8 = vld [vmem:[%s3984_s1 + $0x98] sm:$0xff]  ;;  %v2228_v21 = vld [vmem:[%s3984_s1 + $0x200] sm:$0xff] }
  0x4e   : > { %849 = vmatmul.f32.gmra.mxu2 %v2907_v4  ;;  %561 = vst [vmem:[#allocation2 + $0x1f0] sm:$0xff] %v2905_v1  ;;  %1132 = vmatpush.msrb.mxu3 %v683_v0  ;;  %v2229_v15 = vld [vmem:[%s3984_s1 + $0x208] sm:$0xff]  ;;  %v2291_v2 = vld [vmem:[%s3984_s1 + $0x3f8] sm:$0xff]  ;;  %v698_v30 = vld [vmem:[%s3984_s1 + $0x80] sm:$0xff] }
  0x4f   : > { %873 = vmatmul.f32.gmra.mxu3 %v602_v10  ;;  %569 = vst [vmem:[#allocation2 + $0x290] sm:$0xff] %v446_v5  ;;  %v2230_v5 = vld [vmem:[%s3984_s1 + $0x210] sm:$0xff]  ;;  %v3001_v9 = vmax.f32 %v391_v60, 0.0  ;;  %1019 = vmatpush.msrb.mxu2 %v2245_v7  ;;  %v682_v10 = vld [vmem:[%s3984_s1] sm:$0xff]  ;;  %v699_v28 = vld [vmem:[%s3984_s1 + $0x88] sm:$0xff] }
  0x50   : > { %801 = vmatmul.f32.gmra.mxu0 %v2916_v20  ;;  %545 = vst [vmem:[#allocation2 + $0xb0] sm:$0xff] %v2944_v36  ;;  %v3014_v16 = vld [vmem:[#allocation2 + $0x1c7] sm:$0xff]  ;;  %905 = vmatpush.msrb.mxu1 %v2230_v5  ;;  %v3024_v26 = vld [vmem:[#allocation2 + $0x12f] sm:$0xff]  ;;  %v729_v48 = vld [vmem:[%s3984_s1 + $0x178] sm:$0xff] }
  0x51   : > { %828 = vmatmul.f32.gmra.mxu1 %v2922_v25  ;;  %554 = vst [vmem:[#allocation2 + $0x158] sm:$0xff] %v2946_v37  ;;  %1243 = vmatpush.msrb.mxu0 %v701_v8  ;;  %v3016_v19 = vld [vmem:[#allocation2 + $0x267] sm:$0xff]  ;;  %v3041_v33 = vld [vmem:[#allocation2 + $0x1cf] sm:$0xff]  ;;  %v2307_v49 = vld [vmem:[%s3984_s1 + $0x478] sm:$0xff] }
  0x52   : > { %562 = vst [vmem:[#allocation2 + $0x1f8] sm:$0xff] %v2955_v45  ;;  %1020 = vmatpush.msrb.mxu2 %v2244_v6  ;;  %1133 = vmatpush.msrb.mxu3 %v682_v10  ;;  %v3021_v24 = vld [vmem:[#allocation2 + $0x87] sm:$0xff]  ;;  %v3043_v35 = vld [vmem:[#allocation2 + $0x26f] sm:$0xff] }
  0x53   : > { %570 = vst [vmem:[#allocation2 + $0x298] sm:$0xff] %v3990_v47  ;;  %1244 = vmatpush.msrb.mxu0 %v700_v13  ;;  %906 = vmatpush.msrb.mxu1 %v2229_v15  ;;  %v3045_v41 = vld [vmem:[#allocation2 + $0x8f] sm:$0xff]  ;;  %v3087_v15 = vld [vmem:[#allocation2 + $0x39] sm:$0xff] }
  0x54   : > { %546 = vst [vmem:[#allocation2 + $0xb8] sm:$0xff] %v3001_v9  ;;  %1506 = vmatpush.msra.mxu2 %v2275_v29  ;;  %1619 = vmatpush.msra.mxu3 %v2291_v2  ;;  %v3048_v42 = vld [vmem:[#allocation2 + $0x14f] sm:$0xff] }
  0x55   : > { %907 = vmatpush.msrb.mxu1 %v2228_v21  ;;  %1245 = vmatpush.msrb.mxu0 %v699_v28  ;;  %v3059_v51 = vld [vmem:[#allocation2 + $0x1ef] sm:$0xff] }
  0x56   : > { %852 = vmatmul.f32.gmra.mxu2 %v2965_v50  ;;  %v606_v53 = vld [vmem:[#allocation2 + $0x28f] sm:$0xff] }
  0x57   : > { %876 = vmatmul.f32.gmra.mxu3 %v2969_v52  ;;  %1246 = vmatpush.msrb.mxu0 %v698_v30  ;;  %v3061_v60 = vld [vmem:[#allocation2 + $0xaf] sm:$0xff]  ;;  %v3097_v30 = vld [vmem:[#allocation2 + $0x41] sm:$0xff] }
  0x58   : > { %804 = vmatmul.f32.gmra.mxu0 %v2973_v55  ;;  %1344 = vmatpush.msra.mxu1 %v729_v48  ;;  %v3064_v62 = vld [vmem:[#allocation2 + $0x157] sm:$0xff]  ;;  %v574_v21 = vld [vmem:[#allocation2 + $0xf] sm:$0xff] }
  0x59   : > { %831 = vmatmul.f32.gmra.mxu1 %v2978_v57  ;;  %1732 = vmatpush.msra.mxu0 %v2307_v49  ;;  %v2274_v7 = vld [vmem:[%s3984_s1 + $0x370] sm:$0xff]  ;;  %v2273_v28 = vld [vmem:[%s3984_s1 + $0x368] sm:$0xff] }
  0x5a   : > { %v2290_v0 = vld [vmem:[%s3984_s1 + $0x3f0] sm:$0xff]  ;;  %1507 = vmatpush.msra.mxu2 %v2274_v7  ;;  %v2289_v29 = vld [vmem:[%s3984_s1 + $0x3e8] sm:$0xff] }
  0x5b   : > { %1620 = vmatpush.msra.mxu3 %v2290_v0  ;;  %v3074_v8 = vld [vmem:[#allocation2 + $0x1f7] sm:$0xff]  ;;  %v727_v49 = vld [vmem:[%s3984_s1 + $0x168] sm:$0xff]  ;;  %v2272_v0 = vld [vmem:[%s3984_s1 + $0x360] sm:$0xff] }
  0x5c   : > { %v607_v5 = vld [vmem:[#allocation2 + $0x297] sm:$0xff]  ;;  %1508 = vmatpush.msra.mxu2 %v2273_v28  ;;  %v3107_v7 = vld [vmem:[#allocation2 + $0x61] sm:$0xff] }
  0x5d   : > { %v3076_v6 = vld [vmem:[#allocation2 + $0xb7] sm:$0xff]  ;;  %1621 = vmatpush.msra.mxu3 %v2289_v29 }
  0x5e   : > { %855 = vmatmul.f32.gmra.mxu2 %v3014_v16  ;;  %v728_v10 = vld [vmem:[%s3984_s1 + $0x170] sm:$0xff]  ;;  %v2303_v28 = vld [vmem:[%s3984_s1 + $0x458] sm:$0xff] }
  0x5f   : > { %879 = vmatmul.f32.gmra.mxu3 %v3016_v19  ;;  %v2306_v13 = vld [vmem:[%s3984_s1 + $0x470] sm:$0xff]  ;;  %1345 = vmatpush.msra.mxu1 %v728_v10 }
  0x60   : > { %807 = vmatmul.f32.gmra.mxu0 %v3021_v24  ;;  %v2387_v2 = vld [vmem:[#allocation2 + $0xd0] sm:$0xff]  ;;  %1509 = vmatpush.msra.mxu2 %v2272_v0  ;;  %v2269_v0 = vld [vmem:[%s3984_s1 + $0x348] sm:$0xff] }
  0x61   : > { %834 = vmatmul.f32.gmra.mxu1 %v3024_v26  ;;  %1733 = vmatpush.msra.mxu0 %v2306_v13  ;;  %v575_v48 = vld [vmem:[#allocation2 + $0x17] sm:$0xff]  ;;  %v3119_v10 = vld [vmem:[#allocation2 + $0x69] sm:$0xff]  ;;  %v2304_v13 = vld [vmem:[%s3984_s1 + $0x460] sm:$0xff] }
  0x62   : > { %1346 = vmatpush.msra.mxu1 %v727_v49  ;;  %v2286_v29 = vld [vmem:[%s3984_s1 + $0x3d0] sm:$0xff]  ;;  %v3183_v49 = vld [vmem:[#allocation2 + $0xd9] sm:$0xff] }
  0x63   : > { %4018 = vst [vmem:[#allocation6_spill] sm:$0xff] %v3183_v49 }
  0x66   : > { %858 = vmatmul.f32.gmra.mxu2 %v3041_v33 }
  0x67   : > { %882 = vmatmul.f32.gmra.mxu3 %v3043_v35 }
  0x68   : > { %810 = vmatmul.f32.gmra.mxu0 %v3045_v41 }
  0x69   : > { %837 = vmatmul.f32.gmra.mxu1 %v3048_v42 }
  0x6e   : > { %861 = vmatmul.f32.gmra.mxu2 %v3059_v51 }
  0x6f   : > { %885 = vmatmul.f32.gmra.mxu3 %v606_v53  ;;  %v2305_v53 = vld [vmem:[%s3984_s1 + $0x468] sm:$0xff] }
  0x70   : > { %813 = vmatmul.f32.gmra.mxu0 %v3061_v60 }
  0x71   : > { %840 = vmatmul.f32.gmra.mxu1 %v3064_v62  ;;  %1734 = vmatpush.msra.mxu0 %v2305_v53 }
  0x73   : > { %1735 = vmatpush.msra.mxu0 %v2304_v13  ;;  %v3203_v13 = vld [vmem:[#allocation2 + $0xe1] sm:$0xff] }
  0x74   : > { %4020 = vst [vmem:[#allocation8_spill] sm:$0xff] %v3203_v13 }
  0x75   : > { %1736 = vmatpush.msra.mxu0 %v2303_v28 }
  0x76   : > { %864 = vmatmul.f32.gmra.mxu2 %v3074_v8 }
  0x77   : > { %888 = vmatmul.f32.gmra.mxu3 %v607_v5  ;;  %v2288_v5 = vld [vmem:[%s3984_s1 + $0x3e0] sm:$0xff] }
  0x78   : > { %816 = vmatmul.f32.gmra.mxu0 %v3076_v6  ;;  %1622 = vmatpush.msra.mxu3 %v2288_v5 }
  0x79   : > { %908 = vmatmul.f32.vlgmr.msrb.gmra.mxu1 %v2719_v14 }
  0x7e   : > { %1021 = vmatmul.f32.vlgmr.msrb.gmra.mxu2 %v3087_v15 }
  0x7f   : > { %1134 = vmatmul.f32.vlgmr.msrb.gmra.mxu3 %v574_v21  ;;  %v2287_v21 = vld [vmem:[%s3984_s1 + $0x3d8] sm:$0xff] }
  0x80   : > { %1247 = vmatmul.f32.vlgmr.msrb.gmra.mxu0 %v2387_v2  ;;  %1623 = vmatpush.msra.mxu3 %v2287_v21  ;;  %v2301_v21 = vld [vmem:[%s3984_s1 + $0x448] sm:$0xff] }
  0x81   : > { %911 = vmatmul.f32.gmra.mxu1 %v2747_v34 }
  0x82   : > { %1624 = vmatpush.msra.mxu3 %v2286_v29 }
  0x86   : > { %1024 = vmatmul.f32.gmra.mxu2 %v3097_v30 }
  0x87   : > { %1137 = vmatmul.f32.gmra.mxu3 %v575_v48  ;;  %v724_v48 = vld [vmem:[%s3984_s1 + $0x150] sm:$0xff] }
  0x88   : > { %1250 = vmatmul.f32.gmra.mxu0 %v2387_v2 }
  0x89   : > { %914 = vmatmul.f32.gmra.mxu1 %v2781_v54 }
  0x8e   : > { %1027 = vmatmul.f32.gmra.mxu2 %v3107_v7 }
  0x8f   : > { %1140 = vmatmul.f32.gmra.mxu3 %v2799_v3  ;;  %v726_v3 = vld [vmem:[%s3984_s1 + $0x160] sm:$0xff] }
  0x90   : > { %1253 = vmatmul.f32.gmra.mxu0 %v2719_v14  ;;  %1347 = vmatpush.msra.mxu1 %v726_v3  ;;  %v3131_v14 = vld [vmem:[#allocation2 + $0x89] sm:$0xff] }
  0x91   : > { %917 = vmatmul.f32.gmra.mxu1 %v2813_v12 }
  0x96   : > { %1030 = vmatmul.f32.gmra.mxu2 %v3119_v10 }
  0x97   : > { %1143 = vmatmul.f32.gmra.mxu3 %v2855_v38  ;;  %v2271_v38 = vld [vmem:[%s3984_s1 + $0x358] sm:$0xff] }
  0x98   : > { %1256 = vmatmul.f32.gmra.mxu0 %v2747_v34  ;;  %1510 = vmatpush.msra.mxu2 %v2271_v38  ;;  %v3143_v34 = vld [vmem:[#allocation2 + $0x91] sm:$0xff] }
  0x99   : > { %920 = vmatmul.f32.gmra.mxu1 %v2849_v32 }
  0x9e   : > { %1033 = vmatmul.f32.gmra.mxu2 %v3131_v14 }
  0x9f   : > { %1146 = vmatmul.f32.gmra.mxu3 %v2916_v20  ;;  %v725_v20 = vld [vmem:[%s3984_s1 + $0x158] sm:$0xff] }
  0xa0   : > { %1259 = vmatmul.f32.gmra.mxu0 %v2781_v54  ;;  %1348 = vmatpush.msra.mxu1 %v725_v20  ;;  %v3155_v54 = vld [vmem:[#allocation2 + $0xb1] sm:$0xff] }
  0xa1   : > { %923 = vmatmul.f32.gmra.mxu1 %v2886_v56  ;;  %4015 = vst [vmem:[#allocation3_spill] sm:$0xff] %v3155_v54 }
  0xa2   : > { %1349 = vmatpush.msra.mxu1 %v724_v48  ;;  %v2284_v48 = vld [vmem:[%s3984_s1 + $0x3c0] sm:$0xff] }
  0xa6   : > { %1036 = vmatmul.f32.gmra.mxu2 %v3143_v34 }
  0xa7   : > { %1149 = vmatmul.f32.gmra.mxu3 %v2973_v55  ;;  %v2270_v55 = vld [vmem:[%s3984_s1 + $0x350] sm:$0xff] }
  0xa8   : > { %1262 = vmatmul.f32.gmra.mxu0 %v2813_v12  ;;  %1511 = vmatpush.msra.mxu2 %v2270_v55  ;;  %v3167_v12 = vld [vmem:[#allocation2 + $0xb9] sm:$0xff]  ;;  %v3223_v55 = vld [vmem:[#allocation2 + $0x101] sm:$0xff] }
  0xa9   : > { %926 = vmatmul.f32.gmra.mxu1 %v2944_v36  ;;  %4016 = vst [vmem:[#allocation4_spill] sm:$0xff] %v3167_v12  ;;  %v3169_v2 = vpop.f32.mrf.mxu1 }
  0xaa   : > { %1512 = vmatpush.msra.mxu2 %v2269_v0  ;;  %4022 = vst [vmem:[#allocation10_spill] sm:$0xff] %v3223_v55 }
  0xae   : > { %1039 = vmatmul.f32.gmra.mxu2 %v3155_v54 }
  0xaf   : > { %1152 = vmatmul.f32.gmra.mxu3 %v3021_v24  ;;  %v3172_v24 = vld [vmem:[#allocation2 + $0xd8] sm:$0xff] }
  0xb0   : > { %1265 = vmatmul.f32.gmra.mxu0 %v2849_v32  ;;  %4017 = vst [vmem:[#allocation5_spill] sm:$0xff] %v3172_v24  ;;  %v2302_v32 = vld [vmem:[%s3984_s1 + $0x450] sm:$0xff] }
  0xb1   : > { %929 = vmatmul.f32.gmra.mxu1 %v3001_v9  ;;  %1737 = vmatpush.msra.mxu0 %v2302_v32 }
  0xb3   : > { %1738 = vmatpush.msra.mxu0 %v2301_v21  ;;  %v722_v21 = vld [vmem:[%s3984_s1 + $0x140] sm:$0xff] }
  0xb6   : > { %1042 = vmatmul.f32.gmra.mxu2 %v3167_v12 }
  0xb7   : > { %1155 = vmatmul.f32.gmra.mxu3 %v3045_v41 }
  0xb8   : > { %1268 = vmatmul.f32.gmra.mxu0 %v2886_v56  ;;  %v2285_v56 = vld [vmem:[%s3984_s1 + $0x3c8] sm:$0xff] }
  0xb9   : > { %932 = vmatmul.f32.gmra.mxu1 %v3172_v24  ;;  %1625 = vmatpush.msra.mxu3 %v2285_v56  ;;  %v3243_v56 = vld [vmem:[#allocation2 + $0x109] sm:$0xff] }
  0xba   : > { %4024 = vst [vmem:[#allocation12_spill] sm:$0xff] %v3243_v56 }
  0xbb   : > { %1626 = vmatpush.msra.mxu3 %v2284_v48 }
  0xbd   : > { %v3185_v53 = vpop.f32.mrf.mxu0 }
  0xbe   : > { %1045 = vmatmul.f32.gmra.mxu2 %v3183_v49  ;;  %v3188_v41 = vpop.f32.mrf.mxu1 }
  0xbf   : > { %1158 = vmatmul.f32.gmra.mxu3 %v3061_v60 }
  0xc0   : > { %1271 = vmatmul.f32.gmra.mxu0 %v2944_v36  ;;  %v723_v36 = vld [vmem:[%s3984_s1 + $0x148] sm:$0xff] }
  0xc1   : > { %v3198_v5 = vpop.f32.mrf.mxu2  ;;  %935 = vmatmul.f32.gmra.mxu1 %v2725_v18 }
  0xc2   : > { %v3201_v3 = vpop.f32.mrf.mxu3  ;;  %1350 = vmatpush.msra.mxu1 %v723_v36 }
  0xc3   : > { %4019 = vst [vmem:[#allocation7_spill] sm:$0xff] %v3201_v3 }
  0xc4   : > { %1351 = vmatpush.msra.mxu1 %v722_v21  ;;  %v2283_v21 = vld [vmem:[%s3984_s1 + $0x3b8] sm:$0xff] }
  0xc5   : > { %v3205_v60 = vpop.f32.mrf.mxu0  ;;  %1627 = vmatpush.msra.mxu3 %v2283_v21 }
  0xc6   : > { %1048 = vmatmul.f32.gmra.mxu2 %v3203_v13  ;;  %v3208_v38 = vpop.f32.mrf.mxu1  ;;  %v3328_v13 = vld [vmem:[#allocation2 + $0x178] sm:$0xff] }
  0xc7   : > { %1161 = vmatmul.f32.gmra.mxu3 %v3076_v6 }
  0xc8   : > { %1274 = vmatmul.f32.gmra.mxu0 %v3001_v9  ;;  %v2268_v9 = vld [vmem:[%s3984_s1 + $0x340] sm:$0xff] }
  0xc9   : > { %v3218_v20 = vpop.f32.mrf.mxu2  ;;  %938 = vmatmul.f32.gmra.mxu1 %v2761_v40  ;;  %1513 = vmatpush.msra.mxu2 %v2268_v9  ;;  %v2300_v9 = vld [vmem:[%s3984_s1 + $0x440] sm:$0xff] }
  0xca   : > { %v3221_v28 = vpop.f32.mrf.mxu3  ;;  %1739 = vmatpush.msra.mxu0 %v2300_v9 }
  0xcb   : > { %4021 = vst [vmem:[#allocation9_spill] sm:$0xff] %v3221_v28 }
  0xcd   : > { %v3225_v6 = vpop.f32.mrf.mxu0 }
  0xce   : > { %1051 = vmatmul.f32.gmra.mxu2 %v3223_v55  ;;  %v3228_v29 = vpop.f32.mrf.mxu1 }
  0xcf   : > { %1164 = vmatmul.f32.gmra.mxu3 %v2606_v23 }
  0xd0   : > { %1277 = vmatmul.f32.gmra.mxu0 %v3172_v24 }
  0xd1   : > { %v3238_v32 = vpop.f32.mrf.mxu2  ;;  %941 = vmatmul.f32.gmra.mxu1 %v2789_v59 }
  0xd2   : > { %v3241_v0 = vpop.f32.mrf.mxu3 }
  0xd3   : > { %4023 = vst [vmem:[#allocation11_spill] sm:$0xff] %v3241_v0  ;;  %v3263_v0 = vld [vmem:[#allocation2 + $0x129] sm:$0xff] }
  0xd4   : > { %4026 = vst [vmem:[#allocation14_spill] sm:$0xff] %v3263_v0 }
  0xd5   : > { %v3245_v23 = vpop.f32.mrf.mxu0 }
  0xd6   : > { %1054 = vmatmul.f32.gmra.mxu2 %v3243_v56  ;;  %v3248_v36 = vpop.f32.mrf.mxu1 }
  0xd7   : > { %1167 = vmatmul.f32.gmra.mxu3 %v2810_v11 }
  0xd8   : > { %1280 = vmatmul.f32.gmra.mxu0 %v2725_v18  ;;  %v2267_v18 = vld [vmem:[%s3984_s1 + $0x338] sm:$0xff] }
  0xd9   : > { %v3258_v48 = vpop.f32.mrf.mxu2  ;;  %944 = vmatmul.f32.gmra.mxu1 %v2824_v17  ;;  %1514 = vmatpush.msra.mxu2 %v2267_v18  ;;  %v2299_v18 = vld [vmem:[%s3984_s1 + $0x438] sm:$0xff] }
  0xda   : > { %v3261_v47 = vpop.f32.mrf.mxu3  ;;  %1740 = vmatpush.msra.mxu0 %v2299_v18 }
  0xdb   : > { %4025 = vst [vmem:[#allocation13_spill] sm:$0xff] %v3261_v47 }
  0xdd   : > { %v3265_v11 = vpop.f32.mrf.mxu0 }
  0xde   : > { %1057 = vmatmul.f32.gmra.mxu2 %v3263_v0  ;;  %v3268_v56 = vpop.f32.mrf.mxu1  ;;  %v3283_v0 = vld [vmem:[#allocation2 + $0x131] sm:$0xff] }
  0xdf   : > { %1170 = vmatmul.f32.gmra.mxu3 %v2863_v43  ;;  %4028 = vst [vmem:[#allocation16_spill] sm:$0xff] %v3283_v0 }
  0xe0   : > { %1283 = vmatmul.f32.gmra.mxu0 %v2761_v40  ;;  %v721_v40 = vld [vmem:[%s3984_s1 + $0x138] sm:$0xff] }
  0xe1   : > { %v3278_v9 = vpop.f32.mrf.mxu2  ;;  %947 = vmatmul.f32.gmra.mxu1 %v2858_v39 }
  0xe2   : > { %v3281_v47 = vpop.f32.mrf.mxu3  ;;  %1352 = vmatpush.msra.mxu1 %v721_v40  ;;  %v2282_v40 = vld [vmem:[%s3984_s1 + $0x3b0] sm:$0xff] }
  0xe3   : > { %4027 = vst [vmem:[#allocation15_spill] sm:$0xff] %v3281_v47  ;;  %1628 = vmatpush.msra.mxu3 %v2282_v40 }
  0xe5   : > { %v3285_v43 = vpop.f32.mrf.mxu0 }
  0xe6   : > { %1060 = vmatmul.f32.gmra.mxu2 %v3283_v0  ;;  %v3288_v28 = vpop.f32.mrf.mxu1  ;;  %v3303_v0 = vld [vmem:[#allocation2 + $0x151] sm:$0xff] }
  0xe7   : > { %1173 = vmatmul.f32.gmra.mxu3 %v2922_v25  ;;  %4031 = vst [vmem:[#allocation19_spill] sm:$0xff] %v3303_v0 }
  0xe8   : > { %1286 = vmatmul.f32.gmra.mxu0 %v2789_v59  ;;  %v2266_v59 = vld [vmem:[%s3984_s1 + $0x330] sm:$0xff] }
  0xe9   : > { %v3298_v21 = vpop.f32.mrf.mxu2  ;;  %950 = vmatmul.f32.gmra.mxu1 %v2896_v61  ;;  %1515 = vmatpush.msra.mxu2 %v2266_v59  ;;  %v2298_v59 = vld [vmem:[%s3984_s1 + $0x430] sm:$0xff] }
  0xea   : > { %4029 = vst [vmem:[#allocation17_spill] sm:$0xff] %v3298_v21  ;;  %v3301_v47 = vpop.f32.mrf.mxu3  ;;  %1741 = vmatpush.msra.mxu0 %v2298_v59 }
  0xeb   : > { %4030 = vst [vmem:[#allocation18_spill] sm:$0xff] %v3301_v47 }
  0xed   : > { %v3305_v25 = vpop.f32.mrf.mxu0 }
  0xee   : > { %1063 = vmatmul.f32.gmra.mxu2 %v3303_v0  ;;  %v3308_v55 = vpop.f32.mrf.mxu1  ;;  %v3323_v0 = vld [vmem:[#allocation2 + $0x159] sm:$0xff] }
  0xef   : > { %1176 = vmatmul.f32.gmra.mxu3 %v2978_v57  ;;  %4034 = vst [vmem:[#allocation22_spill] sm:$0xff] %v3323_v0 }
  0xf0   : > { %1289 = vmatmul.f32.gmra.mxu0 %v2824_v17  ;;  %v720_v17 = vld [vmem:[%s3984_s1 + $0x130] sm:$0xff] }
  0xf1   : > { %v3318_v18 = vpop.f32.mrf.mxu2  ;;  %953 = vmatmul.f32.gmra.mxu1 %v2946_v37 }
  0xf2   : > { %4032 = vst [vmem:[#allocation20_spill] sm:$0xff] %v3318_v18  ;;  %v3321_v47 = vpop.f32.mrf.mxu3  ;;  %1353 = vmatpush.msra.mxu1 %v720_v17  ;;  %v3346_v18 = vld [vmem:[#allocation2 + $0x180] sm:$0xff]  ;;  %v2281_v17 = vld [vmem:[%s3984_s1 + $0x3a8] sm:$0xff] }
  0xf3   : > { %4033 = vst [vmem:[#allocation21_spill] sm:$0xff] %v3321_v47  ;;  %1629 = vmatpush.msra.mxu3 %v2281_v17 }
  0xf5   : > { %v3325_v57 = vpop.f32.mrf.mxu0 }
  0xf6   : > { %1066 = vmatmul.f32.gmra.mxu2 %v3323_v0  ;;  %v909_v3 = vpop.f32.mrf.mxu1  ;;  %v3343_v0 = vld [vmem:[#allocation2 + $0x179] sm:$0xff] }
  0xf7   : > { %1179 = vmatmul.f32.gmra.mxu3 %v3024_v26  ;;  %4037 = vst [vmem:[#allocation25_spill] sm:$0xff] %v3343_v0  ;;  %v910_v59 = vadd.f32 %v909_v3, %v3185_v53 }
  0xf8   : > { %1292 = vmatmul.f32.gmra.mxu0 %v2858_v39  ;;  %v2265_v39 = vld [vmem:[%s3984_s1 + $0x328] sm:$0xff] }
  0xf9   : > { %v3338_v40 = vpop.f32.mrf.mxu2  ;;  %956 = vmatmul.f32.gmra.mxu1 %v3328_v13  ;;  %1516 = vmatpush.msra.mxu2 %v2265_v39 }
  0xfa   : > { %4035 = vst [vmem:[#allocation23_spill] sm:$0xff] %v3338_v40  ;;  %v3341_v47 = vpop.f32.mrf.mxu3 }
  0xfb   : > { %4036 = vst [vmem:[#allocation24_spill] sm:$0xff] %v3341_v47 }
  0xfd   : > { %v1248_v26 = vpop.f32.mrf.mxu0 }
  0xfe   : > { %1069 = vmatmul.f32.gmra.mxu2 %v3343_v0  ;;  %v912_v49 = vpop.f32.mrf.mxu1 }
  0xff   : > { %1182 = vmatmul.f32.gmra.mxu3 %v3048_v42  ;;  %v3358_v42 = vld [vmem:[#allocation2 + $0x181] sm:$0xff]  ;;  %v913_v53 = vadd.f32 %v912_v49, %v3205_v60 }
 0x100   : > { %1295 = vmatmul.f32.gmra.mxu0 %v2896_v61  ;;  %v719_v61 = vld [vmem:[%s3984_s1 + $0x128] sm:$0xff]  ;;  %v2280_v49 = vld [vmem:[%s3984_s1 + $0x3a0] sm:$0xff] }
 0x101   : > { %v1022_v47 = vpop.f32.mrf.mxu2  ;;  %959 = vmatmul.f32.gmra.mxu1 %v3346_v18  ;;  %1630 = vmatpush.msra.mxu3 %v2280_v49 }
 0x102   : > { %v1023_v0 = vadd.f32 %v1022_v47, %v910_v59  ;;  %v1135_v40 = vpop.f32.mrf.mxu3  ;;  %v2297_v47 = vld [vmem:[%s3984_s1 + $0x428] sm:$0xff]  ;;  %1354 = vmatpush.msra.mxu1 %v719_v61 }
 0x103   : > { %1742 = vmatpush.msra.mxu0 %v2297_v47 }
 0x104   : > { %v1136_v24 = vadd.f32 %v1135_v40, %v1023_v0 }
 0x105   : > { %v1251_v12 = vpop.f32.mrf.mxu0 }
 0x106   : > { %v3360_v21 = vadd.f32 %v1248_v26, %v1136_v24  ;;  %1072 = vmatmul.f32.gmra.mxu2 %v3358_v42  ;;  %v915_v54 = vpop.f32.mrf.mxu1 }
 0x107   : > { %1185 = vmatmul.f32.gmra.mxu3 %v3064_v62  ;;  %v3373_v62 = vld [vmem:[#allocation2 + $0x1a1] sm:$0xff]  ;;  %v916_v60 = vadd.f32 %v915_v54, %v3225_v6 }
 0x108   : > { %1298 = vmatmul.f32.gmra.mxu0 %v2946_v37  ;;  %v2264_v37 = vld [vmem:[%s3984_s1 + $0x320] sm:$0xff] }
 0x109   : > { %v1025_v24 = vpop.f32.mrf.mxu2  ;;  %962 = vmatmul.f32.gmra.mxu1 %v2772_v46  ;;  %1517 = vmatpush.msra.mxu2 %v2264_v37  ;;  %v718_v54 = vld [vmem:[%s3984_s1 + $0x120] sm:$0xff] }
 0x10a   : > { %v1026_v3 = vadd.f32 %v1025_v24, %v913_v53  ;;  %v1138_v0 = vpop.f32.mrf.mxu3  ;;  %v2296_v6 = vld [vmem:[%s3984_s1 + $0x420] sm:$0xff]  ;;  %1355 = vmatpush.msra.mxu1 %v718_v54 }
 0x10b   : > { %1743 = vmatpush.msra.mxu0 %v2296_v6 }
 0x10c   : > { %v1139_v40 = vadd.f32 %v1138_v0, %v1026_v3 }
 0x10d   : > { %v1254_v26 = vpop.f32.mrf.mxu0 }
 0x10e   : > { %v3375_v39 = vadd.f32 %v1251_v12, %v1139_v40  ;;  %1075 = vmatmul.f32.gmra.mxu2 %v3373_v62  ;;  %v918_v17 = vpop.f32.mrf.mxu1 }
 0x10f   : > { %1188 = vmatmul.f32.gmra.mxu3 %v2786_v58  ;;  %v3388_v58 = vld [vmem:[#allocation2 + $0x1a9] sm:$0xff]  ;;  %v919_v0 = vadd.f32 %v918_v17, %v3245_v23  ;;  %v2263_v23 = vld [vmem:[%s3984_s1 + $0x318] sm:$0xff] }
 0x110   : > { %1301 = vmatmul.f32.gmra.mxu0 %v3328_v13  ;;  %v2279_v17 = vld [vmem:[%s3984_s1 + $0x398] sm:$0xff]  ;;  %1518 = vmatpush.msra.mxu2 %v2263_v23 }
 0x111   : > { %v1028_v12 = vpop.f32.mrf.mxu2  ;;  %965 = vmatmul.f32.gmra.mxu1 %v2795_v63  ;;  %1631 = vmatpush.msra.mxu3 %v2279_v17 }
 0x112   : > { %v1029_v59 = vadd.f32 %v1028_v12, %v916_v60  ;;  %v1141_v61 = vpop.f32.mrf.mxu3 }
 0x114   : > { %v1142_v47 = vadd.f32 %v1141_v61, %v1029_v59 }
 0x115   : > { %v1257_v53 = vpop.f32.mrf.mxu0 }
 0x116   : > { %v3390_v24 = vadd.f32 %v1254_v26, %v1142_v47  ;;  %1078 = vmatmul.f32.gmra.mxu2 %v3388_v58  ;;  %v921_v3 = vpop.f32.mrf.mxu1 }
 0x117   : > { %1191 = vmatmul.f32.gmra.mxu3 %v2843_v27  ;;  %v3403_v27 = vld [vmem:[#allocation2 + $0x1c9] sm:$0xff]  ;;  %v922_v61 = vadd.f32 %v921_v3, %v3265_v11  ;;  %v2295_v11 = vld [vmem:[%s3984_s1 + $0x418] sm:$0xff] }
 0x118   : > { %1304 = vmatmul.f32.gmra.mxu0 %v3346_v18 }
 0x119   : > { %v1031_v40 = vpop.f32.mrf.mxu2  ;;  %968 = vmatmul.f32.gmra.mxu1 %v2834_v22  ;;  %1744 = vmatpush.msra.mxu0 %v2295_v11 }
 0x11a   : > { %v1032_v26 = vadd.f32 %v1031_v40, %v919_v0  ;;  %v1144_v37 = vpop.f32.mrf.mxu3 }
 0x11c   : > { %v1145_v49 = vadd.f32 %v1144_v37, %v1032_v26 }
 0x11d   : > { %v1260_v60 = vpop.f32.mrf.mxu0 }
 0x11e   : > { %v3405_v12 = vadd.f32 %v1257_v53, %v1145_v49  ;;  %1081 = vmatmul.f32.gmra.mxu2 %v3403_v27  ;;  %v924_v59 = vpop.f32.mrf.mxu1 }
 0x11f   : > { %1194 = vmatmul.f32.gmra.mxu3 %v2907_v4  ;;  %v3418_v4 = vld [vmem:[#allocation2 + $0x1d1] sm:$0xff]  ;;  %v925_v3 = vadd.f32 %v924_v59, %v3285_v43 }
 0x120   : > { %1307 = vmatmul.f32.gmra.mxu0 %v2772_v46  ;;  %v717_v46 = vld [vmem:[%s3984_s1 + $0x118] sm:$0xff]  ;;  %v2278_v43 = vld [vmem:[%s3984_s1 + $0x390] sm:$0xff] }
 0x121   : > { %v1034_v47 = vpop.f32.mrf.mxu2  ;;  %971 = vmatmul.f32.gmra.mxu1 %v2866_v44  ;;  %1632 = vmatpush.msra.mxu3 %v2278_v43 }
 0x122   : > { %v1035_v53 = vadd.f32 %v1034_v47, %v922_v61  ;;  %v1147_v54 = vpop.f32.mrf.mxu3  ;;  %1356 = vmatpush.msra.mxu1 %v717_v46 }
 0x124   : > { %v1148_v6 = vadd.f32 %v1147_v54, %v1035_v53 }
 0x125   : > { %v1263_v0 = vpop.f32.mrf.mxu0 }
 0x126   : > { %v3420_v40 = vadd.f32 %v1260_v60, %v1148_v6  ;;  %1084 = vmatmul.f32.gmra.mxu2 %v3418_v4  ;;  %v927_v26 = vpop.f32.mrf.mxu1 }
 0x127   : > { %1197 = vmatmul.f32.gmra.mxu3 %v2965_v50  ;;  %v3433_v50 = vld [vmem:[#allocation2 + $0x1f1] sm:$0xff]  ;;  %v928_v59 = vadd.f32 %v927_v26, %v3305_v25 }
 0x128   : > { %1310 = vmatmul.f32.gmra.mxu0 %v2795_v63  ;;  %v2262_v63 = vld [vmem:[%s3984_s1 + $0x310] sm:$0xff] }
 0x129   : > { %v1037_v37 = vpop.f32.mrf.mxu2  ;;  %974 = vmatmul.f32.gmra.mxu1 %v2905_v1  ;;  %1519 = vmatpush.msra.mxu2 %v2262_v63  ;;  %v2294_v25 = vld [vmem:[%s3984_s1 + $0x410] sm:$0xff] }
 0x12a   : > { %v1038_v49 = vadd.f32 %v1037_v37, %v925_v3  ;;  %v1150_v60 = vpop.f32.mrf.mxu3  ;;  %v3453_v37 = vld [vmem:[#allocation2 + $0x218] sm:$0xff]  ;;  %1745 = vmatpush.msra.mxu0 %v2294_v25 }
 0x12c   : > { %v1151_v23 = vadd.f32 %v1150_v60, %v1038_v49 }
 0x12d   : > { %v1266_v17 = vpop.f32.mrf.mxu0 }
 0x12e   : > { %v3435_v61 = vadd.f32 %v1263_v0, %v1151_v23  ;;  %1087 = vmatmul.f32.gmra.mxu2 %v3433_v50  ;;  %v930_v47 = vpop.f32.mrf.mxu1 }
 0x12f   : > { %1200 = vmatmul.f32.gmra.mxu3 %v3014_v16  ;;  %v3448_v16 = vld [vmem:[#allocation2 + $0x1f9] sm:$0xff]  ;;  %v931_v26 = vadd.f32 %v930_v47, %v3325_v57  ;;  %v2277_v57 = vld [vmem:[%s3984_s1 + $0x388] sm:$0xff] }
 0x130   : > { %1313 = vmatmul.f32.gmra.mxu0 %v2834_v22  ;;  %v716_v22 = vld [vmem:[%s3984_s1 + $0x110] sm:$0xff]  ;;  %1633 = vmatpush.msra.mxu3 %v2277_v57 }
 0x131   : > { %v1040_v53 = vpop.f32.mrf.mxu2  ;;  %977 = vmatmul.f32.gmra.mxu1 %v2955_v45 }
 0x132   : > { %v1041_v54 = vadd.f32 %v1040_v53, %v928_v59  ;;  %v1153_v6 = vpop.f32.mrf.mxu3  ;;  %1357 = vmatpush.msra.mxu1 %v716_v22  ;;  %v3470_v53 = vld [vmem:[#allocation2 + $0x220] sm:$0xff] }
 0x134   : > { %v1154_v0 = vadd.f32 %v1153_v6, %v1041_v54 }
 0x135   : > { %v1269_v46 = vpop.f32.mrf.mxu0 }
 0x136   : > { %v3450_v11 = vadd.f32 %v1266_v17, %v1154_v0  ;;  %1090 = vmatmul.f32.gmra.mxu2 %v3448_v16  ;;  %v933_v3 = vpop.f32.mrf.mxu1 }
 0x137   : > { %1203 = vmatmul.f32.gmra.mxu3 %v3041_v33  ;;  %v3465_v33 = vld [vmem:[#allocation2 + $0x219] sm:$0xff]  ;;  %v934_v47 = vadd.f32 %v933_v3, %v3169_v2  ;;  %v2293_v2 = vld [vmem:[%s3984_s1 + $0x408] sm:$0xff] }
 0x138   : > { %1316 = vmatmul.f32.gmra.mxu0 %v2866_v44  ;;  %v2261_v44 = vld [vmem:[%s3984_s1 + $0x308] sm:$0xff] }
 0x139   : > { %v1043_v49 = vpop.f32.mrf.mxu2  ;;  %980 = vmatmul.f32.gmra.mxu1 %v3453_v37  ;;  %1520 = vmatpush.msra.mxu2 %v2261_v44 }
 0x13a   : > { %v1044_v60 = vadd.f32 %v1043_v49, %v931_v26  ;;  %v1156_v23 = vpop.f32.mrf.mxu3  ;;  %v3487_v49 = vld [vmem:[#allocation2 + $0x240] sm:$0xff]  ;;  %1746 = vmatpush.msra.mxu0 %v2293_v2 }
 0x13c   : > { %v1157_v17 = vadd.f32 %v1156_v23, %v1044_v60 }
 0x13d   : > { %v1272_v63 = vpop.f32.mrf.mxu0 }
 0x13e   : > { %v3467_v43 = vadd.f32 %v1269_v46, %v1157_v17  ;;  %1093 = vmatmul.f32.gmra.mxu2 %v3465_v33  ;;  %v936_v59 = vpop.f32.mrf.mxu1 }
 0x13f   : > { %1206 = vmatmul.f32.gmra.mxu3 %v3059_v51  ;;  %v3482_v51 = vld [vmem:[#allocation2 + $0x221] sm:$0xff]  ;;  %v937_v3 = vadd.f32 %v936_v59, %v3188_v41  ;;  %v3506_v41 = vld [vmem:[#allocation2 + $0x217] sm:$0xff] }
 0x140   : > { %1319 = vmatmul.f32.gmra.mxu0 %v2905_v1  ;;  %v715_v1 = vld [vmem:[%s3984_s1 + $0x108] sm:$0xff]  ;;  %v2276_v59 = vld [vmem:[%s3984_s1 + $0x380] sm:$0xff] }
 0x141   : > { %v1046_v54 = vpop.f32.mrf.mxu2  ;;  %983 = vmatmul.f32.gmra.mxu1 %v3470_v53  ;;  %1634 = vmatpush.msra.mxu3 %v2276_v59 }
 0x142   : > { %v1047_v6 = vadd.f32 %v1046_v54, %v934_v47  ;;  %v1159_v0 = vpop.f32.mrf.mxu3  ;;  %1358 = vmatpush.msra.mxu1 %v715_v1  ;;  %v3504_v54 = vld [vmem:[#allocation2 + $0x248] sm:$0xff] }
 0x143   : > { %v3518_v1 = vld [vmem:[#allocation2 + $0x249] sm:$0xff] }
 0x144   : > { %v1160_v46 = vadd.f32 %v1159_v0, %v1047_v6 }
 0x145   : > { %v1275_v22 = vpop.f32.mrf.mxu0 }
 0x146   : > { %v3484_v25 = vadd.f32 %v1272_v63, %v1160_v46  ;;  %1096 = vmatmul.f32.gmra.mxu2 %v3482_v51  ;;  %v939_v26 = vpop.f32.mrf.mxu1 }
 0x147   : > { %1209 = vmatmul.f32.gmra.mxu3 %v3074_v8  ;;  %v3499_v8 = vld [vmem:[#allocation2 + $0x241] sm:$0xff]  ;;  %v940_v6 = vadd.f32 %v939_v26, %v3208_v38 }
 0x148   : > { %1322 = vmatmul.f32.gmra.mxu0 %v2955_v45  ;;  %v2260_v45 = vld [vmem:[%s3984_s1 + $0x300] sm:$0xff] }
 0x149   : > { %v1049_v60 = vpop.f32.mrf.mxu2  ;;  %986 = vmatmul.f32.gmra.mxu1 %v3487_v49  ;;  %1521 = vmatpush.msra.mxu2 %v2260_v45  ;;  %v3525_v38 = vld [vmem:[#allocation2 + $0x21f] sm:$0xff] }
 0x14a   : > { %v1050_v23 = vadd.f32 %v1049_v60, %v937_v3  ;;  %v1162_v17 = vpop.f32.mrf.mxu3  ;;  %v714_v26 = vld [vmem:[%s3984_s1 + $0x100] sm:$0xff] }
 0x14b   : > { %1359 = vmatpush.msra.mxu1 %v714_v26 }
 0x14c   : > { %v1163_v63 = vadd.f32 %v1162_v17, %v1050_v23  ;;  %v3523_v17 = vld [vmem:[#allocation2 + $0x268] sm:$0xff] }
 0x14d   : > { %v1278_v44 = vpop.f32.mrf.mxu0 }
 0x14e   : > { %v3501_v57 = vadd.f32 %v1275_v22, %v1163_v63  ;;  %1099 = vmatmul.f32.gmra.mxu2 %v3499_v8  ;;  %v942_v47 = vpop.f32.mrf.mxu1  ;;  %v2292_v63 = vld [vmem:[%s3984_s1 + $0x400] sm:$0xff] }
 0x14f   : > { %1212 = vmatmul.f32.gmra.mxu3 %v3506_v41  ;;  %1747 = vmatpush.msra.mxu0 %v2292_v63 }
 0x150   : > { %4038 = vst [vmem:[#allocation26_spill] sm:$0xff] %v3501_v57  ;;  %1325 = vmatmul.f32.gmra.mxu0 %v3453_v37  ;;  %v3542_v57 = vld [vmem:[#allocation2 + $0x270] sm:$0xff] }
 0x151   : > { %v1052_v0 = vpop.f32.mrf.mxu2  ;;  %989 = vmatmul.f32.gmra.mxu1 %v3504_v54 }
 0x152   : > { %v1053_v46 = vadd.f32 %v1052_v0, %v940_v6  ;;  %v1165_v22 = vpop.f32.mrf.mxu3  ;;  %v3537_v0 = vld [vmem:[#allocation2 + $0x269] sm:$0xff] }
 0x154   : > { %v1166_v2 = vadd.f32 %v1165_v22, %v1053_v46 }
 0x155   : > { %v1281_v3 = vpop.f32.mrf.mxu0 }
 0x156   : > { %v3520_v60 = vadd.f32 %v1278_v44, %v1166_v2  ;;  %1102 = vmatmul.f32.gmra.mxu2 %v3518_v1  ;;  %v945_v23 = vpop.f32.mrf.mxu1  ;;  %v943_v44 = vadd.f32 %v942_v47, %v3228_v29  ;;  %v3544_v29 = vld [vmem:[#allocation2 + $0x23f] sm:$0xff] }
 0x157   : > { %1215 = vmatmul.f32.gmra.mxu3 %v3525_v38  ;;  %v946_v47 = vadd.f32 %v945_v23, %v3248_v36 }
 0x158   : > { %4039 = vst [vmem:[#allocation27_spill] sm:$0xff] %v3520_v60  ;;  %1328 = vmatmul.f32.gmra.mxu0 %v3470_v53 }
 0x159   : > { %v1055_v45 = vpop.f32.mrf.mxu2  ;;  %992 = vmatmul.f32.gmra.mxu1 %v3523_v17 }
 0x15a   : > { %v1056_v59 = vadd.f32 %v1055_v45, %v943_v44  ;;  %v1168_v6 = vpop.f32.mrf.mxu3 }
 0x15c   : > { %v1169_v46 = vadd.f32 %v1168_v6, %v1056_v59 }
 0x15d   : > { %v1284_v22 = vpop.f32.mrf.mxu0 }
 0x15e   : > { %v3539_v2 = vadd.f32 %v1281_v3, %v1169_v46  ;;  %1105 = vmatmul.f32.gmra.mxu2 %v3537_v0  ;;  %v948_v60 = vpop.f32.mrf.mxu1  ;;  %v3550_v3 = vld [vmem:[#allocation2 + $0x271] sm:$0xff] }
 0x15f   : > { %1218 = vmatmul.f32.gmra.mxu3 %v3544_v29  ;;  %v949_v36 = vadd.f32 %v948_v60, %v3268_v56  ;;  %v4043_v60 = vmax.f32 %v2935_v31, 0.0 }
 0x160   : > { %4040 = vst [vmem:[#allocation28_spill] sm:$0xff] %v3539_v2  ;;  %1331 = vmatmul.f32.gmra.mxu0 %v3487_v49  ;;  %v3555_v2 = vld [vmem:[#allocation2 + $0x290] sm:$0xff] }
 0x161   : > { %v1058_v26 = vpop.f32.mrf.mxu2  ;;  %995 = vmatmul.f32.gmra.mxu1 %v3542_v57  ;;  %4042 = vst [vmem:[#allocation30_spill] sm:$0xff] %v3555_v2 }
 0x162   : > { %v1059_v63 = vadd.f32 %v1058_v26, %v946_v47  ;;  %v1171_v44 = vpop.f32.mrf.mxu3 }
 0x164   : > { %v1172_v45 = vadd.f32 %v1171_v44, %v1059_v63  ;;  %v3561_v63 = vld [vmem:[#allocation2 + $0x291] sm:$0xff] }
 0x165   : > { %v1287_v59 = vpop.f32.mrf.mxu0 }
 0x166   : > { %v3552_v6 = vadd.f32 %v1284_v22, %v1172_v45  ;;  %1108 = vmatmul.f32.gmra.mxu2 %v3550_v3  ;;  %v951_v46 = vpop.f32.mrf.mxu1 }
 0x167   : > { %1221 = vmatmul.f32.gmra.mxu3 %v2969_v52  ;;  %v952_v52 = vadd.f32 %v951_v46, %v3288_v28 }
 0x168   : > { %4041 = vst [vmem:[#allocation29_spill] sm:$0xff] %v3552_v6  ;;  %1334 = vmatmul.f32.gmra.mxu0 %v3504_v54 }
 0x169   : > { %v1061_v23 = vpop.f32.mrf.mxu2  ;;  %998 = vmatmul.f32.gmra.mxu1 %v3555_v2  ;;  %v3571_v2 = vld [vmem:[#allocation2 + $0x299] sm:$0xff] }
 0x16a   : > { %v1062_v47 = vadd.f32 %v1061_v23, %v949_v36  ;;  %v1174_v26 = vpop.f32.mrf.mxu3 }
 0x16c   : > { %v1175_v22 = vadd.f32 %v1174_v26, %v1062_v47 }
 0x16d   : > { %v1290_v44 = vpop.f32.mrf.mxu0 }
 0x16e   : > { %v3563_v45 = vadd.f32 %v1287_v59, %v1175_v22  ;;  %1111 = vmatmul.f32.gmra.mxu2 %v3561_v63  ;;  %v954_v6 = vpop.f32.mrf.mxu1 }
 0x16f   : > { %1224 = vmatmul.f32.gmra.mxu3 %v3016_v19  ;;  %v646_v19 = vld [vmem:[#allocation2 + $0x11] sm:$0xff]  ;;  %v955_v28 = vadd.f32 %v954_v6, %v3308_v55 }
 0x170   : > { %1337 = vmatmul.f32.gmra.mxu0 %v3523_v17 }
 0x171   : > { %v1064_v56 = vpop.f32.mrf.mxu2  ;;  %1001 = vmatmul.f32.gmra.mxu1 %v4043_v60 }
 0x172   : > { %v1065_v36 = vadd.f32 %v1064_v56, %v952_v52  ;;  %v1177_v23 = vpop.f32.mrf.mxu3 }
 0x174   : > { %v1178_v47 = vadd.f32 %v1177_v23, %v1065_v36 }
 0x175   : > { %v1293_v59 = vpop.f32.mrf.mxu0 }
 0x176   : > { %v3573_v26 = vadd.f32 %v1290_v44, %v1178_v47  ;;  %1114 = vmatmul.f32.gmra.mxu2 %v3571_v2  ;;  %v957_v22 = vpop.f32.mrf.mxu1  ;;  %v2391_v44 = vld [vmem:[#allocation2 + $0x5f] sm:$0xff] }
 0x177   : > { %1227 = vmatmul.f32.gmra.mxu3 %v3043_v35  ;;  %v647_v47 = vld [vmem:[#allocation2 + $0x19] sm:$0xff]  ;;  %v958_v35 = vadd.f32 %v957_v22, %v3198_v5 }
 0x178   : > { %4044 = vst [vmem:[#allocation31_spill] sm:$0xff] %v3573_v26  ;;  %1340 = vmatmul.f32.gmra.mxu0 %v3542_v57  ;;  %v2392_v26 = vld [vmem:[#allocation2 + $0x60] sm:$0xff] }
 0x179   : > { %v1067_v31 = vpop.f32.mrf.mxu2  ;;  %1360 = vmatmul.f32.vlgmr.msra.gmra.mxu1 %v646_v19 }
 0x17a   : > { %v1068_v46 = vadd.f32 %v1067_v31, %v955_v28  ;;  %v1180_v52 = vpop.f32.mrf.mxu3 }
 0x17c   : > { %v1181_v56 = vadd.f32 %v1180_v52, %v1068_v46 }
 0x17d   : > { %v1296_v60 = vpop.f32.mrf.mxu0 }
 0x17e   : > { %v3579_v36 = vadd.f32 %v1293_v59, %v1181_v56  ;;  %1522 = vmatmul.f32.vlgmr.msra.gmra.mxu2 %v2391_v44  ;;  %v960_v23 = vpop.f32.mrf.mxu1  ;;  %v2393_v59 = vld [vmem:[#allocation2 + $0x67] sm:$0xff] }
 0x17f   : > { %1635 = vmatmul.f32.vlgmr.msra.gmra.mxu3 %v2392_v26  ;;  %v2394_v56 = vld [vmem:[#allocation2 + $0x68] sm:$0xff]  ;;  %v961_v44 = vadd.f32 %v960_v23, %v3218_v20 }
 0x180   : > { %1748 = vmatmul.f32.vlgmr.msra.gmra.mxu0 %v3107_v7 }
 0x181   : > { %v1070_v55 = vpop.f32.mrf.mxu2  ;;  %1363 = vmatmul.f32.gmra.mxu1 %v647_v47 }
 0x182   : > { %v1071_v6 = vadd.f32 %v1070_v55, %v958_v35  ;;  %v1183_v19 = vpop.f32.mrf.mxu3 }
 0x184   : > { %v1184_v28 = vadd.f32 %v1183_v19, %v1071_v6  ;;  %v2396_v19 = vld [vmem:[#allocation2 + $0x88] sm:$0xff] }
 0x185   : > { %v1299_v31 = vpop.f32.mrf.mxu0 }
 0x186   : > { %v3583_v46 = vadd.f32 %v1296_v60, %v1184_v28  ;;  %1525 = vmatmul.f32.gmra.mxu2 %v2393_v59  ;;  %v963_v52 = vpop.f32.mrf.mxu1  ;;  %v2395_v60 = vld [vmem:[#allocation2 + $0x87] sm:$0xff] }
 0x187   : > { %1638 = vmatmul.f32.gmra.mxu3 %v2394_v56  ;;  %v964_v28 = vadd.f32 %v963_v52, %v3238_v32 }
 0x188   : > { %1751 = vmatmul.f32.gmra.mxu0 %v3119_v10 }
 0x189   : > { %v1073_v5 = vpop.f32.mrf.mxu2  ;;  %1366 = vmatmul.f32.gmra.mxu1 %v3087_v15 }
 0x18a   : > { %v1074_v26 = vadd.f32 %v1073_v5, %v961_v44  ;;  %v1186_v22 = vpop.f32.mrf.mxu3 }
 0x18c   : > { %v1187_v47 = vadd.f32 %v1186_v22, %v1074_v26  ;;  %v2398_v26 = vld [vmem:[#allocation2 + $0x90] sm:$0xff] }
 0x18d   : > { %v1302_v35 = vpop.f32.mrf.mxu0 }
 0x18e   : > { %v3588_v55 = vadd.f32 %v1299_v31, %v1187_v47  ;;  %1528 = vmatmul.f32.gmra.mxu2 %v2395_v60  ;;  %v966_v6 = vpop.f32.mrf.mxu1  ;;  %v2397_v31 = vld [vmem:[#allocation2 + $0x8f] sm:$0xff] }
 0x18f   : > { %1641 = vmatmul.f32.gmra.mxu3 %v2396_v19  ;;  %v967_v22 = vadd.f32 %v966_v6, %v3258_v48 }
 0x190   : > { %1754 = vmatmul.f32.gmra.mxu0 %v3131_v14 }
 0x191   : > { %v1076_v20 = vpop.f32.mrf.mxu2  ;;  %1369 = vmatmul.f32.gmra.mxu1 %v3097_v30 }
 0x192   : > { %v1077_v23 = vadd.f32 %v1076_v20, %v964_v28  ;;  %v1189_v15 = vpop.f32.mrf.mxu3  ;;  %v2400_v20 = vld [vmem:[#allocation2 + $0xb0] sm:$0xff] }
 0x194   : > { %v1190_v59 = vadd.f32 %v1189_v15, %v1077_v23  ;;  %v4045_v15 = vld [vmem:[#allocation3_spill] sm:$0xff] }
 0x195   : > { %v1305_v56 = vpop.f32.mrf.mxu0 }
 0x196   : > { %v3593_v44 = vadd.f32 %v1302_v35, %v1190_v59  ;;  %1531 = vmatmul.f32.gmra.mxu2 %v2397_v31  ;;  %v969_v5 = vpop.f32.mrf.mxu1  ;;  %v2399_v35 = vld [vmem:[#allocation2 + $0xaf] sm:$0xff] }
 0x197   : > { %1644 = vmatmul.f32.gmra.mxu3 %v2398_v26  ;;  %v970_v23 = vadd.f32 %v969_v5, %v3278_v9 }
 0x198   : > { %1757 = vmatmul.f32.gmra.mxu0 %v3143_v34 }
 0x199   : > { %v1079_v32 = vpop.f32.mrf.mxu2  ;;  %1372 = vmatmul.f32.gmra.mxu1 %v3107_v7 }
 0x19a   : > { %v1080_v52 = vadd.f32 %v1079_v32, %v967_v22  ;;  %v1192_v30 = vpop.f32.mrf.mxu3  ;;  %v2402_v32 = vld [vmem:[#allocation2 + $0xb8] sm:$0xff] }
 0x19c   : > { %v1193_v47 = vadd.f32 %v1192_v30, %v1080_v52  ;;  %v4046_v52 = vld [vmem:[#allocation17_spill] sm:$0xff] }
 0x19d   : > { %v1308_v60 = vpop.f32.mrf.mxu0 }
 0x19e   : > { %v3598_v19 = vadd.f32 %v1305_v56, %v1193_v47  ;;  %1534 = vmatmul.f32.gmra.mxu2 %v2399_v35  ;;  %v972_v28 = vpop.f32.mrf.mxu1  ;;  %v2401_v56 = vld [vmem:[#allocation2 + $0xb7] sm:$0xff] }
 0x19f   : > { %1647 = vmatmul.f32.gmra.mxu3 %v2400_v20  ;;  %v973_v30 = vadd.f32 %v972_v28, %v4046_v52  ;;  %v4047_v47 = vld [vmem:[#allocation4_spill] sm:$0xff] }
 0x1a0   : > { %1760 = vmatmul.f32.gmra.mxu0 %v4045_v15 }
 0x1a1   : > { %v1082_v48 = vpop.f32.mrf.mxu2  ;;  %1375 = vmatmul.f32.gmra.mxu1 %v3119_v10 }
 0x1a2   : > { %v1083_v6 = vadd.f32 %v1082_v48, %v970_v23  ;;  %v1195_v7 = vpop.f32.mrf.mxu3 }
 0x1a4   : > { %v1196_v59 = vadd.f32 %v1195_v7, %v1083_v6  ;;  %v4048_v6 = vld [vmem:[#allocation5_spill] sm:$0xff]  ;;  %v4049_v7 = vld [vmem:[#allocation20_spill] sm:$0xff] }
 0x1a5   : > { %v1311_v31 = vpop.f32.mrf.mxu0 }
 0x1a6   : > { %v3603_v26 = vadd.f32 %v1308_v60, %v1196_v59  ;;  %1537 = vmatmul.f32.gmra.mxu2 %v2401_v56  ;;  %v975_v22 = vpop.f32.mrf.mxu1  ;;  %v2403_v60 = vld [vmem:[#allocation2 + $0xd7] sm:$0xff]  ;;  %v4050_v56 = vld [vmem:[#allocation6_spill] sm:$0xff] }
 0x1a7   : > { %1650 = vmatmul.f32.gmra.mxu3 %v2402_v32  ;;  %v976_v59 = vadd.f32 %v975_v22, %v4049_v7 }
 0x1a8   : > { %1763 = vmatmul.f32.gmra.mxu0 %v4047_v47 }
 0x1a9   : > { %v1085_v9 = vpop.f32.mrf.mxu2  ;;  %1378 = vmatmul.f32.gmra.mxu1 %v3131_v14 }
 0x1aa   : > { %v1086_v5 = vadd.f32 %v1085_v9, %v973_v30  ;;  %v1198_v10 = vpop.f32.mrf.mxu3 }
 0x1ac   : > { %v1199_v35 = vadd.f32 %v1198_v10, %v1086_v5  ;;  %v2405_v10 = vld [vmem:[#allocation2 + $0xe0] sm:$0xff] }
 0x1ad   : > { %v1314_v20 = vpop.f32.mrf.mxu0 }
 0x1ae   : > { %v3608_v23 = vadd.f32 %v1311_v31, %v1199_v35  ;;  %1540 = vmatmul.f32.gmra.mxu2 %v2403_v60  ;;  %v978_v48 = vpop.f32.mrf.mxu1  ;;  %v2404_v31 = vld [vmem:[#allocation2 + $0xdf] sm:$0xff]  ;;  %v4052_v35 = vld [vmem:[#allocation23_spill] sm:$0xff] }
 0x1af   : > { %1653 = vmatmul.f32.gmra.mxu3 %v4048_v6  ;;  %v979_v60 = vadd.f32 %v978_v48, %v4052_v35  ;;  %v4053_v6 = vld [vmem:[#allocation8_spill] sm:$0xff] }
 0x1b0   : > { %1766 = vmatmul.f32.gmra.mxu0 %v4050_v56 }
 0x1b1   : > { %v1088_v28 = vpop.f32.mrf.mxu2  ;;  %1381 = vmatmul.f32.gmra.mxu1 %v3143_v34 }
 0x1b2   : > { %v1089_v32 = vadd.f32 %v1088_v28, %v976_v59  ;;  %v1201_v14 = vpop.f32.mrf.mxu3 }
 0x1b4   : > { %v1202_v52 = vadd.f32 %v1201_v14, %v1089_v32 }
 0x1b5   : > { %v1317_v30 = vpop.f32.mrf.mxu0 }
 0x1b6   : > { %v3614_v9 = vadd.f32 %v1314_v20, %v1202_v52  ;;  %1543 = vmatmul.f32.gmra.mxu2 %v2404_v31  ;;  %v981_v5 = vpop.f32.mrf.mxu1  ;;  %v2406_v20 = vld [vmem:[#allocation2 + $0xff] sm:$0xff]  ;;  %v4055_v31 = vld [vmem:[#allocation7_spill] sm:$0xff] }
 0x1b7   : > { %1656 = vmatmul.f32.gmra.mxu3 %v2405_v10  ;;  %v2407_v52 = vld [vmem:[#allocation2 + $0x100] sm:$0xff]  ;;  %v982_v10 = vadd.f32 %v981_v5, %v4055_v31 }
 0x1b8   : > { %4051 = vst [vmem:[#allocation3_spill] sm:$0xff] %v3614_v9  ;;  %1769 = vmatmul.f32.gmra.mxu0 %v4053_v6  ;;  %v4056_v9 = vld [vmem:[#allocation10_spill] sm:$0xff] }
 0x1b9   : > { %v1091_v22 = vpop.f32.mrf.mxu2  ;;  %1384 = vmatmul.f32.gmra.mxu1 %v4045_v15 }
 0x1ba   : > { %v1092_v7 = vadd.f32 %v1091_v22, %v979_v60  ;;  %v1204_v34 = vpop.f32.mrf.mxu3 }
 0x1bc   : > { %v1205_v59 = vadd.f32 %v1204_v34, %v1092_v7 }
 0x1bd   : > { %v1320_v28 = vpop.f32.mrf.mxu0 }
 0x1be   : > { %v3619_v32 = vadd.f32 %v1317_v30, %v1205_v59  ;;  %1546 = vmatmul.f32.gmra.mxu2 %v2406_v20  ;;  %v984_v14 = vpop.f32.mrf.mxu1  ;;  %v2408_v30 = vld [vmem:[#allocation2 + $0x107] sm:$0xff] }
 0x1bf   : > { %1659 = vmatmul.f32.gmra.mxu3 %v2407_v52  ;;  %v2409_v59 = vld [vmem:[#allocation2 + $0x108] sm:$0xff]  ;;  %v4058_v20 = vld [vmem:[#allocation9_spill] sm:$0xff] }
 0x1c0   : > { %4054 = vst [vmem:[#allocation17_spill] sm:$0xff] %v3619_v32  ;;  %1772 = vmatmul.f32.gmra.mxu0 %v4056_v9  ;;  %v985_v52 = vadd.f32 %v984_v14, %v4058_v20  ;;  %v4059_v32 = vld [vmem:[#allocation12_spill] sm:$0xff] }
 0x1c1   : > { %v1094_v48 = vpop.f32.mrf.mxu2  ;;  %1387 = vmatmul.f32.gmra.mxu1 %v4047_v47 }
 0x1c2   : > { %v1095_v35 = vadd.f32 %v1094_v48, %v982_v10  ;;  %v1207_v15 = vpop.f32.mrf.mxu3 }
 0x1c4   : > { %v1208_v60 = vadd.f32 %v1207_v15, %v1095_v35 }
 0x1c5   : > { %v1323_v22 = vpop.f32.mrf.mxu0 }
 0x1c6   : > { %v3624_v7 = vadd.f32 %v1320_v28, %v1208_v60  ;;  %1549 = vmatmul.f32.gmra.mxu2 %v2408_v30  ;;  %v987_v34 = vpop.f32.mrf.mxu1  ;;  %v2410_v28 = vld [vmem:[#allocation2 + $0x127] sm:$0xff]  ;;  %v4061_v30 = vld [vmem:[#allocation11_spill] sm:$0xff] }
 0x1c7   : > { %1662 = vmatmul.f32.gmra.mxu3 %v2409_v59  ;;  %v2411_v60 = vld [vmem:[#allocation2 + $0x128] sm:$0xff]  ;;  %v988_v59 = vadd.f32 %v987_v34, %v4061_v30 }
 0x1c8   : > { %4057 = vst [vmem:[#allocation4_spill] sm:$0xff] %v3624_v7  ;;  %1775 = vmatmul.f32.gmra.mxu0 %v4059_v32  ;;  %v4062_v7 = vld [vmem:[#allocation14_spill] sm:$0xff] }
 0x1c9   : > { %v1097_v5 = vpop.f32.mrf.mxu2  ;;  %1390 = vmatmul.f32.gmra.mxu1 %v4050_v56 }
 0x1ca   : > { %v1098_v31 = vadd.f32 %v1097_v5, %v985_v52  ;;  %v1210_v47 = vpop.f32.mrf.mxu3 }
 0x1cc   : > { %v1211_v10 = vadd.f32 %v1210_v47, %v1098_v31 }
 0x1cd   : > { %v1326_v48 = vpop.f32.mrf.mxu0 }
 0x1ce   : > { %v3629_v35 = vadd.f32 %v1323_v22, %v1211_v10  ;;  %1552 = vmatmul.f32.gmra.mxu2 %v2410_v28  ;;  %v990_v15 = vpop.f32.mrf.mxu1  ;;  %v2412_v22 = vld [vmem:[#allocation2 + $0x12f] sm:$0xff]  ;;  %v4064_v28 = vld [vmem:[#allocation13_spill] sm:$0xff] }
 0x1cf   : > { %1665 = vmatmul.f32.gmra.mxu3 %v2411_v60  ;;  %v2413_v10 = vld [vmem:[#allocation2 + $0x130] sm:$0xff]  ;;  %v991_v60 = vadd.f32 %v990_v15, %v4064_v28 }
 0x1d0   : > { %4060 = vst [vmem:[#allocation5_spill] sm:$0xff] %v3629_v35  ;;  %1778 = vmatmul.f32.gmra.mxu0 %v4062_v7  ;;  %v4065_v35 = vld [vmem:[#allocation16_spill] sm:$0xff] }
 0x1d1   : > { %v1100_v14 = vpop.f32.mrf.mxu2  ;;  %1393 = vmatmul.f32.gmra.mxu1 %v4053_v6 }
 0x1d2   : > { %v1101_v20 = vadd.f32 %v1100_v14, %v988_v59  ;;  %v1213_v56 = vpop.f32.mrf.mxu3 }
 0x1d4   : > { %v1214_v52 = vadd.f32 %v1213_v56, %v1101_v20 }
 0x1d5   : > { %v1329_v5 = vpop.f32.mrf.mxu0 }
 0x1d6   : > { %v3634_v31 = vadd.f32 %v1326_v48, %v1214_v52  ;;  %1555 = vmatmul.f32.gmra.mxu2 %v2412_v22  ;;  %v993_v47 = vpop.f32.mrf.mxu1  ;;  %v2414_v48 = vld [vmem:[#allocation2 + $0x14f] sm:$0xff] }
 0x1d7   : > { %1668 = vmatmul.f32.gmra.mxu3 %v2413_v10  ;;  %v2415_v52 = vld [vmem:[#allocation2 + $0x150] sm:$0xff] }
 0x1d8   : > { %4063 = vst [vmem:[#allocation20_spill] sm:$0xff] %v3634_v31  ;;  %1781 = vmatmul.f32.gmra.mxu0 %v4065_v35  ;;  %v4067_v22 = vld [vmem:[#allocation15_spill] sm:$0xff] }
 0x1d9   : > { %v1103_v34 = vpop.f32.mrf.mxu2  ;;  %1396 = vmatmul.f32.gmra.mxu1 %v4056_v9  ;;  %v994_v10 = vadd.f32 %v993_v47, %v4067_v22  ;;  %v4068_v31 = vld [vmem:[#allocation19_spill] sm:$0xff] }
 0x1da   : > { %v1104_v30 = vadd.f32 %v1103_v34, %v991_v60  ;;  %v1216_v6 = vpop.f32.mrf.mxu3 }
 0x1dc   : > { %v1217_v59 = vadd.f32 %v1216_v6, %v1104_v30 }
 0x1dd   : > { %v1332_v14 = vpop.f32.mrf.mxu0 }
 0x1de   : > { %v3639_v20 = vadd.f32 %v1329_v5, %v1217_v59  ;;  %1558 = vmatmul.f32.gmra.mxu2 %v2414_v48  ;;  %v996_v56 = vpop.f32.mrf.mxu1  ;;  %v2416_v5 = vld [vmem:[#allocation2 + $0x157] sm:$0xff]  ;;  %v4069_v48 = vld [vmem:[#allocation18_spill] sm:$0xff] }
 0x1df   : > { %1671 = vmatmul.f32.gmra.mxu3 %v2415_v52  ;;  %v2417_v59 = vld [vmem:[#allocation2 + $0x158] sm:$0xff]  ;;  %v997_v52 = vadd.f32 %v996_v56, %v4069_v48 }
 0x1e0   : > { %4066 = vst [vmem:[#allocation6_spill] sm:$0xff] %v3639_v20  ;;  %1784 = vmatmul.f32.gmra.mxu0 %v4068_v31  ;;  %v4070_v20 = vld [vmem:[#allocation22_spill] sm:$0xff] }
 0x1e1   : > { %v1106_v15 = vpop.f32.mrf.mxu2  ;;  %1399 = vmatmul.f32.gmra.mxu1 %v4059_v32 }
 0x1e2   : > { %v1107_v28 = vadd.f32 %v1106_v15, %v994_v10  ;;  %v1219_v9 = vpop.f32.mrf.mxu3 }
 0x1e4   : > { %v1220_v60 = vadd.f32 %v1219_v9, %v1107_v28 }
 0x1e5   : > { %v1335_v34 = vpop.f32.mrf.mxu0 }
 0x1e6   : > { %v3644_v30 = vadd.f32 %v1332_v14, %v1220_v60  ;;  %1561 = vmatmul.f32.gmra.mxu2 %v2416_v5  ;;  %v999_v6 = vpop.f32.mrf.mxu1  ;;  %v2418_v14 = vld [vmem:[#allocation2 + $0x177] sm:$0xff]  ;;  %v4071_v60 = vld [vmem:[#allocation21_spill] sm:$0xff] }
 0x1e7   : > { %1674 = vmatmul.f32.gmra.mxu3 %v2417_v59  ;;  %v1000_v5 = vadd.f32 %v999_v6, %v4071_v60  ;;  %v4072_v59 = vld [vmem:[#allocation25_spill] sm:$0xff] }
 0x1e8   : > { %1787 = vmatmul.f32.gmra.mxu0 %v4070_v20 }
 0x1e9   : > { %v1109_v47 = vpop.f32.mrf.mxu2  ;;  %1402 = vmatmul.f32.gmra.mxu1 %v4062_v7 }
 0x1ea   : > { %v1110_v22 = vadd.f32 %v1109_v47, %v997_v52  ;;  %v1222_v32 = vpop.f32.mrf.mxu3 }
 0x1ec   : > { %v1223_v10 = vadd.f32 %v1222_v32, %v1110_v22 }
 0x1ed   : > { %v1338_v15 = vpop.f32.mrf.mxu0 }
 0x1ee   : > { %v3649_v28 = vadd.f32 %v1335_v34, %v1223_v10  ;;  %1564 = vmatmul.f32.gmra.mxu2 %v2418_v14  ;;  %v1002_v9 = vpop.f32.mrf.mxu1  ;;  %v2419_v34 = vld [vmem:[#allocation2 + $0x17f] sm:$0xff] }
 0x1ef   : > { %1677 = vmatmul.f32.gmra.mxu3 %v3328_v13  ;;  %v4073_v10 = vld [vmem:[#allocation24_spill] sm:$0xff] }
 0x1f0   : > { %1790 = vmatmul.f32.gmra.mxu0 %v4072_v59  ;;  %v1003_v13 = vadd.f32 %v1002_v9, %v4073_v10 }
 0x1f1   : > { %v1112_v56 = vpop.f32.mrf.mxu2  ;;  %1405 = vmatmul.f32.gmra.mxu1 %v4065_v35 }
 0x1f2   : > { %v1113_v48 = vadd.f32 %v1112_v56, %v1000_v5  ;;  %v1225_v7 = vpop.f32.mrf.mxu3 }
 0x1f4   : > { %v1226_v52 = vadd.f32 %v1225_v7, %v1113_v48  ;;  %v2421_v7 = vld [vmem:[#allocation2 + $0x1a0] sm:$0xff] }
 0x1f5   : > { %v1341_v47 = vpop.f32.mrf.mxu0 }
 0x1f6   : > { %v3655_v22 = vadd.f32 %v1338_v15, %v1226_v52  ;;  %1567 = vmatmul.f32.gmra.mxu2 %v2419_v34  ;;  %v1361_v32 = vpop.f32.mrf.mxu1  ;;  %v2420_v15 = vld [vmem:[#allocation2 + $0x19f] sm:$0xff] }
 0x1f7   : > { %1680 = vmatmul.f32.gmra.mxu3 %v3346_v18 }
 0x1f8   : > { %1793 = vmatmul.f32.gmra.mxu0 %v3358_v42 }
 0x1f9   : > { %v1115_v6 = vpop.f32.mrf.mxu2  ;;  %1408 = vmatmul.f32.gmra.mxu1 %v4068_v31  ;;  %v1362_v31 = vadd.f32 %v1361_v32, %v3360_v21 }
 0x1fa   : > { %v1116_v14 = vadd.f32 %v1115_v6, %v1003_v13  ;;  %v1228_v35 = vpop.f32.mrf.mxu3 }
 0x1fc   : > { %v1229_v60 = vadd.f32 %v1228_v35, %v1116_v14  ;;  %v2423_v14 = vld [vmem:[#allocation2 + $0x1a8] sm:$0xff] }
 0x1fd   : > { %v1749_v5 = vpop.f32.mrf.mxu0 }
 0x1fe   : > { %v3661_v56 = vadd.f32 %v1341_v47, %v1229_v60  ;;  %1570 = vmatmul.f32.gmra.mxu2 %v2420_v15  ;;  %v1364_v48 = vpop.f32.mrf.mxu1  ;;  %v2422_v47 = vld [vmem:[#allocation2 + $0x1a7] sm:$0xff] }
 0x1ff   : > { %1683 = vmatmul.f32.gmra.mxu3 %v2421_v7  ;;  %v1365_v35 = vadd.f32 %v1364_v48, %v3375_v39  ;;  %v2424_v15 = vld [vmem:[#allocation2 + $0x1c7] sm:$0xff] }
 0x200   : > { %1796 = vmatmul.f32.gmra.mxu0 %v3373_v62 }
 0x201   : > { %v1523_v18 = vpop.f32.mrf.mxu2  ;;  %1411 = vmatmul.f32.gmra.mxu1 %v4070_v20 }
 0x202   : > { %v1636_v9 = vpop.f32.mrf.mxu3 }
 0x203   : > { %v1637_v52 = vadd.f32 %v1636_v9, %v1523_v18  ;;  %v2425_v9 = vld [vmem:[#allocation2 + $0x1c8] sm:$0xff] }
 0x205   : > { %v1750_v34 = vadd.f32 %v1749_v5, %v1637_v52  ;;  %v1752_v10 = vpop.f32.mrf.mxu0 }
 0x206   : > { %1573 = vmatmul.f32.gmra.mxu2 %v2422_v47  ;;  %v1367_v13 = vpop.f32.mrf.mxu1 }
 0x207   : > { %v3673_v6 = vadd.f32 %v1750_v34, %v1362_v31  ;;  %1686 = vmatmul.f32.gmra.mxu3 %v2423_v14  ;;  %v1368_v39 = vadd.f32 %v1367_v13, %v3390_v24 }
 0x208   : > { %1799 = vmatmul.f32.gmra.mxu0 %v3388_v58 }
 0x209   : > { %1877 = vst [vmem:[%s3671_s20] sm:$0xff] %v3673_v6  ;;  %v1526_v21 = vpop.f32.mrf.mxu2  ;;  %1414 = vmatmul.f32.gmra.mxu1 %v4072_v59 }
 0x20a   : > { %v1639_v20 = vpop.f32.mrf.mxu3 }
 0x20b   : > { %v1640_v32 = vadd.f32 %v1639_v20, %v1526_v21  ;;  %v2427_v21 = vld [vmem:[#allocation2 + $0x1d0] sm:$0xff] }
 0x20d   : > { %v1753_v60 = vadd.f32 %v1752_v10, %v1640_v32  ;;  %v1755_v5 = vpop.f32.mrf.mxu0  ;;  %v2426_v10 = vld [vmem:[#allocation2 + $0x1cf] sm:$0xff] }
 0x20e   : > { %1576 = vmatmul.f32.gmra.mxu2 %v2424_v15  ;;  %v1370_v7 = vpop.f32.mrf.mxu1 }
 0x20f   : > { %v3680_v18 = vadd.f32 %v1753_v60, %v1365_v35  ;;  %1689 = vmatmul.f32.gmra.mxu3 %v2425_v9  ;;  %v1371_v24 = vadd.f32 %v1370_v7, %v3405_v12  ;;  %v2428_v60 = vld [vmem:[#allocation2 + $0x1ef] sm:$0xff] }
 0x210   : > { %1802 = vmatmul.f32.gmra.mxu0 %v3403_v27  ;;  %v2429_v9 = vld [vmem:[#allocation2 + $0x1f0] sm:$0xff] }
 0x211   : > { %1878 = vst [vmem:[%s3671_s20 + $0x8] sm:$0xff] %v3680_v18  ;;  %v1529_v52 = vpop.f32.mrf.mxu2  ;;  %1417 = vmatmul.f32.gmra.mxu1 %v3358_v42 }
 0x212   : > { %v1642_v59 = vpop.f32.mrf.mxu3 }
 0x213   : > { %v1643_v31 = vadd.f32 %v1642_v59, %v1529_v52 }
 0x215   : > { %v1756_v48 = vadd.f32 %v1755_v5, %v1643_v31  ;;  %v1758_v34 = vpop.f32.mrf.mxu0 }
 0x216   : > { %1579 = vmatmul.f32.gmra.mxu2 %v2426_v10  ;;  %v1373_v47 = vpop.f32.mrf.mxu1  ;;  %v2431_v10 = vld [vmem:[#allocation2 + $0x1f8] sm:$0xff] }
 0x217   : > { %v3687_v14 = vadd.f32 %v1756_v48, %v1368_v39  ;;  %1692 = vmatmul.f32.gmra.mxu3 %v2427_v21  ;;  %v1374_v12 = vadd.f32 %v1373_v47, %v3420_v40  ;;  %v2430_v39 = vld [vmem:[#allocation2 + $0x1f7] sm:$0xff] }
 0x218   : > { %1805 = vmatmul.f32.gmra.mxu0 %v3418_v4 }
 0x219   : > { %1879 = vst [vmem:[%s3671_s20 + $0x10] sm:$0xff] %v3687_v14  ;;  %v1532_v20 = vpop.f32.mrf.mxu2  ;;  %1420 = vmatmul.f32.gmra.mxu1 %v3373_v62 }
 0x21a   : > { %v1645_v42 = vpop.f32.mrf.mxu3 }
 0x21b   : > { %v1646_v32 = vadd.f32 %v1645_v42, %v1532_v20 }
 0x21d   : > { %v1759_v13 = vadd.f32 %v1758_v34, %v1646_v32  ;;  %v1761_v35 = vpop.f32.mrf.mxu0 }
 0x21e   : > { %1582 = vmatmul.f32.gmra.mxu2 %v2428_v60  ;;  %v1376_v5 = vpop.f32.mrf.mxu1 }
 0x21f   : > { %v3694_v15 = vadd.f32 %v1759_v13, %v1371_v24  ;;  %1695 = vmatmul.f32.gmra.mxu3 %v2429_v9  ;;  %v1377_v40 = vadd.f32 %v1376_v5, %v3435_v61 }
 0x220   : > { %1808 = vmatmul.f32.gmra.mxu0 %v3433_v50 }
 0x221   : > { %1880 = vst [vmem:[%s3671_s20 + $0x18] sm:$0xff] %v3694_v15  ;;  %v1535_v52 = vpop.f32.mrf.mxu2  ;;  %1423 = vmatmul.f32.gmra.mxu1 %v3388_v58 }
 0x222   : > { %v1648_v62 = vpop.f32.mrf.mxu3 }
 0x223   : > { %v1649_v59 = vadd.f32 %v1648_v62, %v1535_v52 }
 0x225   : > { %v1762_v7 = vadd.f32 %v1761_v35, %v1649_v59  ;;  %v1764_v31 = vpop.f32.mrf.mxu0 }
 0x226   : > { %1585 = vmatmul.f32.gmra.mxu2 %v2430_v39  ;;  %v1379_v48 = vpop.f32.mrf.mxu1 }
 0x227   : > { %v3701_v34 = vadd.f32 %v1762_v7, %v1374_v12  ;;  %1698 = vmatmul.f32.gmra.mxu3 %v2431_v10  ;;  %v1380_v61 = vadd.f32 %v1379_v48, %v3450_v11 }
 0x228   : > { %1811 = vmatmul.f32.gmra.mxu0 %v3448_v16 }
 0x229   : > { %1881 = vst [vmem:[%s3671_s20 + $0x20] sm:$0xff] %v3701_v34  ;;  %v1538_v21 = vpop.f32.mrf.mxu2  ;;  %1426 = vmatmul.f32.gmra.mxu1 %v3403_v27 }
 0x22a   : > { %v1651_v58 = vpop.f32.mrf.mxu3 }
 0x22b   : > { %v1652_v20 = vadd.f32 %v1651_v58, %v1538_v21 }
 0x22d   : > { %v1765_v47 = vadd.f32 %v1764_v31, %v1652_v20  ;;  %v1767_v42 = vpop.f32.mrf.mxu0 }
 0x22e   : > { %1588 = vmatmul.f32.gmra.mxu2 %v3506_v41  ;;  %v1382_v32 = vpop.f32.mrf.mxu1 }
 0x22f   : > { %v3709_v24 = vadd.f32 %v1765_v47, %v1377_v40  ;;  %1701 = vmatmul.f32.gmra.mxu3 %v3453_v37  ;;  %v1383_v11 = vadd.f32 %v1382_v32, %v3467_v43  ;;  %v2433_v47 = vld [vmem:[#allocation2 + $0x267] sm:$0xff] }
 0x230   : > { %1814 = vmatmul.f32.gmra.mxu0 %v3465_v33 }
 0x231   : > { %1882 = vst [vmem:[%s3671_s20 + $0x28] sm:$0xff] %v3709_v24  ;;  %v1541_v13 = vpop.f32.mrf.mxu2  ;;  %1429 = vmatmul.f32.gmra.mxu1 %v3418_v4 }
 0x232   : > { %v1654_v27 = vpop.f32.mrf.mxu3 }
 0x233   : > { %v1655_v35 = vadd.f32 %v1654_v27, %v1541_v13  ;;  %v4075_v27 = vld [vmem:[#allocation27_spill] sm:$0xff] }
 0x235   : > { %v1768_v60 = vadd.f32 %v1767_v42, %v1655_v35  ;;  %v1770_v5 = vpop.f32.mrf.mxu0 }
 0x236   : > { %1591 = vmatmul.f32.gmra.mxu2 %v3525_v38  ;;  %v1385_v41 = vpop.f32.mrf.mxu1 }
 0x237   : > { %v3718_v9 = vadd.f32 %v1768_v60, %v1380_v61  ;;  %1704 = vmatmul.f32.gmra.mxu3 %v3470_v53  ;;  %v1386_v43 = vadd.f32 %v1385_v41, %v3484_v25  ;;  %v4074_v25 = vld [vmem:[#allocation26_spill] sm:$0xff] }
 0x238   : > { %1817 = vmatmul.f32.gmra.mxu0 %v3482_v51 }
 0x239   : > { %1883 = vst [vmem:[%s3671_s20 + $0x30] sm:$0xff] %v3718_v9  ;;  %v1544_v37 = vpop.f32.mrf.mxu2  ;;  %1432 = vmatmul.f32.gmra.mxu1 %v3433_v50 }
 0x23a   : > { %v1657_v4 = vpop.f32.mrf.mxu3 }
 0x23b   : > { %v1658_v52 = vadd.f32 %v1657_v4, %v1544_v37 }
 0x23d   : > { %v1771_v62 = vadd.f32 %v1770_v5, %v1658_v52  ;;  %v1773_v59 = vpop.f32.mrf.mxu0  ;;  %v2434_v5 = vld [vmem:[#allocation2 + $0x26f] sm:$0xff]  ;;  %v4076_v52 = vld [vmem:[#allocation28_spill] sm:$0xff] }
 0x23e   : > { %1594 = vmatmul.f32.gmra.mxu2 %v3544_v29  ;;  %v1388_v38 = vpop.f32.mrf.mxu1  ;;  %v2432_v29 = vld [vmem:[#allocation2 + $0x247] sm:$0xff] }
 0x23f   : > { %v3727_v12 = vadd.f32 %v1771_v62, %v1383_v11  ;;  %1707 = vmatmul.f32.gmra.mxu3 %v3487_v49  ;;  %v1389_v58 = vadd.f32 %v1388_v38, %v4074_v25  ;;  %v2435_v38 = vld [vmem:[#allocation2 + $0x28f] sm:$0xff]  ;;  %v2437_v25 = vld [vmem:[#allocation2 + $0x298] sm:$0xff] }
 0x240   : > { %1820 = vmatmul.f32.gmra.mxu0 %v3499_v8 }
 0x241   : > { %1884 = vst [vmem:[%s3671_s20 + $0x38] sm:$0xff] %v3727_v12  ;;  %v1547_v53 = vpop.f32.mrf.mxu2  ;;  %1435 = vmatmul.f32.gmra.mxu1 %v3448_v16 }
 0x242   : > { %v1660_v50 = vpop.f32.mrf.mxu3 }
 0x243   : > { %v1661_v7 = vadd.f32 %v1660_v50, %v1547_v53 }
 0x245   : > { %v1774_v31 = vadd.f32 %v1773_v59, %v1661_v7  ;;  %v1776_v39 = vpop.f32.mrf.mxu0 }
 0x246   : > { %1597 = vmatmul.f32.gmra.mxu2 %v2432_v29  ;;  %v1391_v48 = vpop.f32.mrf.mxu1 }
 0x247   : > { %v3735_v10 = vadd.f32 %v1774_v31, %v1386_v43  ;;  %1710 = vmatmul.f32.gmra.mxu3 %v3504_v54  ;;  %v1392_v35 = vadd.f32 %v1391_v48, %v4075_v27  ;;  %v4078_v31 = vld [vmem:[#allocation29_spill] sm:$0xff]  ;;  %v2438_v27 = vld [vmem:[#allocation2 + $0xd0] sm:$0xff] }
 0x248   : > { %1823 = vmatmul.f32.gmra.mxu0 %v3518_v1 }
 0x249   : > { %1885 = vst [vmem:[%s3671_s20 + $0x40] sm:$0xff] %v3735_v10  ;;  %v1550_v49 = vpop.f32.mrf.mxu2  ;;  %1438 = vmatmul.f32.gmra.mxu1 %v3465_v33 }
 0x24a   : > { %v1663_v16 = vpop.f32.mrf.mxu3 }
 0x24b   : > { %v1664_v21 = vadd.f32 %v1663_v16, %v1550_v49  ;;  %v2436_v49 = vld [vmem:[#allocation2 + $0x297] sm:$0xff] }
 0x24d   : > { %v1777_v20 = vadd.f32 %v1776_v39, %v1664_v21  ;;  %v1779_v40 = vpop.f32.mrf.mxu0 }
 0x24e   : > { %1600 = vmatmul.f32.gmra.mxu2 %v2433_v47  ;;  %v1394_v42 = vpop.f32.mrf.mxu1 }
 0x24f   : > { %v3743_v32 = vadd.f32 %v1777_v20, %v1389_v58  ;;  %1713 = vmatmul.f32.gmra.mxu3 %v3523_v17  ;;  %v1395_v11 = vadd.f32 %v1394_v42, %v4076_v52  ;;  %v608_v20 = vld [vmem:[#allocation2 + $0x2b7] sm:$0xff] }
 0x250   : > { %1826 = vmatmul.f32.gmra.mxu0 %v3537_v0 }
 0x251   : > { %1886 = vst [vmem:[%s3671_s20 + $0x48] sm:$0xff] %v3743_v32  ;;  %v1553_v54 = vpop.f32.mrf.mxu2  ;;  %1441 = vmatmul.f32.gmra.mxu1 %v3482_v51 }
 0x252   : > { %v1666_v33 = vpop.f32.mrf.mxu3 }
 0x253   : > { %v1667_v13 = vadd.f32 %v1666_v33, %v1553_v54  ;;  %v680_v54 = vld [vmem:[#allocation2 + $0x2b9] sm:$0xff] }
 0x255   : > { %v1780_v61 = vadd.f32 %v1779_v40, %v1667_v13  ;;  %v1782_v60 = vpop.f32.mrf.mxu0 }
 0x256   : > { %1603 = vmatmul.f32.gmra.mxu2 %v2434_v5  ;;  %v1397_v41 = vpop.f32.mrf.mxu1 }
 0x257   : > { %v3751_v37 = vadd.f32 %v1780_v61, %v1392_v35  ;;  %1716 = vmatmul.f32.gmra.mxu3 %v3542_v57  ;;  %v4077_v57 = vld [vmem:[#allocation30_spill] sm:$0xff]  ;;  %v1398_v39 = vadd.f32 %v1397_v41, %v4078_v31  ;;  %v609_v61 = vld [vmem:[#allocation2 + $0x2bf] sm:$0xff] }
 0x258   : > { %1829 = vmatmul.f32.gmra.mxu0 %v3550_v3 }
 0x259   : > { %1887 = vst [vmem:[%s3671_s20 + $0x50] sm:$0xff] %v3751_v37  ;;  %v1556_v17 = vpop.f32.mrf.mxu2  ;;  %1444 = vmatmul.f32.gmra.mxu1 %v3499_v8 }
 0x25a   : > { %v1669_v51 = vpop.f32.mrf.mxu3 }
 0x25b   : > { %v1670_v4 = vadd.f32 %v1669_v51, %v1556_v17  ;;  %v681_v17 = vld [vmem:[#allocation2 + $0x2c1] sm:$0xff] }
 0x25d   : > { %v1783_v62 = vadd.f32 %v1782_v60, %v1670_v4  ;;  %v1785_v59 = vpop.f32.mrf.mxu0 }
 0x25e   : > { %1606 = vmatmul.f32.gmra.mxu2 %v2435_v38  ;;  %v1400_v53 = vpop.f32.mrf.mxu1 }
 0x25f   : > { %v3759_v50 = vadd.f32 %v1783_v62, %v1395_v11  ;;  %1719 = vmatmul.f32.gmra.mxu3 %v4077_v57  ;;  %v1401_v40 = vadd.f32 %v1400_v53, %v3563_v45  ;;  %v4079_v45 = vld [vmem:[#allocation31_spill] sm:$0xff] }
 0x260   : > { %1832 = vmatmul.f32.gmra.mxu0 %v3561_v63 }
 0x261   : > { %1888 = vst [vmem:[%s3671_s20 + $0x58] sm:$0xff] %v3759_v50  ;;  %v1559_v7 = vpop.f32.mrf.mxu2  ;;  %1447 = vmatmul.f32.gmra.mxu1 %v3518_v1 }
 0x262   : > { %v1672_v8 = vpop.f32.mrf.mxu3 }
 0x263   : > { %v1673_v43 = vadd.f32 %v1672_v8, %v1559_v7 }
 0x265   : > { %v1786_v29 = vadd.f32 %v1785_v59, %v1673_v43  ;;  %v1788_v48 = vpop.f32.mrf.mxu0 }
 0x266   : > { %1609 = vmatmul.f32.gmra.mxu2 %v2436_v49  ;;  %v1403_v16 = vpop.f32.mrf.mxu1 }
 0x267   : > { %v3767_v21 = vadd.f32 %v1786_v29, %v1398_v39  ;;  %1722 = vmatmul.f32.gmra.mxu3 %v2437_v25  ;;  %v1404_v60 = vadd.f32 %v1403_v16, %v4079_v45 }
 0x268   : > { %1835 = vmatmul.f32.gmra.mxu0 %v3571_v2 }
 0x269   : > { %1889 = vst [vmem:[%s3671_s20 + $0x60] sm:$0xff] %v3767_v21  ;;  %v1562_v63 = vpop.f32.mrf.mxu2  ;;  %1450 = vmatmul.f32.gmra.mxu1 %v3537_v0 }
 0x26a   : > { %v1675_v1 = vpop.f32.mrf.mxu3 }
 0x26b   : > { %v1676_v58 = vadd.f32 %v1675_v1, %v1562_v63 }
 0x26d   : > { %v1789_v47 = vadd.f32 %v1788_v48, %v1676_v58  ;;  %v1791_v42 = vpop.f32.mrf.mxu0 }
 0x26e   : > { %1612 = vmatmul.f32.gmra.mxu2 %v608_v20  ;;  %v1406_v33 = vpop.f32.mrf.mxu1 }
 0x26f   : > { %v3774_v13 = vadd.f32 %v1789_v47, %v1401_v40  ;;  %1725 = vmatmul.f32.gmra.mxu3 %v2438_v27  ;;  %v1407_v62 = vadd.f32 %v1406_v33, %v3579_v36 }
 0x270   : > { %1838 = vmatmul.f32.gmra.mxu0 %v680_v54 }
 0x271   : > { %1890 = vst [vmem:[%s3671_s20 + $0x68] sm:$0xff] %v3774_v13  ;;  %v1565_v2 = vpop.f32.mrf.mxu2  ;;  %1453 = vmatmul.f32.gmra.mxu1 %v3550_v3 }
 0x272   : > { %v1678_v0 = vpop.f32.mrf.mxu3 }
 0x273   : > { %v1679_v35 = vadd.f32 %v1678_v0, %v1565_v2 }
 0x275   : > { %v1792_v5 = vadd.f32 %v1791_v42, %v1679_v35  ;;  %v1794_v41 = vpop.f32.mrf.mxu0 }
 0x276   : > { %1615 = vmatmul.f32.gmra.mxu2 %v609_v61  ;;  %v1409_v51 = vpop.f32.mrf.mxu1 }
 0x277   : > { %v3780_v4 = vadd.f32 %v1792_v5, %v1404_v60  ;;  %1728 = vmatmul.f32.gmra.mxu3 %v2438_v27  ;;  %v1410_v31 = vadd.f32 %v1409_v51, %v3583_v46 }
 0x278   : > { %1841 = vmatmul.f32.gmra.mxu0 %v681_v17 }
 0x279   : > { %1891 = vst [vmem:[%s3671_s20 + $0x70] sm:$0xff] %v3780_v4  ;;  %v1568_v52 = vpop.f32.mrf.mxu2 }
 0x27a   : > { %v1681_v11 = vpop.f32.mrf.mxu3 }
 0x27b   : > { %v1682_v3 = vadd.f32 %v1681_v11, %v1568_v52 }
 0x27d   : > { %v1795_v59 = vadd.f32 %v1794_v41, %v1682_v3  ;;  %v1797_v38 = vpop.f32.mrf.mxu0 }
 0x27e   : > { %v1412_v53 = vpop.f32.mrf.mxu1 }
 0x27f   : > { %v3785_v57 = vadd.f32 %v1795_v59, %v1407_v62  ;;  %v1413_v63 = vadd.f32 %v1412_v53, %v3588_v55 }
 0x281   : > { %1892 = vst [vmem:[%s3671_s20 + $0x78] sm:$0xff] %v3785_v57  ;;  %v1571_v7 = vpop.f32.mrf.mxu2 }
 0x282   : > { %v1684_v8 = vpop.f32.mrf.mxu3 }
 0x283   : > { %v1685_v43 = vadd.f32 %v1684_v8, %v1571_v7  ;;  %v1909_v8 = vadd.f32 %v3680_v18, %v3673_v6 }
 0x285   : > { %v1798_v39 = vadd.f32 %v1797_v38, %v1685_v43  ;;  %v1800_v29 = vpop.f32.mrf.mxu0 }
 0x286   : > { %v1415_v48 = vpop.f32.mrf.mxu1 }
 0x287   : > { %v3790_v49 = vadd.f32 %v1798_v39, %v1410_v31  ;;  %v1416_v54 = vadd.f32 %v1415_v48, %v3593_v44 }
 0x289   : > { %1893 = vst [vmem:[%s3671_s20 + $0x80] sm:$0xff] %v3790_v49  ;;  %v1574_v36 = vpop.f32.mrf.mxu2 }
 0x28a   : > { %v1687_v16 = vpop.f32.mrf.mxu3 }
 0x28b   : > { %v1688_v25 = vadd.f32 %v1687_v16, %v1574_v36 }
 0x28d   : > { %v1801_v1 = vadd.f32 %v1800_v29, %v1688_v25  ;;  %v1803_v58 = vpop.f32.mrf.mxu0 }
 0x28e   : > { %v1418_v20 = vpop.f32.mrf.mxu1 }
 0x28f   : > { %v3795_v40 = vadd.f32 %v1801_v1, %v1413_v63  ;;  %v1419_v45 = vadd.f32 %v1418_v20, %v3598_v19 }
 0x291   : > { %1894 = vst [vmem:[%s3671_s20 + $0x88] sm:$0xff] %v3795_v40  ;;  %v1577_v46 = vpop.f32.mrf.mxu2 }
 0x292   : > { %v1690_v47 = vpop.f32.mrf.mxu3 }
 0x293   : > { %v1691_v42 = vadd.f32 %v1690_v47, %v1577_v46 }
 0x295   : > { %v1804_v33 = vadd.f32 %v1803_v58, %v1691_v42  ;;  %v1806_v27 = vpop.f32.mrf.mxu0 }
 0x296   : > { %v1421_v2 = vpop.f32.mrf.mxu1 }
 0x297   : > { %v3800_v0 = vadd.f32 %v1804_v33, %v1416_v54  ;;  %v1422_v11 = vadd.f32 %v1421_v2, %v3603_v26  ;;  %v1910_v26 = vadd.f32 %v1909_v8, %v3687_v14  ;;  %v4082_v8 = vld [vmem:[#allocation4_spill] sm:$0xff] }
 0x299   : > { %1895 = vst [vmem:[%s3671_s20 + $0x90] sm:$0xff] %v3800_v0  ;;  %v1580_v55 = vpop.f32.mrf.mxu2  ;;  %v1911_v36 = vadd.f32 %v1910_v26, %v3694_v15 }
 0x29a   : > { %v1693_v35 = vpop.f32.mrf.mxu3 }
 0x29b   : > { %v1694_v61 = vadd.f32 %v1693_v35, %v1580_v55  ;;  %v1912_v63 = vadd.f32 %v1911_v36, %v3701_v34 }
 0x29d   : > { %v1807_v60 = vadd.f32 %v1806_v27, %v1694_v61  ;;  %v1809_v5 = vpop.f32.mrf.mxu0  ;;  %v1913_v58 = vadd.f32 %v1912_v63, %v3709_v24 }
 0x29e   : > { %v1424_v41 = vpop.f32.mrf.mxu1 }
 0x29f   : > { %v3805_v17 = vadd.f32 %v1807_v60, %v1419_v45  ;;  %v1425_v43 = vadd.f32 %v1424_v41, %v3608_v23  ;;  %v4080_v23 = vld [vmem:[#allocation3_spill] sm:$0xff]  ;;  %v1914_v54 = vadd.f32 %v1913_v58, %v3718_v9  ;;  %v4081_v60 = vld [vmem:[#allocation17_spill] sm:$0xff] }
 0x2a1   : > { %1896 = vst [vmem:[%s3671_s20 + $0x98] sm:$0xff] %v3805_v17  ;;  %v1583_v44 = vpop.f32.mrf.mxu2  ;;  %v1915_v27 = vadd.f32 %v1914_v54, %v3727_v12 }
 0x2a2   : > { %v1696_v51 = vpop.f32.mrf.mxu3 }
 0x2a3   : > { %v1697_v52 = vadd.f32 %v1696_v51, %v1583_v44  ;;  %v1916_v35 = vadd.f32 %v1915_v27, %v3735_v10 }
 0x2a5   : > { %v1810_v3 = vadd.f32 %v1809_v5, %v1697_v52  ;;  %v1812_v62 = vpop.f32.mrf.mxu0  ;;  %v1917_v45 = vadd.f32 %v1916_v35, %v3743_v32 }
 0x2a6   : > { %v1427_v59 = vpop.f32.mrf.mxu1 }
 0x2a7   : > { %v3810_v38 = vadd.f32 %v1810_v3, %v1422_v11  ;;  %v1428_v20 = vadd.f32 %v1427_v59, %v4080_v23  ;;  %v1918_v52 = vadd.f32 %v1917_v45, %v3751_v37 }
 0x2a9   : > { %1897 = vst [vmem:[%s3671_s20 + $0xa0] sm:$0xff] %v3810_v38  ;;  %v1586_v19 = vpop.f32.mrf.mxu2  ;;  %v1919_v3 = vadd.f32 %v1918_v52, %v3759_v50 }
 0x2aa   : > { %v1699_v53 = vpop.f32.mrf.mxu3 }
 0x2ab   : > { %v1700_v7 = vadd.f32 %v1699_v53, %v1586_v19  ;;  %v1920_v19 = vadd.f32 %v1919_v3, %v3767_v21 }
 0x2ad   : > { %v1813_v31 = vadd.f32 %v1812_v62, %v1700_v7  ;;  %v1815_v39 = vpop.f32.mrf.mxu0  ;;  %v1921_v7 = vadd.f32 %v1920_v19, %v3774_v13 }
 0x2ae   : > { %v1430_v29 = vpop.f32.mrf.mxu1 }
 0x2af   : > { %v3818_v48 = vadd.f32 %v1813_v31, %v1425_v43  ;;  %v1431_v5 = vadd.f32 %v1430_v29, %v4081_v60  ;;  %v1922_v29 = vadd.f32 %v1921_v7, %v3780_v4 }
 0x2b1   : > { %1898 = vst [vmem:[%s3671_s20 + $0xa8] sm:$0xff] %v3818_v48  ;;  %v1589_v16 = vpop.f32.mrf.mxu2 }
 0x2b2   : > { %v1702_v25 = vpop.f32.mrf.mxu3 }
 0x2b3   : > { %v1703_v1 = vadd.f32 %v1702_v25, %v1589_v16  ;;  %v1923_v16 = vadd.f32 %v1922_v29, %v3785_v57 }
 0x2b5   : > { %v1816_v46 = vadd.f32 %v1815_v39, %v1703_v1  ;;  %v1818_v47 = vpop.f32.mrf.mxu0  ;;  %v1924_v1 = vadd.f32 %v1923_v16, %v3790_v49 }
 0x2b6   : > { %v1433_v42 = vpop.f32.mrf.mxu1 }
 0x2b7   : > { %v3827_v33 = vadd.f32 %v1816_v46, %v1428_v20  ;;  %v1434_v43 = vadd.f32 %v1433_v42, %v4082_v8  ;;  %v1925_v23 = vadd.f32 %v1924_v1, %v3795_v40  ;;  %v4083_v20 = vld [vmem:[#allocation5_spill] sm:$0xff] }
 0x2b9   : > { %1899 = vst [vmem:[%s3671_s20 + $0xb0] sm:$0xff] %v3827_v33  ;;  %v1592_v2 = vpop.f32.mrf.mxu2  ;;  %v1926_v54 = vadd.f32 %v1925_v23, %v3800_v0 }
 0x2ba   : > { %v1705_v55 = vpop.f32.mrf.mxu3 }
 0x2bb   : > { %v1706_v61 = vadd.f32 %v1705_v55, %v1592_v2  ;;  %v1927_v2 = vadd.f32 %v1926_v54, %v3805_v17 }
 0x2bd   : > { %v1819_v41 = vadd.f32 %v1818_v47, %v1706_v61  ;;  %v1821_v44 = vpop.f32.mrf.mxu0  ;;  %v1928_v45 = vadd.f32 %v1927_v2, %v3810_v38 }
 0x2be   : > { %v1436_v51 = vpop.f32.mrf.mxu1 }
 0x2bf   : > { %v3836_v11 = vadd.f32 %v1819_v41, %v1431_v5  ;;  %v1437_v46 = vadd.f32 %v1436_v51, %v4083_v20  ;;  %v1929_v5 = vadd.f32 %v1928_v45, %v3818_v48  ;;  %v4084_v41 = vld [vmem:[#allocation20_spill] sm:$0xff] }
 0x2c1   : > { %1900 = vst [vmem:[%s3671_s20 + $0xb8] sm:$0xff] %v3836_v11  ;;  %v1595_v62 = vpop.f32.mrf.mxu2  ;;  %v1930_v3 = vadd.f32 %v1929_v5, %v3827_v33 }
 0x2c2   : > { %v1708_v59 = vpop.f32.mrf.mxu3 }
 0x2c3   : > { %v1709_v53 = vadd.f32 %v1708_v59, %v1595_v62  ;;  %v1931_v59 = vadd.f32 %v1930_v3, %v3836_v11 }
 0x2c5   : > { %v1822_v31 = vadd.f32 %v1821_v44, %v1709_v53  ;;  %v1824_v39 = vpop.f32.mrf.mxu0 }
 0x2c6   : > { %v1439_v36 = vpop.f32.mrf.mxu1 }
 0x2c7   : > { %v3845_v26 = vadd.f32 %v1822_v31, %v1434_v43  ;;  %v1440_v44 = vadd.f32 %v1439_v36, %v4084_v41 }
 0x2c9   : > { %1901 = vst [vmem:[%s3671_s20 + $0xc0] sm:$0xff] %v3845_v26  ;;  %v1598_v25 = vpop.f32.mrf.mxu2  ;;  %v1932_v7 = vadd.f32 %v1931_v59, %v3845_v26 }
 0x2ca   : > { %v1711_v63 = vpop.f32.mrf.mxu3 }
 0x2cb   : > { %v1712_v58 = vadd.f32 %v1711_v63, %v1598_v25 }
 0x2cd   : > { %v1825_v47 = vadd.f32 %v1824_v39, %v1712_v58  ;;  %v1827_v42 = vpop.f32.mrf.mxu0  ;;  %v4085_v39 = vld [vmem:[#allocation6_spill] sm:$0xff] }
 0x2ce   : > { %v1442_v35 = vpop.f32.mrf.mxu1 }
 0x2cf   : > { %v3854_v27 = vadd.f32 %v1825_v47, %v1437_v46  ;;  %v1443_v29 = vadd.f32 %v1442_v35, %v4085_v39 }
 0x2d1   : > { %1902 = vst [vmem:[%s3671_s20 + $0xc8] sm:$0xff] %v3854_v27  ;;  %v1601_v55 = vpop.f32.mrf.mxu2  ;;  %v1933_v31 = vadd.f32 %v1932_v7, %v3854_v27 }
 0x2d2   : > { %v1714_v61 = vpop.f32.mrf.mxu3 }
 0x2d3   : > { %v1715_v60 = vadd.f32 %v1714_v61, %v1601_v55 }
 0x2d5   : > { %v1828_v51 = vadd.f32 %v1827_v42, %v1715_v60  ;;  %v1830_v52 = vpop.f32.mrf.mxu0 }
 0x2d6   : > { %v1445_v43 = vpop.f32.mrf.mxu1 }
 0x2d7   : > { %v3863_v62 = vadd.f32 %v1828_v51, %v1440_v44  ;;  %v1446_v46 = vadd.f32 %v1445_v43, %v3644_v30 }
 0x2d9   : > { %1903 = vst [vmem:[%s3671_s20 + $0xd0] sm:$0xff] %v3863_v62  ;;  %v1604_v19 = vpop.f32.mrf.mxu2  ;;  %v1934_v25 = vadd.f32 %v1933_v31, %v3863_v62 }
 0x2da   : > { %v1717_v53 = vpop.f32.mrf.mxu3 }
 0x2db   : > { %v1718_v8 = vadd.f32 %v1717_v53, %v1604_v19 }
 0x2dd   : > { %v1831_v36 = vadd.f32 %v1830_v52, %v1718_v8  ;;  %v1833_v16 = vpop.f32.mrf.mxu0 }
 0x2de   : > { %v1448_v47 = vpop.f32.mrf.mxu1 }
 0x2df   : > { %v1872_v63 = vadd.f32 %v1831_v36, %v1443_v29  ;;  %v1449_v60 = vadd.f32 %v1448_v47, %v3649_v28 }
 0x2e1   : > { %1904 = vst [vmem:[%s3671_s20 + $0xd8] sm:$0xff] %v1872_v63  ;;  %v1935_v1 = vadd.f32 %v1934_v25, %v1872_v63  ;;  %v1607_v58 = vpop.f32.mrf.mxu2 }
 0x2e2   : > { %v1720_v23 = vpop.f32.mrf.mxu3 }
 0x2e3   : > { %v1721_v20 = vadd.f32 %v1720_v23, %v1607_v58 }
 0x2e5   : > { %v1834_v42 = vadd.f32 %v1833_v16, %v1721_v20  ;;  %v1836_v54 = vpop.f32.mrf.mxu0 }
 0x2e6   : > { %v1451_v41 = vpop.f32.mrf.mxu1 }
 0x2e7   : > { %v1873_v2 = vadd.f32 %v1834_v42, %v1446_v46  ;;  %v1452_v19 = vadd.f32 %v1451_v41, %v3655_v22 }
 0x2e9   : > { %1905 = vst [vmem:[%s3671_s20 + $0xe0] sm:$0xff] %v1873_v2  ;;  %v1936_v55 = vadd.f32 %v1935_v1, %v1873_v2  ;;  %v1610_v35 = vpop.f32.mrf.mxu2 }
 0x2ea   : > { %v1723_v61 = vpop.f32.mrf.mxu3 }
 0x2eb   : > { %v1724_v45 = vadd.f32 %v1723_v61, %v1610_v35 }
 0x2ed   : > { %v1837_v5 = vadd.f32 %v1836_v54, %v1724_v45  ;;  %v1839_v51 = vpop.f32.mrf.mxu0 }
 0x2ee   : > { %v1454_v8 = vpop.f32.mrf.mxu1 }
 0x2ef   : > { %v1874_v44 = vadd.f32 %v1837_v5, %v1449_v60  ;;  %v1455_v36 = vadd.f32 %v1454_v8, %v3661_v56 }
 0x2f1   : > { %1906 = vst [vmem:[%s3671_s20 + $0xe8] sm:$0xff] %v1874_v44  ;;  %v1937_v52 = vadd.f32 %v1936_v55, %v1874_v44  ;;  %v1613_v3 = vpop.f32.mrf.mxu2 }
 0x2f2   : > { %v1726_v30 = vpop.f32.mrf.mxu3 }
 0x2f3   : > { %v1727_v59 = vadd.f32 %v1726_v30, %v1613_v3 }
 0x2f5   : > { %v1840_v53 = vadd.f32 %v1839_v51, %v1727_v59  ;;  %v1842_v39 = vpop.f32.mrf.mxu0 }
 0x2f7   : > { %v1875_v7 = vadd.f32 %v1840_v53, %v1452_v19 }
 0x2f9   : > { %1907 = vst [vmem:[%s3671_s20 + $0xf0] sm:$0xff] %v1875_v7  ;;  %v1938_v43 = vadd.f32 %v1937_v52, %v1875_v7  ;;  %v1616_v31 = vpop.f32.mrf.mxu2 }
 0x2fa   : > { %v1729_v28 = vpop.f32.mrf.mxu3 }
 0x2fb   : > { %v1730_v29 = vadd.f32 %v1729_v28, %v1616_v31 }
 0x2fd   : > { %v1843_v16 = vadd.f32 %v1842_v39, %v1730_v29 }
 0x2ff   : > { %v1876_v25 = vadd.f32 %v1843_v16, %v1455_v36 }
 0x301   : > { %1908 = vst [vmem:[%s3671_s20 + $0xf8] sm:$0xff] %v1876_v25  ;;  %v1939_v1 = vadd.f32 %v1938_v43, %v1876_v25 }
 0x303   : > { %v1940_v58 = vrot.slane %v1939_v1, 4 }
 0x305   : > { %v1941_v23 = vadd.f32 %v1940_v58, %v1939_v1 }
 0x307   : > { %v1942_v20 = vrot.slane %v1941_v23, 2 }
 0x309   : > { %v1943_v22 = vadd.f32 %v1942_v20, %v1941_v23 }
 0x30b   : > { %v1944_v46 = vrot.slane %v1943_v22, 1 }
 0x30d   : > { %v1945_v47 = vadd.f32 %v1944_v46, %v1943_v22 }
 0x30f   : > { %1979 = vst [vmem:[%s301_s26] sm:$0x1] %v1945_v47  ;;  %v3885_v42 = vmul.f32 0.00390625, %v1945_v47 }
 0x311   : > { %v3889_v56 = vsub.f32 %v3863_v62, %v3885_v42  ;;  %v3892_v54 = vsub.f32 %v1872_v63, %v3885_v42  ;;  %v3895_v55 = vsub.f32 %v1873_v2, %v3885_v42  ;;  %v3898_v35 = vsub.f32 %v1874_v44, %v3885_v42 }
 0x312   : > { %v3901_v61 = vsub.f32 %v1875_v7, %v3885_v42  ;;  %v3904_v45 = vsub.f32 %v1876_v25, %v3885_v42  ;;  %v1947_v60 = vsub.f32 %v3673_v6, %v3885_v42  ;;  %v1948_v62 = vsub.f32 %v3680_v18, %v3885_v42 }
 0x313   : > { %v1949_v63 = vsub.f32 %v3687_v14, %v3885_v42  ;;  %v1950_v41 = vsub.f32 %v3694_v15, %v3885_v42  ;;  %v1951_v44 = vsub.f32 %v3701_v34, %v3885_v42  ;;  %v1952_v3 = vsub.f32 %v3709_v24, %v3885_v42 }
 0x314   : > { %v1980_v2 = vmul.f32 %v1947_v60, %v1947_v60  ;;  %v1981_v5 = vmul.f32 %v1948_v62, %v1948_v62  ;;  %v1953_v18 = vsub.f32 %v3718_v9, %v3885_v42  ;;  %v1954_v19 = vsub.f32 %v3727_v12, %v3885_v42 }
 0x315   : > { %v1982_v51 = vmul.f32 %v1949_v63, %v1949_v63  ;;  %v1983_v6 = vmul.f32 %v1950_v41, %v1950_v41  ;;  %v1984_v59 = vmul.f32 %v1951_v44, %v1951_v44  ;;  %v1985_v53 = vmul.f32 %v1952_v3, %v1952_v3 }
 0x316   : > { %v2012_v52 = vadd.f32 %v1981_v5, %v1980_v2  ;;  %v1955_v34 = vsub.f32 %v3735_v10, %v3885_v42  ;;  %v1986_v7 = vmul.f32 %v1953_v18, %v1953_v18  ;;  %v1956_v24 = vsub.f32 %v3743_v32, %v3885_v42 }
 0x317   : > { %v1987_v43 = vmul.f32 %v1954_v19, %v1954_v19  ;;  %v1957_v9 = vsub.f32 %v3751_v37, %v3885_v42  ;;  %v1958_v12 = vsub.f32 %v3759_v50, %v3885_v42  ;;  %v1959_v10 = vsub.f32 %v3767_v21, %v3885_v42 }
 0x318   : > { %v2013_v30 = vadd.f32 %v2012_v52, %v1982_v51  ;;  %v1988_v28 = vmul.f32 %v1955_v34, %v1955_v34  ;;  %v1989_v29 = vmul.f32 %v1956_v24, %v1956_v24  ;;  %v1960_v32 = vsub.f32 %v3774_v13, %v3885_v42 }
 0x319   : > { %v1990_v16 = vmul.f32 %v1957_v9, %v1957_v9  ;;  %v1991_v1 = vmul.f32 %v1958_v12, %v1958_v12  ;;  %v1961_v37 = vsub.f32 %v3780_v4, %v3885_v42  ;;  %v1992_v23 = vmul.f32 %v1959_v10, %v1959_v10 }
 0x31a   : > { %v2014_v14 = vadd.f32 %v2013_v30, %v1983_v6  ;;  %v1962_v50 = vsub.f32 %v3785_v57, %v3885_v42  ;;  %v1993_v22 = vmul.f32 %v1960_v32, %v1960_v32  ;;  %v1963_v21 = vsub.f32 %v3790_v49, %v3885_v42 }
 0x31b   : > { %v1994_v47 = vmul.f32 %v1961_v37, %v1961_v37  ;;  %v1964_v13 = vsub.f32 %v3795_v40, %v3885_v42  ;;  %v1965_v4 = vsub.f32 %v3800_v0, %v3885_v42  ;;  %v1966_v57 = vsub.f32 %v3805_v17, %v3885_v42 }
 0x31c   : > { %v2015_v15 = vadd.f32 %v2014_v14, %v1984_v59  ;;  %v1995_v62 = vmul.f32 %v1962_v50, %v1962_v50  ;;  %v1996_v2 = vmul.f32 %v1963_v21, %v1963_v21  ;;  %v1967_v49 = vsub.f32 %v3810_v38, %v3885_v42 }
 0x31d   : > { %v1997_v41 = vmul.f32 %v1964_v13, %v1964_v13  ;;  %v1998_v51 = vmul.f32 %v1965_v4, %v1965_v4  ;;  %v1968_v40 = vsub.f32 %v3818_v48, %v3885_v42  ;;  %v1999_v3 = vmul.f32 %v1966_v57, %v1966_v57 }
 0x31e   : > { %v2016_v8 = vadd.f32 %v2015_v15, %v1985_v53  ;;  %v1969_v0 = vsub.f32 %v3827_v33, %v3885_v42  ;;  %v2000_v30 = vmul.f32 %v1967_v49, %v1967_v49  ;;  %v1970_v17 = vsub.f32 %v3836_v11, %v3885_v42 }
 0x31f   : > { %v2001_v59 = vmul.f32 %v1968_v40, %v1968_v40  ;;  %v1971_v38 = vsub.f32 %v3845_v26, %v3885_v42  ;;  %v1972_v48 = vsub.f32 %v3854_v27, %v3885_v42  ;;  %v2008_v9 = vmul.f32 %v3895_v55, %v3895_v55 }
 0x320   : > { %v2017_v31 = vadd.f32 %v2016_v8, %v1986_v7  ;;  %v2002_v19 = vmul.f32 %v1969_v0, %v1969_v0  ;;  %v2003_v15 = vmul.f32 %v1970_v17, %v1970_v17  ;;  %v2009_v27 = vmul.f32 %v3898_v35, %v3898_v35 }
 0x321   : > { %v2004_v7 = vmul.f32 %v1971_v38, %v1971_v38  ;;  %v2005_v33 = vmul.f32 %v1972_v48, %v1972_v48 }
 0x322   : > { %v2018_v39 = vadd.f32 %v2017_v31, %v1987_v43  ;;  %v2006_v43 = vmul.f32 %v3889_v56, %v3889_v56  ;;  %v2007_v31 = vmul.f32 %v3892_v54, %v3892_v54  ;;  %v2011_v56 = vmul.f32 %v3904_v45, %v3904_v45 }
 0x324   : > { %v2019_v36 = vadd.f32 %v2018_v39, %v1988_v28  ;;  %v2010_v39 = vmul.f32 %v3901_v61, %v3901_v61 }
 0x326   : > { %v2020_v25 = vadd.f32 %v2019_v36, %v1989_v29 }
 0x328   : > { %v2021_v58 = vadd.f32 %v2020_v25, %v1990_v16 }
 0x32a   : > { %v2022_v20 = vadd.f32 %v2021_v58, %v1991_v1 }
 0x32c   : > { %v2023_v46 = vadd.f32 %v2022_v20, %v1992_v23 }
 0x32e   : > { %v2024_v60 = vadd.f32 %v2023_v46, %v1993_v22 }
 0x330   : > { %v2025_v63 = vadd.f32 %v2024_v60, %v1994_v47 }
 0x332   : > { %v2026_v5 = vadd.f32 %v2025_v63, %v1995_v62 }
 0x334   : > { %v2027_v44 = vadd.f32 %v2026_v5, %v1996_v2 }
 0x336   : > { %v2028_v52 = vadd.f32 %v2027_v44, %v1997_v41 }
 0x338   : > { %v2029_v6 = vadd.f32 %v2028_v52, %v1998_v51 }
 0x33a   : > { %v2030_v18 = vadd.f32 %v2029_v6, %v1999_v3 }
 0x33c   : > { %v2031_v14 = vadd.f32 %v2030_v18, %v2000_v30 }
 0x33e   : > { %v2032_v53 = vadd.f32 %v2031_v14, %v2001_v59 }
 0x340   : > { %v2033_v34 = vadd.f32 %v2032_v53, %v2002_v19 }
 0x342   : > { %v2034_v8 = vadd.f32 %v2033_v34, %v2003_v15 }
 0x344   : > { %v2035_v24 = vadd.f32 %v2034_v8, %v2004_v7 }
 0x346   : > { %v2036_v11 = vadd.f32 %v2035_v24, %v2005_v33 }
 0x348   : > { %v2037_v26 = vadd.f32 %v2036_v11, %v2006_v43 }
 0x34a   : > { %v2038_v28 = vadd.f32 %v2037_v26, %v2007_v31 }
 0x34c   : > { %v2039_v42 = vadd.f32 %v2038_v28, %v2008_v9 }
 0x34e   : > { %v2040_v12 = vadd.f32 %v2039_v42, %v2009_v27 }
 0x350   : > { %v2041_v29 = vadd.f32 %v2040_v12, %v2010_v39 }
 0x352   : > { %v2042_v36 = vadd.f32 %v2041_v29, %v2011_v56 }
 0x354   : > { %v2043_v54 = vrot.slane %v2042_v36, 4 }
 0x356   : > { %v2044_v10 = vadd.f32 %v2043_v54, %v2042_v36 }
 0x358   : > { %v2045_v16 = vrot.slane %v2044_v10, 2 }
 0x35a   : > { %v2046_v25 = vadd.f32 %v2045_v16, %v2044_v10 }
 0x35c   : > { %v2047_v32 = vrot.slane %v2046_v25, 1 }
 0x35e   : > { %v2048_v55 = vadd.f32 %v2047_v32, %v2046_v25 }
 0x360   : > { %2049 = vst [vmem:[%s307_s29] sm:$0x1] %v2048_v55 }
 0x361 PF: > { %s17_s23 = sadd.s32 1, %s2461_s23   ;;  %s4086_s21 = smov %s2457_s22 }
 0x362   : > { %p14_p5 = scmp.ge.s32.totalorder %s17_s23, 4   ;;  %s4087_s22 = smov %s4089_s24 }
 0x364   :  { %16 = sbr.rel (!%p14_p5) target bundleno = 2 (0x2), region = 98 }

</bundles_post_ra>
